<compile_context>
chip_gen: v7x
topology: tpu7x:2x2x1
jax: 0.10.0
libtpu: 0.0.40
codegen_flags: <defaults>
</compile_context>

<pallas_src>
import functools

import jax
import jax.numpy as jnp
import numpy as np
from jax.experimental import pallas as pl
from jax.experimental.pallas import tpu as pltpu

KS = 25       # ConvTranspose1d kernel size
STRIDE = 4
PAD = 11
TAPS = 7      # number of input positions feeding one 4-wide output block
HALO = 3      # input window is m-3 .. m+3


# ------------------------------ Pallas kernels ------------------------------

def _fc_relu_kernel(z_ref, w_ref, b_ref, o_ref):
    # z: (N, Din) f32, w: (Din, Dout) bf16, b: (1, Dout) f32 -> relu(z @ w + b)
    y = jnp.dot(z_ref[...].astype(jnp.bfloat16), w_ref[...],
                preferred_element_type=jnp.float32)
    y = jnp.maximum(y + b_ref[...], 0.0)
    o_ref[...] = y.astype(o_ref.dtype)


def _tconv_kernel(x_ref, w_ref, o_ref, xs_ref, *, L, act):
    # x_ref : (Cin, L + 2*HALO)  zero-padded bf16 input, one batch sample
    # w_ref : (4*Cout, 7*Cin)    merged polyphase weight (bf16)
    # o_ref : (4*Cout, L)        row q = p*Cout + co holds out[co, 4m + p]
    # xs_ref: (7*Cin, L)         VMEM scratch: tap-stacked ("im2col") operand
    cin = x_ref.shape[0]
    # Stage the 7 tap-shifted views once; they feed a single MXU matmul with
    # contraction K = 7*Cin (instead of 7 small-K matmuls + VPU adds).
    for d in range(TAPS):
        xs_ref[pl.ds(d * cin, cin), :] = x_ref[:, pl.ds(d, L)]
    acc = jnp.dot(w_ref[...], xs_ref[...],
                  preferred_element_type=jnp.float32)      # f32 accumulate
    if act == "relu":
        acc = jnp.maximum(acc, 0.0)
    else:  # "tanh"
        acc = jnp.tanh(acc)
    o_ref[...] = acc.astype(o_ref.dtype)


# ------------------------------ layer wrappers -------------------------------

def fc_relu(z, w_t, b2):
    n, din = z.shape
    dout = w_t.shape[1]
    return pl.pallas_call(
        _fc_relu_kernel,
        out_shape=jax.ShapeDtypeStruct((n, dout), jnp.bfloat16),
        grid=(1,),
        in_specs=[pl.BlockSpec((n, din), lambda i: (0, 0)),
                  pl.BlockSpec((din, dout), lambda i: (0, 0)),
                  pl.BlockSpec((1, dout), lambda i: (0, 0))],
        out_specs=pl.BlockSpec((n, dout), lambda i: (0, 0)),
    )(z, w_t, b2)


def tconv_layer(x, w_mat, act, out_dtype):
    # x: (N, Cin, L) bf16  ->  (N, Cout, 4*L) out_dtype
    n, cin, L = x.shape
    cout4 = w_mat.shape[0]
    cout = cout4 // STRIDE
    xp = jnp.pad(x, ((0, 0), (0, 0), (HALO, HALO)))          # halo for the taps
    lp = L + 2 * HALO
    out = pl.pallas_call(
        functools.partial(_tconv_kernel, L=L, act=act),
        out_shape=jax.ShapeDtypeStruct((n, cout4, L), out_dtype),
        grid=(n,),
        in_specs=[pl.BlockSpec((None, cin, lp), lambda b: (b, 0, 0)),
                  pl.BlockSpec((cout4, TAPS * cin), lambda b: (0, 0))],
        out_specs=pl.BlockSpec((None, cout4, L), lambda b: (b, 0, 0)),
        scratch_shapes=[pltpu.VMEM((TAPS * cin, L), jnp.bfloat16)],
        compiler_params=pltpu.CompilerParams(
            dimension_semantics=("parallel",),               # v7x: 2 TCs
            vmem_limit_bytes=32 * 1024 * 1024),
    )(xp, w_mat)
    # Interleave the 4 phases back into the time axis (cheap XLA glue,
    # <=0.5 MB per layer; fuses with the next layer's pad).
    out = out.reshape(n, STRIDE, cout, L)      # [n, p, co, m]
    out = jnp.transpose(out, (0, 2, 3, 1))     # [n, co, m, p]
    return out.reshape(n, cout, STRIDE * L)    # out[n, co, 4m + p]


# --------------------------- parameter preparation ---------------------------

def make_tconv_wmat(w):
    # w: torch ConvTranspose1d weight (Cin, Cout, KS)  ->  (4*Cout, 7*Cin) bf16
    cin, cout, k_sz = w.shape
    wm = np.zeros((STRIDE * cout, TAPS * cin), np.float32)
    for d in range(TAPS):
        for p in range(STRIDE):
            k = p + 23 - 4 * d   # kernel tap used by out[4m+p] from in[m+d-3]
            if 0 <= k < k_sz:
                wm[p * cout:(p + 1) * cout, d * cin:(d + 1) * cin] = w[:, :, k].T
    return jnp.asarray(wm, dtype=jnp.bfloat16)


def init_params(key, latent_size, model_size):
    m = model_size
    chans = [32 * m, 16 * m, 8 * m, 4 * m, 2 * m, m, 1]
    keys = jax.random.split(key, 2 + len(chans) - 1)
    fc_out = m * 512
    fc_w = (jax.random.normal(keys[0], (fc_out, latent_size), jnp.float32)
            / np.sqrt(latent_size))
    fc_b = 0.01 * jax.random.normal(keys[1], (fc_out,), jnp.float32)
    tconv_ws = []
    for i in range(len(chans) - 1):
        cin, cout = chans[i], chans[i + 1]
        w = (jax.random.normal(keys[2 + i], (cin, cout, KS), jnp.float32)
             / np.sqrt(cin * KS / STRIDE))
        tconv_ws.append(w)
    return fc_w, fc_b, tconv_ws


# --------------------------------- forward -----------------------------------

def generator_forward(z, fc_wt, fc_b2, wmats, *, model_size):
    m = model_size
    x = fc_relu(z, fc_wt, fc_b2)                 # Linear + ReLU (fused), bf16
    n = x.shape[0]
    x = x.reshape(n, 32 * m, 16)                 # view(-1, 32*m, 16)  (NCL)
    acts = ["relu"] * (len(wmats) - 1) + ["tanh"]
    dts = [jnp.bfloat16] * (len(wmats) - 1) + [jnp.float32]
    for wmat, act, dt in zip(wmats, acts, dts):
        x = tconv_layer(x, wmat, act, dt)        # tconv2..tconv7 (+act fused)
    return x                                     # (N, 1, 16 * 4**6) f32


# ------------------------------ numpy reference ------------------------------

def ref_tconv(x, w):
    n, cin, L = x.shape
    cout, k_sz = w.shape[1], w.shape[2]
    full = np.zeros((n, cout, (L - 1) * STRIDE + k_sz), np.float32)
    for k in range(k_sz):
        full[:, :, k:k + STRIDE * L:STRIDE] += np.einsum(
            'nil,io->nol', x, w[:, :, k])
    return full[:, :, PAD:PAD + STRIDE * L]   # crop pad; output_padding=1


def ref_forward(z, fc_w, fc_b, tconv_ws, model_size):
    m = model_size
    x = np.maximum(z @ fc_w.T + fc_b, 0.0)
    x = x.reshape(-1, 32 * m, 16)
    for w in tconv_ws[:-1]:
        x = np.maximum(ref_tconv(x, w), 0.0)
    return np.tanh(ref_tconv(x, tconv_ws[-1]))


# ----------------------------------- main ------------------------------------

if __name__ == "__main__":
    latent_size = 16
    model_size = 2
    batch = 2

    key = jax.random.PRNGKey(0)
    kz, kp = jax.random.split(key)
    z = jax.random.normal(kz, (batch, latent_size), jnp.float32)

    fc_w, fc_b, tconv_ws = init_params(kp, latent_size, model_size)
    wmats = [make_tconv_wmat(np.asarray(w)) for w in tconv_ws]
    fc_wt = jnp.asarray(np.asarray(fc_w).T, dtype=jnp.bfloat16)
    fc_b2 = fc_b[None, :]

    fwd = jax.jit(functools.partial(generator_forward, model_size=model_size))
    out = jax.block_until_ready(fwd(z, fc_wt, fc_b2, wmats))
    assert out.shape == (batch, 1, 16 * 4 ** 6), out.shape   # (2, 1, 65536)

    ref = ref_forward(np.asarray(z), np.asarray(fc_w), np.asarray(fc_b),
                      [np.asarray(w) for w in tconv_ws], model_size)
    # bf16 MXU operands + bf16 inter-layer activations -> loosened tolerance.
    np.testing.assert_allclose(np.asarray(out, np.float32), ref,
                               atol=3e-2, rtol=3e-2)
    print("KERNEL_OK")
</pallas_src>

<mosaic_0001>
module attributes {stable_mosaic.version = 11 : i64} {
  func.func @_fc_relu_kernel(%arg0: i32, %arg1: memref<2x16xf32, #tpu.memory_space<vmem>>, %arg2: memref<16x1024xbf16, #tpu.memory_space<vmem>>, %arg3: memref<1x1024xf32, #tpu.memory_space<vmem>>, %arg4: memref<2x1024xbf16, #tpu.memory_space<vmem>>) attributes {dimension_semantics = [#tpu.dimension_semantics<arbitrary>], iteration_bounds = array<i64: 1>, scalar_prefetch = 0 : i64, scratch_operands = 0 : i64, tpu.core_type = #tpu.core_type<tc>, window_params = [{pipeline_mode = #tpu.pipeline_mode<synchronous>, transform_indices = @transform_0, window_bounds = array<i64: 2, 16>}, {pipeline_mode = #tpu.pipeline_mode<synchronous>, transform_indices = @transform_1, window_bounds = array<i64: 16, 1024>}, {pipeline_mode = #tpu.pipeline_mode<synchronous>, transform_indices = @transform_2, window_bounds = array<i64: 1, 1024>}, {pipeline_mode = #tpu.pipeline_mode<synchronous>, transform_indices = @transform_3, window_bounds = array<i64: 2, 1024>}]} {
    %c0 = arith.constant 0 : index
    %c0_0 = arith.constant 0 : index
    %0 = vector.load %arg1[%c0, %c0_0] : memref<2x16xf32, #tpu.memory_space<vmem>>, vector<2x16xf32>
    %1 = arith.truncf %0 : vector<2x16xf32> to vector<2x16xbf16>
    %c0_1 = arith.constant 0 : index
    %c0_2 = arith.constant 0 : index
    %2 = vector.load %arg2[%c0_1, %c0_2] : memref<16x1024xbf16, #tpu.memory_space<vmem>>, vector<16x1024xbf16>
    %cst = arith.constant dense<0.000000e+00> : vector<2x1024xf32>
    %3 = tpu.matmul %1, %2, %cst {dimension_numbers = #tpu.dot_dimension_numbers<[1], [0], [0], [1], [0, 0, 1, 1], [], []>} : vector<2x16xbf16>, vector<16x1024xbf16>, vector<2x1024xf32> -> vector<2x1024xf32>
    %c0_3 = arith.constant 0 : index
    %c0_4 = arith.constant 0 : index
    %4 = vector.load %arg3[%c0_3, %c0_4] : memref<1x1024xf32, #tpu.memory_space<vmem>>, vector<1x1024xf32>
    %5 = vector.broadcast %4 : vector<1x1024xf32> to vector<2x1024xf32>
    %6 = arith.addf %3, %5 : vector<2x1024xf32>
    %cst_5 = arith.constant 0.000000e+00 : f32
    %7 = vector.broadcast %cst_5 : f32 to vector<2x1024xf32>
    %8 = arith.maximumf %6, %7 : vector<2x1024xf32>
    %9 = arith.truncf %8 : vector<2x1024xf32> to vector<2x1024xbf16>
    %c0_6 = arith.constant 0 : index
    %c0_7 = arith.constant 0 : index
    %10 = vector.load %arg4[%c0_6, %c0_7] : memref<2x1024xbf16, #tpu.memory_space<vmem>>, vector<2x1024xbf16>
    tpu.vector_store %arg4[%c0_6, %c0_7], %9 {strides = array<i32>} : memref<2x1024xbf16, #tpu.memory_space<vmem>>, vector<2x1024xbf16>,
    return
  }
  func.func @transform_0(%arg0: i32) -> (i32, i32) {
    %c0_i32 = arith.constant 0 : i32
    %c0_i32_0 = arith.constant 0 : i32
    %c0_i32_1 = arith.constant 0 : i32
    return %c0_i32, %c0_i32_0 : i32, i32
  }
  func.func @transform_1(%arg0: i32) -> (i32, i32) {
    %c0_i32 = arith.constant 0 : i32
    %c0_i32_0 = arith.constant 0 : i32
    %c0_i32_1 = arith.constant 0 : i32
    return %c0_i32, %c0_i32_0 : i32, i32
  }
  func.func @transform_2(%arg0: i32) -> (i32, i32) {
    %c0_i32 = arith.constant 0 : i32
    %c0_i32_0 = arith.constant 0 : i32
    %c0_i32_1 = arith.constant 0 : i32
    return %c0_i32, %c0_i32_0 : i32, i32
  }
  func.func @transform_3(%arg0: i32) -> (i32, i32) {
    %c0_i32 = arith.constant 0 : i32
    %c0_i32_0 = arith.constant 0 : i32
    %c0_i32_1 = arith.constant 0 : i32
    return %c0_i32, %c0_i32_0 : i32, i32
  }
}

module attributes {stable_mosaic.version = 11 : i64} {
  func.func @_tconv_kernel(%arg0: i32, %arg1: memref<1x64x22xbf16, #tpu.memory_space<vmem>>, %arg2: memref<128x448xbf16, #tpu.memory_space<vmem>>, %arg3: memref<1x128x16xbf16, #tpu.memory_space<vmem>>, %arg4: memref<448x16xbf16, #tpu.memory_space<vmem>>) attributes {dimension_semantics = [#tpu.dimension_semantics<parallel>], iteration_bounds = array<i64: 2>, scalar_prefetch = 0 : i64, scratch_operands = 1 : i64, tpu.core_type = #tpu.core_type<tc>, window_params = [{transform_indices = @transform_0, window_bounds = array<i64: 1, 64, 22>}, {pipeline_mode = #tpu.pipeline_mode<synchronous>, transform_indices = @transform_1, window_bounds = array<i64: 128, 448>}, {transform_indices = @transform_2, window_bounds = array<i64: 1, 128, 16>}]} {
    %c0 = arith.constant 0 : index
    %c0_0 = arith.constant 0 : index
    %c0_1 = arith.constant 0 : index
    %0 = vector.load %arg1[%c0, %c0_0, %c0_1] : memref<1x64x22xbf16, #tpu.memory_space<vmem>>, vector<1x64x16xbf16>
    %1 = vector.shape_cast %0 : vector<1x64x16xbf16> to vector<64x16xbf16>
    %c0_2 = arith.constant 0 : index
    %c0_3 = arith.constant 0 : index
    %2 = vector.load %arg4[%c0_2, %c0_3] : memref<448x16xbf16, #tpu.memory_space<vmem>>, vector<64x16xbf16>
    tpu.vector_store %arg4[%c0_2, %c0_3], %1 {strides = array<i32>} : memref<448x16xbf16, #tpu.memory_space<vmem>>, vector<64x16xbf16>,
    %c0_4 = arith.constant 0 : index
    %c0_5 = arith.constant 0 : index
    %c1 = arith.constant 1 : index
    %3 = vector.load %arg1[%c0_4, %c0_5, %c1] : memref<1x64x22xbf16, #tpu.memory_space<vmem>>, vector<1x64x16xbf16>
    %4 = vector.shape_cast %3 : vector<1x64x16xbf16> to vector<64x16xbf16>
    %c64 = arith.constant 64 : index
    %c0_6 = arith.constant 0 : index
    %5 = vector.load %arg4[%c64, %c0_6] : memref<448x16xbf16, #tpu.memory_space<vmem>>, vector<64x16xbf16>
    tpu.vector_store %arg4[%c64, %c0_6], %4 {strides = array<i32>} : memref<448x16xbf16, #tpu.memory_space<vmem>>, vector<64x16xbf16>,
    %c0_7 = arith.constant 0 : index
    %c0_8 = arith.constant 0 : index
    %c2 = arith.constant 2 : index
    %6 = vector.load %arg1[%c0_7, %c0_8, %c2] : memref<1x64x22xbf16, #tpu.memory_space<vmem>>, vector<1x64x16xbf16>
    %7 = vector.shape_cast %6 : vector<1x64x16xbf16> to vector<64x16xbf16>
    %c128 = arith.constant 128 : index
    %c0_9 = arith.constant 0 : index
    %8 = vector.load %arg4[%c128, %c0_9] : memref<448x16xbf16, #tpu.memory_space<vmem>>, vector<64x16xbf16>
    tpu.vector_store %arg4[%c128, %c0_9], %7 {strides = array<i32>} : memref<448x16xbf16, #tpu.memory_space<vmem>>, vector<64x16xbf16>,
    %c0_10 = arith.constant 0 : index
    %c0_11 = arith.constant 0 : index
    %c3 = arith.constant 3 : index
    %9 = vector.load %arg1[%c0_10, %c0_11, %c3] : memref<1x64x22xbf16, #tpu.memory_space<vmem>>, vector<1x64x16xbf16>
    %10 = vector.shape_cast %9 : vector<1x64x16xbf16> to vector<64x16xbf16>
    %c192 = arith.constant 192 : index
    %c0_12 = arith.constant 0 : index
    %11 = vector.load %arg4[%c192, %c0_12] : memref<448x16xbf16, #tpu.memory_space<vmem>>, vector<64x16xbf16>
    tpu.vector_store %arg4[%c192, %c0_12], %10 {strides = array<i32>} : memref<448x16xbf16, #tpu.memory_space<vmem>>, vector<64x16xbf16>,
    %c0_13 = arith.constant 0 : index
    %c0_14 = arith.constant 0 : index
    %c4 = arith.constant 4 : index
    %12 = vector.load %arg1[%c0_13, %c0_14, %c4] : memref<1x64x22xbf16, #tpu.memory_space<vmem>>, vector<1x64x16xbf16>
    %13 = vector.shape_cast %12 : vector<1x64x16xbf16> to vector<64x16xbf16>
    %c256 = arith.constant 256 : index
    %c0_15 = arith.constant 0 : index
    %14 = vector.load %arg4[%c256, %c0_15] : memref<448x16xbf16, #tpu.memory_space<vmem>>, vector<64x16xbf16>
    tpu.vector_store %arg4[%c256, %c0_15], %13 {strides = array<i32>} : memref<448x16xbf16, #tpu.memory_space<vmem>>, vector<64x16xbf16>,
    %c0_16 = arith.constant 0 : index
    %c0_17 = arith.constant 0 : index
    %c5 = arith.constant 5 : index
    %15 = vector.load %arg1[%c0_16, %c0_17, %c5] : memref<1x64x22xbf16, #tpu.memory_space<vmem>>, vector<1x64x16xbf16>
    %16 = vector.shape_cast %15 : vector<1x64x16xbf16> to vector<64x16xbf16>
    %c320 = arith.constant 320 : index
    %c0_18 = arith.constant 0 : index
    %17 = vector.load %arg4[%c320, %c0_18] : memref<448x16xbf16, #tpu.memory_space<vmem>>, vector<64x16xbf16>
    tpu.vector_store %arg4[%c320, %c0_18], %16 {strides = array<i32>} : memref<448x16xbf16, #tpu.memory_space<vmem>>, vector<64x16xbf16>,
    %c0_19 = arith.constant 0 : index
    %c0_20 = arith.constant 0 : index
    %c6 = arith.constant 6 : index
    %18 = vector.load %arg1[%c0_19, %c0_20, %c6] : memref<1x64x22xbf16, #tpu.memory_space<vmem>>, vector<1x64x16xbf16>
    %19 = vector.shape_cast %18 : vector<1x64x16xbf16> to vector<64x16xbf16>
    %c384 = arith.constant 384 : index
    %c0_21 = arith.constant 0 : index
    %20 = vector.load %arg4[%c384, %c0_21] : memref<448x16xbf16, #tpu.memory_space<vmem>>, vector<64x16xbf16>
    tpu.vector_store %arg4[%c384, %c0_21], %19 {strides = array<i32>} : memref<448x16xbf16, #tpu.memory_space<vmem>>, vector<64x16xbf16>,
    %c0_22 = arith.constant 0 : index
    %c0_23 = arith.constant 0 : index
    %21 = vector.load %arg2[%c0_22, %c0_23] : memref<128x448xbf16, #tpu.memory_space<vmem>>, vector<128x448xbf16>
    %c0_24 = arith.constant 0 : index
    %c0_25 = arith.constant 0 : index
    %22 = vector.load %arg4[%c0_24, %c0_25] : memref<448x16xbf16, #tpu.memory_space<vmem>>, vector<448x16xbf16>
    %cst = arith.constant dense<0.000000e+00> : vector<128x16xf32>
    %23 = tpu.matmul %21, %22, %cst {dimension_numbers = #tpu.dot_dimension_numbers<[1], [0], [0], [1], [0, 0, 1, 1], [], []>} : vector<128x448xbf16>, vector<448x16xbf16>, vector<128x16xf32> -> vector<128x16xf32>
    %cst_26 = arith.constant 0.000000e+00 : f32
    %24 = vector.broadcast %cst_26 : f32 to vector<128x16xf32>
    %25 = arith.maximumf %23, %24 : vector<128x16xf32>
    %26 = arith.truncf %25 : vector<128x16xf32> to vector<128x16xbf16>
    %c0_27 = arith.constant 0 : index
    %c0_28 = arith.constant 0 : index
    %c0_29 = arith.constant 0 : index
    %27 = vector.load %arg3[%c0_27, %c0_28, %c0_29] : memref<1x128x16xbf16, #tpu.memory_space<vmem>>, vector<1x128x16xbf16>
    %28 = vector.shape_cast %27 : vector<1x128x16xbf16> to vector<128x16xbf16>
    %29 = vector.shape_cast %26 : vector<128x16xbf16> to vector<1x128x16xbf16>
    tpu.vector_store %arg3[%c0_27, %c0_28, %c0_29], %29 {strides = array<i32>} : memref<1x128x16xbf16, #tpu.memory_space<vmem>>, vector<1x128x16xbf16>,
    return
  }
  func.func @transform_0(%arg0: i32) -> (i32, i32, i32) {
    %c0_i32 = arith.constant 0 : i32
    %c0_i32_0 = arith.constant 0 : i32
    %c0_i32_1 = arith.constant 0 : i32
    return %arg0, %c0_i32, %c0_i32_0 : i32, i32, i32
  }
  func.func @transform_1(%arg0: i32) -> (i32, i32) {
    %c0_i32 = arith.constant 0 : i32
    %c0_i32_0 = arith.constant 0 : i32
    %c0_i32_1 = arith.constant 0 : i32
    return %c0_i32, %c0_i32_0 : i32, i32
  }
  func.func @transform_2(%arg0: i32) -> (i32, i32, i32) {
    %c0_i32 = arith.constant 0 : i32
    %c0_i32_0 = arith.constant 0 : i32
    %c0_i32_1 = arith.constant 0 : i32
    return %arg0, %c0_i32, %c0_i32_0 : i32, i32, i32
  }
}

module attributes {stable_mosaic.version = 11 : i64} {
  func.func @_tconv_kernel(%arg0: i32, %arg1: memref<1x32x70xbf16, #tpu.memory_space<vmem>>, %arg2: memref<64x224xbf16, #tpu.memory_space<vmem>>, %arg3: memref<1x64x64xbf16, #tpu.memory_space<vmem>>, %arg4: memref<224x64xbf16, #tpu.memory_space<vmem>>) attributes {dimension_semantics = [#tpu.dimension_semantics<parallel>], iteration_bounds = array<i64: 2>, scalar_prefetch = 0 : i64, scratch_operands = 1 : i64, tpu.core_type = #tpu.core_type<tc>, window_params = [{transform_indices = @transform_0, window_bounds = array<i64: 1, 32, 70>}, {pipeline_mode = #tpu.pipeline_mode<synchronous>, transform_indices = @transform_1, window_bounds = array<i64: 64, 224>}, {transform_indices = @transform_2, window_bounds = array<i64: 1, 64, 64>}]} {
    %c0 = arith.constant 0 : index
    %c0_0 = arith.constant 0 : index
    %c0_1 = arith.constant 0 : index
    %0 = vector.load %arg1[%c0, %c0_0, %c0_1] : memref<1x32x70xbf16, #tpu.memory_space<vmem>>, vector<1x32x64xbf16>
    %1 = vector.shape_cast %0 : vector<1x32x64xbf16> to vector<32x64xbf16>
    %c0_2 = arith.constant 0 : index
    %c0_3 = arith.constant 0 : index
    %2 = vector.load %arg4[%c0_2, %c0_3] : memref<224x64xbf16, #tpu.memory_space<vmem>>, vector<32x64xbf16>
    tpu.vector_store %arg4[%c0_2, %c0_3], %1 {strides = array<i32>} : memref<224x64xbf16, #tpu.memory_space<vmem>>, vector<32x64xbf16>,
    %c0_4 = arith.constant 0 : index
    %c0_5 = arith.constant 0 : index
    %c1 = arith.constant 1 : index
    %3 = vector.load %arg1[%c0_4, %c0_5, %c1] : memref<1x32x70xbf16, #tpu.memory_space<vmem>>, vector<1x32x64xbf16>
    %4 = vector.shape_cast %3 : vector<1x32x64xbf16> to vector<32x64xbf16>
    %c32 = arith.constant 32 : index
    %c0_6 = arith.constant 0 : index
    %5 = vector.load %arg4[%c32, %c0_6] : memref<224x64xbf16, #tpu.memory_space<vmem>>, vector<32x64xbf16>
    tpu.vector_store %arg4[%c32, %c0_6], %4 {strides = array<i32>} : memref<224x64xbf16, #tpu.memory_space<vmem>>, vector<32x64xbf16>,
    %c0_7 = arith.constant 0 : index
    %c0_8 = arith.constant 0 : index
    %c2 = arith.constant 2 : index
    %6 = vector.load %arg1[%c0_7, %c0_8, %c2] : memref<1x32x70xbf16, #tpu.memory_space<vmem>>, vector<1x32x64xbf16>
    %7 = vector.shape_cast %6 : vector<1x32x64xbf16> to vector<32x64xbf16>
    %c64 = arith.constant 64 : index
    %c0_9 = arith.constant 0 : index
    %8 = vector.load %arg4[%c64, %c0_9] : memref<224x64xbf16, #tpu.memory_space<vmem>>, vector<32x64xbf16>
    tpu.vector_store %arg4[%c64, %c0_9], %7 {strides = array<i32>} : memref<224x64xbf16, #tpu.memory_space<vmem>>, vector<32x64xbf16>,
    %c0_10 = arith.constant 0 : index
    %c0_11 = arith.constant 0 : index
    %c3 = arith.constant 3 : index
    %9 = vector.load %arg1[%c0_10, %c0_11, %c3] : memref<1x32x70xbf16, #tpu.memory_space<vmem>>, vector<1x32x64xbf16>
    %10 = vector.shape_cast %9 : vector<1x32x64xbf16> to vector<32x64xbf16>
    %c96 = arith.constant 96 : index
    %c0_12 = arith.constant 0 : index
    %11 = vector.load %arg4[%c96, %c0_12] : memref<224x64xbf16, #tpu.memory_space<vmem>>, vector<32x64xbf16>
    tpu.vector_store %arg4[%c96, %c0_12], %10 {strides = array<i32>} : memref<224x64xbf16, #tpu.memory_space<vmem>>, vector<32x64xbf16>,
    %c0_13 = arith.constant 0 : index
    %c0_14 = arith.constant 0 : index
    %c4 = arith.constant 4 : index
    %12 = vector.load %arg1[%c0_13, %c0_14, %c4] : memref<1x32x70xbf16, #tpu.memory_space<vmem>>, vector<1x32x64xbf16>
    %13 = vector.shape_cast %12 : vector<1x32x64xbf16> to vector<32x64xbf16>
    %c128 = arith.constant 128 : index
    %c0_15 = arith.constant 0 : index
    %14 = vector.load %arg4[%c128, %c0_15] : memref<224x64xbf16, #tpu.memory_space<vmem>>, vector<32x64xbf16>
    tpu.vector_store %arg4[%c128, %c0_15], %13 {strides = array<i32>} : memref<224x64xbf16, #tpu.memory_space<vmem>>, vector<32x64xbf16>,
    %c0_16 = arith.constant 0 : index
    %c0_17 = arith.constant 0 : index
    %c5 = arith.constant 5 : index
    %15 = vector.load %arg1[%c0_16, %c0_17, %c5] : memref<1x32x70xbf16, #tpu.memory_space<vmem>>, vector<1x32x64xbf16>
    %16 = vector.shape_cast %15 : vector<1x32x64xbf16> to vector<32x64xbf16>
    %c160 = arith.constant 160 : index
    %c0_18 = arith.constant 0 : index
    %17 = vector.load %arg4[%c160, %c0_18] : memref<224x64xbf16, #tpu.memory_space<vmem>>, vector<32x64xbf16>
    tpu.vector_store %arg4[%c160, %c0_18], %16 {strides = array<i32>} : memref<224x64xbf16, #tpu.memory_space<vmem>>, vector<32x64xbf16>,
    %c0_19 = arith.constant 0 : index
    %c0_20 = arith.constant 0 : index
    %c6 = arith.constant 6 : index
    %18 = vector.load %arg1[%c0_19, %c0_20, %c6] : memref<1x32x70xbf16, #tpu.memory_space<vmem>>, vector<1x32x64xbf16>
    %19 = vector.shape_cast %18 : vector<1x32x64xbf16> to vector<32x64xbf16>
    %c192 = arith.constant 192 : index
    %c0_21 = arith.constant 0 : index
    %20 = vector.load %arg4[%c192, %c0_21] : memref<224x64xbf16, #tpu.memory_space<vmem>>, vector<32x64xbf16>
    tpu.vector_store %arg4[%c192, %c0_21], %19 {strides = array<i32>} : memref<224x64xbf16, #tpu.memory_space<vmem>>, vector<32x64xbf16>,
    %c0_22 = arith.constant 0 : index
    %c0_23 = arith.constant 0 : index
    %21 = vector.load %arg2[%c0_22, %c0_23] : memref<64x224xbf16, #tpu.memory_space<vmem>>, vector<64x224xbf16>
    %c0_24 = arith.constant 0 : index
    %c0_25 = arith.constant 0 : index
    %22 = vector.load %arg4[%c0_24, %c0_25] : memref<224x64xbf16, #tpu.memory_space<vmem>>, vector<224x64xbf16>
    %cst = arith.constant dense<0.000000e+00> : vector<64x64xf32>
    %23 = tpu.matmul %21, %22, %cst {dimension_numbers = #tpu.dot_dimension_numbers<[1], [0], [0], [1], [0, 0, 1, 1], [], []>} : vector<64x224xbf16>, vector<224x64xbf16>, vector<64x64xf32> -> vector<64x64xf32>
    %cst_26 = arith.constant 0.000000e+00 : f32
    %24 = vector.broadcast %cst_26 : f32 to vector<64x64xf32>
    %25 = arith.maximumf %23, %24 : vector<64x64xf32>
    %26 = arith.truncf %25 : vector<64x64xf32> to vector<64x64xbf16>
    %c0_27 = arith.constant 0 : index
    %c0_28 = arith.constant 0 : index
    %c0_29 = arith.constant 0 : index
    %27 = vector.load %arg3[%c0_27, %c0_28, %c0_29] : memref<1x64x64xbf16, #tpu.memory_space<vmem>>, vector<1x64x64xbf16>
    %28 = vector.shape_cast %27 : vector<1x64x64xbf16> to vector<64x64xbf16>
    %29 = vector.shape_cast %26 : vector<64x64xbf16> to vector<1x64x64xbf16>
    tpu.vector_store %arg3[%c0_27, %c0_28, %c0_29], %29 {strides = array<i32>} : memref<1x64x64xbf16, #tpu.memory_space<vmem>>, vector<1x64x64xbf16>,
    return
  }
  func.func @transform_0(%arg0: i32) -> (i32, i32, i32) {
    %c0_i32 = arith.constant 0 : i32
    %c0_i32_0 = arith.constant 0 : i32
    %c0_i32_1 = arith.constant 0 : i32
    return %arg0, %c0_i32, %c0_i32_0 : i32, i32, i32
  }
  func.func @transform_1(%arg0: i32) -> (i32, i32) {
    %c0_i32 = arith.constant 0 : i32
    %c0_i32_0 = arith.constant 0 : i32
    %c0_i32_1 = arith.constant 0 : i32
    return %c0_i32, %c0_i32_0 : i32, i32
  }
  func.func @transform_2(%arg0: i32) -> (i32, i32, i32) {
    %c0_i32 = arith.constant 0 : i32
    %c0_i32_0 = arith.constant 0 : i32
    %c0_i32_1 = arith.constant 0 : i32
    return %arg0, %c0_i32, %c0_i32_0 : i32, i32, i32
  }
}

module attributes {stable_mosaic.version = 11 : i64} {
  func.func @_tconv_kernel(%arg0: i32, %arg1: memref<1x16x262xbf16, #tpu.memory_space<vmem>>, %arg2: memref<32x112xbf16, #tpu.memory_space<vmem>>, %arg3: memref<1x32x256xbf16, #tpu.memory_space<vmem>>, %arg4: memref<112x256xbf16, #tpu.memory_space<vmem>>) attributes {dimension_semantics = [#tpu.dimension_semantics<parallel>], iteration_bounds = array<i64: 2>, scalar_prefetch = 0 : i64, scratch_operands = 1 : i64, tpu.core_type = #tpu.core_type<tc>, window_params = [{transform_indices = @transform_0, window_bounds = array<i64: 1, 16, 262>}, {pipeline_mode = #tpu.pipeline_mode<synchronous>, transform_indices = @transform_1, window_bounds = array<i64: 32, 112>}, {transform_indices = @transform_2, window_bounds = array<i64: 1, 32, 256>}]} {
    %c0 = arith.constant 0 : index
    %c0_0 = arith.constant 0 : index
    %c0_1 = arith.constant 0 : index
    %0 = vector.load %arg1[%c0, %c0_0, %c0_1] : memref<1x16x262xbf16, #tpu.memory_space<vmem>>, vector<1x16x256xbf16>
    %1 = vector.shape_cast %0 : vector<1x16x256xbf16> to vector<16x256xbf16>
    %c0_2 = arith.constant 0 : index
    %c0_3 = arith.constant 0 : index
    %2 = vector.load %arg4[%c0_2, %c0_3] : memref<112x256xbf16, #tpu.memory_space<vmem>>, vector<16x256xbf16>
    tpu.vector_store %arg4[%c0_2, %c0_3], %1 {strides = array<i32>} : memref<112x256xbf16, #tpu.memory_space<vmem>>, vector<16x256xbf16>,
    %c0_4 = arith.constant 0 : index
    %c0_5 = arith.constant 0 : index
    %c1 = arith.constant 1 : index
    %3 = vector.load %arg1[%c0_4, %c0_5, %c1] : memref<1x16x262xbf16, #tpu.memory_space<vmem>>, vector<1x16x256xbf16>
    %4 = vector.shape_cast %3 : vector<1x16x256xbf16> to vector<16x256xbf16>
    %c16 = arith.constant 16 : index
    %c0_6 = arith.constant 0 : index
    %5 = vector.load %arg4[%c16, %c0_6] : memref<112x256xbf16, #tpu.memory_space<vmem>>, vector<16x256xbf16>
    tpu.vector_store %arg4[%c16, %c0_6], %4 {strides = array<i32>} : memref<112x256xbf16, #tpu.memory_space<vmem>>, vector<16x256xbf16>,
    %c0_7 = arith.constant 0 : index
    %c0_8 = arith.constant 0 : index
    %c2 = arith.constant 2 : index
    %6 = vector.load %arg1[%c0_7, %c0_8, %c2] : memref<1x16x262xbf16, #tpu.memory_space<vmem>>, vector<1x16x256xbf16>
    %7 = vector.shape_cast %6 : vector<1x16x256xbf16> to vector<16x256xbf16>
    %c32 = arith.constant 32 : index
    %c0_9 = arith.constant 0 : index
    %8 = vector.load %arg4[%c32, %c0_9] : memref<112x256xbf16, #tpu.memory_space<vmem>>, vector<16x256xbf16>
    tpu.vector_store %arg4[%c32, %c0_9], %7 {strides = array<i32>} : memref<112x256xbf16, #tpu.memory_space<vmem>>, vector<16x256xbf16>,
    %c0_10 = arith.constant 0 : index
    %c0_11 = arith.constant 0 : index
    %c3 = arith.constant 3 : index
    %9 = vector.load %arg1[%c0_10, %c0_11, %c3] : memref<1x16x262xbf16, #tpu.memory_space<vmem>>, vector<1x16x256xbf16>
    %10 = vector.shape_cast %9 : vector<1x16x256xbf16> to vector<16x256xbf16>
    %c48 = arith.constant 48 : index
    %c0_12 = arith.constant 0 : index
    %11 = vector.load %arg4[%c48, %c0_12] : memref<112x256xbf16, #tpu.memory_space<vmem>>, vector<16x256xbf16>
    tpu.vector_store %arg4[%c48, %c0_12], %10 {strides = array<i32>} : memref<112x256xbf16, #tpu.memory_space<vmem>>, vector<16x256xbf16>,
    %c0_13 = arith.constant 0 : index
    %c0_14 = arith.constant 0 : index
    %c4 = arith.constant 4 : index
    %12 = vector.load %arg1[%c0_13, %c0_14, %c4] : memref<1x16x262xbf16, #tpu.memory_space<vmem>>, vector<1x16x256xbf16>
    %13 = vector.shape_cast %12 : vector<1x16x256xbf16> to vector<16x256xbf16>
    %c64 = arith.constant 64 : index
    %c0_15 = arith.constant 0 : index
    %14 = vector.load %arg4[%c64, %c0_15] : memref<112x256xbf16, #tpu.memory_space<vmem>>, vector<16x256xbf16>
    tpu.vector_store %arg4[%c64, %c0_15], %13 {strides = array<i32>} : memref<112x256xbf16, #tpu.memory_space<vmem>>, vector<16x256xbf16>,
    %c0_16 = arith.constant 0 : index
    %c0_17 = arith.constant 0 : index
    %c5 = arith.constant 5 : index
    %15 = vector.load %arg1[%c0_16, %c0_17, %c5] : memref<1x16x262xbf16, #tpu.memory_space<vmem>>, vector<1x16x256xbf16>
    %16 = vector.shape_cast %15 : vector<1x16x256xbf16> to vector<16x256xbf16>
    %c80 = arith.constant 80 : index
    %c0_18 = arith.constant 0 : index
    %17 = vector.load %arg4[%c80, %c0_18] : memref<112x256xbf16, #tpu.memory_space<vmem>>, vector<16x256xbf16>
    tpu.vector_store %arg4[%c80, %c0_18], %16 {strides = array<i32>} : memref<112x256xbf16, #tpu.memory_space<vmem>>, vector<16x256xbf16>,
    %c0_19 = arith.constant 0 : index
    %c0_20 = arith.constant 0 : index
    %c6 = arith.constant 6 : index
    %18 = vector.load %arg1[%c0_19, %c0_20, %c6] : memref<1x16x262xbf16, #tpu.memory_space<vmem>>, vector<1x16x256xbf16>
    %19 = vector.shape_cast %18 : vector<1x16x256xbf16> to vector<16x256xbf16>
    %c96 = arith.constant 96 : index
    %c0_21 = arith.constant 0 : index
    %20 = vector.load %arg4[%c96, %c0_21] : memref<112x256xbf16, #tpu.memory_space<vmem>>, vector<16x256xbf16>
    tpu.vector_store %arg4[%c96, %c0_21], %19 {strides = array<i32>} : memref<112x256xbf16, #tpu.memory_space<vmem>>, vector<16x256xbf16>,
    %c0_22 = arith.constant 0 : index
    %c0_23 = arith.constant 0 : index
    %21 = vector.load %arg2[%c0_22, %c0_23] : memref<32x112xbf16, #tpu.memory_space<vmem>>, vector<32x112xbf16>
    %c0_24 = arith.constant 0 : index
    %c0_25 = arith.constant 0 : index
    %22 = vector.load %arg4[%c0_24, %c0_25] : memref<112x256xbf16, #tpu.memory_space<vmem>>, vector<112x256xbf16>
    %cst = arith.constant dense<0.000000e+00> : vector<32x256xf32>
    %23 = tpu.matmul %21, %22, %cst {dimension_numbers = #tpu.dot_dimension_numbers<[1], [0], [0], [1], [0, 0, 1, 1], [], []>} : vector<32x112xbf16>, vector<112x256xbf16>, vector<32x256xf32> -> vector<32x256xf32>
    %cst_26 = arith.constant 0.000000e+00 : f32
    %24 = vector.broadcast %cst_26 : f32 to vector<32x256xf32>
    %25 = arith.maximumf %23, %24 : vector<32x256xf32>
    %26 = arith.truncf %25 : vector<32x256xf32> to vector<32x256xbf16>
    %c0_27 = arith.constant 0 : index
    %c0_28 = arith.constant 0 : index
    %c0_29 = arith.constant 0 : index
    %27 = vector.load %arg3[%c0_27, %c0_28, %c0_29] : memref<1x32x256xbf16, #tpu.memory_space<vmem>>, vector<1x32x256xbf16>
    %28 = vector.shape_cast %27 : vector<1x32x256xbf16> to vector<32x256xbf16>
    %29 = vector.shape_cast %26 : vector<32x256xbf16> to vector<1x32x256xbf16>
    tpu.vector_store %arg3[%c0_27, %c0_28, %c0_29], %29 {strides = array<i32>} : memref<1x32x256xbf16, #tpu.memory_space<vmem>>, vector<1x32x256xbf16>,
    return
  }
  func.func @transform_0(%arg0: i32) -> (i32, i32, i32) {
    %c0_i32 = arith.constant 0 : i32
    %c0_i32_0 = arith.constant 0 : i32
    %c0_i32_1 = arith.constant 0 : i32
    return %arg0, %c0_i32, %c0_i32_0 : i32, i32, i32
  }
  func.func @transform_1(%arg0: i32) -> (i32, i32) {
    %c0_i32 = arith.constant 0 : i32
    %c0_i32_0 = arith.constant 0 : i32
    %c0_i32_1 = arith.constant 0 : i32
    return %c0_i32, %c0_i32_0 : i32, i32
  }
  func.func @transform_2(%arg0: i32) -> (i32, i32, i32) {
    %c0_i32 = arith.constant 0 : i32
    %c0_i32_0 = arith.constant 0 : i32
    %c0_i32_1 = arith.constant 0 : i32
    return %arg0, %c0_i32, %c0_i32_0 : i32, i32, i32
  }
}

module attributes {stable_mosaic.version = 11 : i64} {
  func.func @_tconv_kernel(%arg0: i32, %arg1: memref<1x8x1030xbf16, #tpu.memory_space<vmem>>, %arg2: memref<16x56xbf16, #tpu.memory_space<vmem>>, %arg3: memref<1x16x1024xbf16, #tpu.memory_space<vmem>>, %arg4: memref<56x1024xbf16, #tpu.memory_space<vmem>>) attributes {dimension_semantics = [#tpu.dimension_semantics<parallel>], iteration_bounds = array<i64: 2>, scalar_prefetch = 0 : i64, scratch_operands = 1 : i64, tpu.core_type = #tpu.core_type<tc>, window_params = [{transform_indices = @transform_0, window_bounds = array<i64: 1, 8, 1030>}, {pipeline_mode = #tpu.pipeline_mode<synchronous>, transform_indices = @transform_1, window_bounds = array<i64: 16, 56>}, {transform_indices = @transform_2, window_bounds = array<i64: 1, 16, 1024>}]} {
    %c0 = arith.constant 0 : index
    %c0_0 = arith.constant 0 : index
    %c0_1 = arith.constant 0 : index
    %0 = vector.load %arg1[%c0, %c0_0, %c0_1] : memref<1x8x1030xbf16, #tpu.memory_space<vmem>>, vector<1x8x1024xbf16>
    %1 = vector.shape_cast %0 : vector<1x8x1024xbf16> to vector<8x1024xbf16>
    %c0_2 = arith.constant 0 : index
    %c0_3 = arith.constant 0 : index
    %2 = vector.load %arg4[%c0_2, %c0_3] : memref<56x1024xbf16, #tpu.memory_space<vmem>>, vector<8x1024xbf16>
    tpu.vector_store %arg4[%c0_2, %c0_3], %1 {strides = array<i32>} : memref<56x1024xbf16, #tpu.memory_space<vmem>>, vector<8x1024xbf16>,
    %c0_4 = arith.constant 0 : index
    %c0_5 = arith.constant 0 : index
    %c1 = arith.constant 1 : index
    %3 = vector.load %arg1[%c0_4, %c0_5, %c1] : memref<1x8x1030xbf16, #tpu.memory_space<vmem>>, vector<1x8x1024xbf16>
    %4 = vector.shape_cast %3 : vector<1x8x1024xbf16> to vector<8x1024xbf16>
    %c8 = arith.constant 8 : index
    %c0_6 = arith.constant 0 : index
    %5 = vector.load %arg4[%c8, %c0_6] : memref<56x1024xbf16, #tpu.memory_space<vmem>>, vector<8x1024xbf16>
    tpu.vector_store %arg4[%c8, %c0_6], %4 {strides = array<i32>} : memref<56x1024xbf16, #tpu.memory_space<vmem>>, vector<8x1024xbf16>,
    %c0_7 = arith.constant 0 : index
    %c0_8 = arith.constant 0 : index
    %c2 = arith.constant 2 : index
    %6 = vector.load %arg1[%c0_7, %c0_8, %c2] : memref<1x8x1030xbf16, #tpu.memory_space<vmem>>, vector<1x8x1024xbf16>
    %7 = vector.shape_cast %6 : vector<1x8x1024xbf16> to vector<8x1024xbf16>
    %c16 = arith.constant 16 : index
    %c0_9 = arith.constant 0 : index
    %8 = vector.load %arg4[%c16, %c0_9] : memref<56x1024xbf16, #tpu.memory_space<vmem>>, vector<8x1024xbf16>
    tpu.vector_store %arg4[%c16, %c0_9], %7 {strides = array<i32>} : memref<56x1024xbf16, #tpu.memory_space<vmem>>, vector<8x1024xbf16>,
    %c0_10 = arith.constant 0 : index
    %c0_11 = arith.constant 0 : index
    %c3 = arith.constant 3 : index
    %9 = vector.load %arg1[%c0_10, %c0_11, %c3] : memref<1x8x1030xbf16, #tpu.memory_space<vmem>>, vector<1x8x1024xbf16>
    %10 = vector.shape_cast %9 : vector<1x8x1024xbf16> to vector<8x1024xbf16>
    %c24 = arith.constant 24 : index
    %c0_12 = arith.constant 0 : index
    %11 = vector.load %arg4[%c24, %c0_12] : memref<56x1024xbf16, #tpu.memory_space<vmem>>, vector<8x1024xbf16>
    tpu.vector_store %arg4[%c24, %c0_12], %10 {strides = array<i32>} : memref<56x1024xbf16, #tpu.memory_space<vmem>>, vector<8x1024xbf16>,
    %c0_13 = arith.constant 0 : index
    %c0_14 = arith.constant 0 : index
    %c4 = arith.constant 4 : index
    %12 = vector.load %arg1[%c0_13, %c0_14, %c4] : memref<1x8x1030xbf16, #tpu.memory_space<vmem>>, vector<1x8x1024xbf16>
    %13 = vector.shape_cast %12 : vector<1x8x1024xbf16> to vector<8x1024xbf16>
    %c32 = arith.constant 32 : index
    %c0_15 = arith.constant 0 : index
    %14 = vector.load %arg4[%c32, %c0_15] : memref<56x1024xbf16, #tpu.memory_space<vmem>>, vector<8x1024xbf16>
    tpu.vector_store %arg4[%c32, %c0_15], %13 {strides = array<i32>} : memref<56x1024xbf16, #tpu.memory_space<vmem>>, vector<8x1024xbf16>,
    %c0_16 = arith.constant 0 : index
    %c0_17 = arith.constant 0 : index
    %c5 = arith.constant 5 : index
    %15 = vector.load %arg1[%c0_16, %c0_17, %c5] : memref<1x8x1030xbf16, #tpu.memory_space<vmem>>, vector<1x8x1024xbf16>
    %16 = vector.shape_cast %15 : vector<1x8x1024xbf16> to vector<8x1024xbf16>
    %c40 = arith.constant 40 : index
    %c0_18 = arith.constant 0 : index
    %17 = vector.load %arg4[%c40, %c0_18] : memref<56x1024xbf16, #tpu.memory_space<vmem>>, vector<8x1024xbf16>
    tpu.vector_store %arg4[%c40, %c0_18], %16 {strides = array<i32>} : memref<56x1024xbf16, #tpu.memory_space<vmem>>, vector<8x1024xbf16>,
    %c0_19 = arith.constant 0 : index
    %c0_20 = arith.constant 0 : index
    %c6 = arith.constant 6 : index
    %18 = vector.load %arg1[%c0_19, %c0_20, %c6] : memref<1x8x1030xbf16, #tpu.memory_space<vmem>>, vector<1x8x1024xbf16>
    %19 = vector.shape_cast %18 : vector<1x8x1024xbf16> to vector<8x1024xbf16>
    %c48 = arith.constant 48 : index
    %c0_21 = arith.constant 0 : index
    %20 = vector.load %arg4[%c48, %c0_21] : memref<56x1024xbf16, #tpu.memory_space<vmem>>, vector<8x1024xbf16>
    tpu.vector_store %arg4[%c48, %c0_21], %19 {strides = array<i32>} : memref<56x1024xbf16, #tpu.memory_space<vmem>>, vector<8x1024xbf16>,
    %c0_22 = arith.constant 0 : index
    %c0_23 = arith.constant 0 : index
    %21 = vector.load %arg2[%c0_22, %c0_23] : memref<16x56xbf16, #tpu.memory_space<vmem>>, vector<16x56xbf16>
    %c0_24 = arith.constant 0 : index
    %c0_25 = arith.constant 0 : index
    %22 = vector.load %arg4[%c0_24, %c0_25] : memref<56x1024xbf16, #tpu.memory_space<vmem>>, vector<56x1024xbf16>
    %cst = arith.constant dense<0.000000e+00> : vector<16x1024xf32>
    %23 = tpu.matmul %21, %22, %cst {dimension_numbers = #tpu.dot_dimension_numbers<[1], [0], [0], [1], [0, 0, 1, 1], [], []>} : vector<16x56xbf16>, vector<56x1024xbf16>, vector<16x1024xf32> -> vector<16x1024xf32>
    %cst_26 = arith.constant 0.000000e+00 : f32
    %24 = vector.broadcast %cst_26 : f32 to vector<16x1024xf32>
    %25 = arith.maximumf %23, %24 : vector<16x1024xf32>
    %26 = arith.truncf %25 : vector<16x1024xf32> to vector<16x1024xbf16>
    %c0_27 = arith.constant 0 : index
    %c0_28 = arith.constant 0 : index
    %c0_29 = arith.constant 0 : index
    %27 = vector.load %arg3[%c0_27, %c0_28, %c0_29] : memref<1x16x1024xbf16, #tpu.memory_space<vmem>>, vector<1x16x1024xbf16>
    %28 = vector.shape_cast %27 : vector<1x16x1024xbf16> to vector<16x1024xbf16>
    %29 = vector.shape_cast %26 : vector<16x1024xbf16> to vector<1x16x1024xbf16>
    tpu.vector_store %arg3[%c0_27, %c0_28, %c0_29], %29 {strides = array<i32>} : memref<1x16x1024xbf16, #tpu.memory_space<vmem>>, vector<1x16x1024xbf16>,
    return
  }
  func.func @transform_0(%arg0: i32) -> (i32, i32, i32) {
    %c0_i32 = arith.constant 0 : i32
    %c0_i32_0 = arith.constant 0 : i32
    %c0_i32_1 = arith.constant 0 : i32
    return %arg0, %c0_i32, %c0_i32_0 : i32, i32, i32
  }
  func.func @transform_1(%arg0: i32) -> (i32, i32) {
    %c0_i32 = arith.constant 0 : i32
    %c0_i32_0 = arith.constant 0 : i32
    %c0_i32_1 = arith.constant 0 : i32
    return %c0_i32, %c0_i32_0 : i32, i32
  }
  func.func @transform_2(%arg0: i32) -> (i32, i32, i32) {
    %c0_i32 = arith.constant 0 : i32
    %c0_i32_0 = arith.constant 0 : i32
    %c0_i32_1 = arith.constant 0 : i32
    return %arg0, %c0_i32, %c0_i32_0 : i32, i32, i32
  }
}

module attributes {stable_mosaic.version = 11 : i64} {
  func.func @_tconv_kernel(%arg0: i32, %arg1: memref<1x4x4102xbf16, #tpu.memory_space<vmem>>, %arg2: memref<8x28xbf16, #tpu.memory_space<vmem>>, %arg3: memref<1x8x4096xbf16, #tpu.memory_space<vmem>>, %arg4: memref<28x4096xbf16, #tpu.memory_space<vmem>>) attributes {dimension_semantics = [#tpu.dimension_semantics<parallel>], iteration_bounds = array<i64: 2>, scalar_prefetch = 0 : i64, scratch_operands = 1 : i64, tpu.core_type = #tpu.core_type<tc>, window_params = [{transform_indices = @transform_0, window_bounds = array<i64: 1, 4, 4102>}, {pipeline_mode = #tpu.pipeline_mode<synchronous>, transform_indices = @transform_1, window_bounds = array<i64: 8, 28>}, {transform_indices = @transform_2, window_bounds = array<i64: 1, 8, 4096>}]} {
    %c0 = arith.constant 0 : index
    %c0_0 = arith.constant 0 : index
    %c0_1 = arith.constant 0 : index
    %0 = vector.load %arg1[%c0, %c0_0, %c0_1] : memref<1x4x4102xbf16, #tpu.memory_space<vmem>>, vector<1x4x4096xbf16>
    %1 = vector.shape_cast %0 : vector<1x4x4096xbf16> to vector<4x4096xbf16>
    %c0_2 = arith.constant 0 : index
    %c0_3 = arith.constant 0 : index
    %2 = vector.load %arg4[%c0_2, %c0_3] : memref<28x4096xbf16, #tpu.memory_space<vmem>>, vector<4x4096xbf16>
    tpu.vector_store %arg4[%c0_2, %c0_3], %1 {strides = array<i32>} : memref<28x4096xbf16, #tpu.memory_space<vmem>>, vector<4x4096xbf16>,
    %c0_4 = arith.constant 0 : index
    %c0_5 = arith.constant 0 : index
    %c1 = arith.constant 1 : index
    %3 = vector.load %arg1[%c0_4, %c0_5, %c1] : memref<1x4x4102xbf16, #tpu.memory_space<vmem>>, vector<1x4x4096xbf16>
    %4 = vector.shape_cast %3 : vector<1x4x4096xbf16> to vector<4x4096xbf16>
    %c4 = arith.constant 4 : index
    %c0_6 = arith.constant 0 : index
    %5 = vector.load %arg4[%c4, %c0_6] : memref<28x4096xbf16, #tpu.memory_space<vmem>>, vector<4x4096xbf16>
    tpu.vector_store %arg4[%c4, %c0_6], %4 {strides = array<i32>} : memref<28x4096xbf16, #tpu.memory_space<vmem>>, vector<4x4096xbf16>,
    %c0_7 = arith.constant 0 : index
    %c0_8 = arith.constant 0 : index
    %c2 = arith.constant 2 : index
    %6 = vector.load %arg1[%c0_7, %c0_8, %c2] : memref<1x4x4102xbf16, #tpu.memory_space<vmem>>, vector<1x4x4096xbf16>
    %7 = vector.shape_cast %6 : vector<1x4x4096xbf16> to vector<4x4096xbf16>
    %c8 = arith.constant 8 : index
    %c0_9 = arith.constant 0 : index
    %8 = vector.load %arg4[%c8, %c0_9] : memref<28x4096xbf16, #tpu.memory_space<vmem>>, vector<4x4096xbf16>
    tpu.vector_store %arg4[%c8, %c0_9], %7 {strides = array<i32>} : memref<28x4096xbf16, #tpu.memory_space<vmem>>, vector<4x4096xbf16>,
    %c0_10 = arith.constant 0 : index
    %c0_11 = arith.constant 0 : index
    %c3 = arith.constant 3 : index
    %9 = vector.load %arg1[%c0_10, %c0_11, %c3] : memref<1x4x4102xbf16, #tpu.memory_space<vmem>>, vector<1x4x4096xbf16>
    %10 = vector.shape_cast %9 : vector<1x4x4096xbf16> to vector<4x4096xbf16>
    %c12 = arith.constant 12 : index
    %c0_12 = arith.constant 0 : index
    %11 = vector.load %arg4[%c12, %c0_12] : memref<28x4096xbf16, #tpu.memory_space<vmem>>, vector<4x4096xbf16>
    tpu.vector_store %arg4[%c12, %c0_12], %10 {strides = array<i32>} : memref<28x4096xbf16, #tpu.memory_space<vmem>>, vector<4x4096xbf16>,
    %c0_13 = arith.constant 0 : index
    %c0_14 = arith.constant 0 : index
    %c4_15 = arith.constant 4 : index
    %12 = vector.load %arg1[%c0_13, %c0_14, %c4_15] : memref<1x4x4102xbf16, #tpu.memory_space<vmem>>, vector<1x4x4096xbf16>
    %13 = vector.shape_cast %12 : vector<1x4x4096xbf16> to vector<4x4096xbf16>
    %c16 = arith.constant 16 : index
    %c0_16 = arith.constant 0 : index
    %14 = vector.load %arg4[%c16, %c0_16] : memref<28x4096xbf16, #tpu.memory_space<vmem>>, vector<4x4096xbf16>
    tpu.vector_store %arg4[%c16, %c0_16], %13 {strides = array<i32>} : memref<28x4096xbf16, #tpu.memory_space<vmem>>, vector<4x4096xbf16>,
    %c0_17 = arith.constant 0 : index
    %c0_18 = arith.constant 0 : index
    %c5 = arith.constant 5 : index
    %15 = vector.load %arg1[%c0_17, %c0_18, %c5] : memref<1x4x4102xbf16, #tpu.memory_space<vmem>>, vector<1x4x4096xbf16>
    %16 = vector.shape_cast %15 : vector<1x4x4096xbf16> to vector<4x4096xbf16>
    %c20 = arith.constant 20 : index
    %c0_19 = arith.constant 0 : index
    %17 = vector.load %arg4[%c20, %c0_19] : memref<28x4096xbf16, #tpu.memory_space<vmem>>, vector<4x4096xbf16>
    tpu.vector_store %arg4[%c20, %c0_19], %16 {strides = array<i32>} : memref<28x4096xbf16, #tpu.memory_space<vmem>>, vector<4x4096xbf16>,
    %c0_20 = arith.constant 0 : index
    %c0_21 = arith.constant 0 : index
    %c6 = arith.constant 6 : index
    %18 = vector.load %arg1[%c0_20, %c0_21, %c6] : memref<1x4x4102xbf16, #tpu.memory_space<vmem>>, vector<1x4x4096xbf16>
    %19 = vector.shape_cast %18 : vector<1x4x4096xbf16> to vector<4x4096xbf16>
    %c24 = arith.constant 24 : index
    %c0_22 = arith.constant 0 : index
    %20 = vector.load %arg4[%c24, %c0_22] : memref<28x4096xbf16, #tpu.memory_space<vmem>>, vector<4x4096xbf16>
    tpu.vector_store %arg4[%c24, %c0_22], %19 {strides = array<i32>} : memref<28x4096xbf16, #tpu.memory_space<vmem>>, vector<4x4096xbf16>,
    %c0_23 = arith.constant 0 : index
    %c0_24 = arith.constant 0 : index
    %21 = vector.load %arg2[%c0_23, %c0_24] : memref<8x28xbf16, #tpu.memory_space<vmem>>, vector<8x28xbf16>
    %c0_25 = arith.constant 0 : index
    %c0_26 = arith.constant 0 : index
    %22 = vector.load %arg4[%c0_25, %c0_26] : memref<28x4096xbf16, #tpu.memory_space<vmem>>, vector<28x4096xbf16>
    %cst = arith.constant dense<0.000000e+00> : vector<8x4096xf32>
    %23 = tpu.matmul %21, %22, %cst {dimension_numbers = #tpu.dot_dimension_numbers<[1], [0], [0], [1], [0, 0, 1, 1], [], []>} : vector<8x28xbf16>, vector<28x4096xbf16>, vector<8x4096xf32> -> vector<8x4096xf32>
    %cst_27 = arith.constant 0.000000e+00 : f32
    %24 = vector.broadcast %cst_27 : f32 to vector<8x4096xf32>
    %25 = arith.maximumf %23, %24 : vector<8x4096xf32>
    %26 = arith.truncf %25 : vector<8x4096xf32> to vector<8x4096xbf16>
    %c0_28 = arith.constant 0 : index
    %c0_29 = arith.constant 0 : index
    %c0_30 = arith.constant 0 : index
    %27 = vector.load %arg3[%c0_28, %c0_29, %c0_30] : memref<1x8x4096xbf16, #tpu.memory_space<vmem>>, vector<1x8x4096xbf16>
    %28 = vector.shape_cast %27 : vector<1x8x4096xbf16> to vector<8x4096xbf16>
    %29 = vector.shape_cast %26 : vector<8x4096xbf16> to vector<1x8x4096xbf16>
    tpu.vector_store %arg3[%c0_28, %c0_29, %c0_30], %29 {strides = array<i32>} : memref<1x8x4096xbf16, #tpu.memory_space<vmem>>, vector<1x8x4096xbf16>,
    return
  }
  func.func @transform_0(%arg0: i32) -> (i32, i32, i32) {
    %c0_i32 = arith.constant 0 : i32
    %c0_i32_0 = arith.constant 0 : i32
    %c0_i32_1 = arith.constant 0 : i32
    return %arg0, %c0_i32, %c0_i32_0 : i32, i32, i32
  }
  func.func @transform_1(%arg0: i32) -> (i32, i32) {
    %c0_i32 = arith.constant 0 : i32
    %c0_i32_0 = arith.constant 0 : i32
    %c0_i32_1 = arith.constant 0 : i32
    return %c0_i32, %c0_i32_0 : i32, i32
  }
  func.func @transform_2(%arg0: i32) -> (i32, i32, i32) {
    %c0_i32 = arith.constant 0 : i32
    %c0_i32_0 = arith.constant 0 : i32
    %c0_i32_1 = arith.constant 0 : i32
    return %arg0, %c0_i32, %c0_i32_0 : i32, i32, i32
  }
}

module attributes {stable_mosaic.version = 11 : i64} {
  func.func @_tconv_kernel(%arg0: i32, %arg1: memref<1x2x16390xbf16, #tpu.memory_space<vmem>>, %arg2: memref<4x14xbf16, #tpu.memory_space<vmem>>, %arg3: memref<1x4x16384xf32, #tpu.memory_space<vmem>>, %arg4: memref<14x16384xbf16, #tpu.memory_space<vmem>>) attributes {dimension_semantics = [#tpu.dimension_semantics<parallel>], iteration_bounds = array<i64: 2>, scalar_prefetch = 0 : i64, scratch_operands = 1 : i64, tpu.core_type = #tpu.core_type<tc>, window_params = [{transform_indices = @transform_0, window_bounds = array<i64: 1, 2, 16390>}, {pipeline_mode = #tpu.pipeline_mode<synchronous>, transform_indices = @transform_1, window_bounds = array<i64: 4, 14>}, {transform_indices = @transform_2, window_bounds = array<i64: 1, 4, 16384>}]} {
    %c0 = arith.constant 0 : index
    %c0_0 = arith.constant 0 : index
    %c0_1 = arith.constant 0 : index
    %0 = vector.load %arg1[%c0, %c0_0, %c0_1] : memref<1x2x16390xbf16, #tpu.memory_space<vmem>>, vector<1x2x16384xbf16>
    %1 = vector.shape_cast %0 : vector<1x2x16384xbf16> to vector<2x16384xbf16>
    %c0_2 = arith.constant 0 : index
    %c0_3 = arith.constant 0 : index
    %2 = vector.load %arg4[%c0_2, %c0_3] : memref<14x16384xbf16, #tpu.memory_space<vmem>>, vector<2x16384xbf16>
    tpu.vector_store %arg4[%c0_2, %c0_3], %1 {strides = array<i32>} : memref<14x16384xbf16, #tpu.memory_space<vmem>>, vector<2x16384xbf16>,
    %c0_4 = arith.constant 0 : index
    %c0_5 = arith.constant 0 : index
    %c1 = arith.constant 1 : index
    %3 = vector.load %arg1[%c0_4, %c0_5, %c1] : memref<1x2x16390xbf16, #tpu.memory_space<vmem>>, vector<1x2x16384xbf16>
    %4 = vector.shape_cast %3 : vector<1x2x16384xbf16> to vector<2x16384xbf16>
    %c2 = arith.constant 2 : index
    %c0_6 = arith.constant 0 : index
    %5 = vector.load %arg4[%c2, %c0_6] : memref<14x16384xbf16, #tpu.memory_space<vmem>>, vector<2x16384xbf16>
    tpu.vector_store %arg4[%c2, %c0_6], %4 {strides = array<i32>} : memref<14x16384xbf16, #tpu.memory_space<vmem>>, vector<2x16384xbf16>,
    %c0_7 = arith.constant 0 : index
    %c0_8 = arith.constant 0 : index
    %c2_9 = arith.constant 2 : index
    %6 = vector.load %arg1[%c0_7, %c0_8, %c2_9] : memref<1x2x16390xbf16, #tpu.memory_space<vmem>>, vector<1x2x16384xbf16>
    %7 = vector.shape_cast %6 : vector<1x2x16384xbf16> to vector<2x16384xbf16>
    %c4 = arith.constant 4 : index
    %c0_10 = arith.constant 0 : index
    %8 = vector.load %arg4[%c4, %c0_10] : memref<14x16384xbf16, #tpu.memory_space<vmem>>, vector<2x16384xbf16>
    tpu.vector_store %arg4[%c4, %c0_10], %7 {strides = array<i32>} : memref<14x16384xbf16, #tpu.memory_space<vmem>>, vector<2x16384xbf16>,
    %c0_11 = arith.constant 0 : index
    %c0_12 = arith.constant 0 : index
    %c3 = arith.constant 3 : index
    %9 = vector.load %arg1[%c0_11, %c0_12, %c3] : memref<1x2x16390xbf16, #tpu.memory_space<vmem>>, vector<1x2x16384xbf16>
    %10 = vector.shape_cast %9 : vector<1x2x16384xbf16> to vector<2x16384xbf16>
    %c6 = arith.constant 6 : index
    %c0_13 = arith.constant 0 : index
    %11 = vector.load %arg4[%c6, %c0_13] : memref<14x16384xbf16, #tpu.memory_space<vmem>>, vector<2x16384xbf16>
    tpu.vector_store %arg4[%c6, %c0_13], %10 {strides = array<i32>} : memref<14x16384xbf16, #tpu.memory_space<vmem>>, vector<2x16384xbf16>,
    %c0_14 = arith.constant 0 : index
    %c0_15 = arith.constant 0 : index
    %c4_16 = arith.constant 4 : index
    %12 = vector.load %arg1[%c0_14, %c0_15, %c4_16] : memref<1x2x16390xbf16, #tpu.memory_space<vmem>>, vector<1x2x16384xbf16>
    %13 = vector.shape_cast %12 : vector<1x2x16384xbf16> to vector<2x16384xbf16>
    %c8 = arith.constant 8 : index
    %c0_17 = arith.constant 0 : index
    %14 = vector.load %arg4[%c8, %c0_17] : memref<14x16384xbf16, #tpu.memory_space<vmem>>, vector<2x16384xbf16>
    tpu.vector_store %arg4[%c8, %c0_17], %13 {strides = array<i32>} : memref<14x16384xbf16, #tpu.memory_space<vmem>>, vector<2x16384xbf16>,
    %c0_18 = arith.constant 0 : index
    %c0_19 = arith.constant 0 : index
    %c5 = arith.constant 5 : index
    %15 = vector.load %arg1[%c0_18, %c0_19, %c5] : memref<1x2x16390xbf16, #tpu.memory_space<vmem>>, vector<1x2x16384xbf16>
    %16 = vector.shape_cast %15 : vector<1x2x16384xbf16> to vector<2x16384xbf16>
    %c10 = arith.constant 10 : index
    %c0_20 = arith.constant 0 : index
    %17 = vector.load %arg4[%c10, %c0_20] : memref<14x16384xbf16, #tpu.memory_space<vmem>>, vector<2x16384xbf16>
    tpu.vector_store %arg4[%c10, %c0_20], %16 {strides = array<i32>} : memref<14x16384xbf16, #tpu.memory_space<vmem>>, vector<2x16384xbf16>,
    %c0_21 = arith.constant 0 : index
    %c0_22 = arith.constant 0 : index
    %c6_23 = arith.constant 6 : index
    %18 = vector.load %arg1[%c0_21, %c0_22, %c6_23] : memref<1x2x16390xbf16, #tpu.memory_space<vmem>>, vector<1x2x16384xbf16>
    %19 = vector.shape_cast %18 : vector<1x2x16384xbf16> to vector<2x16384xbf16>
    %c12 = arith.constant 12 : index
    %c0_24 = arith.constant 0 : index
    %20 = vector.load %arg4[%c12, %c0_24] : memref<14x16384xbf16, #tpu.memory_space<vmem>>, vector<2x16384xbf16>
    tpu.vector_store %arg4[%c12, %c0_24], %19 {strides = array<i32>} : memref<14x16384xbf16, #tpu.memory_space<vmem>>, vector<2x16384xbf16>,
    %c0_25 = arith.constant 0 : index
    %c0_26 = arith.constant 0 : index
    %21 = vector.load %arg2[%c0_25, %c0_26] : memref<4x14xbf16, #tpu.memory_space<vmem>>, vector<4x14xbf16>
    %c0_27 = arith.constant 0 : index
    %c0_28 = arith.constant 0 : index
    %22 = vector.load %arg4[%c0_27, %c0_28] : memref<14x16384xbf16, #tpu.memory_space<vmem>>, vector<14x16384xbf16>
    %cst = arith.constant dense<0.000000e+00> : vector<4x16384xf32>
    %23 = tpu.matmul %21, %22, %cst {dimension_numbers = #tpu.dot_dimension_numbers<[1], [0], [0], [1], [0, 0, 1, 1], [], []>} : vector<4x14xbf16>, vector<14x16384xbf16>, vector<4x16384xf32> -> vector<4x16384xf32>
    %24 = math.tanh %23 : vector<4x16384xf32>
    %c0_29 = arith.constant 0 : index
    %c0_30 = arith.constant 0 : index
    %c0_31 = arith.constant 0 : index
    %25 = vector.load %arg3[%c0_29, %c0_30, %c0_31] : memref<1x4x16384xf32, #tpu.memory_space<vmem>>, vector<1x4x16384xf32>
    %26 = vector.shape_cast %25 : vector<1x4x16384xf32> to vector<4x16384xf32>
    %27 = vector.shape_cast %24 : vector<4x16384xf32> to vector<1x4x16384xf32>
    tpu.vector_store %arg3[%c0_29, %c0_30, %c0_31], %27 {strides = array<i32>} : memref<1x4x16384xf32, #tpu.memory_space<vmem>>, vector<1x4x16384xf32>,
    return
  }
  func.func @transform_0(%arg0: i32) -> (i32, i32, i32) {
    %c0_i32 = arith.constant 0 : i32
    %c0_i32_0 = arith.constant 0 : i32
    %c0_i32_1 = arith.constant 0 : i32
    return %arg0, %c0_i32, %c0_i32_0 : i32, i32, i32
  }
  func.func @transform_1(%arg0: i32) -> (i32, i32) {
    %c0_i32 = arith.constant 0 : i32
    %c0_i32_0 = arith.constant 0 : i32
    %c0_i32_1 = arith.constant 0 : i32
    return %c0_i32, %c0_i32_0 : i32, i32
  }
  func.func @transform_2(%arg0: i32) -> (i32, i32, i32) {
    %c0_i32 = arith.constant 0 : i32
    %c0_i32_0 = arith.constant 0 : i32
    %c0_i32_1 = arith.constant 0 : i32
    return %arg0, %c0_i32, %c0_i32_0 : i32, i32, i32
  }
}

</mosaic_0001>

<bundles_post_ra>
// kernel: generator_forward.7
= control target key start
LH: loop header
LB: loop body
LE: loop exit
PB: predicated region body
PF: predicated region fallthrough
CT: control target
= control target key end

     0   :  { %8 = vsyncpa [#allocation3], 0  ;;  %s552_s0 = inlined_call_operand.hbm [shape: f32[2,16], index: 0, kind: input, shape index: {}]   ;;  %s553_s1 = inlined_call_operand.hbm [shape: bf16[16,1024], index: 1, kind: input, shape index: {}]   ;;  %s554_s2 = inlined_call_operand.hbm [shape: f32[1,1024], index: 2, kind: input, shape index: {}]   ;;  %s555_s3 = inlined_call_operand.vmem [shape: bf16[2,1024], index: 3, kind: output, shape index: {}]  }
   0x1   :  { %9 = vsyncpa [#allocation5], 0  ;;  %s486_s12 = smov [#allocation4]   ;;  %s416_s16 = scalar_lea.hbm %s553_s1, 1024 }
   0x2   :  { %s25_s13 = sshll.u32 %s486_s12, 4  ;;  %p417_p0 = scmp.ne.s32.totalorder %s553_s1, %s416_s16  ;;  %s26_s13 = int_to_ptr.vmem [resolvable:$true] %s25_s13 }
   0x3   :  { %p420_p1 = scmp.lt.u32.totalorder %s416_s16, %s553_s1 }
   0x5   :  { %p422_p2 = pnand %p420_p1, %p417_p0 }
   0x7   :  { %425 = shalt.err (!%p422_p2)
}
   0x8   :  { %s426_s21 = scalar_lea.vmem %s26_s13, 1024  ;;  %p431_p4 = scmp.lt.s32.totalorder %s26_s13, %s26_s13 }
   0x9   :  { %p427_p3 = scmp.ne.s32.totalorder %s26_s13, %s426_s21  ;;  %p432_p5 = scmp.lt.s32.totalorder %s426_s21, %s426_s21 }
   0xb   :  { %p433_p6 = por %p432_p5, %p431_p4 }
   0xd   :  { %p434_p7 = pnand %p433_p6, %p427_p3 }
   0xf   :  { %437 = shalt.err (!%p434_p7)
}
  0x10   :  { %s487_s22 = smov 512   ;;  %s488_s23 = smov 32  }
  0x11   :  { %31 = dma.hbm_to_vmem [thread:$0]  %s553_s1, 1024, %s26_s13, [#allocation5], %s487_s22, %s487_s22, %s488_s23  }
  0x12   :  { %s489_s26 = smov [#allocation2]   ;;  %s490_s28 = smov [#allocation6]  }
  0x13   :  { %s16_s27 = sshll.u32 %s489_s26, 4  ;;  %s38_s29 = sshll.u32 %s490_s28, 4  ;;  %s17_s27 = int_to_ptr.vmem [resolvable:$true] %s16_s27  ;;  %s39_s29 = int_to_ptr.vmem [resolvable:$true] %s38_s29 }
  0x14   :  { %s438_s5 = scalar_lea.hbm %s552_s0, 32 }
  0x15   :  { %p439_p8 = scmp.ne.s32.totalorder %s552_s0, %s438_s5  ;;  %p442_p9 = scmp.lt.u32.totalorder %s438_s5, %s552_s0 }
  0x17   :  { %p444_p10 = pnand %p442_p9, %p439_p8 }
  0x19   :  { %447 = shalt.err (!%p444_p10)
}
  0x1a   :  { %s448_s1 = scalar_lea.vmem %s17_s27, 32  ;;  %p453_p12 = scmp.lt.s32.totalorder %s17_s27, %s17_s27 }
  0x1b   :  { %p449_p11 = scmp.ne.s32.totalorder %s17_s27, %s448_s1  ;;  %p454_p13 = scmp.lt.s32.totalorder %s448_s1, %s448_s1 }
  0x1d   :  { %p455_p0 = por %p454_p13, %p453_p12 }
  0x1f   :  { %p456_p1 = pnand %p455_p0, %p449_p11 }
  0x21   :  { %459 = shalt.err (!%p456_p1)
}
  0x22   :  { %19 = dma.hbm_to_vmem [thread:$0]  %s552_s0, 32, %s17_s27, [#allocation3]  }
  0x23   :  { %s460_s14 = scalar_lea.hbm %s554_s2, 128 }
  0x24   :  { %p461_p2 = scmp.ne.s32.totalorder %s554_s2, %s460_s14  ;;  %p464_p3 = scmp.lt.u32.totalorder %s460_s14, %s554_s2 }
  0x26   :  { %p466_p4 = pnand %p464_p3, %p461_p2 }
  0x28   :  { %469 = shalt.err (!%p466_p4)
}
  0x29   :  { %s470_s19 = scalar_lea.vmem %s39_s29, 128  ;;  %p475_p6 = scmp.lt.s32.totalorder %s39_s29, %s39_s29 }
  0x2a   :  { %p471_p5 = scmp.ne.s32.totalorder %s39_s29, %s470_s19  ;;  %p476_p7 = scmp.lt.s32.totalorder %s470_s19, %s470_s19 }
  0x2c   :  { %p477_p8 = por %p476_p7, %p475_p6 }
  0x2e   :  { %p478_p9 = pnand %p477_p8, %p471_p5 }
  0x30   :  { %481 = shalt.err (!%p478_p9)
}
  0x31   :  { %41 = dma.hbm_to_vmem [thread:$0]  %s554_s2, 128, %s39_s29, [#allocation5]  }
  0x32   :  { %482 = dma.done.wait [#allocation3], 32  }
  0x33   :  { %483 = vsyncadd [#allocation3], 4294967264 }
  0x34   :  { %484 = dma.done.wait [#allocation5], 1152  }
  0x35   :  { %485 = vsyncadd [#allocation5], 4294966144  ;;  %v491_v0 = vmov 0   ;;  %v54_v1 = vld [vmem:[#allocation4] sm:$0xff]  ;;  %v55_v3 = vld [vmem:[#allocation4 + $0x8] sm:$0xff]  ;;  %vm144_vm0 = vcmask 130048   ;;  %v64_v19 = vlaneseq }
  0x36   :  { %180 = vmatprep.mubr.bf16.mxu0 %v491_v0  ;;  %221 = vmatprep.mubr.bf16.mxu1 %v491_v0  ;;  %v58_v2 = vld [vmem:[#allocation4 + $0x20] sm:$0xff]  ;;  %v59_v5 = vld [vmem:[#allocation4 + $0x28] sm:$0xff]  ;;  %v52_v7 = vld [vmem:[#allocation2] sm:$0x3]  ;;  %v492_v26 = vmov 1966171168  }
  0x37   :  { %v394_v4 = vcombine.high %v54_v1, %v58_v2  ;;  %v393_v6 = vcombine.low %v54_v1, %v58_v2  ;;  %v56_v8 = vld [vmem:[#allocation4 + $0x10] sm:$0xff]  ;;  %v396_v9 = vcombine.high %v55_v3, %v59_v5  ;;  %v395_v10 = vcombine.low %v55_v3, %v59_v5  ;;  %v57_v12 = vld [vmem:[#allocation4 + $0x18] sm:$0xff]  ;;  %v62_v22 = vld [vmem:[#allocation6] sm:$0xff] }
  0x38   :  { %v60_v11 = vld [vmem:[#allocation4 + $0x30] sm:$0xff]  ;;  %v61_v13 = vld [vmem:[#allocation4 + $0x38] sm:$0xff]  ;;  %v53_v14 = vpack.c.bf16 %v52_v7, %v52_v7  ;;  %v65_v20 = vshrl.u32 %v64_v19, 7  ;;  %v341_v27 = vunpack.c.l.s4 %v492_v26 }
  0x39   :  { %148 = vmatprep.subr.bf16.mxu0 %v394_v4  ;;  %v398_v15 = vcombine.high %v56_v8, %v60_v11  ;;  %v400_v16 = vcombine.high %v57_v12, %v61_v13  ;;  %189 = vmatprep.subr.bf16.mxu1 %v396_v9  ;;  %v397_v17 = vcombine.low %v56_v8, %v60_v11 }
  0x3a   :  { %149 = vmatpush1.bf16.msra.mxu0 %v393_v6  ;;  %190 = vmatpush1.bf16.msra.mxu1 %v395_v10  ;;  %v399_v18 = vcombine.low %v57_v12, %v61_v13  ;;  %v66_v21 = vsub.s32 0, %v65_v20  ;;  %v74_v23 = vsub.s32 2, %v65_v20  ;;  %v70_v24 = vsub.s32 1, %v65_v20 }
  0x3b   :  { %230 = vmatprep.subr.bf16.mxu0 %v398_v15  ;;  %271 = vmatprep.subr.bf16.mxu1 %v400_v16  ;;  %v78_v25 = vsub.s32 3, %v65_v20  ;;  %v342_v33 = vunpack.c.0.s8 %v341_v27  ;;  %v82_v37 = vsub.s32 4, %v65_v20  ;;  %v90_v42 = vsub.s32 6, %v65_v20 }
  0x3c   :  { %v67_v28 = vrot.slane %v62_v22, %v66_v21  ;;  %v75_v29 = vrot.slane %v62_v22, %v74_v23  ;;  %v71_v30 = vrot.slane %v62_v22, %v70_v24  ;;  %v86_v43 = vsub.s32 5, %v65_v20 }
  0x3d   :  { %401 = vmatmul.mubr.msk.bf16.vlgmr.msra.gmra.mrb[0].mxu0 %vm144_vm0, %v53_v14  ;;  %402 = vmatmul.mubr.msk.bf16.vlgmr.msra.gmra.mrb[0].mxu1 %vm144_vm0, %v53_v14  ;;  %v79_v31 = vrot.slane %v62_v22, %v78_v25  ;;  %v94_v48 = vsub.s32 7, %v65_v20  ;;  %v345_v51 = vsub.s32 %v342_v33, %v65_v20  ;;  %v83_v54 = vrot.slane %v62_v22, %v82_v37 }
  0x3e   :  { %231 = vmatpush1.bf16.msra.mxu0 %v397_v17  ;;  %272 = vmatpush1.bf16.msra.mxu1 %v399_v18  ;;  %v91_v56 = vrot.slane %v62_v22, %v90_v42  ;;  %v87_v57 = vrot.slane %v62_v22, %v86_v43 }
  0x3f   :  { %262 = vmatprep.mubr.bf16.mxu0 %v491_v0  ;;  %303 = vmatprep.mubr.bf16.mxu1 %v491_v0  ;;  %v95_v59 = vrot.slane %v62_v22, %v94_v48 }
  0x45   :  { %403 = vmatmul.mubr.msk.bf16.vlgmr.msra.gmra.mrb[4].mxu0 %vm144_vm0, %v53_v14  ;;  %404 = vmatmul.mubr.msk.bf16.vlgmr.msra.gmra.mrb[4].mxu1 %vm144_vm0, %v53_v14 }
 0x110   :  { %v182_v32 = vpop.f32.mrb[0].mxu0  ;;  %v223_v35 = vpop.f32.mrb[0].mxu1 }
 0x111   :  { %v183_v34 = vadd.f32 %v182_v32, %v67_v28  ;;  %v184_v36 = vpop.f32.mrb[1].mxu0  ;;  %v224_v38 = vadd.f32 %v223_v35, %v75_v29  ;;  %v225_v40 = vpop.f32.mrb[1].mxu1 }
 0x112   :  { %v185_v39 = vadd.f32 %v184_v36, %v71_v30  ;;  %v186_v41 = vpop.f32.mrb[2].mxu0  ;;  %v226_v45 = vadd.f32 %v225_v40, %v79_v31  ;;  %v227_v46 = vpop.f32.mrb[2].mxu1 }
 0x113   :  { %v312_v44 = vmax.f32 %v183_v34, 0.0  ;;  %v187_v47 = vpop.f32.mrb[3].mxu0  ;;  %v314_v49 = vmax.f32 %v224_v38, 0.0  ;;  %v228_v52 = vpop.f32.mrb[3].mxu1 }
 0x114   :  { %v313_v50 = vmax.f32 %v185_v39, 0.0  ;;  %v315_v53 = vmax.f32 %v226_v45, 0.0 }
 0x116   :  { %v405_v55 = vpack.c.bf16 %v313_v50, %v312_v44  ;;  %v406_v58 = vpack.c.bf16 %v315_v53, %v314_v49 }
 0x118   :  { %v346_v60 = vrot.slane %v405_v55, %v345_v51  ;;  %v264_v61 = vpop.f32.mrb[4].mxu0  ;;  %v353_v62 = vrot.slane %v406_v58, %v345_v51  ;;  %v305_v0 = vpop.f32.mrb[4].mxu1 }
 0x119   :  { %v265_v63 = vadd.f32 %v264_v61, %v83_v54  ;;  %v266_v1 = vpop.f32.mrb[5].mxu0  ;;  %v306_v2 = vadd.f32 %v305_v0, %v91_v56  ;;  %v307_v4 = vpop.f32.mrb[5].mxu1 }
 0x11a   :  { %v267_v3 = vadd.f32 %v266_v1, %v87_v57  ;;  %v268_v5 = vpop.f32.mrb[6].mxu0  ;;  %v368_v6 = vcombine.low %v346_v60, %v353_v62  ;;  %v308_v8 = vadd.f32 %v307_v4, %v95_v59  ;;  %v309_v9 = vpop.f32.mrb[6].mxu1 }
 0x11b   :  { %v316_v7 = vmax.f32 %v265_v63, 0.0  ;;  %v269_v10 = vpop.f32.mrb[7].mxu0  ;;  %v318_v11 = vmax.f32 %v306_v2, 0.0  ;;  %v310_v13 = vpop.f32.mrb[7].mxu1 }
 0x11c   :  { %v317_v12 = vmax.f32 %v267_v3, 0.0  ;;  %v319_v14 = vmax.f32 %v308_v8, 0.0  ;;  %v376_v20 = vrot.slane %v368_v6, %v345_v51 }
 0x11e   :  { %v407_v15 = vpack.c.bf16 %v317_v12, %v316_v7  ;;  %v408_v16 = vpack.c.bf16 %v319_v14, %v318_v11 }
 0x120   :  { %v360_v17 = vrot.slane %v407_v15, %v345_v51  ;;  %v367_v18 = vrot.slane %v408_v16, %v345_v51 }
 0x122   :  { %v369_v19 = vcombine.low %v360_v17, %v367_v18 }
 0x124   :  { %v383_v21 = vrot.slane %v369_v19, %v345_v51 }
 0x126   :  { %v384_v22 = vcombine.low %v376_v20, %v383_v21 }
 0x128   :  { %386 = vst [vmem:[%s555_s3] sm:$0xff] %v384_v22 }
 0x129   :  { %391 = vsyncpa [#allocation3], 1 }
 0x12a   :  { %392 = vsyncpa [#allocation5], 1 }

// kernel: generator_forward.9
= control target key start
LH: loop header
LB: loop body
LE: loop exit
PB: predicated region body
PF: predicated region fallthrough
CT: control target
= control target key end

     0   :  { %7 = vsyncpa [#allocation4], 0  ;;  %s767_s9 = smov 0   ;;  %s907_s0 = inlined_call_operand.vmem [shape: bf16[2,32,70], index: 0, kind: input, shape index: {}]   ;;  %s908_s1 = inlined_call_operand.hbm [shape: bf16[64,224], index: 1, kind: input, shape index: {}]   ;;  %s909_s2 = inlined_call_operand.vmem [shape: bf16[2,64,64], index: 2, kind: output, shape index: {}]  }
   0x1 LB: > { %s773_s10 = sadd.s32 4294967295, %s740_s9   ;;  %p565_p0 = scmp.ge.s32.totalorder %s740_s9, 1  ;;  %s740_s9 = sphi %s767_s9, %s13_s9  }
   0x2   : > { %p91_p1 = scmp.lt.s32.totalorder %s740_s9, 3  ;;  %s742_s11 = smov [#allocation3]  }
   0x3   : > { %s103_s12 = sshll.u32 %s742_s11, 4  ;;  %p910_p3 = scmp.eq.s32.totalorder %s773_s10, 0  ;;  %s104_s12 = int_to_ptr.vmem [resolvable:$true] %s103_s12 }
   0x4   : > { %p777_p2 = pnand %p565_p0, %p91_p1  ;;  %s702_s17 = scalar_lea.hbm %s908_s1, 1024 }
   0x5   : > { %p703_p6 = scmp.ne.s32.totalorder %s908_s1, %s702_s17  ;;  %p709_p10 = scmp.lt.u32.totalorder %s702_s17, %s908_s1 }
   0x6   : > { %s912_s13 = scalar_select %p777_p2, 1, 0 }
   0x7   : > { %p652_p4 = pneg %p777_p2 }
   0x9   : > { %p786_p5 = pnand %p910_p3, %p652_p4 }
   0xb   : > { %p704_p7 = pneg %p786_p5 }
   0xd   : > { %p705_p8 = pnand %p704_p7, %p703_p6 }
   0xf   : > { %p706_p9 = pneg %p705_p8 }
  0x11   : > { %p711_p11 = pnand %p709_p10, %p706_p9 }
  0x13   : > { %714 = shalt.err (!%p711_p11)
}
  0x14   : > { %s715_s22 = scalar_lea.vmem %s104_s12, 1024  ;;  %p723_p1 = scmp.lt.s32.totalorder %s104_s12, %s104_s12 }
  0x15   : > { %p716_p12 = scmp.ne.s32.totalorder %s104_s12, %s715_s22  ;;  %p724_p4 = scmp.lt.s32.totalorder %s715_s22, %s715_s22 }
  0x17   : > { %p718_p13 = pnand %p716_p12, %p704_p7  ;;  %p725_p3 = por %p724_p4, %p723_p1 }
  0x19   : > { %p719_p0 = pneg %p718_p13 }
  0x1b   : > { %p726_p2 = pnand %p725_p3, %p719_p0 }
  0x1d   : > { %729 = shalt.err (!%p726_p2)
}
  0x1e   : > { %s743_s23 = smov 128   ;;  %s744_s24 = smov 8  }
  0x1f   : > { %655 = dma.hbm_to_vmem [thread:$0]  (!%p786_p5), %s908_s1, 1024, %s104_s12, [#allocation4], %s743_s23, %s743_s23, %s744_s24  }
  0x20   : > { %p914_p6 = scmp.ne.s32.totalorder %s912_s13, 0 }
  0x21   : > { %p915_p8 = scmp.eq.s32.totalorder (!%p914_p6), %s773_s10, 0 }
  0x22   : > { %127 = sbr.rel (%p914_p6) target bundleno = 445 (0x1bd), region = 28 }
  0x29   : > { %735 = dma.done.wait (%p915_p8), [#allocation4], 1024   ;;  %p916_p7 = pmov %p915_p8 }
  0x2a   : > { %p149_p2 = scmp.lt.s32.totalorder %s773_s10, 1  ;;  %v745_v0 = vmov 0   ;;  %s746_s3 = smov 127   ;;  %vm176_vm0 = vcmask 523264   ;;  %v692_v17 = vld [vmem:[#allocation3 + $0x4] ss:$8 sps:$4 sm:$0xff]  }
  0x2b   : > { %737 = vsyncadd (%p916_p7), [#allocation4], 4294966272  ;;  %382 = vmatprep.subr.bf16.mxu0 %v745_v0  ;;  %620 = vmatprep.subr.bf16.mxu1 %v745_v0  ;;  %s747_s4 = smov 126   ;;  %s748_s5 = smov 125   ;;  %vm369_vm1 = vcmask 785408   ;;  %vm487_vm2 = vcmask 519168  }
  0x2c   : > { %s918_s10 = smov (!%p149_p2, %s773_s10), 1  ;;  %s749_s6 = smov 124   ;;  %v695_v18 = vld [vmem:[#allocation3 + $0x24] ss:$8 sps:$4 sm:$0xff]   ;;  %596 = vmatprep.mubr.msk.bf16.mxu0 %vm369_vm1, %v692_v17  ;;  %v690_v43 = vld [vmem:[#allocation3] ss:$8 sps:$4 sm:$0xff]  }
  0x2d   : > { %s610_s27 = sshll.u32 %s918_s10, 4  ;;  %s750_s7 = smov 123   ;;  %598 = vmatprep.mubr.msk.bf16.mxu1 %vm369_vm1, %v695_v18  ;;  %v693_v44 = vld [vmem:[#allocation3 + $0x20] ss:$8 sps:$4 sm:$0xff]   ;;  %v696_v45 = vld [vmem:[#allocation3 + $0x14] ss:$8 sps:$4 sm:$0xff]  }
  0x2e   : > { %s822_s30 = scalar_lea.vmem %s907_s0, %s610_s27  ;;  %s751_s8 = smov 122   ;;  %v698_v46 = vld [vmem:[#allocation3 + $0x34] ss:$8 sps:$4 sm:$0xff]   ;;  %v700_v47 = vld [vmem:[#allocation3 + $0x10] ss:$8 sps:$4 sm:$0xff]  }
  0x2f   : > { %v676_v1 = vld [vmem:[%s822_s30] sm:$0xff]   ;;  %v677_v2 = vld [vmem:[%s822_s30 + $0x8] sm:$0xff]   ;;  %s611_s11 = sshll.u32 %s918_s10, 5 }
  0x30   : > { %193 = vrot.lane.b32.xlu0 %v676_v1, %s746_s3  ;;  %v678_v3 = vld [vmem:[%s822_s30] sm:$0xff]   ;;  %v679_v4 = vld [vmem:[%s822_s30 + $0x8] sm:$0xff]   ;;  %s886_s14 = scalar_lea.vmem %s909_s2, %s611_s11 }
  0x31   : > { %215 = vrot.lane.b32.xlu1 %v678_v3, %s747_s4  ;;  %v680_v5 = vld [vmem:[%s822_s30] sm:$0xff]   ;;  %v681_v6 = vld [vmem:[%s822_s30 + $0x8] sm:$0xff]  }
  0x32   : > { %v682_v7 = vld [vmem:[%s822_s30] sm:$0xff]   ;;  %v683_v8 = vld [vmem:[%s822_s30 + $0x8] sm:$0xff]  }
  0x33   : > { %v684_v9 = vld [vmem:[%s822_s30] sm:$0xff]   ;;  %v689_v11 = vld [vmem:[%s822_s30 + $0x8] sm:$0xff]  }
  0x34   : > { %195 = vrot.lane.b32.xlu0 %v677_v2, %s746_s3  ;;  %v688_v10 = vld [vmem:[%s822_s30] sm:$0xff]   ;;  %178 = vst.msk [vmem:[#allocation2 + $0x8] sm:$0xff] %vm176_vm0, %v689_v11  ;;  %v685_v12 = vld [vmem:[%s822_s30 + $0x8] sm:$0xff]  }
  0x35   : > { %217 = vrot.lane.b32.xlu1 %v679_v4, %s747_s4  ;;  %177 = vst.msk [vmem:[#allocation2] sm:$0xff] %vm176_vm0, %v688_v10  ;;  %v686_v13 = vld [vmem:[%s822_s30] sm:$0xff]   ;;  %v687_v14 = vld [vmem:[%s822_s30 + $0x8] sm:$0xff]  }
  0x36   : > { %v701_v48 = vld [vmem:[#allocation3 + $0x30] ss:$8 sps:$4 sm:$0xff]  }
  0x38   : > { %237 = vrot.lane.b32.xlu0 %v680_v5, %s748_s5 }
  0x39   : > { %239 = vrot.lane.b32.xlu1 %v681_v6, %s748_s5 }
  0x3b   : > { %v320_v16 = vld [vmem:[#allocation2 + $0x8] sm:$0xff] }
  0x3c   : > { %259 = vrot.lane.b32.xlu0 %v682_v7, %s749_s6  ;;  %v319_v15 = vld [vmem:[#allocation2] sm:$0xff] }
  0x3d   : > { %261 = vrot.lane.b32.xlu1 %v683_v8, %s749_s6  ;;  %383 = vmatpush1.bf16.msra.mxu0 %v319_v15 }
  0x3e   : > { %634 = vmatpush1.bf16.msra.mxu1 %v319_v15  ;;  %384 = vmatprep.subr.bf16.mxu0 %v745_v0 }
  0x3f   : > { %621 = vmatprep.subr.bf16.mxu1 %v745_v0 }
  0x40   : > { %281 = vrot.lane.b32.xlu0 %v684_v9, %s750_s7 }
  0x41   : > { %283 = vrot.lane.b32.xlu1 %v685_v12, %s750_s7  ;;  %385 = vmatpush1.bf16.msra.mxu0 %v320_v16 }
  0x42   : > { %635 = vmatpush1.bf16.msra.mxu1 %v320_v16  ;;  %386 = vmatprep.subr.bf16.mxu0 %v745_v0 }
  0x43   : > { %622 = vmatprep.subr.bf16.mxu1 %v745_v0 }
  0x44   : > { %303 = vrot.lane.b32.xlu0 %v686_v13, %s751_s8 }
  0x45   : > { %305 = vrot.lane.b32.xlu1 %v687_v14, %s751_s8 }
  0xa2   : > { %v194_v19 = vpop.permute.xlu0 %193 }
  0xa3   : > { %199 = vst.msk [vmem:[#allocation2 + $0x10] sm:$0xff] %vm176_vm0, %v194_v19  ;;  %v216_v20 = vpop.permute.xlu1 %215 }
  0xa4   : > { %221 = vst.msk [vmem:[#allocation2 + $0x20] sm:$0xff] %vm176_vm0, %v216_v20 }
  0xa6   : > { %v196_v21 = vpop.permute.xlu0 %195 }
  0xa7   : > { %200 = vst.msk [vmem:[#allocation2 + $0x18] sm:$0xff] %vm176_vm0, %v196_v21  ;;  %v218_v22 = vpop.permute.xlu1 %217 }
  0xa8   : > { %222 = vst.msk [vmem:[#allocation2 + $0x28] sm:$0xff] %vm176_vm0, %v218_v22 }
  0xaa   : > { %v321_v23 = vld [vmem:[#allocation2 + $0x10] sm:$0xff]  ;;  %v238_v24 = vpop.permute.xlu0 %237 }
  0xab   : > { %387 = vmatpush1.bf16.msra.mxu0 %v321_v23  ;;  %636 = vmatpush1.bf16.msra.mxu1 %v321_v23  ;;  %243 = vst.msk [vmem:[#allocation2 + $0x30] sm:$0xff] %vm176_vm0, %v238_v24  ;;  %v240_v25 = vpop.permute.xlu1 %239  ;;  %v323_v28 = vld [vmem:[#allocation2 + $0x20] sm:$0xff] }
  0xac   : > { %388 = vmatprep.subr.bf16.mxu0 %v745_v0  ;;  %623 = vmatprep.subr.bf16.mxu1 %v745_v0  ;;  %244 = vst.msk [vmem:[#allocation2 + $0x38] sm:$0xff] %vm176_vm0, %v240_v25 }
  0xae   : > { %v322_v26 = vld [vmem:[#allocation2 + $0x18] sm:$0xff]  ;;  %v260_v27 = vpop.permute.xlu0 %259 }
  0xaf   : > { %389 = vmatpush1.bf16.msra.mxu0 %v322_v26  ;;  %637 = vmatpush1.bf16.msra.mxu1 %v322_v26  ;;  %265 = vst.msk [vmem:[#allocation2 + $0x40] sm:$0xff] %vm176_vm0, %v260_v27  ;;  %v262_v29 = vpop.permute.xlu1 %261  ;;  %v324_v31 = vld [vmem:[#allocation2 + $0x28] sm:$0xff] }
  0xb0   : > { %390 = vmatprep.subr.bf16.mxu0 %v745_v0  ;;  %624 = vmatprep.subr.bf16.mxu1 %v745_v0  ;;  %266 = vst.msk [vmem:[#allocation2 + $0x48] sm:$0xff] %vm176_vm0, %v262_v29 }
  0xb2   : > { %v282_v30 = vpop.permute.xlu0 %281  ;;  %v325_v34 = vld [vmem:[#allocation2 + $0x30] sm:$0xff] }
  0xb3   : > { %391 = vmatpush1.bf16.msra.mxu0 %v323_v28  ;;  %638 = vmatpush1.bf16.msra.mxu1 %v323_v28  ;;  %287 = vst.msk [vmem:[#allocation2 + $0x50] sm:$0xff] %vm176_vm0, %v282_v30  ;;  %v284_v32 = vpop.permute.xlu1 %283  ;;  %v326_v36 = vld [vmem:[#allocation2 + $0x38] sm:$0xff] }
  0xb4   : > { %392 = vmatprep.subr.bf16.mxu0 %v745_v0  ;;  %625 = vmatprep.subr.bf16.mxu1 %v745_v0  ;;  %288 = vst.msk [vmem:[#allocation2 + $0x58] sm:$0xff] %vm176_vm0, %v284_v32 }
  0xb6   : > { %v304_v33 = vpop.permute.xlu0 %303  ;;  %v327_v37 = vld [vmem:[#allocation2 + $0x40] sm:$0xff] }
  0xb7   : > { %393 = vmatpush1.bf16.msra.mxu0 %v324_v31  ;;  %639 = vmatpush1.bf16.msra.mxu1 %v324_v31  ;;  %309 = vst.msk [vmem:[#allocation2 + $0x60] sm:$0xff] %vm176_vm0, %v304_v33  ;;  %v306_v35 = vpop.permute.xlu1 %305  ;;  %v328_v38 = vld [vmem:[#allocation2 + $0x48] sm:$0xff] }
  0xb8   : > { %394 = vmatprep.subr.bf16.mxu0 %v745_v0  ;;  %626 = vmatprep.subr.bf16.mxu1 %v745_v0  ;;  %310 = vst.msk [vmem:[#allocation2 + $0x68] sm:$0xff] %vm176_vm0, %v306_v35 }
  0xba   : > { %v329_v39 = vld [vmem:[#allocation2 + $0x50] sm:$0xff] }
  0xbb   : > { %395 = vmatpush1.bf16.msra.mxu0 %v325_v34  ;;  %640 = vmatpush1.bf16.msra.mxu1 %v325_v34  ;;  %v330_v40 = vld [vmem:[#allocation2 + $0x58] sm:$0xff] }
  0xbc   : > { %396 = vmatprep.subr.bf16.mxu0 %v745_v0  ;;  %627 = vmatprep.subr.bf16.mxu1 %v745_v0 }
  0xbe   : > { %v331_v41 = vld [vmem:[#allocation2 + $0x60] sm:$0xff] }
  0xbf   : > { %397 = vmatpush1.bf16.msra.mxu0 %v326_v36  ;;  %641 = vmatpush1.bf16.msra.mxu1 %v326_v36  ;;  %v332_v42 = vld [vmem:[#allocation2 + $0x68] sm:$0xff] }
  0xc0   : > { %398 = vmatprep.subr.bf16.mxu0 %v745_v0  ;;  %628 = vmatprep.subr.bf16.mxu1 %v745_v0 }
  0xc3   : > { %399 = vmatpush1.bf16.msra.mxu0 %v327_v37  ;;  %642 = vmatpush1.bf16.msra.mxu1 %v327_v37 }
  0xc4   : > { %400 = vmatprep.subr.bf16.mxu0 %v745_v0  ;;  %629 = vmatprep.subr.bf16.mxu1 %v745_v0 }
  0xc7   : > { %401 = vmatpush1.bf16.msra.mxu0 %v328_v38  ;;  %643 = vmatpush1.bf16.msra.mxu1 %v328_v38 }
  0xc8   : > { %402 = vmatprep.subr.bf16.mxu0 %v745_v0  ;;  %630 = vmatprep.subr.bf16.mxu1 %v745_v0 }
  0xcb   : > { %403 = vmatpush1.bf16.msra.mxu0 %v329_v39  ;;  %644 = vmatpush1.bf16.msra.mxu1 %v329_v39 }
  0xcc   : > { %404 = vmatprep.subr.bf16.mxu0 %v745_v0  ;;  %631 = vmatprep.subr.bf16.mxu1 %v745_v0 }
  0xcf   : > { %405 = vmatpush1.bf16.msra.mxu0 %v330_v40  ;;  %645 = vmatpush1.bf16.msra.mxu1 %v330_v40 }
  0xd0   : > { %406 = vmatprep.subr.bf16.mxu0 %v745_v0  ;;  %632 = vmatprep.subr.bf16.mxu1 %v745_v0 }
  0xd3   : > { %407 = vmatpush1.bf16.msra.mxu0 %v331_v41  ;;  %646 = vmatpush1.bf16.msra.mxu1 %v331_v41 }
  0xd4   : > { %408 = vmatprep.subr.bf16.mxu0 %v745_v0  ;;  %633 = vmatprep.subr.bf16.mxu1 %v745_v0 }
  0xd7   : > { %409 = vmatpush1.bf16.msra.mxu0 %v332_v42  ;;  %647 = vmatpush1.bf16.msra.mxu1 %v332_v42 }
  0xda   : > { %415 = vmatmul.mubr.bf16.vlgmr.msra.gmra.mrb[0].mxu0 %v690_v43  ;;  %431 = vmatmul.mubr.bf16.vlgmr.msra.gmra.mrb[0].mxu1 %v693_v44 }
  0xdb   : > { %597 = vmatprep.mubr.msk.bf16.mxu0 %vm369_vm1, %v696_v45  ;;  %599 = vmatprep.mubr.msk.bf16.mxu1 %vm369_vm1, %v698_v46 }
  0xe2   : > { %423 = vmatmul.mubr.bf16.gmra.mrb[4].mxu0 %v700_v47  ;;  %439 = vmatmul.mubr.bf16.gmra.mrb[4].mxu1 %v701_v48 }
 0x1ad   : > { %v416_v49 = vpop.f32.mrb[0].mxu0  ;;  %v432_v50 = vpop.f32.mrb[0].mxu1 }
 0x1ae   : > { %v447_v51 = vmax.f32 %v416_v49, 0.0  ;;  %v451_v52 = vmax.f32 %v432_v50, 0.0  ;;  %v418_v53 = vpop.f32.mrb[1].mxu0  ;;  %v434_v54 = vpop.f32.mrb[1].mxu1 }
 0x1af   : > { %v419_v55 = vpop.f32.mrb[2].mxu0  ;;  %v435_v56 = vpop.f32.mrb[2].mxu1 }
 0x1b0   : > { %v612_v57 = vpack.c.bf16 %v447_v51, %v447_v51  ;;  %v616_v58 = vpack.c.bf16 %v451_v52, %v451_v52  ;;  %v448_v59 = vmax.f32 %v419_v55, 0.0  ;;  %v452_v60 = vmax.f32 %v435_v56, 0.0  ;;  %v421_v61 = vpop.f32.mrb[3].mxu0  ;;  %v437_v62 = vpop.f32.mrb[3].mxu1 }
 0x1b2   : > { %488 = vst.msk [vmem:[%s886_s14] sm:$0xf] %vm487_vm2, %v612_v57  ;;  %492 = vst.msk [vmem:[%s886_s14 + $0x10] sm:$0xf] %vm487_vm2, %v616_v58  ;;  %v613_v63 = vpack.c.bf16 %v448_v59, %v448_v59  ;;  %v617_v0 = vpack.c.bf16 %v452_v60, %v452_v60 }
 0x1b4   : > { %489 = vst.msk [vmem:[%s886_s14 + $0x4] sm:$0xf] %vm487_vm2, %v613_v63  ;;  %493 = vst.msk [vmem:[%s886_s14 + $0x14] sm:$0xf] %vm487_vm2, %v617_v0 }
 0x1b5   : > { %v424_v1 = vpop.f32.mrb[4].mxu0  ;;  %v440_v2 = vpop.f32.mrb[4].mxu1 }
 0x1b6   : > { %v449_v3 = vmax.f32 %v424_v1, 0.0  ;;  %v453_v4 = vmax.f32 %v440_v2, 0.0  ;;  %v426_v5 = vpop.f32.mrb[5].mxu0  ;;  %v442_v6 = vpop.f32.mrb[5].mxu1 }
 0x1b7   : > { %v427_v7 = vpop.f32.mrb[6].mxu0  ;;  %v443_v8 = vpop.f32.mrb[6].mxu1 }
 0x1b8   : > { %v614_v9 = vpack.c.bf16 %v449_v3, %v449_v3  ;;  %v618_v10 = vpack.c.bf16 %v453_v4, %v453_v4  ;;  %v450_v11 = vmax.f32 %v427_v7, 0.0  ;;  %v454_v12 = vmax.f32 %v443_v8, 0.0  ;;  %v429_v13 = vpop.f32.mrb[7].mxu0  ;;  %v445_v14 = vpop.f32.mrb[7].mxu1 }
 0x1ba   : > { %490 = vst.msk [vmem:[%s886_s14 + $0x8] sm:$0xf] %vm487_vm2, %v614_v9  ;;  %494 = vst.msk [vmem:[%s886_s14 + $0x18] sm:$0xf] %vm487_vm2, %v618_v10  ;;  %v615_v15 = vpack.c.bf16 %v450_v11, %v450_v11  ;;  %v619_v16 = vpack.c.bf16 %v454_v12, %v454_v12 }
 0x1bc   : > { %491 = vst.msk [vmem:[%s886_s14 + $0xc] sm:$0xf] %vm487_vm2, %v615_v15  ;;  %495 = vst.msk [vmem:[%s886_s14 + $0x1c] sm:$0xf] %vm487_vm2, %v619_v16 }
 0x1bd PF: > { %s13_s9 = sadd.s32 1, %s740_s9  }
 0x1be   : > { %p10_p3 = scmp.ge.s32.totalorder %s13_s9, 4  }
 0x1c0   :  { %12 = sbr.rel (!%p10_p3) target bundleno = 1 (0x1), region = 63 }
 0x1c7   :  { %517 = vsyncpa [#allocation4], 1 }
 0x1c8   :  { %519 = vsyncpa [#allocation4 + $0x1], 1 }

// kernel: generator_forward.8
= control target key start
LH: loop header
LB: loop body
LE: loop exit
PB: predicated region body
PF: predicated region fallthrough
CT: control target
= control target key end

     0   :  { %s1351_s9 = smov 0   ;;  %s1626_s0 = inlined_call_operand.vmem [shape: bf16[2,64,22], index: 0, kind: input, shape index: {}]   ;;  %s1627_s1 = inlined_call_operand.vmem [shape: bf16[128,448], index: 1, kind: input, shape index: {}]   ;;  %s1628_s2 = inlined_call_operand.vmem [shape: bf16[2,128,16], index: 2, kind: output, shape index: {}]  }
   0x1 LB: > { %s1029_s10 = sadd.s32 4294967295, %s1327_s9   ;;  %p1033_p0 = scmp.ge.s32.totalorder %s1327_s9, 1  ;;  %s1327_s9 = sphi %s1351_s9, %s12_s9  }
   0x2   : > { %p112_p1 = scmp.lt.s32.totalorder %s1327_s9, 3 }
   0x4   : > { %p113_p2 = pnand %p1033_p0, %p112_p1 }
   0x5   : > { %p134_p3 = scmp.lt.s32.totalorder (!%p113_p2), %s1029_s10, 1  ;;  %v1329_v2 = vmov (!%p113_p2), 0   ;;  %s1330_s15 = smov (!%p113_p2), 126   ;;  %vm177_vm0 = vcmask (!%p113_p2), 130048   ;;  %v1275_v24 = vld [vmem:[%s1627_s1 + $0x4] ss:$16 sps:$4 sm:$0xff] (!%p113_p2)  }
   0x6   : > { %116 = sbr.rel (%p113_p2) target bundleno = 465 (0x1d1), region = 28  ;;  %1206 = vmatprep.subr.bf16.mxu1 (!%p113_p2), %v1329_v2  ;;  %s1331_s16 = smov (!%p113_p2), 124   ;;  %715 = vmatprep.mubr.bf16.mxu0 (!%p113_p2), %v1275_v24  ;;  %v1283_v30 = vld [vmem:[%s1627_s1 + $0x2c] ss:$16 sps:$4 sm:$0xff] (!%p113_p2)   ;;  %vm658_vm1 = vcmask (!%p113_p2), 523264   ;;  %vm957_vm2 = vcmask (!%p113_p2), 125952  }
   0x7   : > { %s1332_s17 = smov (!%p113_p2), 127   ;;  %s1333_s18 = smov (!%p113_p2), 125   ;;  %1099 = vmatprep.mubr.msk.bf16.mxu1 (!%p113_p2), %vm658_vm1, %v1283_v30  ;;  %v1281_v24 = vld [vmem:[%s1627_s1 + $0x28] ss:$16 sps:$4 sm:$0xff] (!%p113_p2)   ;;  %v1291_v30 = vld [vmem:[%s1627_s1 + $0x84] ss:$16 sps:$4 sm:$0xff] (!%p113_p2)  }
   0x8   : > { %s1334_s19 = smov (!%p113_p2), 123   ;;  %s1335_s22 = smov (!%p113_p2), 122  }
   0xd   : > { %s1630_s10 = smov (!%p134_p3, %s1029_s10), 1 }
   0xe   : > { %s1124_s11 = sshll.u32 %s1630_s10, 5  ;;  %s1125_s5 = sshll.u32 %s1630_s10, 6 }
   0xf   : > { %s1365_s14 = scalar_lea.vmem %s1626_s0, %s1124_s11  ;;  %s1587_s8 = scalar_lea.vmem %s1628_s2, %s1125_s5 }
  0x10   : > { %v1245_v0 = vld [vmem:[%s1365_s14 + $0x8] sm:$0xff]   ;;  %v1246_v1 = vld [vmem:[%s1365_s14] sm:$0xff]   ;;  %v1249_v5 = vld [vmem:[%s1365_s14 + $0x10] sm:$0xff]  }
  0x11   : > { %256 = vrot.lane.b32.xlu1 %v1245_v0, %s1330_s15  ;;  %v1247_v3 = vld [vmem:[%s1365_s14 + $0x8] sm:$0xff]   ;;  %254 = vrot.lane.b32.xlu0 %v1246_v1, %s1330_s15  ;;  %v1248_v4 = vld [vmem:[%s1365_s14] sm:$0xff]  }
  0x12   : > { %v1250_v6 = vld [vmem:[%s1365_s14 + $0x10] sm:$0xff]   ;;  %v1251_v7 = vld [vmem:[%s1365_s14 + $0x18] sm:$0xff]   ;;  %v1254_v9 = vld [vmem:[%s1365_s14] sm:$0xff]  }
  0x13   : > { %v1252_v8 = vld [vmem:[%s1365_s14 + $0x18] sm:$0xff]   ;;  %v1253_v10 = vld [vmem:[%s1365_s14] sm:$0xff]   ;;  %v1256_v11 = vld [vmem:[%s1365_s14 + $0x8] sm:$0xff]  }
  0x14   : > { %v1255_v12 = vld [vmem:[%s1365_s14] sm:$0xff]   ;;  %v1258_v13 = vld [vmem:[%s1365_s14 + $0x8] sm:$0xff]   ;;  %v1260_v15 = vld [vmem:[%s1365_s14 + $0x10] sm:$0xff]  }
  0x15   : > { %344 = vrot.lane.b32.xlu1 %v1247_v3, %s1331_s16  ;;  %342 = vrot.lane.b32.xlu0 %v1248_v4, %s1331_s16  ;;  %v1257_v14 = vld [vmem:[%s1365_s14 + $0x8] sm:$0xff]   ;;  %v1269_v16 = vld [vmem:[%s1365_s14] sm:$0xff]  }
  0x16   : > { %v1259_v17 = vld [vmem:[%s1365_s14 + $0x10] sm:$0xff]   ;;  %v1270_v18 = vld [vmem:[%s1365_s14 + $0x8] sm:$0xff]   ;;  %178 = vst.msk [vmem:[#allocation2] sm:$0xff] %vm177_vm0, %v1269_v16  ;;  %v1272_v20 = vld [vmem:[%s1365_s14 + $0x18] sm:$0xff]  }
  0x17   : > { %v1271_v19 = vld [vmem:[%s1365_s14 + $0x10] sm:$0xff]   ;;  %179 = vst.msk [vmem:[#allocation2 + $0x8] sm:$0xff] %vm177_vm0, %v1270_v18  ;;  %v1262_v21 = vld [vmem:[%s1365_s14 + $0x18] sm:$0xff]   ;;  %181 = vst.msk [vmem:[#allocation2 + $0x18] sm:$0xff] %vm177_vm0, %v1272_v20 }
  0x18   : > { %180 = vst.msk [vmem:[#allocation2 + $0x10] sm:$0xff] %vm177_vm0, %v1271_v19  ;;  %v1261_v22 = vld [vmem:[%s1365_s14 + $0x10] sm:$0xff]   ;;  %v1264_v23 = vld [vmem:[%s1365_s14 + $0x18] sm:$0xff]   ;;  %v1266_v26 = vld [vmem:[%s1365_s14 + $0x8] sm:$0xff]  }
  0x19   : > { %346 = vrot.lane.b32.xlu1 %v1249_v5, %s1331_s16  ;;  %258 = vrot.lane.b32.xlu0 %v1250_v6, %s1330_s15  ;;  %v1263_v25 = vld [vmem:[%s1365_s14 + $0x18] sm:$0xff]   ;;  %v1265_v27 = vld [vmem:[%s1365_s14] sm:$0xff]  }
  0x1a   : > { %v1268_v28 = vld [vmem:[%s1365_s14 + $0x18] sm:$0xff]   ;;  %v1267_v29 = vld [vmem:[%s1365_s14 + $0x10] sm:$0xff]  }
  0x1b   : > { %v1278_v20 = vld [vmem:[%s1627_s1 + $0x20] ss:$16 sps:$4 sm:$0xff]  }
  0x1d   : > { %348 = vrot.lane.b32.xlu1 %v1251_v7, %s1331_s16  ;;  %260 = vrot.lane.b32.xlu0 %v1252_v8, %s1330_s15  ;;  %v478_v36 = vld [vmem:[#allocation2] sm:$0xff] }
  0x1e   : > { %v479_v41 = vld [vmem:[#allocation2 + $0x8] sm:$0xff]  ;;  %v481_v50 = vld [vmem:[#allocation2 + $0x18] sm:$0xff] }
  0x1f   : > { %v480_v45 = vld [vmem:[#allocation2 + $0x10] sm:$0xff] }
  0x21   : > { %210 = vrot.lane.b32.xlu1 %v1254_v9, %s1332_s17  ;;  %298 = vrot.lane.b32.xlu0 %v1253_v10, %s1333_s18 }
  0x25   : > { %300 = vrot.lane.b32.xlu1 %v1256_v11, %s1333_s18  ;;  %386 = vrot.lane.b32.xlu0 %v1255_v12, %s1334_s19 }
  0x29   : > { %388 = vrot.lane.b32.xlu1 %v1258_v13, %s1334_s19  ;;  %212 = vrot.lane.b32.xlu0 %v1257_v14, %s1332_s17 }
  0x2d   : > { %214 = vrot.lane.b32.xlu1 %v1260_v15, %s1332_s17  ;;  %302 = vrot.lane.b32.xlu0 %v1259_v17, %s1333_s18  ;;  %v1273_v15 = vld [vmem:[%s1627_s1] ss:$16 sps:$4 sm:$0xff]   ;;  %v1276_v17 = vld [vmem:[%s1627_s1 + $0x24] ss:$16 sps:$4 sm:$0xff]  }
  0x31   : > { %304 = vrot.lane.b32.xlu1 %v1262_v21, %s1333_s18  ;;  %390 = vrot.lane.b32.xlu0 %v1261_v22, %s1334_s19  ;;  %v1279_v22 = vld [vmem:[%s1627_s1 + $0x44] ss:$16 sps:$4 sm:$0xff]  }
  0x35   : > { %392 = vrot.lane.b32.xlu1 %v1264_v23, %s1334_s19  ;;  %216 = vrot.lane.b32.xlu0 %v1263_v25, %s1332_s17  ;;  %v1284_v25 = vld [vmem:[%s1627_s1 + $0x40] ss:$16 sps:$4 sm:$0xff]  }
  0x39   : > { %432 = vrot.lane.b32.xlu1 %v1266_v26, %s1335_s22  ;;  %430 = vrot.lane.b32.xlu0 %v1265_v27, %s1335_s22  ;;  %v1285_v26 = vld [vmem:[%s1627_s1 + $0x64] ss:$16 sps:$4 sm:$0xff]   ;;  %v1287_v27 = vld [vmem:[%s1627_s1 + $0x4c] ss:$16 sps:$4 sm:$0xff]  }
  0x3d   : > { %436 = vrot.lane.b32.xlu1 %v1268_v28, %s1335_s22  ;;  %434 = vrot.lane.b32.xlu0 %v1267_v29, %s1335_s22  ;;  %v1289_v28 = vld [vmem:[%s1627_s1 + $0x60] ss:$16 sps:$4 sm:$0xff]   ;;  %v1290_v29 = vld [vmem:[%s1627_s1 + $0x48] ss:$16 sps:$4 sm:$0xff]  }
  0x83   : > { %v257_v31 = vpop.permute.xlu1 %256  ;;  %v255_v32 = vpop.permute.xlu0 %254 }
  0x84   : > { %267 = vst.msk [vmem:[#allocation2 + $0x48] sm:$0xff] %vm177_vm0, %v257_v31  ;;  %266 = vst.msk [vmem:[#allocation2 + $0x40] sm:$0xff] %vm177_vm0, %v255_v32  ;;  %v1293_v31 = vld [vmem:[%s1627_s1 + $0x6c] ss:$16 sps:$4 sm:$0xff]   ;;  %v1295_v32 = vld [vmem:[%s1627_s1 + $0x80] ss:$16 sps:$4 sm:$0xff]  }
  0x87   : > { %v345_v33 = vpop.permute.xlu1 %344  ;;  %v343_v34 = vpop.permute.xlu0 %342 }
  0x88   : > { %355 = vst.msk [vmem:[#allocation2 + $0x88] sm:$0xff] %vm177_vm0, %v345_v33  ;;  %354 = vst.msk [vmem:[#allocation2 + $0x80] sm:$0xff] %vm177_vm0, %v343_v34  ;;  %v1296_v33 = vld [vmem:[%s1627_s1 + $0x68] ss:$16 sps:$4 sm:$0xff]   ;;  %v1297_v34 = vld [vmem:[%s1627_s1 + $0xa4] ss:$16 sps:$4 sm:$0xff]  }
  0x8b   : > { %v347_v35 = vpop.permute.xlu1 %346  ;;  %v259_v37 = vpop.permute.xlu0 %258  ;;  %v486_v38 = vld [vmem:[#allocation2 + $0x40] sm:$0xff]  ;;  %v487_v39 = vld [vmem:[#allocation2 + $0x48] sm:$0xff] }
  0x8c   : > { %356 = vst.msk [vmem:[#allocation2 + $0x90] sm:$0xff] %vm177_vm0, %v347_v35  ;;  %268 = vst.msk [vmem:[#allocation2 + $0x50] sm:$0xff] %vm177_vm0, %v259_v37  ;;  %1142 = vmatprep.subr.bf16.mxu0 %v486_v38  ;;  %v1299_v35 = vld [vmem:[%s1627_s1 + $0x8c] ss:$16 sps:$4 sm:$0xff]   ;;  %v1302_v37 = vld [vmem:[%s1627_s1 + $0x88] ss:$16 sps:$4 sm:$0xff]  }
  0x8d   : > { %1143 = vmatpush3.bf16.msra.mxu0 %v478_v36  ;;  %v1301_v36 = vld [vmem:[%s1627_s1 + $0xa0] ss:$16 sps:$4 sm:$0xff]   ;;  %v1303_v38 = vld [vmem:[%s1627_s1 + $0xc4] ss:$16 sps:$4 sm:$0xff]  }
  0x8e   : > { %1144 = vmatprep.subr.bf16.mxu0 %v487_v39  ;;  %v1305_v39 = vld [vmem:[%s1627_s1 + $0xac] ss:$16 sps:$4 sm:$0xff]  }
  0x8f   : > { %v349_v40 = vpop.permute.xlu1 %348  ;;  %v261_v42 = vpop.permute.xlu0 %260  ;;  %v1418_v43 = vld [vmem:[#allocation2 + $0x80] sm:$0xff]  ;;  %v1424_v48 = vld [vmem:[#allocation2 + $0x88] sm:$0xff] }
  0x90   : > { %357 = vst.msk [vmem:[#allocation2 + $0x98] sm:$0xff] %vm177_vm0, %v349_v40  ;;  %269 = vst.msk [vmem:[#allocation2 + $0x58] sm:$0xff] %vm177_vm0, %v261_v42  ;;  %1218 = vmatpush1.bf16.msra.mxu1 %v1418_v43  ;;  %v1307_v40 = vld [vmem:[%s1627_s1 + $0xc0] ss:$16 sps:$4 sm:$0xff]   ;;  %v1309_v42 = vld [vmem:[%s1627_s1 + $0xe4] ss:$16 sps:$4 sm:$0xff]  }
  0x91   : > { %1145 = vmatpush3.bf16.msra.mxu0 %v479_v41  ;;  %1207 = vmatprep.subr.bf16.mxu1 %v1329_v2  ;;  %v1308_v41 = vld [vmem:[%s1627_s1 + $0xa8] ss:$16 sps:$4 sm:$0xff]  }
  0x93   : > { %v211_v44 = vpop.permute.xlu1 %210  ;;  %v299_v46 = vpop.permute.xlu0 %298  ;;  %v488_v47 = vld [vmem:[#allocation2 + $0x50] sm:$0xff] }
  0x94   : > { %222 = vst.msk [vmem:[#allocation2 + $0x20] sm:$0xff] %vm177_vm0, %v211_v44  ;;  %310 = vst.msk [vmem:[#allocation2 + $0x60] sm:$0xff] %vm177_vm0, %v299_v46  ;;  %1146 = vmatprep.subr.bf16.mxu0 %v488_v47  ;;  %1219 = vmatpush1.bf16.msra.mxu1 %v1424_v48  ;;  %v1430_v53 = vld [vmem:[#allocation2 + $0x90] sm:$0xff] }
  0x95   : > { %1147 = vmatpush3.bf16.msra.mxu0 %v480_v45  ;;  %1208 = vmatprep.subr.bf16.mxu1 %v1329_v2  ;;  %v1314_v44 = vld [vmem:[%s1627_s1 + $0xc8] ss:$16 sps:$4 sm:$0xff]   ;;  %v1317_v45 = vld [vmem:[%s1627_s1 + $0xc] ss:$16 sps:$4 sm:$0xff]  }
  0x96   : > { %v1318_v46 = vld [vmem:[%s1627_s1 + $0xec] ss:$16 sps:$4 sm:$0xff]   ;;  %v1315_v47 = vld [vmem:[%s1627_s1 + $0x8] ss:$16 sps:$4 sm:$0xff]  }
  0x97   : > { %v301_v49 = vpop.permute.xlu1 %300  ;;  %v387_v51 = vpop.permute.xlu0 %386  ;;  %v489_v52 = vld [vmem:[#allocation2 + $0x58] sm:$0xff] }
  0x98   : > { %311 = vst.msk [vmem:[#allocation2 + $0x68] sm:$0xff] %vm177_vm0, %v301_v49  ;;  %398 = vst.msk [vmem:[#allocation2 + $0xa0] sm:$0xff] %vm177_vm0, %v387_v51  ;;  %1148 = vmatprep.subr.bf16.mxu0 %v489_v52  ;;  %1220 = vmatpush1.bf16.msra.mxu1 %v1430_v53  ;;  %v1436_v58 = vld [vmem:[#allocation2 + $0x98] sm:$0xff] }
  0x99   : > { %1149 = vmatpush3.bf16.msra.mxu0 %v481_v50  ;;  %1209 = vmatprep.subr.bf16.mxu1 %v1329_v2 }
  0x9b   : > { %v389_v54 = vpop.permute.xlu1 %388  ;;  %v482_v55 = vld [vmem:[#allocation2 + $0x20] sm:$0xff]  ;;  %v213_v56 = vpop.permute.xlu0 %212 }
  0x9c   : > { %399 = vst.msk [vmem:[#allocation2 + $0xa8] sm:$0xff] %vm177_vm0, %v389_v54  ;;  %v490_v57 = vld [vmem:[#allocation2 + $0x60] sm:$0xff]  ;;  %223 = vst.msk [vmem:[#allocation2 + $0x28] sm:$0xff] %vm177_vm0, %v213_v56  ;;  %1221 = vmatpush1.bf16.msra.mxu1 %v1436_v58 }
  0x9d   : > { %1150 = vmatprep.subr.bf16.mxu0 %v490_v57  ;;  %1210 = vmatprep.subr.bf16.mxu1 %v1329_v2 }
  0x9e   : > { %1151 = vmatpush3.bf16.msra.mxu0 %v482_v55 }
  0x9f   : > { %v215_v59 = vpop.permute.xlu1 %214  ;;  %v491_v60 = vld [vmem:[#allocation2 + $0x68] sm:$0xff]  ;;  %v303_v61 = vpop.permute.xlu0 %302  ;;  %v1442_v62 = vld [vmem:[#allocation2 + $0xa0] sm:$0xff] }
  0xa0   : > { %224 = vst.msk [vmem:[#allocation2 + $0x30] sm:$0xff] %vm177_vm0, %v215_v59  ;;  %1152 = vmatprep.subr.bf16.mxu0 %v491_v60  ;;  %312 = vst.msk [vmem:[#allocation2 + $0x70] sm:$0xff] %vm177_vm0, %v303_v61  ;;  %1222 = vmatpush1.bf16.msra.mxu1 %v1442_v62 }
  0xa1   : > { %1211 = vmatprep.subr.bf16.mxu1 %v1329_v2 }
  0xa3   : > { %v305_v63 = vpop.permute.xlu1 %304  ;;  %v1447_v0 = vld [vmem:[#allocation2 + $0xa8] sm:$0xff]  ;;  %v391_v1 = vpop.permute.xlu0 %390 }
  0xa4   : > { %313 = vst.msk [vmem:[#allocation2 + $0x78] sm:$0xff] %vm177_vm0, %v305_v63  ;;  %v483_v3 = vld [vmem:[#allocation2 + $0x28] sm:$0xff]  ;;  %400 = vst.msk [vmem:[#allocation2 + $0xb0] sm:$0xff] %vm177_vm0, %v391_v1  ;;  %1223 = vmatpush1.bf16.msra.mxu1 %v1447_v0 }
  0xa5   : > { %1153 = vmatpush3.bf16.msra.mxu0 %v483_v3  ;;  %1212 = vmatprep.subr.bf16.mxu1 %v1329_v2 }
  0xa7   : > { %v393_v4 = vpop.permute.xlu1 %392  ;;  %v484_v5 = vld [vmem:[#allocation2 + $0x30] sm:$0xff]  ;;  %v217_v6 = vpop.permute.xlu0 %216 }
  0xa8   : > { %401 = vst.msk [vmem:[#allocation2 + $0xb8] sm:$0xff] %vm177_vm0, %v393_v4  ;;  %v492_v7 = vld [vmem:[#allocation2 + $0x70] sm:$0xff]  ;;  %225 = vst.msk [vmem:[#allocation2 + $0x38] sm:$0xff] %vm177_vm0, %v217_v6 }
  0xa9   : > { %1154 = vmatprep.subr.bf16.mxu0 %v492_v7 }
  0xaa   : > { %1155 = vmatpush3.bf16.msra.mxu0 %v484_v5 }
  0xab   : > { %v493_v8 = vld [vmem:[#allocation2 + $0x78] sm:$0xff]  ;;  %v433_v9 = vpop.permute.xlu1 %432  ;;  %v431_v10 = vpop.permute.xlu0 %430  ;;  %v500_v11 = vld [vmem:[#allocation2 + $0xb0] sm:$0xff] }
  0xac   : > { %1156 = vmatprep.subr.bf16.mxu0 %v493_v8  ;;  %443 = vst.msk [vmem:[#allocation2 + $0xc8] sm:$0xff] %vm177_vm0, %v433_v9  ;;  %442 = vst.msk [vmem:[#allocation2 + $0xc0] sm:$0xff] %vm177_vm0, %v431_v10  ;;  %1224 = vmatpush1.bf16.msra.mxu1 %v500_v11 }
  0xad   : > { %1213 = vmatprep.subr.bf16.mxu1 %v1329_v2 }
  0xaf   : > { %v501_v12 = vld [vmem:[#allocation2 + $0xb8] sm:$0xff]  ;;  %v437_v13 = vpop.permute.xlu1 %436  ;;  %v435_v16 = vpop.permute.xlu0 %434 }
  0xb0   : > { %v485_v14 = vld [vmem:[#allocation2 + $0x38] sm:$0xff]  ;;  %445 = vst.msk [vmem:[#allocation2 + $0xd8] sm:$0xff] %vm177_vm0, %v437_v13  ;;  %1225 = vmatpush1.bf16.msra.mxu1 %v501_v12  ;;  %444 = vst.msk [vmem:[#allocation2 + $0xd0] sm:$0xff] %vm177_vm0, %v435_v16 }
  0xb1   : > { %1157 = vmatpush3.bf16.msra.mxu0 %v485_v14  ;;  %1214 = vmatprep.subr.bf16.mxu1 %v1329_v2 }
  0xb2   : > { %780 = vmatprep.subr.bf16.mxu0 %v1329_v2 }
  0xb3   : > { %v502_v18 = vld [vmem:[#allocation2 + $0xc0] sm:$0xff]  ;;  %v503_v19 = vld [vmem:[#allocation2 + $0xc8] sm:$0xff] }
  0xb4   : > { %716 = vmatmul.mubr.bf16.vlgmr.msra.gmra.mrb[0].mxu0 %v1273_v15  ;;  %1226 = vmatpush1.bf16.msra.mxu1 %v502_v18 }
  0xb5   : > { %781 = vmatpush1.bf16.msra.mxu0 %v1418_v43  ;;  %1215 = vmatprep.subr.bf16.mxu1 %v1329_v2  ;;  %v1311_v43 = vld [vmem:[%s1627_s1 + $0xcc] ss:$16 sps:$4 sm:$0xff]  }
  0xb6   : > { %782 = vmatprep.subr.bf16.mxu0 %v1329_v2  ;;  %723 = vmatprep.mubr.bf16.mxu0 %v1276_v17 }
  0xb7   : > { %v504_v21 = vld [vmem:[#allocation2 + $0xd0] sm:$0xff]  ;;  %v505_v23 = vld [vmem:[#allocation2 + $0xd8] sm:$0xff] }
  0xb8   : > { %1227 = vmatpush1.bf16.msra.mxu1 %v503_v19 }
  0xb9   : > { %783 = vmatpush1.bf16.msra.mxu0 %v1424_v48  ;;  %1216 = vmatprep.subr.bf16.mxu1 %v1329_v2  ;;  %v1320_v48 = vld [vmem:[%s1627_s1 + $0xe8] ss:$16 sps:$4 sm:$0xff]  }
  0xba   : > { %784 = vmatprep.subr.bf16.mxu0 %v1329_v2 }
  0xbc   : > { %724 = vmatmul.mubr.bf16.gmra.mrb[4].mxu0 %v1278_v20  ;;  %1228 = vmatpush1.bf16.msra.mxu1 %v504_v21 }
  0xbd   : > { %785 = vmatpush1.bf16.msra.mxu0 %v1430_v53  ;;  %1217 = vmatprep.subr.bf16.mxu1 %v1329_v2 }
  0xbe   : > { %786 = vmatprep.subr.bf16.mxu0 %v1329_v2  ;;  %731 = vmatprep.mubr.bf16.mxu0 %v1279_v22 }
  0xc0   : > { %1229 = vmatpush1.bf16.msra.mxu1 %v505_v23 }
  0xc1   : > { %787 = vmatpush1.bf16.msra.mxu0 %v1436_v58 }
  0xc2   : > { %788 = vmatprep.subr.bf16.mxu0 %v1329_v2 }
  0xc3   : > { %821 = vmatmul.mubr.bf16.vlgmr.msra.gmra.mrb[0].mxu1 %v1281_v24 }
  0xc4   : > { %732 = vmatmul.mubr.bf16.gmra.mrb[8].mxu0 %v1284_v25  ;;  %1100 = vmatprep.mubr.msk.bf16.mxu1 %vm658_vm1, %v1287_v27 }
  0xc5   : > { %789 = vmatpush1.bf16.msra.mxu0 %v1442_v62  ;;  %739 = vmatprep.mubr.bf16.mxu0 %v1285_v26 }
  0xc6   : > { %790 = vmatprep.subr.bf16.mxu0 %v1329_v2 }
  0xc9   : > { %791 = vmatpush1.bf16.msra.mxu0 %v1447_v0 }
  0xca   : > { %792 = vmatprep.subr.bf16.mxu0 %v1329_v2 }
  0xcb   : > { %829 = vmatmul.mubr.bf16.gmra.mrb[4].mxu1 %v1290_v29 }
  0xcc   : > { %740 = vmatmul.mubr.bf16.gmra.mrb[12].mxu0 %v1289_v28  ;;  %1101 = vmatprep.mubr.msk.bf16.mxu1 %vm658_vm1, %v1293_v31 }
  0xcd   : > { %793 = vmatpush1.bf16.msra.mxu0 %v500_v11  ;;  %747 = vmatprep.mubr.bf16.mxu0 %v1291_v30 }
  0xce   : > { %794 = vmatprep.subr.bf16.mxu0 %v1329_v2 }
  0xd1   : > { %795 = vmatpush1.bf16.msra.mxu0 %v501_v12 }
  0xd2   : > { %796 = vmatprep.subr.bf16.mxu0 %v1329_v2 }
  0xd3   : > { %837 = vmatmul.mubr.bf16.gmra.mrb[8].mxu1 %v1296_v33 }
  0xd4   : > { %748 = vmatmul.mubr.bf16.gmra.mrb[16].mxu0 %v1295_v32  ;;  %1102 = vmatprep.mubr.msk.bf16.mxu1 %vm658_vm1, %v1299_v35 }
  0xd5   : > { %797 = vmatpush1.bf16.msra.mxu0 %v502_v18  ;;  %755 = vmatprep.mubr.bf16.mxu0 %v1297_v34 }
  0xd6   : > { %798 = vmatprep.subr.bf16.mxu0 %v1329_v2 }
  0xd9   : > { %799 = vmatpush1.bf16.msra.mxu0 %v503_v19 }
  0xda   : > { %800 = vmatprep.subr.bf16.mxu0 %v1329_v2 }
  0xdb   : > { %845 = vmatmul.mubr.bf16.gmra.mrb[12].mxu1 %v1302_v37 }
  0xdc   : > { %756 = vmatmul.mubr.bf16.gmra.mrb[20].mxu0 %v1301_v36  ;;  %1103 = vmatprep.mubr.msk.bf16.mxu1 %vm658_vm1, %v1305_v39 }
  0xdd   : > { %801 = vmatpush1.bf16.msra.mxu0 %v504_v21  ;;  %763 = vmatprep.mubr.bf16.mxu0 %v1303_v38 }
  0xde   : > { %802 = vmatprep.subr.bf16.mxu0 %v1329_v2  ;;  %v1313_v2 = vld [vmem:[%s1627_s1 + $0xe0] ss:$16 sps:$4 sm:$0xff]  }
  0xe1   : > { %803 = vmatpush1.bf16.msra.mxu0 %v505_v23 }
  0xe3   : > { %853 = vmatmul.mubr.bf16.gmra.mrb[16].mxu1 %v1308_v41 }
  0xe4   : > { %764 = vmatmul.mubr.bf16.gmra.mrb[24].mxu0 %v1307_v40  ;;  %1104 = vmatprep.mubr.msk.bf16.mxu1 %vm658_vm1, %v1311_v43 }
  0xe5   : > { %771 = vmatprep.mubr.bf16.mxu0 %v1309_v42 }
  0xeb   : > { %861 = vmatmul.mubr.bf16.gmra.mrb[20].mxu1 %v1314_v44 }
  0xec   : > { %772 = vmatmul.mubr.bf16.gmra.mrb[28].mxu0 %v1313_v2  ;;  %1105 = vmatprep.mubr.msk.bf16.mxu1 %vm658_vm1, %v1318_v46 }
  0xed   : > { %1098 = vmatprep.mubr.msk.bf16.mxu0 %vm658_vm1, %v1317_v45 }
  0xf3   : > { %869 = vmatmul.mubr.bf16.gmra.mrb[24].mxu1 %v1320_v48 }
  0xf4   : > { %813 = vmatmul.mubr.bf16.vlgmr.msra.gmra.mrb[32].mxu0 %v1315_v47 }
 0x187   : > { %v1158_v49 = vpop.f32.mrb[0].mxu0 }
 0x188   : > { %v1159_v50 = vpop.f32.mrb[1].mxu0 }
 0x189   : > { %v1579_v51 = vadd.f32 %v1159_v50, %v1158_v49  ;;  %v1161_v52 = vpop.f32.mrb[2].mxu0 }
 0x18a   : > { %v1162_v53 = vpop.f32.mrb[3].mxu0 }
 0x18b   : > { %v1581_v54 = vadd.f32 %v1162_v53, %v1161_v52 }
 0x18f   : > { %v1164_v55 = vpop.f32.mrb[4].mxu0 }
 0x190   : > { %v1165_v56 = vpop.f32.mrb[5].mxu0 }
 0x191   : > { %v1166_v57 = vadd.f32 %v1165_v56, %v1164_v55  ;;  %v1167_v58 = vpop.f32.mrb[6].mxu0 }
 0x192   : > { %v1168_v59 = vpop.f32.mrb[7].mxu0 }
 0x193   : > { %v1169_v60 = vadd.f32 %v1168_v59, %v1167_v58 }
 0x196   : > { %v822_v62 = vpop.f32.mrb[0].mxu1 }
 0x197   : > { %v1170_v61 = vpop.f32.mrb[8].mxu0  ;;  %v823_v63 = vadd.f32 %v1166_v57, %v822_v62  ;;  %v824_v1 = vpop.f32.mrb[1].mxu1 }
 0x198   : > { %v1171_v0 = vpop.f32.mrb[9].mxu0  ;;  %v825_v5 = vpop.f32.mrb[2].mxu1 }
 0x199   : > { %v1172_v3 = vadd.f32 %v1171_v0, %v1170_v61  ;;  %v1173_v4 = vpop.f32.mrb[10].mxu0  ;;  %v879_v6 = vmax.f32 %v823_v63, 0.0  ;;  %v826_v7 = vadd.f32 %v1169_v60, %v825_v5  ;;  %v827_v9 = vpop.f32.mrb[3].mxu1 }
 0x19a   : > { %v1174_v8 = vpop.f32.mrb[11].mxu0 }
 0x19b   : > { %v1175_v10 = vadd.f32 %v1174_v8, %v1173_v4  ;;  %v1128_v11 = vpack.c.bf16 %v879_v6, %v879_v6  ;;  %v880_v12 = vmax.f32 %v826_v7, 0.0 }
 0x19d   : > { %960 = vst.msk [vmem:[%s1587_s8 + $0x8] sm:$0xf] %vm957_vm2, %v1128_v11  ;;  %v1129_v13 = vpack.c.bf16 %v880_v12, %v880_v12 }
 0x19e   : > { %v830_v15 = vpop.f32.mrb[4].mxu1 }
 0x19f   : > { %v1176_v14 = vpop.f32.mrb[12].mxu0  ;;  %961 = vst.msk [vmem:[%s1587_s8 + $0xc] sm:$0xf] %vm957_vm2, %v1129_v13  ;;  %v831_v16 = vadd.f32 %v1172_v3, %v830_v15  ;;  %v832_v18 = vpop.f32.mrb[5].mxu1 }
 0x1a0   : > { %v1177_v17 = vpop.f32.mrb[13].mxu0  ;;  %v833_v21 = vpop.f32.mrb[6].mxu1 }
 0x1a1   : > { %v1178_v19 = vadd.f32 %v1177_v17, %v1176_v14  ;;  %v1179_v20 = vpop.f32.mrb[14].mxu0  ;;  %v881_v22 = vmax.f32 %v831_v16, 0.0  ;;  %v834_v23 = vadd.f32 %v1175_v10, %v833_v21  ;;  %v835_v25 = vpop.f32.mrb[7].mxu1 }
 0x1a2   : > { %v1180_v24 = vpop.f32.mrb[15].mxu0 }
 0x1a3   : > { %v1181_v26 = vadd.f32 %v1180_v24, %v1179_v20  ;;  %v1130_v27 = vpack.c.bf16 %v881_v22, %v881_v22  ;;  %v882_v28 = vmax.f32 %v834_v23, 0.0 }
 0x1a5   : > { %962 = vst.msk [vmem:[%s1587_s8 + $0x10] sm:$0xf] %vm957_vm2, %v1130_v27  ;;  %v1131_v29 = vpack.c.bf16 %v882_v28, %v882_v28 }
 0x1a6   : > { %v838_v31 = vpop.f32.mrb[8].mxu1 }
 0x1a7   : > { %v1182_v30 = vpop.f32.mrb[16].mxu0  ;;  %963 = vst.msk [vmem:[%s1587_s8 + $0x14] sm:$0xf] %vm957_vm2, %v1131_v29  ;;  %v839_v32 = vadd.f32 %v1178_v19, %v838_v31  ;;  %v840_v34 = vpop.f32.mrb[9].mxu1 }
 0x1a8   : > { %v1183_v33 = vpop.f32.mrb[17].mxu0  ;;  %v841_v37 = vpop.f32.mrb[10].mxu1 }
 0x1a9   : > { %v1184_v35 = vadd.f32 %v1183_v33, %v1182_v30  ;;  %v1185_v36 = vpop.f32.mrb[18].mxu0  ;;  %v883_v38 = vmax.f32 %v839_v32, 0.0  ;;  %v842_v39 = vadd.f32 %v1181_v26, %v841_v37  ;;  %v843_v41 = vpop.f32.mrb[11].mxu1 }
 0x1aa   : > { %v1186_v40 = vpop.f32.mrb[19].mxu0 }
 0x1ab   : > { %v1187_v42 = vadd.f32 %v1186_v40, %v1185_v36  ;;  %v1132_v43 = vpack.c.bf16 %v883_v38, %v883_v38  ;;  %v884_v2 = vmax.f32 %v842_v39, 0.0 }
 0x1ad   : > { %964 = vst.msk [vmem:[%s1587_s8 + $0x18] sm:$0xf] %vm957_vm2, %v1132_v43  ;;  %v1133_v44 = vpack.c.bf16 %v884_v2, %v884_v2 }
 0x1ae   : > { %v846_v46 = vpop.f32.mrb[12].mxu1 }
 0x1af   : > { %v1188_v45 = vpop.f32.mrb[20].mxu0  ;;  %965 = vst.msk [vmem:[%s1587_s8 + $0x1c] sm:$0xf] %vm957_vm2, %v1133_v44  ;;  %v847_v47 = vadd.f32 %v1184_v35, %v846_v46  ;;  %v848_v49 = vpop.f32.mrb[13].mxu1 }
 0x1b0   : > { %v1189_v48 = vpop.f32.mrb[21].mxu0  ;;  %v849_v53 = vpop.f32.mrb[14].mxu1 }
 0x1b1   : > { %v1190_v50 = vadd.f32 %v1189_v48, %v1188_v45  ;;  %v1191_v52 = vpop.f32.mrb[22].mxu0  ;;  %v885_v55 = vmax.f32 %v847_v47, 0.0  ;;  %v850_v56 = vadd.f32 %v1187_v42, %v849_v53  ;;  %v851_v58 = vpop.f32.mrb[15].mxu1 }
 0x1b2   : > { %v1192_v57 = vpop.f32.mrb[23].mxu0 }
 0x1b3   : > { %v1193_v59 = vadd.f32 %v1192_v57, %v1191_v52  ;;  %v1134_v60 = vpack.c.bf16 %v885_v55, %v885_v55  ;;  %v886_v61 = vmax.f32 %v850_v56, 0.0 }
 0x1b5   : > { %966 = vst.msk [vmem:[%s1587_s8 + $0x20] sm:$0xf] %vm957_vm2, %v1134_v60  ;;  %v1135_v62 = vpack.c.bf16 %v886_v61, %v886_v61 }
 0x1b6   : > { %v854_v0 = vpop.f32.mrb[16].mxu1 }
 0x1b7   : > { %v1194_v63 = vpop.f32.mrb[24].mxu0  ;;  %967 = vst.msk [vmem:[%s1587_s8 + $0x24] sm:$0xf] %vm957_vm2, %v1135_v62  ;;  %v855_v1 = vadd.f32 %v1190_v50, %v854_v0  ;;  %v856_v4 = vpop.f32.mrb[17].mxu1 }
 0x1b8   : > { %v1195_v3 = vpop.f32.mrb[25].mxu0  ;;  %v857_v7 = vpop.f32.mrb[18].mxu1 }
 0x1b9   : > { %v1196_v5 = vadd.f32 %v1195_v3, %v1194_v63  ;;  %v1197_v6 = vpop.f32.mrb[26].mxu0  ;;  %v887_v8 = vmax.f32 %v855_v1, 0.0  ;;  %v858_v9 = vadd.f32 %v1193_v59, %v857_v7  ;;  %v859_v11 = vpop.f32.mrb[19].mxu1 }
 0x1ba   : > { %v1198_v10 = vpop.f32.mrb[27].mxu0 }
 0x1bb   : > { %v1199_v12 = vadd.f32 %v1198_v10, %v1197_v6  ;;  %v1136_v13 = vpack.c.bf16 %v887_v8, %v887_v8  ;;  %v888_v14 = vmax.f32 %v858_v9, 0.0 }
 0x1bd   : > { %968 = vst.msk [vmem:[%s1587_s8 + $0x28] sm:$0xf] %vm957_vm2, %v1136_v13  ;;  %v1137_v15 = vpack.c.bf16 %v888_v14, %v888_v14 }
 0x1be   : > { %v862_v17 = vpop.f32.mrb[20].mxu1 }
 0x1bf   : > { %v1200_v16 = vpop.f32.mrb[28].mxu0  ;;  %969 = vst.msk [vmem:[%s1587_s8 + $0x2c] sm:$0xf] %vm957_vm2, %v1137_v15  ;;  %v863_v18 = vadd.f32 %v1196_v5, %v862_v17  ;;  %v864_v20 = vpop.f32.mrb[21].mxu1 }
 0x1c0   : > { %v1201_v19 = vpop.f32.mrb[29].mxu0  ;;  %v865_v23 = vpop.f32.mrb[22].mxu1 }
 0x1c1   : > { %v1202_v21 = vadd.f32 %v1201_v19, %v1200_v16  ;;  %v1203_v22 = vpop.f32.mrb[30].mxu0  ;;  %v889_v24 = vmax.f32 %v863_v18, 0.0  ;;  %v866_v25 = vadd.f32 %v1199_v12, %v865_v23  ;;  %v867_v27 = vpop.f32.mrb[23].mxu1 }
 0x1c2   : > { %v1204_v26 = vpop.f32.mrb[31].mxu0 }
 0x1c3   : > { %v1205_v28 = vadd.f32 %v1204_v26, %v1203_v22  ;;  %v1138_v29 = vpack.c.bf16 %v889_v24, %v889_v24  ;;  %v890_v30 = vmax.f32 %v866_v25, 0.0 }
 0x1c5   : > { %970 = vst.msk [vmem:[%s1587_s8 + $0x30] sm:$0xf] %vm957_vm2, %v1138_v29  ;;  %v1139_v31 = vpack.c.bf16 %v890_v30, %v890_v30 }
 0x1c6   : > { %v870_v33 = vpop.f32.mrb[24].mxu1 }
 0x1c7   : > { %v814_v32 = vpop.f32.mrb[32].mxu0  ;;  %971 = vst.msk [vmem:[%s1587_s8 + $0x34] sm:$0xf] %vm957_vm2, %v1139_v31  ;;  %v871_v35 = vadd.f32 %v1202_v21, %v870_v33  ;;  %v872_v37 = vpop.f32.mrb[25].mxu1 }
 0x1c8   : > { %v815_v34 = vadd.f32 %v1579_v51, %v814_v32  ;;  %v816_v36 = vpop.f32.mrb[33].mxu0  ;;  %v873_v39 = vpop.f32.mrb[26].mxu1 }
 0x1c9   : > { %v817_v38 = vpop.f32.mrb[34].mxu0  ;;  %v891_v41 = vmax.f32 %v871_v35, 0.0  ;;  %v874_v43 = vadd.f32 %v1205_v28, %v873_v39  ;;  %v875_v44 = vpop.f32.mrb[27].mxu1 }
 0x1ca   : > { %v877_v40 = vmax.f32 %v815_v34, 0.0  ;;  %v818_v42 = vadd.f32 %v1581_v54, %v817_v38  ;;  %v819_v2 = vpop.f32.mrb[35].mxu0 }
 0x1cb   : > { %v1140_v46 = vpack.c.bf16 %v891_v41, %v891_v41  ;;  %v892_v51 = vmax.f32 %v874_v43, 0.0 }
 0x1cc   : > { %v1126_v45 = vpack.c.bf16 %v877_v40, %v877_v40  ;;  %v878_v47 = vmax.f32 %v818_v42, 0.0 }
 0x1cd   : > { %972 = vst.msk [vmem:[%s1587_s8 + $0x38] sm:$0xf] %vm957_vm2, %v1140_v46  ;;  %v1141_v49 = vpack.c.bf16 %v892_v51, %v892_v51 }
 0x1ce   : > { %958 = vst.msk [vmem:[%s1587_s8] sm:$0xf] %vm957_vm2, %v1126_v45  ;;  %v1127_v48 = vpack.c.bf16 %v878_v47, %v878_v47 }
 0x1cf   : > { %973 = vst.msk [vmem:[%s1587_s8 + $0x3c] sm:$0xf] %vm957_vm2, %v1141_v49 }
 0x1d0   : > { %959 = vst.msk [vmem:[%s1587_s8 + $0x4] sm:$0xf] %vm957_vm2, %v1127_v48 }
 0x1d1 PF: > { %s12_s9 = sadd.s32 1, %s1327_s9  }
 0x1d2   : > { %p9_p4 = scmp.ge.s32.totalorder %s12_s9, 4  }
 0x1d4   :  { %11 = sbr.rel (!%p9_p4) target bundleno = 1 (0x1), region = 58 }

// kernel: generator_forward.10
= control target key start
LH: loop header
LB: loop body
LE: loop exit
PB: predicated region body
PF: predicated region fallthrough
CT: control target
= control target key end

     0   :  { %7 = vsyncpa [#allocation4], 0  ;;  %s709_s9 = smov 0   ;;  %s779_s0 = inlined_call_operand.vmem [shape: bf16[2,16,262], index: 0, kind: input, shape index: {}]   ;;  %s780_s1 = inlined_call_operand.hbm [shape: bf16[32,112], index: 1, kind: input, shape index: {}]   ;;  %s781_s2 = inlined_call_operand.vmem [shape: bf16[2,32,256], index: 2, kind: output, shape index: {}]  }
   0x1 LB: > { %s715_s10 = sadd.s32 4294967295, %s682_s9   ;;  %p547_p0 = scmp.ge.s32.totalorder %s682_s9, 1  ;;  %s682_s9 = sphi %s709_s9, %s13_s9  }
   0x2   : > { %p91_p1 = scmp.lt.s32.totalorder %s682_s9, 3  ;;  %s684_s11 = smov [#allocation3]  }
   0x3   : > { %s103_s12 = sshll.u32 %s684_s11, 4  ;;  %p782_p3 = scmp.eq.s32.totalorder %s715_s10, 0  ;;  %s104_s12 = int_to_ptr.vmem [resolvable:$true] %s103_s12 }
   0x4   : > { %p719_p2 = pnand %p547_p0, %p91_p1  ;;  %s644_s17 = scalar_lea.hbm %s780_s1, 256 }
   0x5   : > { %p645_p6 = scmp.ne.s32.totalorder %s780_s1, %s644_s17  ;;  %p651_p10 = scmp.lt.u32.totalorder %s644_s17, %s780_s1 }
   0x6   : > { %s784_s13 = scalar_select %p719_p2, 1, 0 }
   0x7   : > { %p609_p4 = pneg %p719_p2 }
   0x9   : > { %p728_p5 = pnand %p782_p3, %p609_p4 }
   0xb   : > { %p646_p7 = pneg %p728_p5 }
   0xd   : > { %p647_p8 = pnand %p646_p7, %p645_p6 }
   0xf   : > { %p648_p9 = pneg %p647_p8 }
  0x11   : > { %p653_p11 = pnand %p651_p10, %p648_p9 }
  0x13   : > { %656 = shalt.err (!%p653_p11)
}
  0x14   : > { %s657_s22 = scalar_lea.vmem %s104_s12, 256  ;;  %p665_p1 = scmp.lt.s32.totalorder %s104_s12, %s104_s12 }
  0x15   : > { %p658_p12 = scmp.ne.s32.totalorder %s104_s12, %s657_s22  ;;  %p666_p4 = scmp.lt.s32.totalorder %s657_s22, %s657_s22 }
  0x17   : > { %p660_p13 = pnand %p658_p12, %p646_p7  ;;  %p667_p3 = por %p666_p4, %p665_p1 }
  0x19   : > { %p661_p0 = pneg %p660_p13 }
  0x1b   : > { %p668_p2 = pnand %p667_p3, %p661_p0 }
  0x1d   : > { %671 = shalt.err (!%p668_p2)
}
  0x1e   : > { %s685_s23 = smov 64   ;;  %s686_s24 = smov 4  }
  0x1f   : > { %612 = dma.hbm_to_vmem [thread:$0]  (!%p728_p5), %s780_s1, 256, %s104_s12, [#allocation4], %s685_s23, %s685_s23, %s686_s24  }
  0x20   : > { %p786_p6 = scmp.ne.s32.totalorder %s784_s13, 0 }
  0x21   : > { %p787_p8 = scmp.eq.s32.totalorder (!%p786_p6), %s715_s10, 0 }
  0x22   : > { %127 = sbr.rel (%p786_p6) target bundleno = 421 (0x1a5), region = 28 }
  0x29   : > { %677 = dma.done.wait (%p787_p8), [#allocation4], 256   ;;  %p788_p7 = pmov %p787_p8 }
  0x2a   : > { %p149_p2 = scmp.lt.s32.totalorder %s715_s10, 1  ;;  %s687_s3 = smov 127   ;;  %v691_v7 = vmov 0   ;;  %vm197_vm0 = vcmask 1039360   ;;  %vm227_vm1 = vcmask 1031168   ;;  %vm257_vm2 = vcmask 1022976  }
  0x2b   : > { %679 = vsyncadd (%p788_p7), [#allocation4], 4294967040  ;;  %s688_s4 = smov 126   ;;  %s689_s5 = smov 125   ;;  %421 = vmatprep.mubr.bf16.mxu0 %v691_v7  ;;  %431 = vmatprep.mubr.bf16.mxu1 %v691_v7  ;;  %vm287_vm3 = vcmask 1014784   ;;  %vm317_vm4 = vcmask 1006592  }
  0x2c   : > { %s790_s10 = smov (!%p149_p2, %s715_s10), 1  ;;  %s690_s6 = smov 124   ;;  %vm347_vm5 = vcmask 998400   ;;  %v642_v39 = vld [vmem:[#allocation3] sm:$0xff]   ;;  %v643_v40 = vld [vmem:[#allocation3 + $0x8] sm:$0xff]   ;;  %vm382_vm6 = vcmask 916480  }
  0x2d   : > { %s604_s27 = smul.u32 24, %s790_s10  ;;  %s692_s7 = smov 123  }
  0x2e   : > { %s693_s8 = smov 122   ;;  %s585_s11 = sshll.u32 %s790_s10, 5 }
  0x2f   : > { %s762_s30 = scalar_lea.vmem %s779_s0, %s604_s27  ;;  %s158_s14 = scalar_lea.vmem %s781_s2, %s585_s11 }
  0x30   : > { %v633_v0 = vld [vmem:[%s762_s30 + $0x4] ss:$12 sps:$4 sm:$0xff]   ;;  %v635_v1 = vld [vmem:[%s762_s30] ss:$12 sps:$4 sm:$0xff]   ;;  %v636_v2 = vld [vmem:[%s762_s30 + $0x8] ss:$12 sps:$4 sm:$0xff]  }
  0x31   : > { %193 = vrot.lane.b32.xlu0 %v633_v0, %s687_s3  ;;  %389 = vmatprep.subr.bf16.mxu0 %v633_v0  ;;  %v637_v3 = vld [vmem:[%s762_s30 + $0x8] ss:$12 sps:$4 sm:$0xff]  }
  0x32   : > { %191 = vrot.lane.b32.xlu1 %v635_v1, %s687_s3  ;;  %590 = vmatprep.subr.bf16.mxu1 %v633_v0  ;;  %v638_v4 = vld [vmem:[%s762_s30 + $0x8] ss:$12 sps:$4 sm:$0xff]  }
  0x33   : > { %390 = vmatpush1.bf16.msra.mxu0 %v635_v1  ;;  %597 = vmatpush1.bf16.msra.mxu1 %v635_v1  ;;  %v639_v5 = vld [vmem:[%s762_s30 + $0x8] ss:$12 sps:$4 sm:$0xff]  }
  0x34   : > { %v640_v6 = vld [vmem:[%s762_s30 + $0x8] ss:$12 sps:$4 sm:$0xff]  }
  0x35   : > { %195 = vrot.lane.b32.xlu0 %v636_v2, %s687_s3  ;;  %v641_v8 = vld [vmem:[%s762_s30 + $0x8] ss:$12 sps:$4 sm:$0xff]  }
  0x36   : > { %223 = vrot.lane.b32.xlu1 %v633_v0, %s688_s4 }
  0x39   : > { %225 = vrot.lane.b32.xlu0 %v637_v3, %s688_s4 }
  0x3a   : > { %221 = vrot.lane.b32.xlu1 %v635_v1, %s688_s4 }
  0x3d   : > { %253 = vrot.lane.b32.xlu0 %v633_v0, %s689_s5 }
  0x3e   : > { %255 = vrot.lane.b32.xlu1 %v638_v4, %s689_s5 }
  0x41   : > { %251 = vrot.lane.b32.xlu0 %v635_v1, %s689_s5 }
  0x42   : > { %283 = vrot.lane.b32.xlu1 %v633_v0, %s690_s6 }
  0x45   : > { %285 = vrot.lane.b32.xlu0 %v639_v5, %s690_s6 }
  0x46   : > { %281 = vrot.lane.b32.xlu1 %v635_v1, %s690_s6 }
  0x49   : > { %313 = vrot.lane.b32.xlu0 %v633_v0, %s692_s7 }
  0x4a   : > { %315 = vrot.lane.b32.xlu1 %v640_v6, %s692_s7 }
  0x4d   : > { %311 = vrot.lane.b32.xlu0 %v635_v1, %s692_s7 }
  0x4e   : > { %343 = vrot.lane.b32.xlu1 %v633_v0, %s693_s8 }
  0x51   : > { %345 = vrot.lane.b32.xlu0 %v641_v8, %s693_s8 }
  0x52   : > { %341 = vrot.lane.b32.xlu1 %v635_v1, %s693_s8 }
  0xa3   : > { %v194_v9 = vpop.permute.xlu0 %193 }
  0xa4   : > { %v192_v10 = vpop.permute.xlu1 %191 }
  0xa5   : > { %v198_v14 = vsel %vm197_vm0, %v192_v10, %v194_v9 }
  0xa7   : > { %v196_v11 = vpop.permute.xlu0 %195 }
  0xa8   : > { %v224_v12 = vpop.permute.xlu1 %223  ;;  %v199_v13 = vsel %vm197_vm0, %v194_v9, %v196_v11 }
  0xa9   : > { %391 = vmatprep.subr.bf16.mxu0 %v199_v13  ;;  %591 = vmatprep.subr.bf16.mxu1 %v199_v13 }
  0xaa   : > { %392 = vmatpush1.bf16.msra.mxu0 %v198_v14  ;;  %598 = vmatpush1.bf16.msra.mxu1 %v198_v14 }
  0xab   : > { %v226_v15 = vpop.permute.xlu0 %225 }
  0xac   : > { %v222_v16 = vpop.permute.xlu1 %221  ;;  %v229_v17 = vsel %vm227_vm1, %v224_v12, %v226_v15 }
  0xad   : > { %393 = vmatprep.subr.bf16.mxu0 %v229_v17  ;;  %592 = vmatprep.subr.bf16.mxu1 %v229_v17  ;;  %v228_v18 = vsel %vm227_vm1, %v222_v16, %v224_v12 }
  0xae   : > { %394 = vmatpush1.bf16.msra.mxu0 %v228_v18  ;;  %599 = vmatpush1.bf16.msra.mxu1 %v228_v18 }
  0xaf   : > { %v254_v19 = vpop.permute.xlu0 %253 }
  0xb0   : > { %v256_v20 = vpop.permute.xlu1 %255 }
  0xb1   : > { %v259_v21 = vsel %vm257_vm2, %v254_v19, %v256_v20 }
  0xb2   : > { %395 = vmatprep.subr.bf16.mxu0 %v259_v21  ;;  %593 = vmatprep.subr.bf16.mxu1 %v259_v21 }
  0xb3   : > { %v252_v22 = vpop.permute.xlu0 %251 }
  0xb4   : > { %v284_v23 = vpop.permute.xlu1 %283  ;;  %v258_v24 = vsel %vm257_vm2, %v252_v22, %v254_v19 }
  0xb5   : > { %396 = vmatpush1.bf16.msra.mxu0 %v258_v24  ;;  %600 = vmatpush1.bf16.msra.mxu1 %v258_v24 }
  0xb7   : > { %v286_v25 = vpop.permute.xlu0 %285 }
  0xb8   : > { %v282_v26 = vpop.permute.xlu1 %281  ;;  %v289_v27 = vsel %vm287_vm3, %v284_v23, %v286_v25 }
  0xb9   : > { %397 = vmatprep.subr.bf16.mxu0 %v289_v27  ;;  %594 = vmatprep.subr.bf16.mxu1 %v289_v27  ;;  %v288_v28 = vsel %vm287_vm3, %v282_v26, %v284_v23 }
  0xba   : > { %398 = vmatpush1.bf16.msra.mxu0 %v288_v28  ;;  %601 = vmatpush1.bf16.msra.mxu1 %v288_v28 }
  0xbb   : > { %v314_v29 = vpop.permute.xlu0 %313 }
  0xbc   : > { %v316_v30 = vpop.permute.xlu1 %315 }
  0xbd   : > { %v319_v31 = vsel %vm317_vm4, %v314_v29, %v316_v30 }
  0xbe   : > { %399 = vmatprep.subr.bf16.mxu0 %v319_v31  ;;  %595 = vmatprep.subr.bf16.mxu1 %v319_v31 }
  0xbf   : > { %v312_v32 = vpop.permute.xlu0 %311 }
  0xc0   : > { %v344_v33 = vpop.permute.xlu1 %343  ;;  %v318_v34 = vsel %vm317_vm4, %v312_v32, %v314_v29 }
  0xc1   : > { %400 = vmatpush1.bf16.msra.mxu0 %v318_v34  ;;  %602 = vmatpush1.bf16.msra.mxu1 %v318_v34 }
  0xc3   : > { %v346_v35 = vpop.permute.xlu0 %345 }
  0xc4   : > { %v342_v36 = vpop.permute.xlu1 %341  ;;  %v349_v37 = vsel %vm347_vm5, %v344_v33, %v346_v35 }
  0xc5   : > { %401 = vmatprep.subr.bf16.mxu0 %v349_v37  ;;  %596 = vmatprep.subr.bf16.mxu1 %v349_v37  ;;  %v348_v38 = vsel %vm347_vm5, %v342_v36, %v344_v33 }
  0xc6   : > { %402 = vmatpush1.bf16.msra.mxu0 %v348_v38  ;;  %603 = vmatpush1.bf16.msra.mxu1 %v348_v38 }
  0xc9   : > { %577 = vmatmul.mubr.msk.bf16.vlgmr.msra.gmra.mrb[0].mxu0 %vm382_vm6, %v642_v39  ;;  %578 = vmatmul.mubr.msk.bf16.vlgmr.msra.gmra.mrb[0].mxu1 %vm382_vm6, %v643_v40 }
 0x19c   : > { %v423_v41 = vpop.f32.mrb[0].mxu0  ;;  %v433_v42 = vpop.f32.mrb[0].mxu1 }
 0x19d   : > { %v442_v43 = vmax.f32 %v423_v41, 0.0  ;;  %v446_v44 = vmax.f32 %v433_v42, 0.0  ;;  %v425_v45 = vpop.f32.mrb[1].mxu0  ;;  %v435_v46 = vpop.f32.mrb[1].mxu1 }
 0x19e   : > { %v443_v47 = vmax.f32 %v425_v45, 0.0  ;;  %v447_v48 = vmax.f32 %v435_v46, 0.0  ;;  %v427_v49 = vpop.f32.mrb[2].mxu0  ;;  %v437_v50 = vpop.f32.mrb[2].mxu1 }
 0x19f   : > { %v444_v51 = vmax.f32 %v427_v49, 0.0  ;;  %v448_v52 = vmax.f32 %v437_v50, 0.0  ;;  %v429_v53 = vpop.f32.mrb[3].mxu0  ;;  %v439_v54 = vpop.f32.mrb[3].mxu1 }
 0x1a0   : > { %v586_v55 = vpack.c.bf16 %v443_v47, %v442_v43  ;;  %v588_v56 = vpack.c.bf16 %v447_v48, %v446_v44  ;;  %v445_v57 = vmax.f32 %v429_v53, 0.0  ;;  %v449_v58 = vmax.f32 %v439_v54, 0.0 }
 0x1a2   : > { %474 = vst [vmem:[%s158_s14] sm:$0xff] %v586_v55  ;;  %476 = vst [vmem:[%s158_s14 + $0x10] sm:$0xff] %v588_v56  ;;  %v587_v59 = vpack.c.bf16 %v445_v57, %v444_v51  ;;  %v589_v60 = vpack.c.bf16 %v449_v58, %v448_v52 }
 0x1a4   : > { %475 = vst [vmem:[%s158_s14 + $0x8] sm:$0xff] %v587_v59  ;;  %477 = vst [vmem:[%s158_s14 + $0x18] sm:$0xff] %v589_v60 }
 0x1a5 PF: > { %s13_s9 = sadd.s32 1, %s682_s9  }
 0x1a6   : > { %p10_p3 = scmp.ge.s32.totalorder %s13_s9, 4  }
 0x1a8   :  { %12 = sbr.rel (!%p10_p3) target bundleno = 1 (0x1), region = 63 }
 0x1af   :  { %499 = vsyncpa [#allocation4], 1 }
 0x1b0   :  { %501 = vsyncpa [#allocation4 + $0x1], 1 }

// kernel: generator_forward.11
= control target key start
LH: loop header
LB: loop body
LE: loop exit
PB: predicated region body
PF: predicated region fallthrough
CT: control target
= control target key end

     0   :  { %7 = vsyncpa [#allocation4], 0  ;;  %s1101_s9 = smov 0   ;;  %s1346_s0 = inlined_call_operand.vmem [shape: bf16[2,8,1030], index: 0, kind: input, shape index: {}]   ;;  %s1347_s1 = inlined_call_operand.hbm [shape: bf16[16,56], index: 1, kind: input, shape index: {}]   ;;  %s1348_s2 = inlined_call_operand.vmem [shape: bf16[2,16,1024], index: 2, kind: output, shape index: {}]  }
   0x1 LB: > { %s1107_s10 = sadd.s32 4294967295, %s1074_s9   ;;  %p938_p0 = scmp.ge.s32.totalorder %s1074_s9, 1  ;;  %s1074_s9 = sphi %s1101_s9, %s13_s9  }
   0x2   : > { %p91_p1 = scmp.lt.s32.totalorder %s1074_s9, 3  ;;  %s1076_s11 = smov [#allocation3]  }
   0x3   : > { %s103_s12 = sshll.u32 %s1076_s11, 4  ;;  %p1349_p3 = scmp.eq.s32.totalorder %s1107_s10, 0  ;;  %s104_s12 = int_to_ptr.vmem [resolvable:$true] %s103_s12 }
   0x4   : > { %p1111_p2 = pnand %p938_p0, %p91_p1  ;;  %s1036_s17 = scalar_lea.hbm %s1347_s1, 128 }
   0x5   : > { %p1037_p6 = scmp.ne.s32.totalorder %s1347_s1, %s1036_s17  ;;  %p1043_p10 = scmp.lt.u32.totalorder %s1036_s17, %s1347_s1 }
   0x6   : > { %s1351_s13 = scalar_select %p1111_p2, 1, 0 }
   0x7   : > { %p1011_p4 = pneg %p1111_p2 }
   0x9   : > { %p1120_p5 = pnand %p1349_p3, %p1011_p4 }
   0xb   : > { %p1038_p7 = pneg %p1120_p5 }
   0xd   : > { %p1039_p8 = pnand %p1038_p7, %p1037_p6 }
   0xf   : > { %p1040_p9 = pneg %p1039_p8 }
  0x11   : > { %p1045_p11 = pnand %p1043_p10, %p1040_p9 }
  0x13   : > { %1048 = shalt.err (!%p1045_p11)
}
  0x14   : > { %s1049_s22 = scalar_lea.vmem %s104_s12, 128  ;;  %p1057_p1 = scmp.lt.s32.totalorder %s104_s12, %s104_s12 }
  0x15   : > { %p1050_p12 = scmp.ne.s32.totalorder %s104_s12, %s1049_s22  ;;  %p1058_p4 = scmp.lt.s32.totalorder %s1049_s22, %s1049_s22 }
  0x17   : > { %p1052_p13 = pnand %p1050_p12, %p1038_p7  ;;  %p1059_p3 = por %p1058_p4, %p1057_p1 }
  0x19   : > { %p1053_p0 = pneg %p1052_p13 }
  0x1b   : > { %p1060_p2 = pnand %p1059_p3, %p1053_p0 }
  0x1d   : > { %1063 = shalt.err (!%p1060_p2)
}
  0x1e   : > { %s1077_s23 = smov 64   ;;  %s1078_s24 = smov 4  }
  0x1f   : > { %1014 = dma.hbm_to_vmem [thread:$0]  (!%p1120_p5), %s1347_s1, 128, %s104_s12, [#allocation4], %s1077_s23, %s1077_s23, %s1078_s24  }
  0x20   : > { %p1353_p6 = scmp.ne.s32.totalorder %s1351_s13, 0 }
  0x21   : > { %p1354_p8 = scmp.eq.s32.totalorder (!%p1353_p6), %s1107_s10, 0 }
  0x22   : > { %127 = sbr.rel (%p1353_p6) target bundleno = 451 (0x1c3), region = 28 }
  0x29   : > { %1069 = dma.done.wait (%p1354_p8), [#allocation4], 128   ;;  %p1355_p7 = pmov %p1354_p8 }
  0x2a   : > { %p149_p2 = scmp.lt.s32.totalorder %s1107_s10, 1  ;;  %s1079_s3 = smov 127   ;;  %v1085_v3 = vmov 0   ;;  %vm193_vm0 = vcmask 1043456   ;;  %vm195_vm1 = vcmask 1039360   ;;  %vm237_vm2 = vcmask 1031168  }
  0x2b   : > { %1071 = vsyncadd (%p1355_p7), [#allocation4], 4294967168  ;;  %s1080_s4 = smov 126   ;;  %s1081_s5 = smov 125   ;;  %657 = vmatprep.mubr.bf16.mxu0 %v1085_v3  ;;  %700 = vmatprep.mubr.bf16.mxu1 %v1085_v3  ;;  %vm279_vm3 = vcmask 1022976   ;;  %vm321_vm4 = vcmask 1014784  }
  0x2c   : > { %s1357_s10 = smov (!%p149_p2, %s1107_s10), 1  ;;  %s1082_s6 = smov 124   ;;  %vm363_vm5 = vcmask 1006592   ;;  %vm405_vm6 = vcmask 998400   ;;  %vm596_vm7 = vcmask 457728  }
  0x2d   : > { %s1006_s27 = smul.u32 36, %s1357_s10  ;;  %s1083_s7 = smov 123  }
  0x2e   : > { %s1084_s8 = smov 122   ;;  %s997_s11 = sshll.u32 %s1357_s10, 6 }
  0x2f   : > { %s1154_s30 = scalar_lea.vmem %s1346_s0, %s1006_s27  ;;  %s1333_s14 = scalar_lea.vmem %s1348_s2, %s997_s11 }
  0x30   : > { %v1157_v0 = vld [vmem:[%s1154_s30 + $0x10] sm:$0xff]  ;;  %v1160_v1 = vld [vmem:[%s1154_s30] sm:$0xff]  ;;  %v1167_v2 = vld [vmem:[%s1154_s30 + $0x8] sm:$0xff] }
  0x31   : > { %182 = vrot.lane.b32.xlu1 %v1157_v0, %s1079_s3  ;;  %178 = vrot.lane.b32.xlu0 %v1160_v1, %s1079_s3  ;;  %v172_v4 = vld [vmem:[%s1154_s30 + $0x20] sm:$0xf]  ;;  %v1190_v5 = vld [vmem:[%s1154_s30 + $0x18] sm:$0xff] }
  0x32   : > { %v215_v6 = vld [vmem:[%s1154_s30 + $0x20] sm:$0xf] }
  0x33   : > { %v257_v7 = vld [vmem:[%s1154_s30 + $0x20] sm:$0xf] }
  0x34   : > { %v299_v8 = vld [vmem:[%s1154_s30 + $0x20] sm:$0xf] }
  0x35   : > { %221 = vrot.lane.b32.xlu1 %v1160_v1, %s1080_s4  ;;  %180 = vrot.lane.b32.xlu0 %v1167_v2, %s1079_s3  ;;  %v341_v9 = vld [vmem:[%s1154_s30 + $0x20] sm:$0xf] }
  0x36   : > { %v383_v10 = vld [vmem:[%s1154_s30 + $0x20] sm:$0xf] }
  0x39   : > { %225 = vrot.lane.b32.xlu1 %v1157_v0, %s1080_s4  ;;  %223 = vrot.lane.b32.xlu0 %v1167_v2, %s1080_s4 }
  0x3d   : > { %265 = vrot.lane.b32.xlu1 %v1167_v2, %s1081_s5  ;;  %263 = vrot.lane.b32.xlu0 %v1160_v1, %s1081_s5 }
  0x41   : > { %305 = vrot.lane.b32.xlu1 %v1160_v1, %s1082_s6  ;;  %267 = vrot.lane.b32.xlu0 %v1157_v0, %s1081_s5 }
  0x45   : > { %309 = vrot.lane.b32.xlu1 %v1157_v0, %s1082_s6  ;;  %307 = vrot.lane.b32.xlu0 %v1167_v2, %s1082_s6 }
  0x49   : > { %349 = vrot.lane.b32.xlu1 %v1167_v2, %s1083_s7  ;;  %347 = vrot.lane.b32.xlu0 %v1160_v1, %s1083_s7 }
  0x4d   : > { %389 = vrot.lane.b32.xlu1 %v1160_v1, %s1084_s8  ;;  %351 = vrot.lane.b32.xlu0 %v1157_v0, %s1083_s7 }
  0x51   : > { %393 = vrot.lane.b32.xlu1 %v1157_v0, %s1084_s8  ;;  %391 = vrot.lane.b32.xlu0 %v1167_v2, %s1084_s8 }
  0x55   : > { %186 = vrot.lane.b32.xlu1 %v172_v4, %s1079_s3  ;;  %184 = vrot.lane.b32.xlu0 %v1190_v5, %s1079_s3 }
  0x59   : > { %229 = vrot.lane.b32.xlu1 %v215_v6, %s1080_s4  ;;  %227 = vrot.lane.b32.xlu0 %v1190_v5, %s1080_s4 }
  0x5d   : > { %271 = vrot.lane.b32.xlu1 %v257_v7, %s1081_s5  ;;  %269 = vrot.lane.b32.xlu0 %v1190_v5, %s1081_s5 }
  0x61   : > { %313 = vrot.lane.b32.xlu1 %v299_v8, %s1082_s6  ;;  %311 = vrot.lane.b32.xlu0 %v1190_v5, %s1082_s6 }
  0x65   : > { %355 = vrot.lane.b32.xlu1 %v341_v9, %s1083_s7  ;;  %353 = vrot.lane.b32.xlu0 %v1190_v5, %s1083_s7 }
  0x69   : > { %397 = vrot.lane.b32.xlu1 %v383_v10, %s1084_s8  ;;  %395 = vrot.lane.b32.xlu0 %v1190_v5, %s1084_s8 }
  0xa3   : > { %v1205_v11 = vpop.permute.xlu1 %182  ;;  %v179_v12 = vpop.permute.xlu0 %178 }
  0xa4   : > { %v190_v15 = vrot.slane %v1205_v11, 4  ;;  %v188_v16 = vrot.slane %v179_v12, 4 }
  0xa7   : > { %v222_v13 = vpop.permute.xlu1 %221  ;;  %v181_v14 = vpop.permute.xlu0 %180 }
  0xa8   : > { %v189_v17 = vrot.slane %v181_v14, 4  ;;  %v231_v29 = vrot.slane %v222_v13, 4 }
  0xaa   : > { %v194_v18 = vsel %vm193_vm0, %v188_v16, %v189_v17  ;;  %v197_v19 = vsel %vm193_vm0, %v189_v17, %v190_v15 }
  0xab   : > { %v1212_v20 = vpop.permute.xlu1 %225  ;;  %v224_v21 = vpop.permute.xlu0 %223  ;;  %v196_v22 = vsel %vm195_vm1, %v179_v12, %v194_v18  ;;  %v198_v23 = vsel %vm195_vm1, %v181_v14, %v197_v19 }
  0xac   : > { %v232_v24 = vrot.slane %v224_v21, 4  ;;  %v948_v25 = vcombine.high %v1160_v1, %v196_v22  ;;  %v950_v26 = vcombine.high %v1167_v2, %v198_v23  ;;  %v947_v27 = vcombine.low %v1160_v1, %v196_v22 }
  0xad   : > { %v949_v28 = vcombine.low %v1167_v2, %v198_v23  ;;  %v233_v32 = vrot.slane %v1212_v20, 4 }
  0xae   : > { %625 = vmatprep.subr.bf16.mxu0 %v948_v25  ;;  %668 = vmatprep.subr.bf16.mxu1 %v950_v26  ;;  %v236_v34 = vsel %vm193_vm0, %v231_v29, %v232_v24 }
  0xaf   : > { %v266_v30 = vpop.permute.xlu1 %265  ;;  %v264_v31 = vpop.permute.xlu0 %263  ;;  %626 = vmatpush1.bf16.msra.mxu0 %v947_v27  ;;  %669 = vmatpush1.bf16.msra.mxu1 %v949_v28  ;;  %v238_v37 = vsel %vm237_vm2, %v222_v13, %v236_v34  ;;  %v239_v41 = vsel %vm193_vm0, %v232_v24, %v233_v32 }
  0xb0   : > { %v274_v33 = vrot.slane %v266_v30, 4  ;;  %v273_v35 = vrot.slane %v264_v31, 4  ;;  %v240_v46 = vsel %vm237_vm2, %v224_v21, %v239_v41 }
  0xb2   : > { %v278_v36 = vsel %vm193_vm0, %v273_v35, %v274_v33 }
  0xb3   : > { %v280_v38 = vsel %vm279_vm3, %v264_v31, %v278_v36  ;;  %v306_v39 = vpop.permute.xlu1 %305  ;;  %v1225_v40 = vpop.permute.xlu0 %267 }
  0xb4   : > { %v955_v42 = vcombine.low %v238_v37, %v280_v38  ;;  %v956_v43 = vcombine.high %v238_v37, %v280_v38  ;;  %v275_v44 = vrot.slane %v1225_v40, 4  ;;  %v315_v53 = vrot.slane %v306_v39, 4  ;;  %v1269_v37 = vld [vmem:[#allocation3] sm:$0xff]  }
  0xb6   : > { %v281_v45 = vsel %vm193_vm0, %v274_v33, %v275_v44  ;;  %627 = vmatprep.subr.bf16.mxu0 %v956_v43 }
  0xb7   : > { %v1235_v47 = vpop.permute.xlu1 %309  ;;  %v308_v48 = vpop.permute.xlu0 %307  ;;  %628 = vmatpush1.bf16.msra.mxu0 %v955_v42  ;;  %v282_v49 = vsel %vm279_vm3, %v266_v30, %v281_v45 }
  0xb8   : > { %v316_v50 = vrot.slane %v308_v48, 4  ;;  %v958_v51 = vcombine.high %v240_v46, %v282_v49  ;;  %v957_v52 = vcombine.low %v240_v46, %v282_v49  ;;  %v317_v56 = vrot.slane %v1235_v47, 4 }
  0xba   : > { %670 = vmatprep.subr.bf16.mxu1 %v958_v51  ;;  %v320_v58 = vsel %vm193_vm0, %v315_v53, %v316_v50  ;;  %v323_v2 = vsel %vm193_vm0, %v316_v50, %v317_v56 }
  0xbb   : > { %v350_v54 = vpop.permute.xlu1 %349  ;;  %v348_v55 = vpop.permute.xlu0 %347  ;;  %671 = vmatpush1.bf16.msra.mxu1 %v957_v52  ;;  %v322_v61 = vsel %vm321_vm4, %v306_v39, %v320_v58  ;;  %v324_v9 = vsel %vm321_vm4, %v308_v48, %v323_v2 }
  0xbc   : > { %v358_v57 = vrot.slane %v350_v54, 4  ;;  %v357_v59 = vrot.slane %v348_v55, 4 }
  0xbe   : > { %v362_v60 = vsel %vm193_vm0, %v357_v59, %v358_v57 }
  0xbf   : > { %v364_v62 = vsel %vm363_vm5, %v348_v55, %v362_v60  ;;  %v390_v63 = vpop.permute.xlu1 %389  ;;  %v1243_v1 = vpop.permute.xlu0 %351 }
  0xc0   : > { %v963_v4 = vcombine.low %v322_v61, %v364_v62  ;;  %v964_v6 = vcombine.high %v322_v61, %v364_v62  ;;  %v359_v7 = vrot.slane %v1243_v1, 4  ;;  %v399_v10 = vrot.slane %v390_v63, 4 }
  0xc2   : > { %v365_v8 = vsel %vm193_vm0, %v358_v57, %v359_v7  ;;  %629 = vmatprep.subr.bf16.mxu0 %v964_v6 }
  0xc3   : > { %v1253_v12 = vpop.permute.xlu1 %393  ;;  %v392_v13 = vpop.permute.xlu0 %391  ;;  %630 = vmatpush1.bf16.msra.mxu0 %v963_v4  ;;  %v366_v14 = vsel %vm363_vm5, %v350_v54, %v365_v8 }
  0xc4   : > { %v401_v16 = vrot.slane %v1253_v12, 4  ;;  %v400_v17 = vrot.slane %v392_v13, 4  ;;  %v966_v18 = vcombine.high %v324_v9, %v366_v14  ;;  %v965_v19 = vcombine.low %v324_v9, %v366_v14 }
  0xc6   : > { %v404_v21 = vsel %vm193_vm0, %v399_v10, %v400_v17  ;;  %v407_v22 = vsel %vm193_vm0, %v400_v17, %v401_v16  ;;  %672 = vmatprep.subr.bf16.mxu1 %v966_v18 }
  0xc7   : > { %v408_v23 = vsel %vm405_vm6, %v392_v13, %v407_v22  ;;  %v187_v24 = vpop.permute.xlu1 %186  ;;  %v185_v25 = vpop.permute.xlu0 %184  ;;  %673 = vmatpush1.bf16.msra.mxu1 %v965_v19  ;;  %v406_v26 = vsel %vm405_vm6, %v390_v63, %v404_v21 }
  0xc8   : > { %v973_v27 = vcombine.low %v408_v23, %v408_v23  ;;  %v974_v28 = vcombine.high %v408_v23, %v408_v23  ;;  %v192_v29 = vrot.slane %v187_v24, 4  ;;  %v191_v30 = vrot.slane %v185_v25, 4 }
  0xc9   : > { %v972_v31 = vcombine.high %v406_v26, %v406_v26  ;;  %v971_v33 = vcombine.low %v406_v26, %v406_v26 }
  0xca   : > { %v199_v34 = vsel %vm193_vm0, %v190_v15, %v191_v30  ;;  %v201_v35 = vsel %vm193_vm0, %v191_v30, %v192_v29  ;;  %981 = vmatprep.subr.msk.bf16.mxu1 %vm193_vm0, %v974_v28  ;;  %v608_v36 = vsel %vm193_vm0, %v973_v27, 0 }
  0xcb   : > { %v202_v38 = vsel %vm195_vm1, %v185_v25, %v201_v35  ;;  %979 = vmatprep.subr.msk.bf16.mxu0 %vm193_vm0, %v972_v31  ;;  %v230_v39 = vpop.permute.xlu1 %229  ;;  %v228_v41 = vpop.permute.xlu0 %227  ;;  %v602_v42 = vsel %vm193_vm0, %v971_v33, 0  ;;  %675 = vmatpush1.bf16.msra.mxu1 %v608_v36  ;;  %v200_v15 = vsel %vm195_vm1, %v1205_v11, %v199_v34 }
  0xcc   : > { %v953_v43 = vcombine.low %v1190_v5, %v202_v38  ;;  %v954_v45 = vcombine.high %v1190_v5, %v202_v38  ;;  %v235_v46 = vrot.slane %v230_v39, 4  ;;  %v234_v48 = vrot.slane %v228_v41, 4  ;;  %632 = vmatpush1.bf16.msra.mxu0 %v602_v42 }
  0xcd   : > { %v951_v49 = vcombine.low %v1157_v0, %v200_v15  ;;  %v952_v50 = vcombine.high %v1157_v0, %v200_v15 }
  0xce   : > { %754 = vmatprep.subr.bf16.mxu1 %v954_v45  ;;  %982 = vmatmul.mubr.msk.bf16.vlgmr.msra.gmra.mrb[0].mxu1 %vm596_vm7, %v1269_v37  ;;  %v241_v5 = vsel %vm193_vm0, %v233_v32, %v234_v48  ;;  %v243_v11 = vsel %vm193_vm0, %v234_v48, %v235_v46 }
  0xcf   : > { %711 = vmatprep.subr.bf16.mxu0 %v952_v50  ;;  %v272_v51 = vpop.permute.xlu1 %271  ;;  %v270_v52 = vpop.permute.xlu0 %269  ;;  %980 = vmatmul.mubr.msk.bf16.vlgmr.msra.gmra.mrb[0].mxu0 %vm596_vm7, %v1269_v37  ;;  %v244_v57 = vsel %vm237_vm2, %v228_v41, %v243_v11  ;;  %v242_v60 = vsel %vm237_vm2, %v1212_v20, %v241_v5 }
  0xd0   : > { %v277_v53 = vrot.slane %v272_v51, 4  ;;  %v276_v54 = vrot.slane %v270_v52, 4  ;;  %712 = vmatpush1.bf16.msra.mxu0 %v951_v49  ;;  %755 = vmatpush1.bf16.msra.mxu1 %v953_v43 }
  0xd1   : > { %743 = vmatprep.mubr.bf16.mxu0 %v1085_v3  ;;  %786 = vmatprep.mubr.bf16.mxu1 %v1085_v3 }
  0xd2   : > { %v283_v0 = vsel %vm193_vm0, %v275_v44, %v276_v54  ;;  %v285_v55 = vsel %vm193_vm0, %v276_v54, %v277_v53 }
  0xd3   : > { %v286_v32 = vsel %vm279_vm3, %v270_v52, %v285_v55  ;;  %v314_v58 = vpop.permute.xlu1 %313  ;;  %v312_v59 = vpop.permute.xlu0 %311  ;;  %v284_v61 = vsel %vm279_vm3, %v1225_v40, %v283_v0 }
  0xd4   : > { %v961_v62 = vcombine.low %v244_v57, %v286_v32  ;;  %v962_v3 = vcombine.high %v244_v57, %v286_v32  ;;  %v319_v63 = vrot.slane %v314_v58, 4  ;;  %v318_v2 = vrot.slane %v312_v59, 4 }
  0xd5   : > { %v959_v4 = vcombine.low %v242_v60, %v284_v61  ;;  %v960_v44 = vcombine.high %v242_v60, %v284_v61 }
  0xd6   : > { %756 = vmatprep.subr.bf16.mxu1 %v962_v3  ;;  %v325_v9 = vsel %vm193_vm0, %v317_v56, %v318_v2  ;;  %v327_v20 = vsel %vm193_vm0, %v318_v2, %v319_v63 }
  0xd7   : > { %713 = vmatprep.subr.bf16.mxu0 %v960_v44  ;;  %v356_v6 = vpop.permute.xlu1 %355  ;;  %v354_v8 = vpop.permute.xlu0 %353  ;;  %757 = vmatpush1.bf16.msra.mxu1 %v961_v62  ;;  %v328_v17 = vsel %vm321_vm4, %v312_v59, %v327_v20  ;;  %v326_v56 = vsel %vm321_vm4, %v1235_v47, %v325_v9 }
  0xd8   : > { %v361_v10 = vrot.slane %v356_v6, 4  ;;  %v360_v13 = vrot.slane %v354_v8, 4  ;;  %714 = vmatpush1.bf16.msra.mxu0 %v959_v4 }
  0xda   : > { %v367_v40 = vsel %vm193_vm0, %v359_v7, %v360_v13  ;;  %v369_v14 = vsel %vm193_vm0, %v360_v13, %v361_v10 }
  0xdb   : > { %v370_v18 = vsel %vm363_vm5, %v354_v8, %v369_v14  ;;  %v398_v19 = vpop.permute.xlu1 %397  ;;  %v396_v21 = vpop.permute.xlu0 %395  ;;  %v368_v22 = vsel %vm363_vm5, %v1243_v1, %v367_v40 }
  0xdc   : > { %v969_v23 = vcombine.low %v328_v17, %v370_v18  ;;  %v970_v24 = vcombine.high %v328_v17, %v370_v18  ;;  %v403_v25 = vrot.slane %v398_v19, 4  ;;  %v402_v26 = vrot.slane %v396_v21, 4 }
  0xdd   : > { %v967_v27 = vcombine.low %v326_v56, %v368_v22  ;;  %v968_v7 = vcombine.high %v326_v56, %v368_v22 }
  0xde   : > { %v409_v28 = vsel %vm193_vm0, %v401_v16, %v402_v26  ;;  %v411_v29 = vsel %vm193_vm0, %v402_v26, %v403_v25  ;;  %758 = vmatprep.subr.bf16.mxu1 %v970_v24 }
  0xdf   : > { %v410_v30 = vsel %vm405_vm6, %v1253_v12, %v409_v28  ;;  %v412_v47 = vsel %vm405_vm6, %v396_v21, %v411_v29  ;;  %715 = vmatprep.subr.bf16.mxu0 %v968_v7  ;;  %759 = vmatpush1.bf16.msra.mxu1 %v969_v23 }
  0xe0   : > { %v977_v1 = vcombine.low %v412_v47, %v412_v47  ;;  %v978_v31 = vcombine.high %v412_v47, %v412_v47  ;;  %716 = vmatpush1.bf16.msra.mxu0 %v967_v27  ;;  %v976_v33 = vcombine.high %v410_v30, %v410_v30  ;;  %v975_v34 = vcombine.low %v410_v30, %v410_v30 }
  0xe2   : > { %983 = vmatprep.subr.msk.bf16.mxu0 %vm193_vm0, %v976_v33  ;;  %985 = vmatprep.subr.msk.bf16.mxu1 %vm193_vm0, %v978_v31  ;;  %v614_v16 = vsel %vm193_vm0, %v975_v34, 0  ;;  %v620_v35 = vsel %vm193_vm0, %v977_v1, 0 }
  0xe3   : > { %761 = vmatpush1.bf16.msra.mxu1 %v620_v35 }
  0xe4   : > { %718 = vmatpush1.bf16.msra.mxu0 %v614_v16 }
  0xe6   : > { %986 = vmatmul.mubr.msk.bf16.vlgmr.msra.gmra.mrb[4].mxu1 %vm596_vm7, %v1269_v37 }
  0xe7   : > { %984 = vmatmul.mubr.msk.bf16.vlgmr.msra.gmra.mrb[4].mxu0 %vm596_vm7, %v1269_v37 }
 0x1a1   : > { %v702_v12 = vpop.f32.mrb[0].mxu1 }
 0x1a2   : > { %v659_v36 = vpop.f32.mrb[0].mxu0  ;;  %v799_v38 = vmax.f32 %v702_v12, 0.0  ;;  %v704_v39 = vpop.f32.mrb[1].mxu1 }
 0x1a3   : > { %v797_v41 = vmax.f32 %v659_v36, 0.0  ;;  %v661_v42 = vpop.f32.mrb[1].mxu0  ;;  %v800_v15 = vmax.f32 %v704_v39, 0.0  ;;  %v706_v43 = vpop.f32.mrb[2].mxu1 }
 0x1a4   : > { %v798_v45 = vmax.f32 %v661_v42, 0.0  ;;  %v663_v37 = vpop.f32.mrb[2].mxu0  ;;  %v807_v46 = vmax.f32 %v706_v43, 0.0  ;;  %v708_v48 = vpop.f32.mrb[3].mxu1 }
 0x1a5   : > { %v999_v49 = vpack.c.bf16 %v800_v15, %v799_v38  ;;  %v805_v50 = vmax.f32 %v663_v37, 0.0  ;;  %v665_v51 = vpop.f32.mrb[3].mxu0  ;;  %v808_v52 = vmax.f32 %v708_v48, 0.0 }
 0x1a6   : > { %v998_v5 = vpack.c.bf16 %v798_v45, %v797_v41  ;;  %v806_v11 = vmax.f32 %v665_v51, 0.0 }
 0x1a7   : > { %862 = vst [vmem:[%s1333_s14 + $0x8] sm:$0xff] %v999_v49  ;;  %v1003_v53 = vpack.c.bf16 %v808_v52, %v807_v46 }
 0x1a8   : > { %861 = vst [vmem:[%s1333_s14] sm:$0xff] %v998_v5  ;;  %v1002_v54 = vpack.c.bf16 %v806_v11, %v805_v50 }
 0x1a9   : > { %866 = vst [vmem:[%s1333_s14 + $0x28] sm:$0xff] %v1003_v53 }
 0x1aa   : > { %865 = vst [vmem:[%s1333_s14 + $0x20] sm:$0xff] %v1002_v54 }
 0x1b9   : > { %v788_v0 = vpop.f32.mrb[4].mxu1 }
 0x1ba   : > { %v745_v55 = vpop.f32.mrb[4].mxu0  ;;  %v803_v57 = vmax.f32 %v788_v0, 0.0  ;;  %v790_v32 = vpop.f32.mrb[5].mxu1 }
 0x1bb   : > { %v801_v58 = vmax.f32 %v745_v55, 0.0  ;;  %v747_v59 = vpop.f32.mrb[5].mxu0  ;;  %v804_v60 = vmax.f32 %v790_v32, 0.0  ;;  %v792_v61 = vpop.f32.mrb[6].mxu1 }
 0x1bc   : > { %v802_v62 = vmax.f32 %v747_v59, 0.0  ;;  %v749_v3 = vpop.f32.mrb[6].mxu0  ;;  %v811_v63 = vmax.f32 %v792_v61, 0.0  ;;  %v794_v2 = vpop.f32.mrb[7].mxu1 }
 0x1bd   : > { %v1001_v4 = vpack.c.bf16 %v804_v60, %v803_v57  ;;  %v809_v44 = vmax.f32 %v749_v3, 0.0  ;;  %v751_v6 = vpop.f32.mrb[7].mxu0  ;;  %v812_v8 = vmax.f32 %v794_v2, 0.0 }
 0x1be   : > { %v1000_v9 = vpack.c.bf16 %v802_v62, %v801_v58  ;;  %v810_v20 = vmax.f32 %v751_v6, 0.0 }
 0x1bf   : > { %864 = vst [vmem:[%s1333_s14 + $0x18] sm:$0xff] %v1001_v4  ;;  %v1005_v10 = vpack.c.bf16 %v812_v8, %v811_v63 }
 0x1c0   : > { %863 = vst [vmem:[%s1333_s14 + $0x10] sm:$0xff] %v1000_v9  ;;  %v1004_v13 = vpack.c.bf16 %v810_v20, %v809_v44 }
 0x1c1   : > { %868 = vst [vmem:[%s1333_s14 + $0x38] sm:$0xff] %v1005_v10 }
 0x1c2   : > { %867 = vst [vmem:[%s1333_s14 + $0x30] sm:$0xff] %v1004_v13 }
 0x1c3 PF: > { %s13_s9 = sadd.s32 1, %s1074_s9  }
 0x1c4   : > { %p10_p3 = scmp.ge.s32.totalorder %s13_s9, 4  }
 0x1c6   :  { %12 = sbr.rel (!%p10_p3) target bundleno = 1 (0x1), region = 63 }
 0x1cd   :  { %890 = vsyncpa [#allocation4], 1 }
 0x1ce   :  { %892 = vsyncpa [#allocation4 + $0x1], 1 }

// kernel: generator_forward.12
= control target key start
LH: loop header
LB: loop body
LE: loop exit
PB: predicated region body
PF: predicated region fallthrough
CT: control target
= control target key end

     0   :  { %s3448_s9 = smov 0   ;;  %s4325_s0 = inlined_call_operand.vmem [shape: bf16[2,4,4102], index: 0, kind: input, shape index: {}]   ;;  %s4326_s1 = inlined_call_operand.vmem [shape: bf16[8,28], index: 1, kind: input, shape index: {}]   ;;  %s4327_s2 = inlined_call_operand.vmem [shape: bf16[2,8,4096], index: 2, kind: output, shape index: {}]  }
   0x1 LB: > { %s3224_s10 = sadd.s32 4294967295, %s3423_s9   ;;  %p3228_p0 = scmp.ge.s32.totalorder %s3423_s9, 1  ;;  %s3423_s9 = sphi %s3448_s9, %s12_s9  }
   0x2   : > { %p112_p1 = scmp.lt.s32.totalorder %s3423_s9, 3 }
   0x4   : > { %p113_p2 = pnand %p3228_p0, %p112_p1 }
   0x5   : > { %p134_p3 = scmp.lt.s32.totalorder (!%p113_p2), %s3224_s10, 1  ;;  %v335_v0 = vlaneseq (!%p113_p2)  ;;  %v3425_v1 = vmov (!%p113_p2), 1983009808   ;;  %s3426_s15 = smov (!%p113_p2), 126   ;;  %v3432_v22 = vmov (!%p113_p2), 0   ;;  %vm510_vm0 = vcmask (!%p113_p2), 1043456  }
   0x6   : > { %116 = sbr.rel (%p113_p2) target bundleno = 571 (0x23b), region = 28  ;;  %v333_v2 = vunpack.c.l.s4 (!%p113_p2), %v3425_v1  ;;  %s3427_s16 = smov (!%p113_p2), 127   ;;  %2369 = vmatprep.mubr.bf16.mxu0 (!%p113_p2), %v3432_v22  ;;  %2410 = vmatprep.mubr.bf16.mxu1 (!%p113_p2), %v3432_v22  ;;  %vm512_vm1 = vcmask (!%p113_p2), 1039360   ;;  %vm773_vm2 = vcmask (!%p113_p2), 1031168   ;;  %vm1035_vm3 = vcmask (!%p113_p2), 1022976  }
   0x7   : > { %v336_v3 = vshrl.u32 (!%p113_p2), %v335_v0, 7  ;;  %s3428_s17 = smov (!%p113_p2), 125   ;;  %s3429_s18 = smov (!%p113_p2), 124   ;;  %vm1296_vm4 = vcmask (!%p113_p2), 1014784   ;;  %vm1558_vm5 = vcmask (!%p113_p2), 1006592   ;;  %vm1819_vm6 = vcmask (!%p113_p2), 998400  }
   0x8   : > { %v334_v4 = vunpack.c.0.s8 (!%p113_p2), %v333_v2  ;;  %s3430_s19 = smov (!%p113_p2), 123   ;;  %s3431_s20 = smov (!%p113_p2), 122   ;;  %vm2240_vm7 = vcmask (!%p113_p2), 1045504   ;;  %vm2236_vm8 = vcmask (!%p113_p2), 228352  }
   0xa   : > { %v3459_v5 = vsub.s32 (!%p113_p2), %v334_v4, %v336_v3 }
   0xd   : > { %s4329_s10 = smov (!%p134_p3, %s3224_s10), 1 }
   0xe   : > { %s3382_s11 = smul.u32 66, %s4329_s10  ;;  %s3365_s25 = sshll.u32 %s4329_s10, 7 }
   0xf   : > { %s4304_s28 = scalar_lea.vmem %s4327_s2, %s3365_s25 }
  0x10   : > { %s3464_s14 = scalar_lea.vmem %s4325_s0, %s3382_s11 }
  0x11   : > { %v576_v6 = vld [vmem:[%s3464_s14] sm:$0xff]  ;;  %v577_v7 = vld [vmem:[%s3464_s14 + $0x8] sm:$0xff]  ;;  %v315_v17 = vld [vmem:[%s3464_s14 + $0x10] sm:$0xff] }
  0x12   : > { %v601_v8 = vrot.slane %v576_v6, %v3459_v5  ;;  %v594_v9 = vcombine.high %v576_v6, %v576_v6  ;;  %v331_v10 = vcombine.low %v576_v6, %v576_v6  ;;  %3232 = vst.sshfl [vmem:[#allocation2] sm:$0xf pattern:$0x76325410] %v576_v6  ;;  %v609_v11 = vcombine.high %v577_v7, %v577_v7  ;;  %v316_v23 = vld [vmem:[%s3464_s14 + $0x18] sm:$0xff]  ;;  %v147_v24 = vld [vmem:[%s3464_s14 + $0x10] sm:$0xff] }
  0x13   : > { %3234 = vst.sshfl [vmem:[#allocation2 + $0x10] sm:$0xf pattern:$0x76325410] %v577_v7  ;;  %v616_v12 = vrot.slane %v577_v7, %v3459_v5  ;;  %v346_v15 = vcombine.low %v577_v7, %v577_v7  ;;  %v361_v18 = vcombine.low %v315_v17, %v315_v17  ;;  %v631_v20 = vrot.slane %v315_v17, %v3459_v5  ;;  %v317_v31 = vld [vmem:[%s3464_s14 + $0x20] sm:$0xff]  ;;  %v148_v32 = vld [vmem:[%s3464_s14 + $0x18] sm:$0xff] }
  0x14   : > { %721 = vrot.lane.b32.xlu1 %v601_v8, %s3426_s15  ;;  %461 = vrot.lane.b32.xlu0 %v601_v8, %s3427_s16  ;;  %v338_v13 = vrot.slane %v331_v10, %v3459_v5  ;;  %3233 = vst.sshfl [vmem:[#allocation2 + $0x8] sm:$0xf pattern:$0x76325410] %v594_v9  ;;  %v608_v14 = vrot.slane %v594_v9, %v3459_v5  ;;  %v3540_v39 = vld [vmem:[%s3464_s14 + $0x28] sm:$0xff]  ;;  %v149_v40 = vld [vmem:[%s3464_s14 + $0x20] sm:$0xff] }
  0x15   : > { %3235 = vst.sshfl [vmem:[#allocation2 + $0x18] sm:$0xf pattern:$0x76325410] %v609_v11  ;;  %v353_v16 = vrot.slane %v346_v15, %v3459_v5  ;;  %v368_v19 = vrot.slane %v361_v18, %v3459_v5  ;;  %v623_v21 = vrot.slane %v609_v11, %v3459_v5  ;;  %v191_v25 = vcombine.high %v147_v24, %v147_v24  ;;  %v3569_v54 = vld [vmem:[%s3464_s14 + $0x30] sm:$0xff]  ;;  %v150_v55 = vld [vmem:[%s3464_s14 + $0x28] sm:$0xff] }
  0x16   : > { %3236 = vst.sshfl [vmem:[#allocation2 + $0x20] sm:$0xf pattern:$0x76325410] %v147_v24  ;;  %v376_v26 = vcombine.low %v316_v23, %v316_v23  ;;  %v624_v28 = vcombine.high %v315_v17, %v315_v17  ;;  %v646_v29 = vrot.slane %v316_v23, %v3459_v5  ;;  %v206_v33 = vcombine.high %v148_v32, %v148_v32 }
  0x17   : > { %3237 = vst.sshfl [vmem:[#allocation2 + $0x28] sm:$0xf pattern:$0x76325410] %v191_v25  ;;  %v391_v34 = vcombine.low %v317_v31, %v317_v31  ;;  %v639_v36 = vcombine.high %v316_v23, %v316_v23  ;;  %v661_v37 = vrot.slane %v317_v31, %v3459_v5  ;;  %v221_v41 = vcombine.high %v149_v40, %v149_v40 }
  0x18   : > { %725 = vrot.lane.b32.xlu1 %v616_v12, %s3426_s15  ;;  %459 = vrot.lane.b32.xlu0 %v338_v13, %s3427_s16  ;;  %v383_v27 = vrot.slane %v376_v26, %v3459_v5  ;;  %v638_v30 = vrot.slane %v624_v28, %v3459_v5  ;;  %3238 = vst.sshfl [vmem:[#allocation2 + $0x30] sm:$0xf pattern:$0x76325410] %v148_v32 }
  0x19   : > { %3239 = vst.sshfl [vmem:[#allocation2 + $0x38] sm:$0xf pattern:$0x76325410] %v206_v33  ;;  %v398_v35 = vrot.slane %v391_v34, %v3459_v5  ;;  %v653_v38 = vrot.slane %v639_v36, %v3459_v5  ;;  %v406_v42 = vcombine.low %v3540_v39, %v3540_v39  ;;  %v654_v44 = vcombine.high %v317_v31, %v317_v31 }
  0x1a   : > { %3240 = vst.sshfl [vmem:[#allocation2 + $0x40] sm:$0xf pattern:$0x76325410] %v149_v40  ;;  %v3554_v45 = vrot.slane %v3540_v39, %v3459_v5  ;;  %v236_v59 = vcombine.high %v150_v55, %v150_v55  ;;  %v421_v63 = vcombine.low %v3569_v54, %v3569_v54  ;;  %v669_v11 = vcombine.high %v3540_v39, %v3540_v39 }
  0x1b   : > { %3241 = vst.sshfl [vmem:[#allocation2 + $0x48] sm:$0xf pattern:$0x76325410] %v221_v41  ;;  %v413_v43 = vrot.slane %v406_v42, %v3459_v5  ;;  %v668_v46 = vrot.slane %v654_v44, %v3459_v5 }
  0x1c   : > { %985 = vrot.lane.b32.xlu1 %v601_v8, %s3428_s17  ;;  %723 = vrot.lane.b32.xlu0 %v608_v14, %s3426_s15  ;;  %3242 = vst.sshfl [vmem:[#allocation2 + $0x50] sm:$0xf pattern:$0x76325410] %v150_v55  ;;  %v3591_v10 = vrot.slane %v421_v63, %v3459_v5  ;;  %v151_v55 = vld [vmem:[%s3464_s14 + $0x30] sm:$0xff] }
  0x1d   : > { %3243 = vst.sshfl [vmem:[#allocation2 + $0x58] sm:$0xf pattern:$0x76325410] %v236_v59  ;;  %v251_v59 = vcombine.high %v151_v55, %v151_v55 }
  0x1e   : > { %3244 = vst.sshfl [vmem:[#allocation2 + $0x60] sm:$0xf pattern:$0x76325410] %v151_v55 }
  0x1f   : > { %3245 = vst.sshfl [vmem:[#allocation2 + $0x68] sm:$0xf pattern:$0x76325410] %v251_v59 }
  0x20   : > { %463 = vrot.lane.b32.xlu1 %v353_v16, %s3427_s16  ;;  %983 = vrot.lane.b32.xlu0 %v338_v13, %s3428_s17 }
  0x24   : > { %1244 = vrot.lane.b32.xlu1 %v601_v8, %s3429_s18  ;;  %987 = vrot.lane.b32.xlu0 %v353_v16, %s3428_s17 }
  0x28   : > { %1248 = vrot.lane.b32.xlu1 %v616_v12, %s3429_s18  ;;  %1246 = vrot.lane.b32.xlu0 %v608_v14, %s3429_s18 }
  0x2c   : > { %1508 = vrot.lane.b32.xlu1 %v601_v8, %s3430_s19  ;;  %1506 = vrot.lane.b32.xlu0 %v338_v13, %s3430_s19 }
  0x30   : > { %1767 = vrot.lane.b32.xlu1 %v601_v8, %s3431_s20  ;;  %1510 = vrot.lane.b32.xlu0 %v353_v16, %s3430_s19 }
  0x34   : > { %1771 = vrot.lane.b32.xlu1 %v616_v12, %s3431_s20  ;;  %1769 = vrot.lane.b32.xlu0 %v608_v14, %s3431_s20 }
  0x38   : > { %467 = vrot.lane.b32.xlu1 %v368_v19, %s3427_s16  ;;  %465 = vrot.lane.b32.xlu0 %v616_v12, %s3427_s16 }
  0x3c   : > { %729 = vrot.lane.b32.xlu1 %v631_v20, %s3426_s15  ;;  %727 = vrot.lane.b32.xlu0 %v623_v21, %s3426_s15 }
  0x40   : > { %991 = vrot.lane.b32.xlu1 %v368_v19, %s3428_s17  ;;  %989 = vrot.lane.b32.xlu0 %v616_v12, %s3428_s17 }
  0x44   : > { %1252 = vrot.lane.b32.xlu1 %v631_v20, %s3429_s18  ;;  %1250 = vrot.lane.b32.xlu0 %v623_v21, %s3429_s18 }
  0x48   : > { %1514 = vrot.lane.b32.xlu1 %v368_v19, %s3430_s19  ;;  %1512 = vrot.lane.b32.xlu0 %v616_v12, %s3430_s19  ;;  %v3610_v19 = vrot.slane %v3569_v54, %v3459_v5 }
  0x4c   : > { %1775 = vrot.lane.b32.xlu1 %v631_v20, %s3431_s20  ;;  %1773 = vrot.lane.b32.xlu0 %v623_v21, %s3431_s20 }
  0x50   : > { %471 = vrot.lane.b32.xlu1 %v383_v27, %s3427_s16  ;;  %469 = vrot.lane.b32.xlu0 %v631_v20, %s3427_s16 }
  0x54   : > { %733 = vrot.lane.b32.xlu1 %v646_v29, %s3426_s15  ;;  %731 = vrot.lane.b32.xlu0 %v638_v30, %s3426_s15 }
  0x58   : > { %995 = vrot.lane.b32.xlu1 %v383_v27, %s3428_s17  ;;  %993 = vrot.lane.b32.xlu0 %v631_v20, %s3428_s17 }
  0x5c   : > { %1256 = vrot.lane.b32.xlu1 %v646_v29, %s3429_s18  ;;  %1254 = vrot.lane.b32.xlu0 %v638_v30, %s3429_s18 }
  0x60   : > { %1518 = vrot.lane.b32.xlu1 %v383_v27, %s3430_s19  ;;  %1516 = vrot.lane.b32.xlu0 %v631_v20, %s3430_s19  ;;  %v3613_v20 = vrot.slane %v669_v11, %v3459_v5 }
  0x64   : > { %1779 = vrot.lane.b32.xlu1 %v646_v29, %s3431_s20  ;;  %1777 = vrot.lane.b32.xlu0 %v638_v30, %s3431_s20 }
  0x68   : > { %475 = vrot.lane.b32.xlu1 %v398_v35, %s3427_s16  ;;  %473 = vrot.lane.b32.xlu0 %v646_v29, %s3427_s16 }
  0x6c   : > { %737 = vrot.lane.b32.xlu1 %v661_v37, %s3426_s15  ;;  %735 = vrot.lane.b32.xlu0 %v653_v38, %s3426_s15 }
  0x70   : > { %999 = vrot.lane.b32.xlu1 %v398_v35, %s3428_s17  ;;  %997 = vrot.lane.b32.xlu0 %v646_v29, %s3428_s17 }
  0x74   : > { %1260 = vrot.lane.b32.xlu1 %v661_v37, %s3429_s18  ;;  %1258 = vrot.lane.b32.xlu0 %v653_v38, %s3429_s18 }
  0x78   : > { %1522 = vrot.lane.b32.xlu1 %v398_v35, %s3430_s19  ;;  %1520 = vrot.lane.b32.xlu0 %v646_v29, %s3430_s19 }
  0x7c   : > { %1783 = vrot.lane.b32.xlu1 %v661_v37, %s3431_s20  ;;  %1781 = vrot.lane.b32.xlu0 %v653_v38, %s3431_s20 }
  0x80   : > { %479 = vrot.lane.b32.xlu1 %v413_v43, %s3427_s16  ;;  %477 = vrot.lane.b32.xlu0 %v661_v37, %s3427_s16 }
  0x84   : > { %741 = vrot.lane.b32.xlu1 %v3554_v45, %s3426_s15  ;;  %739 = vrot.lane.b32.xlu0 %v668_v46, %s3426_s15 }
  0x86   : > { %v722_v47 = vpop.permute.xlu1 %721  ;;  %v462_v48 = vpop.permute.xlu0 %461 }
  0x87   : > { %v494_v51 = vrot.slane %v462_v48, 4  ;;  %v755_v60 = vrot.slane %v722_v47, 4 }
  0x88   : > { %1003 = vrot.lane.b32.xlu1 %v413_v43, %s3428_s17  ;;  %1001 = vrot.lane.b32.xlu0 %v661_v37, %s3428_s17 }
  0x8a   : > { %v3562_v49 = vpop.permute.xlu1 %725  ;;  %v460_v50 = vpop.permute.xlu0 %459 }
  0x8b   : > { %v493_v52 = vrot.slane %v460_v50, 4  ;;  %v757_v61 = vrot.slane %v3562_v49, 4 }
  0x8c   : > { %1264 = vrot.lane.b32.xlu1 %v3554_v45, %s3429_s18  ;;  %1262 = vrot.lane.b32.xlu0 %v668_v46, %s3429_s18 }
  0x8d   : > { %v511_v53 = vsel %vm510_vm0, %v493_v52, %v494_v51 }
  0x8e   : > { %v513_v56 = vsel %vm512_vm1, %v460_v50, %v511_v53  ;;  %v986_v57 = vpop.permute.xlu1 %985  ;;  %v724_v58 = vpop.permute.xlu0 %723  ;;  %v3649_v53 = vld [vmem:[%s3464_s14 + $0x38] sm:$0xff] }
  0x8f   : > { %560 = vst [vmem:[#allocation2] sm:$0xcc] %v513_v56  ;;  %v756_v62 = vrot.slane %v724_v58, 4  ;;  %v1018_v7 = vrot.slane %v986_v57, 4 }
  0x90   : > { %1526 = vrot.lane.b32.xlu1 %v413_v43, %s3430_s19  ;;  %1524 = vrot.lane.b32.xlu0 %v661_v37, %s3430_s19 }
  0x91   : > { %v772_v0 = vsel %vm510_vm0, %v755_v60, %v756_v62  ;;  %v775_v1 = vsel %vm510_vm0, %v756_v62, %v757_v61 }
  0x92   : > { %v774_v2 = vsel %vm773_vm2, %v722_v47, %v772_v0  ;;  %v776_v3 = vsel %vm773_vm2, %v724_v58, %v775_v1  ;;  %v3584_v4 = vpop.permute.xlu1 %463  ;;  %v984_v6 = vpop.permute.xlu0 %983  ;;  %v436_v0 = vcombine.low %v3649_v53, %v3649_v53 }
  0x93   : > { %821 = vst [vmem:[#allocation2 + $0x80] sm:$0x33] %v774_v2  ;;  %822 = vst [vmem:[#allocation2 + $0x88] sm:$0x33] %v776_v3  ;;  %v495_v8 = vrot.slane %v3584_v4, 4  ;;  %v1017_v9 = vrot.slane %v984_v6, 4 }
  0x94   : > { %1787 = vrot.lane.b32.xlu1 %v3554_v45, %s3431_s20  ;;  %1785 = vrot.lane.b32.xlu0 %v668_v46, %s3431_s20  ;;  %v3676_v11 = vrot.slane %v436_v0, %v3459_v5 }
  0x95   : > { %v514_v12 = vsel %vm510_vm0, %v494_v51, %v495_v8  ;;  %v1034_v13 = vsel %vm510_vm0, %v1017_v9, %v1018_v7 }
  0x96   : > { %v515_v14 = vsel %vm512_vm1, %v462_v48, %v514_v12  ;;  %v1036_v15 = vsel %vm1035_vm3, %v984_v6, %v1034_v13  ;;  %v1245_v16 = vpop.permute.xlu1 %1244  ;;  %v3601_v17 = vpop.permute.xlu0 %987  ;;  %v1884_v35 = vld [vmem:[#allocation2] sm:$0xff]  ;;  %v684_v12 = vcombine.high %v3569_v54, %v3569_v54 }
  0x97   : > { %561 = vst [vmem:[#allocation2 + $0x8] sm:$0xcc] %v515_v14  ;;  %1083 = vst [vmem:[#allocation2 + $0x80] sm:$0xcc] %v1036_v15  ;;  %v1019_v18 = vrot.slane %v3601_v17, 4  ;;  %v1278_v26 = vrot.slane %v1245_v16, 4 }
  0x98   : > { %483 = vrot.lane.b32.xlu1 %v3591_v10, %s3427_s16  ;;  %481 = vrot.lane.b32.xlu0 %v3554_v45, %s3427_s16 }
  0x99   : > { %v1037_v21 = vsel %vm510_vm0, %v1018_v7, %v1019_v18 }
  0x9a   : > { %v1038_v23 = vsel %vm1035_vm3, %v986_v57, %v1037_v21  ;;  %v3619_v24 = vpop.permute.xlu1 %1248  ;;  %v1247_v25 = vpop.permute.xlu0 %1246 }
  0x9b   : > { %1084 = vst [vmem:[#allocation2 + $0x88] sm:$0xcc] %v1038_v23  ;;  %v1280_v27 = vrot.slane %v3619_v24, 4  ;;  %v1279_v28 = vrot.slane %v1247_v25, 4 }
  0x9c   : > { %745 = vrot.lane.b32.xlu1 %v3610_v19, %s3426_s15  ;;  %743 = vrot.lane.b32.xlu0 %v3613_v20, %s3426_s15 }
  0x9d   : > { %v1295_v29 = vsel %vm510_vm0, %v1278_v26, %v1279_v28  ;;  %v1298_v30 = vsel %vm510_vm0, %v1279_v28, %v1280_v27 }
  0x9e   : > { %v1297_v31 = vsel %vm1296_vm4, %v1245_v16, %v1295_v29  ;;  %v1299_v32 = vsel %vm1296_vm4, %v1247_v25, %v1298_v30  ;;  %v1509_v33 = vpop.permute.xlu1 %1508  ;;  %v1507_v34 = vpop.permute.xlu0 %1506  ;;  %v1900_v36 = vld [vmem:[#allocation2 + $0x80] sm:$0xff]  ;;  %v1885_v46 = vld [vmem:[#allocation2 + $0x8] sm:$0xff] }
  0x9f   : > { %1344 = vst [vmem:[#allocation2 + $0x100] sm:$0x33] %v1297_v31  ;;  %1345 = vst [vmem:[#allocation2 + $0x108] sm:$0x33] %v1299_v32  ;;  %v1541_v37 = vrot.slane %v1509_v33, 4  ;;  %v1540_v38 = vrot.slane %v1507_v34, 4  ;;  %v3252_v39 = vcombine.high %v1884_v35, %v1900_v36  ;;  %v3251_v40 = vcombine.low %v1884_v35, %v1900_v36 }
  0xa0   : > { %1007 = vrot.lane.b32.xlu1 %v3591_v10, %s3428_s17  ;;  %1005 = vrot.lane.b32.xlu0 %v3554_v45, %s3428_s17 }
  0xa1   : > { %v1557_v41 = vsel %vm510_vm0, %v1540_v38, %v1541_v37  ;;  %2337 = vmatprep.subr.bf16.mxu0 %v3252_v39 }
  0xa2   : > { %v1559_v42 = vsel %vm1558_vm5, %v1507_v34, %v1557_v41  ;;  %v1768_v43 = vpop.permute.xlu1 %1767  ;;  %v3638_v44 = vpop.permute.xlu0 %1510  ;;  %2338 = vmatpush1.bf16.msra.mxu0 %v3251_v40  ;;  %v1901_v47 = vld [vmem:[#allocation2 + $0x88] sm:$0xff] }
  0xa3   : > { %1606 = vst [vmem:[#allocation2 + $0x100] sm:$0xcc] %v1559_v42  ;;  %v1542_v48 = vrot.slane %v3638_v44, 4  ;;  %v3254_v50 = vcombine.high %v1885_v46, %v1901_v47  ;;  %v3253_v51 = vcombine.low %v1885_v46, %v1901_v47  ;;  %v1801_v60 = vrot.slane %v1768_v43, 4 }
  0xa4   : > { %1268 = vrot.lane.b32.xlu1 %v3610_v19, %s3429_s18  ;;  %1266 = vrot.lane.b32.xlu0 %v3613_v20, %s3429_s18 }
  0xa5   : > { %v1560_v52 = vsel %vm510_vm0, %v1541_v37, %v1542_v48  ;;  %2378 = vmatprep.subr.bf16.mxu1 %v3254_v50 }
  0xa6   : > { %v1561_v56 = vsel %vm1558_vm5, %v1509_v33, %v1560_v52  ;;  %v3653_v57 = vpop.permute.xlu1 %1771  ;;  %v1770_v58 = vpop.permute.xlu0 %1769  ;;  %2379 = vmatpush1.bf16.msra.mxu1 %v3253_v51 }
  0xa7   : > { %1607 = vst [vmem:[#allocation2 + $0x108] sm:$0xcc] %v1561_v56  ;;  %v1803_v62 = vrot.slane %v3653_v57, 4  ;;  %v1802_v63 = vrot.slane %v1770_v58, 4 }
  0xa8   : > { %1530 = vrot.lane.b32.xlu1 %v3591_v10, %s3430_s19  ;;  %1528 = vrot.lane.b32.xlu0 %v3554_v45, %s3430_s19 }
  0xa9   : > { %v1818_v1 = vsel %vm510_vm0, %v1801_v60, %v1802_v63  ;;  %v1821_v2 = vsel %vm510_vm0, %v1802_v63, %v1803_v62 }
  0xaa   : > { %v1820_v3 = vsel %vm1819_vm6, %v1768_v43, %v1818_v1  ;;  %v1822_v6 = vsel %vm1819_vm6, %v1770_v58, %v1821_v2  ;;  %v3668_v7 = vpop.permute.xlu1 %467  ;;  %v466_v9 = vpop.permute.xlu0 %465  ;;  %v1916_v28 = vld [vmem:[#allocation2 + $0x100] sm:$0xff]  ;;  %v152_v2 = vld [vmem:[%s3464_s14 + $0x38] sm:$0xff] }
  0xab   : > { %1867 = vst [vmem:[#allocation2 + $0x180] sm:$0x33] %v1820_v3  ;;  %1868 = vst [vmem:[#allocation2 + $0x188] sm:$0x33] %v1822_v6  ;;  %v497_v45 = vrot.slane %v3668_v7, 4  ;;  %v496_v10 = vrot.slane %v466_v9, 4 }
  0xac   : > { %1791 = vrot.lane.b32.xlu1 %v3610_v19, %s3431_s20  ;;  %1789 = vrot.lane.b32.xlu0 %v3613_v20, %s3431_s20  ;;  %3246 = vst.sshfl [vmem:[#allocation2 + $0x70] sm:$0xf pattern:$0x76325410] %v152_v2 }
  0xad   : > { %v516_v13 = vsel %vm510_vm0, %v495_v8, %v496_v10  ;;  %v518_v14 = vsel %vm510_vm0, %v496_v10, %v497_v45  ;;  %v3698_v8 = vrot.slane %v3649_v53, %v3459_v5 }
  0xae   : > { %v517_v15 = vsel %vm512_vm1, %v3584_v4, %v516_v13  ;;  %v519_v16 = vsel %vm512_vm1, %v466_v9, %v518_v14  ;;  %v3689_v20 = vpop.permute.xlu1 %729  ;;  %v728_v21 = vpop.permute.xlu0 %727  ;;  %v3701_v4 = vrot.slane %v684_v12, %v3459_v5  ;;  %v1917_v34 = vld [vmem:[#allocation2 + $0x108] sm:$0xff] }
  0xaf   : > { %562 = vst [vmem:[#allocation2 + $0x10] sm:$0xcc] %v517_v15  ;;  %563 = vst [vmem:[#allocation2 + $0x18] sm:$0xcc] %v519_v16  ;;  %v759_v54 = vrot.slane %v3689_v20, 4  ;;  %v758_v23 = vrot.slane %v728_v21, 4  ;;  %v266_v15 = vcombine.high %v152_v2, %v152_v2 }
  0xb0   : > { %487 = vrot.lane.b32.xlu1 %v3676_v11, %s3427_s16  ;;  %485 = vrot.lane.b32.xlu0 %v3610_v19, %s3427_s16 }
  0xb1   : > { %v777_v25 = vsel %vm510_vm0, %v757_v61, %v758_v23  ;;  %v779_v26 = vsel %vm510_vm0, %v758_v23, %v759_v54  ;;  %3247 = vst.sshfl [vmem:[#allocation2 + $0x78] sm:$0xf pattern:$0x76325410] %v266_v15 }
  0xb2   : > { %v778_v29 = vsel %vm773_vm2, %v3562_v49, %v777_v25  ;;  %v780_v30 = vsel %vm773_vm2, %v728_v21, %v779_v26  ;;  %v3712_v31 = vpop.permute.xlu1 %991  ;;  %v990_v32 = vpop.permute.xlu0 %989  ;;  %v1932_v33 = vld [vmem:[#allocation2 + $0x180] sm:$0x33]  ;;  %v1933_v35 = vld [vmem:[#allocation2 + $0x188] sm:$0x33] }
  0xb3   : > { %823 = vst [vmem:[#allocation2 + $0x90] sm:$0x33] %v778_v29  ;;  %824 = vst [vmem:[#allocation2 + $0x98] sm:$0x33] %v780_v30  ;;  %v1021_v61 = vrot.slane %v3712_v31, 4  ;;  %v1020_v36 = vrot.slane %v990_v32, 4  ;;  %v3284_v37 = vcombine.high %v1916_v28, %v1932_v33  ;;  %v3286_v38 = vcombine.high %v1917_v34, %v1933_v35 }
  0xb4   : > { %749 = vrot.lane.b32.xlu1 %v3698_v8, %s3426_s15  ;;  %747 = vrot.lane.b32.xlu0 %v3701_v4, %s3426_s15  ;;  %v3283_v49 = vcombine.low %v1916_v28, %v1932_v33  ;;  %v3285_v39 = vcombine.low %v1917_v34, %v1933_v35  ;;  %v3413_v28 = vld [vmem:[%s3464_s14 + $0x40] ss:$0 sps:$4 sm:$0x33]   ;;  %v1745_v35 = vcombine.high %v3649_v53, %v3649_v53 }
  0xb5   : > { %v1039_v40 = vsel %vm510_vm0, %v1019_v18, %v1020_v36  ;;  %v1041_v41 = vsel %vm510_vm0, %v1020_v36, %v1021_v61  ;;  %3315 = vmatprep.subr.msk.bf16.mxu0 %vm2240_vm7, %v3284_v37  ;;  %3317 = vmatprep.subr.msk.bf16.mxu1 %vm2240_vm7, %v3286_v38 }
  0xb6   : > { %v1040_v42 = vsel %vm1035_vm3, %v3601_v17, %v1039_v40  ;;  %v1042_v43 = vsel %vm1035_vm3, %v990_v32, %v1041_v41  ;;  %v3730_v46 = vpop.permute.xlu1 %1252  ;;  %v1251_v47 = vpop.permute.xlu0 %1250  ;;  %v2242_v50 = vsel %vm2240_vm7, %v3283_v49, 0  ;;  %v2248_v18 = vsel %vm2240_vm7, %v3285_v39, 0  ;;  %v3738_v17 = vld [vmem:[%s4326_s1] sm:$0xf]  ;;  %v1886_v12 = vld [vmem:[#allocation2 + $0x10] sm:$0xff] }
  0xb7   : > { %1085 = vst [vmem:[#allocation2 + $0x90] sm:$0xcc] %v1040_v42  ;;  %1086 = vst [vmem:[#allocation2 + $0x98] sm:$0xcc] %v1042_v43  ;;  %v1282_v51 = vrot.slane %v3730_v46, 4  ;;  %v1281_v52 = vrot.slane %v1251_v47, 4  ;;  %2340 = vmatpush1.bf16.msra.mxu0 %v2242_v50  ;;  %2381 = vmatpush1.bf16.msra.mxu1 %v2248_v18 }
  0xb8   : > { %1011 = vrot.lane.b32.xlu1 %v3676_v11, %s3428_s17  ;;  %1009 = vrot.lane.b32.xlu0 %v3610_v19, %s3428_s17  ;;  %v1887_v25 = vld [vmem:[#allocation2 + $0x18] sm:$0xff] }
  0xb9   : > { %v1300_v55 = vsel %vm510_vm0, %v1280_v27, %v1281_v52  ;;  %v1302_v56 = vsel %vm510_vm0, %v1281_v52, %v1282_v51  ;;  %v3414_v41 = vld [vmem:[%s3464_s14 + $0x40] ss:$0 sps:$4 sm:$0x33]  }
  0xba   : > { %v1301_v58 = vsel %vm1296_vm4, %v3619_v24, %v1300_v55  ;;  %v1303_v59 = vsel %vm1296_vm4, %v1251_v47, %v1302_v56  ;;  %v3753_v60 = vpop.permute.xlu1 %1514  ;;  %v1513_v63 = vpop.permute.xlu0 %1512  ;;  %3316 = vmatmul.mubr.msk.bf16.vlgmr.msra.gmra.mrb[0].mxu0 %vm2236_vm8, %v3738_v17  ;;  %3318 = vmatmul.mubr.msk.bf16.vlgmr.msra.gmra.mrb[0].mxu1 %vm2236_vm8, %v3738_v17  ;;  %v3829_v43 = vld.sshfl [vmem:[%s3464_s14 + $0x40] sm:$0x3 pattern:$0x76325410]  ;;  %v982_v2 = vrot.slane %v3414_v41, %v3459_v5 }
  0xbb   : > { %1346 = vst [vmem:[#allocation2 + $0x110] sm:$0x33] %v1301_v58  ;;  %1347 = vst [vmem:[#allocation2 + $0x118] sm:$0x33] %v1303_v59  ;;  %v1544_v27 = vrot.slane %v3753_v60, 4  ;;  %v1543_v0 = vrot.slane %v1513_v63, 4  ;;  %2451 = vmatprep.mubr.bf16.mxu0 %v3432_v22  ;;  %2492 = vmatprep.mubr.bf16.mxu1 %v3432_v22 }
  0xbc   : > { %1272 = vrot.lane.b32.xlu1 %v3698_v8, %s3429_s18  ;;  %1270 = vrot.lane.b32.xlu0 %v3701_v4, %s3429_s18 }
  0xbd   : > { %v1562_v24 = vsel %vm510_vm0, %v1542_v48, %v1543_v0  ;;  %v1564_v1 = vsel %vm510_vm0, %v1543_v0, %v1544_v27 }
  0xbe   : > { %v1563_v3 = vsel %vm1558_vm5, %v3638_v44, %v1562_v24  ;;  %v1565_v6 = vsel %vm1558_vm5, %v1513_v63, %v1564_v1  ;;  %v3776_v9 = vpop.permute.xlu1 %1775  ;;  %v1774_v10 = vpop.permute.xlu0 %1773  ;;  %v1902_v13 = vld [vmem:[#allocation2 + $0x90] sm:$0xff]  ;;  %v1903_v14 = vld [vmem:[#allocation2 + $0x98] sm:$0xff] }
  0xbf   : > { %1608 = vst [vmem:[#allocation2 + $0x110] sm:$0xcc] %v1563_v3  ;;  %1609 = vst [vmem:[#allocation2 + $0x118] sm:$0xcc] %v1565_v6  ;;  %v1805_v48 = vrot.slane %v3776_v9, 4  ;;  %v1804_v16 = vrot.slane %v1774_v10, 4  ;;  %v3255_v21 = vcombine.low %v1886_v12, %v1902_v13  ;;  %v3256_v23 = vcombine.high %v1886_v12, %v1902_v13 }
  0xc0   : > { %1534 = vrot.lane.b32.xlu1 %v3676_v11, %s3430_s19  ;;  %1532 = vrot.lane.b32.xlu0 %v3610_v19, %s3430_s19  ;;  %v3257_v44 = vcombine.low %v1887_v25, %v1903_v14  ;;  %v3258_v26 = vcombine.high %v1887_v25, %v1903_v14 }
  0xc1   : > { %v1823_v29 = vsel %vm510_vm0, %v1803_v62, %v1804_v16  ;;  %v1825_v30 = vsel %vm510_vm0, %v1804_v16, %v1805_v48  ;;  %2419 = vmatprep.subr.bf16.mxu0 %v3256_v23 }
  0xc2   : > { %v1824_v32 = vsel %vm1819_vm6, %v3653_v57, %v1823_v29  ;;  %v1826_v11 = vsel %vm1819_vm6, %v1774_v10, %v1825_v30  ;;  %2460 = vmatprep.subr.bf16.mxu1 %v3258_v26  ;;  %v3793_v19 = vpop.permute.xlu1 %471  ;;  %v470_v33 = vpop.permute.xlu0 %469  ;;  %2420 = vmatpush1.bf16.msra.mxu0 %v3255_v21  ;;  %v458_v57 = vrot.slane %v3413_v28, %v3459_v5 }
  0xc3   : > { %1869 = vst [vmem:[#allocation2 + $0x190] sm:$0x33] %v1824_v32  ;;  %1870 = vst [vmem:[#allocation2 + $0x198] sm:$0x33] %v1826_v11  ;;  %v499_v34 = vrot.slane %v3793_v19, 4  ;;  %v498_v62 = vrot.slane %v470_v33, 4  ;;  %2461 = vmatpush1.bf16.msra.mxu1 %v3257_v44 }
  0xc4   : > { %1795 = vrot.lane.b32.xlu1 %v3698_v8, %s3431_s20  ;;  %1793 = vrot.lane.b32.xlu0 %v3701_v4, %s3431_s20 }
  0xc5   : > { %v520_v36 = vsel %vm510_vm0, %v497_v45, %v498_v62  ;;  %v522_v37 = vsel %vm510_vm0, %v498_v62, %v499_v34  ;;  %v3819_v45 = vrot.slane %v1745_v35, %v3459_v5 }
  0xc6   : > { %v521_v53 = vsel %vm512_vm1, %v3668_v7, %v520_v36  ;;  %v523_v38 = vsel %vm512_vm1, %v470_v33, %v522_v37  ;;  %v3812_v49 = vpop.permute.xlu1 %733  ;;  %v732_v39 = vpop.permute.xlu0 %731  ;;  %v1918_v47 = vld [vmem:[#allocation2 + $0x110] sm:$0xff]  ;;  %v1919_v58 = vld [vmem:[#allocation2 + $0x118] sm:$0xff] }
  0xc7   : > { %564 = vst [vmem:[#allocation2 + $0x20] sm:$0xcc] %v521_v53  ;;  %565 = vst [vmem:[#allocation2 + $0x28] sm:$0xcc] %v523_v38  ;;  %v761_v4 = vrot.slane %v3812_v49, 4  ;;  %v760_v40 = vrot.slane %v732_v39, 4 }
  0xc8   : > { %491 = vrot.lane.b32.xlu1 %v458_v57, %s3427_s16  ;;  %489 = vrot.lane.b32.xlu0 %v3698_v8, %s3427_s16 }
  0xc9   : > { %v781_v7 = vsel %vm510_vm0, %v759_v54, %v760_v40  ;;  %v783_v42 = vsel %vm510_vm0, %v760_v40, %v761_v4 }
  0xca   : > { %v782_v50 = vsel %vm773_vm2, %v3689_v20, %v781_v7  ;;  %v784_v18 = vsel %vm773_vm2, %v732_v39, %v783_v42  ;;  %v3834_v52 = vpop.permute.xlu1 %995  ;;  %v994_v55 = vpop.permute.xlu0 %993  ;;  %v1934_v56 = vld [vmem:[#allocation2 + $0x190] sm:$0x33]  ;;  %v1935_v59 = vld [vmem:[#allocation2 + $0x198] sm:$0x33] }
  0xcb   : > { %825 = vst [vmem:[#allocation2 + $0xa0] sm:$0x33] %v782_v50  ;;  %826 = vst [vmem:[#allocation2 + $0xa8] sm:$0x33] %v784_v18  ;;  %v1023_v54 = vrot.slane %v3834_v52, 4  ;;  %v1022_v63 = vrot.slane %v994_v55, 4  ;;  %v3288_v0 = vcombine.high %v1918_v47, %v1934_v56  ;;  %v3290_v24 = vcombine.high %v1919_v58, %v1935_v59 }
  0xcc   : > { %753 = vrot.lane.b32.xlu1 %v3829_v43, %s3426_s15  ;;  %751 = vrot.lane.b32.xlu0 %v3819_v45, %s3426_s15  ;;  %v3287_v20 = vcombine.low %v1918_v47, %v1934_v56  ;;  %v3289_v1 = vcombine.low %v1919_v58, %v1935_v59 }
  0xcd   : > { %v1043_v3 = vsel %vm510_vm0, %v1021_v61, %v1022_v63  ;;  %v1045_v6 = vsel %vm510_vm0, %v1022_v63, %v1023_v54  ;;  %3319 = vmatprep.subr.msk.bf16.mxu0 %vm2240_vm7, %v3288_v0  ;;  %3321 = vmatprep.subr.msk.bf16.mxu1 %vm2240_vm7, %v3290_v24 }
  0xce   : > { %v1044_v10 = vsel %vm1035_vm3, %v3712_v31, %v1043_v3  ;;  %v1046_v12 = vsel %vm1035_vm3, %v994_v55, %v1045_v6  ;;  %v3853_v13 = vpop.permute.xlu1 %1256  ;;  %v1255_v14 = vpop.permute.xlu0 %1254  ;;  %v2254_v15 = vsel %vm2240_vm7, %v3287_v20, 0  ;;  %v2260_v61 = vsel %vm2240_vm7, %v3289_v1, 0  ;;  %v3415_v31 = vld [vmem:[%s3464_s14 + $0x40] ss:$0 sps:$4 sm:$0x33]   ;;  %v1888_v36 = vld [vmem:[#allocation2 + $0x20] sm:$0xff] }
  0xcf   : > { %1087 = vst [vmem:[#allocation2 + $0xa0] sm:$0xcc] %v1044_v10  ;;  %1088 = vst [vmem:[#allocation2 + $0xa8] sm:$0xcc] %v1046_v12  ;;  %v1284_v16 = vrot.slane %v3853_v13, 4  ;;  %v1283_v21 = vrot.slane %v1255_v14, 4  ;;  %2422 = vmatpush1.bf16.msra.mxu0 %v2254_v15  ;;  %2463 = vmatpush1.bf16.msra.mxu1 %v2260_v61 }
  0xd0   : > { %1015 = vrot.lane.b32.xlu1 %v982_v2, %s3428_s17  ;;  %1013 = vrot.lane.b32.xlu0 %v3698_v8, %s3428_s17  ;;  %v1889_v40 = vld [vmem:[#allocation2 + $0x28] sm:$0xff] }
  0xd1   : > { %v1304_v23 = vsel %vm510_vm0, %v1282_v51, %v1283_v21  ;;  %v1306_v25 = vsel %vm510_vm0, %v1283_v21, %v1284_v16 }
  0xd2   : > { %v1305_v44 = vsel %vm1296_vm4, %v3730_v46, %v1304_v23  ;;  %v1307_v26 = vsel %vm1296_vm4, %v1255_v14, %v1306_v25  ;;  %v3871_v28 = vpop.permute.xlu1 %1518  ;;  %v1517_v29 = vpop.permute.xlu0 %1516  ;;  %3320 = vmatmul.mubr.msk.bf16.vlgmr.msra.gmra.mrb[4].mxu0 %vm2236_vm8, %v3738_v17  ;;  %3322 = vmatmul.mubr.msk.bf16.vlgmr.msra.gmra.mrb[4].mxu1 %vm2236_vm8, %v3738_v17  ;;  %v1505_v46 = vrot.slane %v3415_v31, %v3459_v5 }
  0xd3   : > { %1348 = vst [vmem:[#allocation2 + $0x120] sm:$0x33] %v1305_v44  ;;  %1349 = vst [vmem:[#allocation2 + $0x128] sm:$0x33] %v1307_v26  ;;  %v1546_v51 = vrot.slane %v3871_v28, 4  ;;  %v1545_v30 = vrot.slane %v1517_v29, 4  ;;  %2533 = vmatprep.mubr.bf16.mxu0 %v3432_v22  ;;  %2574 = vmatprep.mubr.bf16.mxu1 %v3432_v22 }
  0xd4   : > { %1276 = vrot.lane.b32.xlu1 %v3829_v43, %s3429_s18  ;;  %1274 = vrot.lane.b32.xlu0 %v3819_v45, %s3429_s18 }
  0xd5   : > { %v1566_v32 = vsel %vm510_vm0, %v1544_v27, %v1545_v30  ;;  %v1568_v11 = vsel %vm510_vm0, %v1545_v30, %v1546_v51 }
  0xd6   : > { %v1567_v33 = vsel %vm1558_vm5, %v3753_v60, %v1566_v32  ;;  %v1569_v62 = vsel %vm1558_vm5, %v1517_v29, %v1568_v11  ;;  %v3894_v35 = vpop.permute.xlu1 %1779  ;;  %v1778_v57 = vpop.permute.xlu0 %1777  ;;  %v1904_v37 = vld [vmem:[#allocation2 + $0xa0] sm:$0xff]  ;;  %v1905_v53 = vld [vmem:[#allocation2 + $0xa8] sm:$0xff] }
  0xd7   : > { %1610 = vst [vmem:[#allocation2 + $0x120] sm:$0xcc] %v1567_v33  ;;  %1611 = vst [vmem:[#allocation2 + $0x128] sm:$0xcc] %v1569_v62  ;;  %v1807_v5 = vrot.slane %v3894_v35, 4  ;;  %v1806_v27 = vrot.slane %v1778_v57, 4  ;;  %v3259_v38 = vcombine.low %v1888_v36, %v1904_v37  ;;  %v3260_v39 = vcombine.high %v1888_v36, %v1904_v37 }
  0xd8   : > { %1538 = vrot.lane.b32.xlu1 %v1505_v46, %s3430_s19  ;;  %1536 = vrot.lane.b32.xlu0 %v3698_v8, %s3430_s19  ;;  %v3261_v60 = vcombine.low %v1889_v40, %v1905_v53  ;;  %v3262_v41 = vcombine.high %v1889_v40, %v1905_v53 }
  0xd9   : > { %v1827_v7 = vsel %vm510_vm0, %v1805_v48, %v1806_v27  ;;  %v1829_v42 = vsel %vm510_vm0, %v1806_v27, %v1807_v5  ;;  %2501 = vmatprep.subr.bf16.mxu0 %v3260_v39 }
  0xda   : > { %v1828_v47 = vsel %vm1819_vm6, %v3776_v9, %v1827_v7  ;;  %v1830_v50 = vsel %vm1819_vm6, %v1778_v57, %v1829_v42  ;;  %2542 = vmatprep.subr.bf16.mxu1 %v3262_v41  ;;  %v3909_v18 = vpop.permute.xlu1 %475  ;;  %v474_v8 = vpop.permute.xlu0 %473  ;;  %2502 = vmatpush1.bf16.msra.mxu0 %v3259_v38 }
  0xdb   : > { %1871 = vst [vmem:[#allocation2 + $0x1a0] sm:$0x33] %v1828_v47  ;;  %1872 = vst [vmem:[#allocation2 + $0x1a8] sm:$0x33] %v1830_v50  ;;  %v501_v55 = vrot.slane %v3909_v18, 4  ;;  %v500_v48 = vrot.slane %v474_v8, 4  ;;  %2543 = vmatpush1.bf16.msra.mxu1 %v3261_v60 }
  0xdc   : > { %1799 = vrot.lane.b32.xlu1 %v3829_v43, %s3431_s20  ;;  %1797 = vrot.lane.b32.xlu0 %v3819_v45, %s3431_s20 }
  0xdd   : > { %v524_v9 = vsel %vm510_vm0, %v499_v34, %v500_v48  ;;  %v526_v56 = vsel %vm510_vm0, %v500_v48, %v501_v55 }
  0xde   : > { %v525_v58 = vsel %vm512_vm1, %v3793_v19, %v524_v9  ;;  %v527_v59 = vsel %vm512_vm1, %v474_v8, %v526_v56  ;;  %v3925_v63 = vpop.permute.xlu1 %737  ;;  %v736_v0 = vpop.permute.xlu0 %735  ;;  %v1920_v20 = vld [vmem:[#allocation2 + $0x120] sm:$0xff]  ;;  %v1921_v10 = vld [vmem:[#allocation2 + $0x128] sm:$0xff] }
  0xdf   : > { %566 = vst [vmem:[#allocation2 + $0x30] sm:$0xcc] %v525_v58  ;;  %567 = vst [vmem:[#allocation2 + $0x38] sm:$0xcc] %v527_v59  ;;  %v763_v45 = vrot.slane %v3925_v63, 4  ;;  %v762_v43 = vrot.slane %v736_v0, 4 }
  0xe1   : > { %v785_v34 = vsel %vm510_vm0, %v761_v4, %v762_v43  ;;  %v787_v24 = vsel %vm510_vm0, %v762_v43, %v763_v45 }
  0xe2   : > { %v786_v19 = vsel %vm773_vm2, %v3812_v49, %v785_v34  ;;  %v788_v1 = vsel %vm773_vm2, %v736_v0, %v787_v24  ;;  %v3937_v2 = vpop.permute.xlu1 %999  ;;  %v998_v3 = vpop.permute.xlu0 %997  ;;  %v1936_v6 = vld [vmem:[#allocation2 + $0x1a0] sm:$0x33]  ;;  %v1937_v12 = vld [vmem:[#allocation2 + $0x1a8] sm:$0x33] }
  0xe3   : > { %827 = vst [vmem:[#allocation2 + $0xb0] sm:$0x33] %v786_v19  ;;  %828 = vst [vmem:[#allocation2 + $0xb8] sm:$0x33] %v788_v1  ;;  %v1025_v4 = vrot.slane %v3937_v2, 4  ;;  %v1024_v14 = vrot.slane %v998_v3, 4  ;;  %v3292_v15 = vcombine.high %v1920_v20, %v1936_v6  ;;  %v3294_v61 = vcombine.high %v1921_v10, %v1937_v12 }
  0xe4   : > { %v3291_v21 = vcombine.low %v1920_v20, %v1936_v6  ;;  %v3293_v31 = vcombine.low %v1921_v10, %v1937_v12 }
  0xe5   : > { %v1047_v49 = vsel %vm510_vm0, %v1023_v54, %v1024_v14  ;;  %v1049_v23 = vsel %vm510_vm0, %v1024_v14, %v1025_v4  ;;  %3323 = vmatprep.subr.msk.bf16.mxu0 %vm2240_vm7, %v3292_v15  ;;  %3325 = vmatprep.subr.msk.bf16.mxu1 %vm2240_vm7, %v3294_v61 }
  0xe6   : > { %v1048_v25 = vsel %vm1035_vm3, %v3834_v52, %v1047_v49  ;;  %v1050_v44 = vsel %vm1035_vm3, %v998_v3, %v1049_v23  ;;  %v3951_v26 = vpop.permute.xlu1 %1260  ;;  %v1259_v29 = vpop.permute.xlu0 %1258  ;;  %v2266_v30 = vsel %vm2240_vm7, %v3291_v21, 0  ;;  %v2272_v54 = vsel %vm2240_vm7, %v3293_v31, 0  ;;  %v1890_v60 = vld [vmem:[#allocation2 + $0x30] sm:$0xff]  ;;  %v1891_v8 = vld [vmem:[#allocation2 + $0x38] sm:$0xff] }
  0xe7   : > { %1089 = vst [vmem:[#allocation2 + $0xb0] sm:$0xcc] %v1048_v25  ;;  %1090 = vst [vmem:[#allocation2 + $0xb8] sm:$0xcc] %v1050_v44  ;;  %v1286_v46 = vrot.slane %v3951_v26, 4  ;;  %v1285_v32 = vrot.slane %v1259_v29, 4  ;;  %2504 = vmatpush1.bf16.msra.mxu0 %v2266_v30  ;;  %2545 = vmatpush1.bf16.msra.mxu1 %v2272_v54 }
  0xe9   : > { %v1308_v52 = vsel %vm510_vm0, %v1284_v16, %v1285_v32  ;;  %v1310_v11 = vsel %vm510_vm0, %v1285_v32, %v1286_v46 }
  0xea   : > { %v1309_v33 = vsel %vm1296_vm4, %v3853_v13, %v1308_v52  ;;  %v1311_v62 = vsel %vm1296_vm4, %v1259_v29, %v1310_v11  ;;  %v3965_v57 = vpop.permute.xlu1 %1522  ;;  %v1521_v36 = vpop.permute.xlu0 %1520  ;;  %3324 = vmatmul.mubr.msk.bf16.vlgmr.msra.gmra.mrb[8].mxu0 %vm2236_vm8, %v3738_v17  ;;  %3326 = vmatmul.mubr.msk.bf16.vlgmr.msra.gmra.mrb[8].mxu1 %vm2236_vm8, %v3738_v17 }
  0xeb   : > { %1350 = vst [vmem:[#allocation2 + $0x130] sm:$0x33] %v1309_v33  ;;  %1351 = vst [vmem:[#allocation2 + $0x138] sm:$0x33] %v1311_v62  ;;  %v1548_v16 = vrot.slane %v3965_v57, 4  ;;  %v1547_v37 = vrot.slane %v1521_v36, 4  ;;  %2615 = vmatprep.mubr.bf16.mxu0 %v3432_v22  ;;  %2656 = vmatprep.mubr.bf16.mxu1 %v3432_v22 }
  0xed   : > { %v1570_v13 = vsel %vm510_vm0, %v1546_v51, %v1547_v37  ;;  %v1572_v53 = vsel %vm510_vm0, %v1547_v37, %v1548_v16 }
  0xee   : > { %v1571_v27 = vsel %vm1558_vm5, %v3871_v28, %v1570_v13  ;;  %v1573_v38 = vsel %vm1558_vm5, %v1521_v36, %v1572_v53  ;;  %v3983_v39 = vpop.permute.xlu1 %1783  ;;  %v1782_v40 = vpop.permute.xlu0 %1781  ;;  %v1906_v41 = vld [vmem:[#allocation2 + $0xb0] sm:$0xff]  ;;  %v1907_v7 = vld [vmem:[#allocation2 + $0xb8] sm:$0xff] }
  0xef   : > { %1612 = vst [vmem:[#allocation2 + $0x130] sm:$0xcc] %v1571_v27  ;;  %1613 = vst [vmem:[#allocation2 + $0x138] sm:$0xcc] %v1573_v38  ;;  %v1809_v42 = vrot.slane %v3983_v39, 4  ;;  %v1808_v51 = vrot.slane %v1782_v40, 4  ;;  %v3263_v47 = vcombine.low %v1890_v60, %v1906_v41  ;;  %v3264_v50 = vcombine.high %v1890_v60, %v1906_v41 }
  0xf0   : > { %v3265_v48 = vcombine.low %v1891_v8, %v1907_v7  ;;  %v3266_v9 = vcombine.high %v1891_v8, %v1907_v7 }
  0xf1   : > { %v1831_v28 = vsel %vm510_vm0, %v1807_v5, %v1808_v51  ;;  %v1833_v56 = vsel %vm510_vm0, %v1808_v51, %v1809_v42  ;;  %2583 = vmatprep.subr.bf16.mxu0 %v3264_v50 }
  0xf2   : > { %v1832_v58 = vsel %vm1819_vm6, %v3894_v35, %v1831_v28  ;;  %v1834_v59 = vsel %vm1819_vm6, %v1782_v40, %v1833_v56  ;;  %2624 = vmatprep.subr.bf16.mxu1 %v3266_v9  ;;  %v3995_v0 = vpop.permute.xlu1 %479  ;;  %v478_v43 = vpop.permute.xlu0 %477  ;;  %2584 = vmatpush1.bf16.msra.mxu0 %v3263_v47 }
  0xf3   : > { %1873 = vst [vmem:[#allocation2 + $0x1b0] sm:$0x33] %v1832_v58  ;;  %1874 = vst [vmem:[#allocation2 + $0x1b8] sm:$0x33] %v1834_v59  ;;  %v503_v34 = vrot.slane %v3995_v0, 4  ;;  %v502_v5 = vrot.slane %v478_v43, 4  ;;  %2625 = vmatpush1.bf16.msra.mxu1 %v3265_v48 }
  0xf5   : > { %v528_v24 = vsel %vm510_vm0, %v501_v55, %v502_v5  ;;  %v530_v35 = vsel %vm510_vm0, %v502_v5, %v503_v34 }
  0xf6   : > { %v529_v20 = vsel %vm512_vm1, %v3909_v18, %v528_v24  ;;  %v531_v19 = vsel %vm512_vm1, %v478_v43, %v530_v35  ;;  %v4007_v1 = vpop.permute.xlu1 %741  ;;  %v740_v3 = vpop.permute.xlu0 %739  ;;  %v1922_v14 = vld [vmem:[#allocation2 + $0x130] sm:$0xff]  ;;  %v1923_v49 = vld [vmem:[#allocation2 + $0x138] sm:$0xff] }
  0xf7   : > { %568 = vst [vmem:[#allocation2 + $0x40] sm:$0xcc] %v529_v20  ;;  %569 = vst [vmem:[#allocation2 + $0x48] sm:$0xcc] %v531_v19  ;;  %v765_v6 = vrot.slane %v4007_v1, 4  ;;  %v764_v10 = vrot.slane %v740_v3, 4 }
  0xf9   : > { %v789_v55 = vsel %vm510_vm0, %v763_v45, %v764_v10  ;;  %v791_v12 = vsel %vm510_vm0, %v764_v10, %v765_v6 }
  0xfa   : > { %v790_v18 = vsel %vm773_vm2, %v3925_v63, %v789_v55  ;;  %v792_v15 = vsel %vm773_vm2, %v740_v3, %v791_v12  ;;  %v4019_v61 = vpop.permute.xlu1 %1003  ;;  %v1002_v21 = vpop.permute.xlu0 %1001  ;;  %v1938_v31 = vld [vmem:[#allocation2 + $0x1b0] sm:$0x33]  ;;  %v1939_v23 = vld [vmem:[#allocation2 + $0x1b8] sm:$0x33] }
  0xfb   : > { %829 = vst [vmem:[#allocation2 + $0xc0] sm:$0x33] %v790_v18  ;;  %830 = vst [vmem:[#allocation2 + $0xc8] sm:$0x33] %v792_v15  ;;  %v1027_v45 = vrot.slane %v4019_v61, 4  ;;  %v1026_v25 = vrot.slane %v1002_v21, 4  ;;  %v3296_v44 = vcombine.high %v1922_v14, %v1938_v31  ;;  %v3298_v29 = vcombine.high %v1923_v49, %v1939_v23 }
  0xfc   : > { %v3295_v30 = vcombine.low %v1922_v14, %v1938_v31  ;;  %v3297_v54 = vcombine.low %v1923_v49, %v1939_v23 }
  0xfd   : > { %v1051_v63 = vsel %vm510_vm0, %v1025_v4, %v1026_v25  ;;  %v1053_v32 = vsel %vm510_vm0, %v1026_v25, %v1027_v45  ;;  %3327 = vmatprep.subr.msk.bf16.mxu0 %vm2240_vm7, %v3296_v44  ;;  %3329 = vmatprep.subr.msk.bf16.mxu1 %vm2240_vm7, %v3298_v29 }
  0xfe   : > { %v1052_v52 = vsel %vm1035_vm3, %v3937_v2, %v1051_v63  ;;  %v1054_v11 = vsel %vm1035_vm3, %v1002_v21, %v1053_v32  ;;  %v4033_v33 = vpop.permute.xlu1 %1264  ;;  %v1263_v62 = vpop.permute.xlu0 %1262  ;;  %v2278_v36 = vsel %vm2240_vm7, %v3295_v30, 0  ;;  %v2284_v4 = vsel %vm2240_vm7, %v3297_v54, 0  ;;  %v1892_v48 = vld [vmem:[#allocation2 + $0x40] sm:$0xff]  ;;  %v1893_v43 = vld [vmem:[#allocation2 + $0x48] sm:$0xff] }
  0xff   : > { %1091 = vst [vmem:[#allocation2 + $0xc0] sm:$0xcc] %v1052_v52  ;;  %1092 = vst [vmem:[#allocation2 + $0xc8] sm:$0xcc] %v1054_v11  ;;  %v1288_v37 = vrot.slane %v4033_v33, 4  ;;  %v1287_v13 = vrot.slane %v1263_v62, 4  ;;  %2586 = vmatpush1.bf16.msra.mxu0 %v2278_v36  ;;  %2627 = vmatpush1.bf16.msra.mxu1 %v2284_v4 }
 0x101   : > { %v1312_v2 = vsel %vm510_vm0, %v1286_v46, %v1287_v13  ;;  %v1314_v53 = vsel %vm510_vm0, %v1287_v13, %v1288_v37 }
 0x102   : > { %v1313_v27 = vsel %vm1296_vm4, %v3951_v26, %v1312_v2  ;;  %v1315_v38 = vsel %vm1296_vm4, %v1263_v62, %v1314_v53  ;;  %v4047_v40 = vpop.permute.xlu1 %1526  ;;  %v1525_v60 = vpop.permute.xlu0 %1524  ;;  %3328 = vmatmul.mubr.msk.bf16.vlgmr.msra.gmra.mrb[12].mxu0 %vm2236_vm8, %v3738_v17  ;;  %3330 = vmatmul.mubr.msk.bf16.vlgmr.msra.gmra.mrb[12].mxu1 %vm2236_vm8, %v3738_v17 }
 0x103   : > { %1352 = vst [vmem:[#allocation2 + $0x140] sm:$0x33] %v1313_v27  ;;  %1353 = vst [vmem:[#allocation2 + $0x148] sm:$0x33] %v1315_v38  ;;  %v1550_v46 = vrot.slane %v4047_v40, 4  ;;  %v1549_v41 = vrot.slane %v1525_v60, 4  ;;  %2697 = vmatprep.mubr.bf16.mxu0 %v3432_v22  ;;  %2738 = vmatprep.mubr.bf16.mxu1 %v3432_v22 }
 0x105   : > { %v1574_v26 = vsel %vm510_vm0, %v1548_v16, %v1549_v41  ;;  %v1576_v7 = vsel %vm510_vm0, %v1549_v41, %v1550_v46 }
 0x106   : > { %v1575_v51 = vsel %vm1558_vm5, %v3965_v57, %v1574_v26  ;;  %v1577_v47 = vsel %vm1558_vm5, %v1525_v60, %v1576_v7  ;;  %v4065_v50 = vpop.permute.xlu1 %1787  ;;  %v1786_v8 = vpop.permute.xlu0 %1785  ;;  %v1908_v9 = vld [vmem:[#allocation2 + $0xc0] sm:$0xff]  ;;  %v1909_v28 = vld [vmem:[#allocation2 + $0xc8] sm:$0xff] }
 0x107   : > { %1614 = vst [vmem:[#allocation2 + $0x140] sm:$0xcc] %v1575_v51  ;;  %1615 = vst [vmem:[#allocation2 + $0x148] sm:$0xcc] %v1577_v47  ;;  %v1811_v56 = vrot.slane %v4065_v50, 4  ;;  %v1810_v16 = vrot.slane %v1786_v8, 4  ;;  %v3267_v58 = vcombine.low %v1892_v48, %v1908_v9  ;;  %v3268_v59 = vcombine.high %v1892_v48, %v1908_v9 }
 0x108   : > { %v3269_v5 = vcombine.low %v1893_v43, %v1909_v28  ;;  %v3270_v24 = vcombine.high %v1893_v43, %v1909_v28 }
 0x109   : > { %v1835_v57 = vsel %vm510_vm0, %v1809_v42, %v1810_v16  ;;  %v1837_v35 = vsel %vm510_vm0, %v1810_v16, %v1811_v56  ;;  %2665 = vmatprep.subr.bf16.mxu0 %v3268_v59 }
 0x10a   : > { %v1836_v20 = vsel %vm1819_vm6, %v3983_v39, %v1835_v57  ;;  %v1838_v19 = vsel %vm1819_vm6, %v1786_v8, %v1837_v35  ;;  %2706 = vmatprep.subr.bf16.mxu1 %v3270_v24  ;;  %v4077_v3 = vpop.permute.xlu1 %483  ;;  %v482_v10 = vpop.permute.xlu0 %481  ;;  %2666 = vmatpush1.bf16.msra.mxu0 %v3267_v58 }
 0x10b   : > { %1875 = vst [vmem:[#allocation2 + $0x1c0] sm:$0x33] %v1836_v20  ;;  %1876 = vst [vmem:[#allocation2 + $0x1c8] sm:$0x33] %v1838_v19  ;;  %v505_v55 = vrot.slane %v4077_v3, 4  ;;  %v504_v42 = vrot.slane %v482_v10, 4  ;;  %2707 = vmatpush1.bf16.msra.mxu1 %v3269_v5 }
 0x10d   : > { %v532_v12 = vsel %vm510_vm0, %v503_v34, %v504_v42  ;;  %v534_v39 = vsel %vm510_vm0, %v504_v42, %v505_v55 }
 0x10e   : > { %v533_v14 = vsel %vm512_vm1, %v3995_v0, %v532_v12  ;;  %v535_v18 = vsel %vm512_vm1, %v482_v10, %v534_v39  ;;  %v4089_v15 = vpop.permute.xlu1 %745  ;;  %v744_v21 = vpop.permute.xlu0 %743  ;;  %v1924_v25 = vld [vmem:[#allocation2 + $0x140] sm:$0xff]  ;;  %v1925_v63 = vld [vmem:[#allocation2 + $0x148] sm:$0xff] }
 0x10f   : > { %570 = vst [vmem:[#allocation2 + $0x50] sm:$0xcc] %v533_v14  ;;  %571 = vst [vmem:[#allocation2 + $0x58] sm:$0xcc] %v535_v18  ;;  %v767_v31 = vrot.slane %v4089_v15, 4  ;;  %v766_v49 = vrot.slane %v744_v21, 4 }
 0x111   : > { %v793_v34 = vsel %vm510_vm0, %v765_v6, %v766_v49  ;;  %v795_v23 = vsel %vm510_vm0, %v766_v49, %v767_v31 }
 0x112   : > { %v794_v0 = vsel %vm773_vm2, %v4007_v1, %v793_v34  ;;  %v796_v44 = vsel %vm773_vm2, %v744_v21, %v795_v23  ;;  %v4101_v29 = vpop.permute.xlu1 %1007  ;;  %v1006_v30 = vpop.permute.xlu0 %1005  ;;  %v1940_v54 = vld [vmem:[#allocation2 + $0x1c0] sm:$0x33]  ;;  %v1941_v32 = vld [vmem:[#allocation2 + $0x1c8] sm:$0x33] }
 0x113   : > { %831 = vst [vmem:[#allocation2 + $0xd0] sm:$0x33] %v794_v0  ;;  %832 = vst [vmem:[#allocation2 + $0xd8] sm:$0x33] %v796_v44  ;;  %v1029_v6 = vrot.slane %v4101_v29, 4  ;;  %v1028_v52 = vrot.slane %v1006_v30, 4  ;;  %v3300_v11 = vcombine.high %v1924_v25, %v1940_v54  ;;  %v3302_v62 = vcombine.high %v1925_v63, %v1941_v32 }
 0x114   : > { %v3299_v36 = vcombine.low %v1924_v25, %v1940_v54  ;;  %v3301_v4 = vcombine.low %v1925_v63, %v1941_v32 }
 0x115   : > { %v1055_v1 = vsel %vm510_vm0, %v1027_v45, %v1028_v52  ;;  %v1057_v13 = vsel %vm510_vm0, %v1028_v52, %v1029_v6  ;;  %3331 = vmatprep.subr.msk.bf16.mxu0 %vm2240_vm7, %v3300_v11  ;;  %3333 = vmatprep.subr.msk.bf16.mxu1 %vm2240_vm7, %v3302_v62 }
 0x116   : > { %v1056_v2 = vsel %vm1035_vm3, %v4019_v61, %v1055_v1  ;;  %v1058_v53 = vsel %vm1035_vm3, %v1006_v30, %v1057_v13  ;;  %v4115_v27 = vpop.permute.xlu1 %1268  ;;  %v1267_v38 = vpop.permute.xlu0 %1266  ;;  %v2290_v60 = vsel %vm2240_vm7, %v3299_v36, 0  ;;  %v2296_v45 = vsel %vm2240_vm7, %v3301_v4, 0  ;;  %v1894_v5 = vld [vmem:[#allocation2 + $0x50] sm:$0xff]  ;;  %v1895_v10 = vld [vmem:[#allocation2 + $0x58] sm:$0xff] }
 0x117   : > { %1093 = vst [vmem:[#allocation2 + $0xd0] sm:$0xcc] %v1056_v2  ;;  %1094 = vst [vmem:[#allocation2 + $0xd8] sm:$0xcc] %v1058_v53  ;;  %v1290_v41 = vrot.slane %v4115_v27, 4  ;;  %v1289_v26 = vrot.slane %v1267_v38, 4  ;;  %2668 = vmatpush1.bf16.msra.mxu0 %v2290_v60  ;;  %2709 = vmatpush1.bf16.msra.mxu1 %v2296_v45 }
 0x119   : > { %v1316_v61 = vsel %vm510_vm0, %v1288_v37, %v1289_v26  ;;  %v1318_v7 = vsel %vm510_vm0, %v1289_v26, %v1290_v41 }
 0x11a   : > { %v1317_v51 = vsel %vm1296_vm4, %v4033_v33, %v1316_v61  ;;  %v1319_v47 = vsel %vm1296_vm4, %v1267_v38, %v1318_v7  ;;  %v4129_v8 = vpop.permute.xlu1 %1530  ;;  %v1529_v48 = vpop.permute.xlu0 %1528  ;;  %3332 = vmatmul.mubr.msk.bf16.vlgmr.msra.gmra.mrb[16].mxu0 %vm2236_vm8, %v3738_v17  ;;  %3334 = vmatmul.mubr.msk.bf16.vlgmr.msra.gmra.mrb[16].mxu1 %vm2236_vm8, %v3738_v17 }
 0x11b   : > { %1354 = vst [vmem:[#allocation2 + $0x150] sm:$0x33] %v1317_v51  ;;  %1355 = vst [vmem:[#allocation2 + $0x158] sm:$0x33] %v1319_v47  ;;  %v1552_v37 = vrot.slane %v4129_v8, 4  ;;  %v1551_v9 = vrot.slane %v1529_v48, 4  ;;  %2779 = vmatprep.mubr.bf16.mxu0 %v3432_v22  ;;  %2820 = vmatprep.mubr.bf16.mxu1 %v3432_v22 }
 0x11d   : > { %v1578_v33 = vsel %vm510_vm0, %v1550_v46, %v1551_v9  ;;  %v1580_v28 = vsel %vm510_vm0, %v1551_v9, %v1552_v37 }
 0x11e   : > { %v1579_v16 = vsel %vm1558_vm5, %v4047_v40, %v1578_v33  ;;  %v1581_v58 = vsel %vm1558_vm5, %v1529_v48, %v1580_v28  ;;  %v4147_v59 = vpop.permute.xlu1 %1791  ;;  %v1790_v43 = vpop.permute.xlu0 %1789  ;;  %v1910_v24 = vld [vmem:[#allocation2 + $0xd0] sm:$0xff]  ;;  %v1911_v57 = vld [vmem:[#allocation2 + $0xd8] sm:$0xff] }
 0x11f   : > { %1616 = vst [vmem:[#allocation2 + $0x150] sm:$0xcc] %v1579_v16  ;;  %1617 = vst [vmem:[#allocation2 + $0x158] sm:$0xcc] %v1581_v58  ;;  %v1813_v35 = vrot.slane %v4147_v59, 4  ;;  %v1812_v46 = vrot.slane %v1790_v43, 4  ;;  %v3271_v20 = vcombine.low %v1894_v5, %v1910_v24  ;;  %v3272_v19 = vcombine.high %v1894_v5, %v1910_v24 }
 0x120   : > { %v3273_v42 = vcombine.low %v1895_v10, %v1911_v57  ;;  %v3274_v12 = vcombine.high %v1895_v10, %v1911_v57 }
 0x121   : > { %v1839_v40 = vsel %vm510_vm0, %v1811_v56, %v1812_v46  ;;  %v1841_v39 = vsel %vm510_vm0, %v1812_v46, %v1813_v35  ;;  %2747 = vmatprep.subr.bf16.mxu0 %v3272_v19 }
 0x122   : > { %v1840_v14 = vsel %vm1819_vm6, %v4065_v50, %v1839_v40  ;;  %v1842_v18 = vsel %vm1819_vm6, %v1790_v43, %v1841_v39  ;;  %2788 = vmatprep.subr.bf16.mxu1 %v3274_v12  ;;  %v4159_v21 = vpop.permute.xlu1 %487  ;;  %v486_v49 = vpop.permute.xlu0 %485  ;;  %2748 = vmatpush1.bf16.msra.mxu0 %v3271_v20 }
 0x123   : > { %1877 = vst [vmem:[#allocation2 + $0x1d0] sm:$0x33] %v1840_v14  ;;  %1878 = vst [vmem:[#allocation2 + $0x1d8] sm:$0x33] %v1842_v18  ;;  %v507_v34 = vrot.slane %v4159_v21, 4  ;;  %v506_v56 = vrot.slane %v486_v49, 4  ;;  %2789 = vmatpush1.bf16.msra.mxu1 %v3273_v42 }
 0x125   : > { %v536_v23 = vsel %vm510_vm0, %v505_v55, %v506_v56  ;;  %v538_v50 = vsel %vm510_vm0, %v506_v56, %v507_v34 }
 0x126   : > { %v537_v25 = vsel %vm512_vm1, %v4077_v3, %v536_v23  ;;  %v539_v0 = vsel %vm512_vm1, %v486_v49, %v538_v50  ;;  %v4171_v44 = vpop.permute.xlu1 %749  ;;  %v748_v30 = vpop.permute.xlu0 %747  ;;  %v1926_v52 = vld [vmem:[#allocation2 + $0x150] sm:$0xff]  ;;  %v1927_v1 = vld [vmem:[#allocation2 + $0x158] sm:$0xff] }
 0x127   : > { %572 = vst [vmem:[#allocation2 + $0x60] sm:$0xcc] %v537_v25  ;;  %573 = vst [vmem:[#allocation2 + $0x68] sm:$0xcc] %v539_v0  ;;  %v769_v54 = vrot.slane %v4171_v44, 4  ;;  %v768_v63 = vrot.slane %v748_v30, 4 }
 0x129   : > { %v797_v55 = vsel %vm510_vm0, %v767_v31, %v768_v63  ;;  %v799_v32 = vsel %vm510_vm0, %v768_v63, %v769_v54 }
 0x12a   : > { %v798_v3 = vsel %vm773_vm2, %v4089_v15, %v797_v55  ;;  %v800_v11 = vsel %vm773_vm2, %v748_v30, %v799_v32  ;;  %v4183_v62 = vpop.permute.xlu1 %1011  ;;  %v1010_v36 = vpop.permute.xlu0 %1009  ;;  %v1942_v4 = vld [vmem:[#allocation2 + $0x1d0] sm:$0x33]  ;;  %v1943_v13 = vld [vmem:[#allocation2 + $0x1d8] sm:$0x33] }
 0x12b   : > { %833 = vst [vmem:[#allocation2 + $0xe0] sm:$0x33] %v798_v3  ;;  %834 = vst [vmem:[#allocation2 + $0xe8] sm:$0x33] %v800_v11  ;;  %v1031_v31 = vrot.slane %v4183_v62, 4  ;;  %v1030_v2 = vrot.slane %v1010_v36, 4  ;;  %v3304_v53 = vcombine.high %v1926_v52, %v1942_v4  ;;  %v3306_v38 = vcombine.high %v1927_v1, %v1943_v13 }
 0x12c   : > { %v3303_v60 = vcombine.low %v1926_v52, %v1942_v4  ;;  %v3305_v45 = vcombine.low %v1927_v1, %v1943_v13 }
 0x12d   : > { %v1059_v15 = vsel %vm510_vm0, %v1029_v6, %v1030_v2  ;;  %v1061_v26 = vsel %vm510_vm0, %v1030_v2, %v1031_v31  ;;  %3335 = vmatprep.subr.msk.bf16.mxu0 %vm2240_vm7, %v3304_v53  ;;  %3337 = vmatprep.subr.msk.bf16.mxu1 %vm2240_vm7, %v3306_v38 }
 0x12e   : > { %v1060_v61 = vsel %vm1035_vm3, %v4101_v29, %v1059_v15  ;;  %v1062_v7 = vsel %vm1035_vm3, %v1010_v36, %v1061_v26  ;;  %v4197_v51 = vpop.permute.xlu1 %1272  ;;  %v1271_v47 = vpop.permute.xlu0 %1270  ;;  %v2302_v48 = vsel %vm2240_vm7, %v3303_v60, 0  ;;  %v2308_v6 = vsel %vm2240_vm7, %v3305_v45, 0  ;;  %v1896_v10 = vld [vmem:[#allocation2 + $0x60] sm:$0xff]  ;;  %v1897_v18 = vld [vmem:[#allocation2 + $0x68] sm:$0xff] }
 0x12f   : > { %1095 = vst [vmem:[#allocation2 + $0xe0] sm:$0xcc] %v1060_v61  ;;  %1096 = vst [vmem:[#allocation2 + $0xe8] sm:$0xcc] %v1062_v7  ;;  %v1292_v9 = vrot.slane %v4197_v51, 4  ;;  %v1291_v33 = vrot.slane %v1271_v47, 4  ;;  %2750 = vmatpush1.bf16.msra.mxu0 %v2302_v48  ;;  %2791 = vmatpush1.bf16.msra.mxu1 %v2308_v6 }
 0x131   : > { %v1320_v29 = vsel %vm510_vm0, %v1290_v41, %v1291_v33  ;;  %v1322_v28 = vsel %vm510_vm0, %v1291_v33, %v1292_v9 }
 0x132   : > { %v1321_v16 = vsel %vm1296_vm4, %v4115_v27, %v1320_v29  ;;  %v1323_v58 = vsel %vm1296_vm4, %v1271_v47, %v1322_v28  ;;  %v4211_v43 = vpop.permute.xlu1 %1534  ;;  %v1533_v5 = vpop.permute.xlu0 %1532  ;;  %3336 = vmatmul.mubr.msk.bf16.vlgmr.msra.gmra.mrb[20].mxu0 %vm2236_vm8, %v3738_v17  ;;  %3338 = vmatmul.mubr.msk.bf16.vlgmr.msra.gmra.mrb[20].mxu1 %vm2236_vm8, %v3738_v17 }
 0x133   : > { %1356 = vst [vmem:[#allocation2 + $0x160] sm:$0x33] %v1321_v16  ;;  %1357 = vst [vmem:[#allocation2 + $0x168] sm:$0x33] %v1323_v58  ;;  %v1554_v41 = vrot.slane %v4211_v43, 4  ;;  %v1553_v24 = vrot.slane %v1533_v5, 4  ;;  %2861 = vmatprep.mubr.bf16.mxu0 %v3432_v22  ;;  %2902 = vmatprep.mubr.bf16.mxu1 %v3432_v22 }
 0x135   : > { %v1582_v27 = vsel %vm510_vm0, %v1552_v37, %v1553_v24  ;;  %v1584_v57 = vsel %vm510_vm0, %v1553_v24, %v1554_v41 }
 0x136   : > { %v1583_v17 = vsel %vm1558_vm5, %v4129_v8, %v1582_v27  ;;  %v1585_v46 = vsel %vm1558_vm5, %v1533_v5, %v1584_v57  ;;  %v4229_v20 = vpop.permute.xlu1 %1795  ;;  %v1794_v19 = vpop.permute.xlu0 %1793  ;;  %v1912_v42 = vld [vmem:[#allocation2 + $0xe0] sm:$0xff]  ;;  %v1913_v12 = vld [vmem:[#allocation2 + $0xe8] sm:$0xff] }
 0x137   : > { %1618 = vst [vmem:[#allocation2 + $0x160] sm:$0xcc] %v1583_v17  ;;  %1619 = vst [vmem:[#allocation2 + $0x168] sm:$0xcc] %v1585_v46  ;;  %v1815_v40 = vrot.slane %v4229_v20, 4  ;;  %v1814_v37 = vrot.slane %v1794_v19, 4  ;;  %v3275_v39 = vcombine.low %v1896_v10, %v1912_v42  ;;  %v3276_v14 = vcombine.high %v1896_v10, %v1912_v42 }
 0x138   : > { %v3277_v49 = vcombine.low %v1897_v18, %v1913_v12  ;;  %v3278_v56 = vcombine.high %v1897_v18, %v1913_v12  ;;  %v3416_v10 = vld [vmem:[%s4326_s1] sm:$0xf] }
 0x139   : > { %v1843_v8 = vsel %vm510_vm0, %v1813_v35, %v1814_v37  ;;  %v1845_v23 = vsel %vm510_vm0, %v1814_v37, %v1815_v40  ;;  %2829 = vmatprep.subr.bf16.mxu0 %v3276_v14 }
 0x13a   : > { %v1844_v50 = vsel %vm1819_vm6, %v4147_v59, %v1843_v8  ;;  %v1846_v25 = vsel %vm1819_vm6, %v1794_v19, %v1845_v23  ;;  %2870 = vmatprep.subr.bf16.mxu1 %v3278_v56  ;;  %v492_v0 = vpop.permute.xlu1 %491  ;;  %v490_v30 = vpop.permute.xlu0 %489  ;;  %2830 = vmatpush1.bf16.msra.mxu0 %v3275_v39 }
 0x13b   : > { %1879 = vst [vmem:[#allocation2 + $0x1e0] sm:$0x33] %v1844_v50  ;;  %1880 = vst [vmem:[#allocation2 + $0x1e8] sm:$0x33] %v1846_v25  ;;  %v509_v63 = vrot.slane %v492_v0, 4  ;;  %v508_v55 = vrot.slane %v490_v30, 4  ;;  %2871 = vmatpush1.bf16.msra.mxu1 %v3277_v49 }
 0x13d   : > { %v540_v35 = vsel %vm510_vm0, %v507_v34, %v508_v55  ;;  %v542_v32 = vsel %vm510_vm0, %v508_v55, %v509_v63 }
 0x13e   : > { %v541_v59 = vsel %vm512_vm1, %v4159_v21, %v540_v35  ;;  %v543_v52 = vsel %vm512_vm1, %v490_v30, %v542_v32  ;;  %v754_v3 = vpop.permute.xlu1 %753  ;;  %v752_v11 = vpop.permute.xlu0 %751  ;;  %v1928_v34 = vld [vmem:[#allocation2 + $0x160] sm:$0xff]  ;;  %v1929_v45 = vld [vmem:[#allocation2 + $0x168] sm:$0xff] }
 0x13f   : > { %574 = vst [vmem:[#allocation2 + $0x70] sm:$0xcc] %v541_v59  ;;  %575 = vst [vmem:[#allocation2 + $0x78] sm:$0xcc] %v543_v52  ;;  %v771_v36 = vrot.slane %v754_v3, 4  ;;  %v770_v4 = vrot.slane %v752_v11, 4 }
 0x141   : > { %v801_v1 = vsel %vm510_vm0, %v769_v54, %v770_v4  ;;  %v803_v13 = vsel %vm510_vm0, %v770_v4, %v771_v36 }
 0x142   : > { %v802_v2 = vsel %vm773_vm2, %v4171_v44, %v801_v1  ;;  %v804_v21 = vsel %vm773_vm2, %v752_v11, %v803_v13  ;;  %v1016_v53 = vpop.permute.xlu1 %1015  ;;  %v1014_v38 = vpop.permute.xlu0 %1013  ;;  %v1944_v60 = vld [vmem:[#allocation2 + $0x1e0] sm:$0x33]  ;;  %v1945_v15 = vld [vmem:[#allocation2 + $0x1e8] sm:$0x33] }
 0x143   : > { %835 = vst [vmem:[#allocation2 + $0xf0] sm:$0x33] %v802_v2  ;;  %836 = vst [vmem:[#allocation2 + $0xf8] sm:$0x33] %v804_v21  ;;  %v1033_v26 = vrot.slane %v1016_v53, 4  ;;  %v1032_v61 = vrot.slane %v1014_v38, 4  ;;  %v3308_v7 = vcombine.high %v1928_v34, %v1944_v60  ;;  %v3310_v47 = vcombine.high %v1929_v45, %v1945_v15 }
 0x144   : > { %v3307_v54 = vcombine.low %v1928_v34, %v1944_v60  ;;  %v3309_v48 = vcombine.low %v1929_v45, %v1945_v15 }
 0x145   : > { %v1063_v6 = vsel %vm510_vm0, %v1031_v31, %v1032_v61  ;;  %v1065_v44 = vsel %vm510_vm0, %v1032_v61, %v1033_v26  ;;  %3339 = vmatprep.subr.msk.bf16.mxu0 %vm2240_vm7, %v3308_v7  ;;  %3341 = vmatprep.subr.msk.bf16.mxu1 %vm2240_vm7, %v3310_v47 }
 0x146   : > { %v1064_v33 = vsel %vm1035_vm3, %v4183_v62, %v1063_v6  ;;  %v1066_v29 = vsel %vm1035_vm3, %v1014_v38, %v1065_v44  ;;  %v1277_v28 = vpop.permute.xlu1 %1276  ;;  %v1275_v16 = vpop.permute.xlu0 %1274  ;;  %v2314_v58 = vsel %vm2240_vm7, %v3307_v54, 0  ;;  %v2320_v5 = vsel %vm2240_vm7, %v3309_v48, 0  ;;  %v1898_v49 = vld [vmem:[#allocation2 + $0x70] sm:$0xff]  ;;  %v1899_v0 = vld [vmem:[#allocation2 + $0x78] sm:$0xff] }
 0x147   : > { %1097 = vst [vmem:[#allocation2 + $0xf0] sm:$0xcc] %v1064_v33  ;;  %1098 = vst [vmem:[#allocation2 + $0xf8] sm:$0xcc] %v1066_v29  ;;  %v1294_v31 = vrot.slane %v1277_v28, 4  ;;  %v1293_v24 = vrot.slane %v1275_v16, 4  ;;  %2832 = vmatpush1.bf16.msra.mxu0 %v2314_v58  ;;  %2873 = vmatpush1.bf16.msra.mxu1 %v2320_v5 }
 0x149   : > { %v1324_v27 = vsel %vm510_vm0, %v1292_v9, %v1293_v24  ;;  %v1326_v62 = vsel %vm510_vm0, %v1293_v24, %v1294_v31 }
 0x14a   : > { %v1325_v57 = vsel %vm1296_vm4, %v4197_v51, %v1324_v27  ;;  %v1327_v17 = vsel %vm1296_vm4, %v1275_v16, %v1326_v62  ;;  %v1539_v46 = vpop.permute.xlu1 %1538  ;;  %v1537_v19 = vpop.permute.xlu0 %1536  ;;  %3340 = vmatmul.mubr.msk.bf16.vlgmr.msra.gmra.mrb[24].mxu0 %vm2236_vm8, %v3416_v10  ;;  %3342 = vmatmul.mubr.msk.bf16.vlgmr.msra.gmra.mrb[24].mxu1 %vm2236_vm8, %v3416_v10 }
 0x14b   : > { %1358 = vst [vmem:[#allocation2 + $0x170] sm:$0x33] %v1325_v57  ;;  %1359 = vst [vmem:[#allocation2 + $0x178] sm:$0x33] %v1327_v17  ;;  %v1556_v9 = vrot.slane %v1539_v46, 4  ;;  %v1555_v42 = vrot.slane %v1537_v19, 4  ;;  %2943 = vmatprep.mubr.bf16.mxu0 %v3432_v22  ;;  %2984 = vmatprep.mubr.bf16.mxu1 %v3432_v22 }
 0x14d   : > { %v1586_v51 = vsel %vm510_vm0, %v1554_v41, %v1555_v42  ;;  %v1588_v12 = vsel %vm510_vm0, %v1555_v42, %v1556_v9 }
 0x14e   : > { %v1587_v37 = vsel %vm1558_vm5, %v4211_v43, %v1586_v51  ;;  %v1589_v39 = vsel %vm1558_vm5, %v1537_v19, %v1588_v12  ;;  %v1800_v14 = vpop.permute.xlu1 %1799  ;;  %v1798_v18 = vpop.permute.xlu0 %1797  ;;  %v1914_v56 = vld [vmem:[#allocation2 + $0xf0] sm:$0xff]  ;;  %v1915_v8 = vld [vmem:[#allocation2 + $0xf8] sm:$0xff] }
 0x14f   : > { %1620 = vst [vmem:[#allocation2 + $0x170] sm:$0xcc] %v1587_v37  ;;  %1621 = vst [vmem:[#allocation2 + $0x178] sm:$0xcc] %v1589_v39  ;;  %v1817_v23 = vrot.slane %v1800_v14, 4  ;;  %v1816_v22 = vrot.slane %v1798_v18, 4  ;;  %v3279_v50 = vcombine.low %v1898_v49, %v1914_v56  ;;  %v3280_v25 = vcombine.high %v1898_v49, %v1914_v56 }
 0x150   : > { %v3281_v41 = vcombine.low %v1899_v0, %v1915_v8  ;;  %v3282_v30 = vcombine.high %v1899_v0, %v1915_v8 }
 0x151   : > { %v1847_v43 = vsel %vm510_vm0, %v1815_v40, %v1816_v22  ;;  %v1849_v63 = vsel %vm510_vm0, %v1816_v22, %v1817_v23  ;;  %2911 = vmatprep.subr.bf16.mxu0 %v3280_v25 }
 0x152   : > { %v1848_v55 = vsel %vm1819_vm6, %v4229_v20, %v1847_v43  ;;  %v1850_v35 = vsel %vm1819_vm6, %v1798_v18, %v1849_v63  ;;  %2952 = vmatprep.subr.bf16.mxu1 %v3282_v30  ;;  %2912 = vmatpush1.bf16.msra.mxu0 %v3279_v50 }
 0x153   : > { %1881 = vst [vmem:[#allocation2 + $0x1f0] sm:$0x33] %v1848_v55  ;;  %1882 = vst [vmem:[#allocation2 + $0x1f8] sm:$0x33] %v1850_v35  ;;  %2953 = vmatpush1.bf16.msra.mxu1 %v3281_v41 }
 0x156   : > { %v1930_v32 = vld [vmem:[#allocation2 + $0x170] sm:$0xff]  ;;  %v1931_v52 = vld [vmem:[#allocation2 + $0x178] sm:$0xff] }
 0x15a   : > { %v1946_v59 = vld [vmem:[#allocation2 + $0x1f0] sm:$0x33]  ;;  %v1947_v3 = vld [vmem:[#allocation2 + $0x1f8] sm:$0x33] }
 0x15b   : > { %v3312_v11 = vcombine.high %v1930_v32, %v1946_v59  ;;  %v3314_v40 = vcombine.high %v1931_v52, %v1947_v3  ;;  %v3311_v36 = vcombine.low %v1930_v32, %v1946_v59  ;;  %v3313_v4 = vcombine.low %v1931_v52, %v1947_v3 }
 0x15d   : > { %3343 = vmatprep.subr.msk.bf16.mxu0 %vm2240_vm7, %v3312_v11  ;;  %3345 = vmatprep.subr.msk.bf16.mxu1 %vm2240_vm7, %v3314_v40  ;;  %v2326_v20 = vsel %vm2240_vm7, %v3311_v36, 0  ;;  %v2332_v1 = vsel %vm2240_vm7, %v3313_v4, 0 }
 0x15e   : > { %2914 = vmatpush1.bf16.msra.mxu0 %v2326_v20  ;;  %2955 = vmatpush1.bf16.msra.mxu1 %v2332_v1 }
 0x161   : > { %3344 = vmatmul.mubr.msk.bf16.vlgmr.msra.gmra.mrb[28].mxu0 %vm2236_vm8, %v3416_v10  ;;  %3346 = vmatmul.mubr.msk.bf16.vlgmr.msra.gmra.mrb[28].mxu1 %vm2236_vm8, %v3416_v10 }
 0x18d   : > { %v2371_v13 = vpop.f32.mrb[0].mxu0  ;;  %v2412_v34 = vpop.f32.mrb[0].mxu1 }
 0x18e   : > { %v2993_v2 = vmax.f32 %v2371_v13, 0.0  ;;  %v2995_v21 = vmax.f32 %v2412_v34, 0.0  ;;  %v2373_v53 = vpop.f32.mrb[1].mxu0  ;;  %v2414_v38 = vpop.f32.mrb[1].mxu1 }
 0x18f   : > { %v2994_v60 = vmax.f32 %v2373_v53, 0.0  ;;  %v2996_v45 = vmax.f32 %v2414_v38, 0.0  ;;  %v2375_v15 = vpop.f32.mrb[2].mxu0  ;;  %v2416_v26 = vpop.f32.mrb[2].mxu1 }
 0x190   : > { %v2376_v61 = vpop.f32.mrb[3].mxu0  ;;  %v2417_v7 = vpop.f32.mrb[3].mxu1 }
 0x191   : > { %v3366_v47 = vpack.c.bf16 %v2994_v60, %v2993_v2  ;;  %v3367_v54 = vpack.c.bf16 %v2996_v45, %v2995_v21 }
 0x193   : > { %3153 = vst [vmem:[%s4304_s28] sm:$0xff] %v3366_v47  ;;  %3154 = vst [vmem:[%s4304_s28 + $0x8] sm:$0xff] %v3367_v54 }
 0x1a5   : > { %v2453_v48 = vpop.f32.mrb[4].mxu0  ;;  %v2494_v6 = vpop.f32.mrb[4].mxu1 }
 0x1a6   : > { %v2997_v44 = vmax.f32 %v2453_v48, 0.0  ;;  %v2999_v33 = vmax.f32 %v2494_v6, 0.0  ;;  %v2455_v29 = vpop.f32.mrb[5].mxu0  ;;  %v2496_v28 = vpop.f32.mrb[5].mxu1 }
 0x1a7   : > { %v2998_v16 = vmax.f32 %v2455_v29, 0.0  ;;  %v3000_v58 = vmax.f32 %v2496_v28, 0.0  ;;  %v2457_v5 = vpop.f32.mrb[6].mxu0  ;;  %v2498_v31 = vpop.f32.mrb[6].mxu1 }
 0x1a8   : > { %v2458_v24 = vpop.f32.mrb[7].mxu0  ;;  %v2499_v27 = vpop.f32.mrb[7].mxu1 }
 0x1a9   : > { %v3368_v62 = vpack.c.bf16 %v2998_v16, %v2997_v44  ;;  %v3369_v57 = vpack.c.bf16 %v3000_v58, %v2999_v33 }
 0x1ab   : > { %3155 = vst [vmem:[%s4304_s28 + $0x10] sm:$0xff] %v3368_v62  ;;  %3156 = vst [vmem:[%s4304_s28 + $0x18] sm:$0xff] %v3369_v57 }
 0x1bd   : > { %v2535_v17 = vpop.f32.mrb[8].mxu0  ;;  %v2576_v46 = vpop.f32.mrb[8].mxu1 }
 0x1be   : > { %v3001_v19 = vmax.f32 %v2535_v17, 0.0  ;;  %v3003_v10 = vmax.f32 %v2576_v46, 0.0  ;;  %v2537_v9 = vpop.f32.mrb[9].mxu0  ;;  %v2578_v42 = vpop.f32.mrb[9].mxu1 }
 0x1bf   : > { %v3002_v51 = vmax.f32 %v2537_v9, 0.0  ;;  %v3004_v12 = vmax.f32 %v2578_v42, 0.0  ;;  %v2539_v37 = vpop.f32.mrb[10].mxu0  ;;  %v2580_v39 = vpop.f32.mrb[10].mxu1 }
 0x1c0   : > { %v2540_v14 = vpop.f32.mrb[11].mxu0  ;;  %v2581_v18 = vpop.f32.mrb[11].mxu1 }
 0x1c1   : > { %v3370_v49 = vpack.c.bf16 %v3002_v51, %v3001_v19  ;;  %v3371_v56 = vpack.c.bf16 %v3004_v12, %v3003_v10 }
 0x1c3   : > { %3157 = vst [vmem:[%s4304_s28 + $0x20] sm:$0xff] %v3370_v49  ;;  %3158 = vst [vmem:[%s4304_s28 + $0x28] sm:$0xff] %v3371_v56 }
 0x1d5   : > { %v2617_v8 = vpop.f32.mrb[12].mxu0  ;;  %v2658_v23 = vpop.f32.mrb[12].mxu1 }
 0x1d6   : > { %v3005_v22 = vmax.f32 %v2617_v8, 0.0  ;;  %v3007_v50 = vmax.f32 %v2658_v23, 0.0  ;;  %v2619_v25 = vpop.f32.mrb[13].mxu0  ;;  %v2660_v0 = vpop.f32.mrb[13].mxu1 }
 0x1d7   : > { %v3006_v41 = vmax.f32 %v2619_v25, 0.0  ;;  %v3008_v30 = vmax.f32 %v2660_v0, 0.0  ;;  %v2621_v43 = vpop.f32.mrb[14].mxu0  ;;  %v2662_v63 = vpop.f32.mrb[14].mxu1 }
 0x1d8   : > { %v2622_v55 = vpop.f32.mrb[15].mxu0  ;;  %v2663_v35 = vpop.f32.mrb[15].mxu1 }
 0x1d9   : > { %v3372_v32 = vpack.c.bf16 %v3006_v41, %v3005_v22  ;;  %v3373_v59 = vpack.c.bf16 %v3008_v30, %v3007_v50 }
 0x1db   : > { %3159 = vst [vmem:[%s4304_s28 + $0x30] sm:$0xff] %v3372_v32  ;;  %3160 = vst [vmem:[%s4304_s28 + $0x38] sm:$0xff] %v3373_v59 }
 0x1ed   : > { %v2699_v52 = vpop.f32.mrb[16].mxu0  ;;  %v2740_v3 = vpop.f32.mrb[16].mxu1 }
 0x1ee   : > { %v3009_v11 = vmax.f32 %v2699_v52, 0.0  ;;  %v3011_v40 = vmax.f32 %v2740_v3, 0.0  ;;  %v2701_v36 = vpop.f32.mrb[17].mxu0  ;;  %v2742_v4 = vpop.f32.mrb[17].mxu1 }
 0x1ef   : > { %v3010_v20 = vmax.f32 %v2701_v36, 0.0  ;;  %v3012_v1 = vmax.f32 %v2742_v4, 0.0  ;;  %v2703_v13 = vpop.f32.mrb[18].mxu0  ;;  %v2744_v34 = vpop.f32.mrb[18].mxu1 }
 0x1f0   : > { %v2704_v2 = vpop.f32.mrb[19].mxu0  ;;  %v2745_v21 = vpop.f32.mrb[19].mxu1 }
 0x1f1   : > { %v3374_v53 = vpack.c.bf16 %v3010_v20, %v3009_v11  ;;  %v3375_v38 = vpack.c.bf16 %v3012_v1, %v3011_v40 }
 0x1f3   : > { %3161 = vst [vmem:[%s4304_s28 + $0x40] sm:$0xff] %v3374_v53  ;;  %3162 = vst [vmem:[%s4304_s28 + $0x48] sm:$0xff] %v3375_v38 }
 0x205   : > { %v2781_v60 = vpop.f32.mrb[20].mxu0  ;;  %v2822_v45 = vpop.f32.mrb[20].mxu1 }
 0x206   : > { %v3013_v15 = vmax.f32 %v2781_v60, 0.0  ;;  %v3015_v26 = vmax.f32 %v2822_v45, 0.0  ;;  %v2783_v61 = vpop.f32.mrb[21].mxu0  ;;  %v2824_v7 = vpop.f32.mrb[21].mxu1 }
 0x207   : > { %v3014_v47 = vmax.f32 %v2783_v61, 0.0  ;;  %v3016_v54 = vmax.f32 %v2824_v7, 0.0  ;;  %v2785_v48 = vpop.f32.mrb[22].mxu0  ;;  %v2826_v6 = vpop.f32.mrb[22].mxu1 }
 0x208   : > { %v2786_v44 = vpop.f32.mrb[23].mxu0  ;;  %v2827_v33 = vpop.f32.mrb[23].mxu1 }
 0x209   : > { %v3376_v29 = vpack.c.bf16 %v3014_v47, %v3013_v15  ;;  %v3377_v28 = vpack.c.bf16 %v3016_v54, %v3015_v26 }
 0x20b   : > { %3163 = vst [vmem:[%s4304_s28 + $0x50] sm:$0xff] %v3376_v29  ;;  %3164 = vst [vmem:[%s4304_s28 + $0x58] sm:$0xff] %v3377_v28 }
 0x21d   : > { %v2863_v16 = vpop.f32.mrb[24].mxu0  ;;  %v2904_v58 = vpop.f32.mrb[24].mxu1 }
 0x21e   : > { %v3017_v5 = vmax.f32 %v2863_v16, 0.0  ;;  %v3019_v31 = vmax.f32 %v2904_v58, 0.0  ;;  %v2865_v24 = vpop.f32.mrb[25].mxu0  ;;  %v2906_v27 = vpop.f32.mrb[25].mxu1 }
 0x21f   : > { %v3018_v62 = vmax.f32 %v2865_v24, 0.0  ;;  %v3020_v57 = vmax.f32 %v2906_v27, 0.0  ;;  %v2867_v17 = vpop.f32.mrb[26].mxu0  ;;  %v2908_v46 = vpop.f32.mrb[26].mxu1 }
 0x220   : > { %v2868_v19 = vpop.f32.mrb[27].mxu0  ;;  %v2909_v10 = vpop.f32.mrb[27].mxu1 }
 0x221   : > { %v3378_v9 = vpack.c.bf16 %v3018_v62, %v3017_v5  ;;  %v3379_v42 = vpack.c.bf16 %v3020_v57, %v3019_v31 }
 0x223   : > { %3165 = vst [vmem:[%s4304_s28 + $0x60] sm:$0xff] %v3378_v9  ;;  %3166 = vst [vmem:[%s4304_s28 + $0x68] sm:$0xff] %v3379_v42 }
 0x234   : > { %v2945_v51 = vpop.f32.mrb[28].mxu0  ;;  %v2986_v12 = vpop.f32.mrb[28].mxu1 }
 0x235   : > { %v3021_v37 = vmax.f32 %v2945_v51, 0.0  ;;  %v3023_v39 = vmax.f32 %v2986_v12, 0.0  ;;  %v2947_v14 = vpop.f32.mrb[29].mxu0  ;;  %v2988_v18 = vpop.f32.mrb[29].mxu1 }
 0x236   : > { %v3022_v49 = vmax.f32 %v2947_v14, 0.0  ;;  %v3024_v56 = vmax.f32 %v2988_v18, 0.0  ;;  %v2949_v8 = vpop.f32.mrb[30].mxu0  ;;  %v2990_v23 = vpop.f32.mrb[30].mxu1 }
 0x237   : > { %v2950_v22 = vpop.f32.mrb[31].mxu0  ;;  %v2991_v50 = vpop.f32.mrb[31].mxu1 }
 0x238   : > { %v3380_v25 = vpack.c.bf16 %v3022_v49, %v3021_v37  ;;  %v3381_v0 = vpack.c.bf16 %v3024_v56, %v3023_v39 }
 0x23a   : > { %3167 = vst [vmem:[%s4304_s28 + $0x70] sm:$0xff] %v3380_v25  ;;  %3168 = vst [vmem:[%s4304_s28 + $0x78] sm:$0xff] %v3381_v0 }
 0x23b PF: > { %s12_s9 = sadd.s32 1, %s3423_s9  }
 0x23c   : > { %p9_p4 = scmp.ge.s32.totalorder %s12_s9, 4  }
 0x23e   :  { %11 = sbr.rel (!%p9_p4) target bundleno = 1 (0x1), region = 58 }

// kernel: generator_forward.13
= control target key start
LH: loop header
LB: loop body
LE: loop exit
PB: predicated region body
PF: predicated region fallthrough
CT: control target
= control target key end

     0   :  { %s13204_s9 = smov 0   ;;  %s17298_s0 = inlined_call_operand.vmem [shape: bf16[2,2,16390], index: 0, kind: input, shape index: {}]   ;;  %s17299_s1 = inlined_call_operand.vmem [shape: bf16[4,14], index: 1, kind: input, shape index: {}]   ;;  %s17300_s2 = inlined_call_operand.vmem [shape: f32[2,4,16384], index: 2, kind: output, shape index: {}]  }
   0x1 LB: > { %s12506_s10 = sadd.s32 4294967295, %s13179_s9   ;;  %p12510_p0 = scmp.ge.s32.totalorder %s13179_s9, 1  ;;  %s13179_s9 = sphi %s13204_s9, %s12_s9  }
   0x2   : > { %p111_p1 = scmp.lt.s32.totalorder %s13179_s9, 3 }
   0x4   : > { %p112_p2 = pnand %p12510_p0, %p111_p1 }
   0x5   : > { %p132_p3 = scmp.lt.s32.totalorder (!%p112_p2), %s12506_s10, 1  ;;  %v178_v0 = vlaneseq (!%p112_p2)  ;;  %v13181_v1 = vmov (!%p112_p2), 1935823168   ;;  %s13182_s15 = smov (!%p112_p2), 127   ;;  %vm1986_vm0 = vcmask (!%p112_p2), 1043456   ;;  %vm1988_vm1 = vcmask (!%p112_p2), 1039360  }
   0x6   : > { %115 = sbr.rel (%p112_p2) target bundleno = 1180 (0x49c), region = 28  ;;  %v176_v2 = vunpack.c.l.s4 (!%p112_p2), %v13181_v1  ;;  %s13183_s16 = smov (!%p112_p2), 126   ;;  %vm3209_vm2 = vcmask (!%p112_p2), 1031168   ;;  %vm4431_vm3 = vcmask (!%p112_p2), 1022976   ;;  %vm5651_vm4 = vcmask (!%p112_p2), 1014784  }
   0x7   : > { %v179_v3 = vshrl.u32 (!%p112_p2), %v178_v0, 7  ;;  %s13184_s17 = smov (!%p112_p2), 125   ;;  %s13185_s18 = smov (!%p112_p2), 124   ;;  %vm6872_vm5 = vcmask (!%p112_p2), 1006592   ;;  %vm8093_vm6 = vcmask (!%p112_p2), 998400   ;;  %vm8994_vm7 = vcmask (!%p112_p2), 1046528  }
   0x8   : > { %v177_v4 = vunpack.c.0.s8 (!%p112_p2), %v176_v2  ;;  %s13186_s19 = smov (!%p112_p2), 123   ;;  %s13187_s20 = smov (!%p112_p2), 122   ;;  %vm8990_vm8 = vcmask (!%p112_p2), 113664  }
   0xa   : > { %v13215_v5 = vsub.s32 (!%p112_p2), %v177_v4, %v179_v3 }
   0xd   : > { %s17302_s10 = smov (!%p132_p3, %s12506_s10), 1 }
   0xe   : > { %s12839_s11 = smul.u32 129, %s17302_s10  ;;  %s12838_s29 = sshll.u32 %s17302_s10, 9 }
   0xf   : > { %s16743_s4 = scalar_lea.vmem %s17300_s2, %s12838_s29 }
  0x10   : > { %s13220_s14 = scalar_lea.vmem %s17298_s0, %s12839_s11 }
  0x11   : > { %v13223_v6 = vld [vmem:[%s13220_s14 + $0x8] sm:$0xff]  ;;  %v13226_v7 = vld [vmem:[%s13220_s14] sm:$0xff]  ;;  %v13241_v12 = vld [vmem:[%s13220_s14 + $0x10] sm:$0xff] }
  0x12   : > { %v13230_v8 = vrot.slane %v13223_v6, %v13215_v5  ;;  %v1101_v9 = vcombine.high %v13223_v6, %v13223_v6  ;;  %v13236_v10 = vrot.slane %v13226_v7, %v13215_v5  ;;  %v1056_v11 = vcombine.high %v13226_v7, %v13226_v7  ;;  %v13284_v31 = vld [vmem:[%s13220_s14 + $0x18] sm:$0xff]  ;;  %v13305_v41 = vld [vmem:[%s13220_s14 + $0x20] sm:$0xff]  ;;  %v13329_v51 = vld [vmem:[%s13220_s14 + $0x28] sm:$0xff] }
  0x13   : > { %v13256_v17 = vrot.slane %v13241_v12, %v13215_v5  ;;  %v1146_v22 = vcombine.high %v13241_v12, %v13241_v12  ;;  %v13288_v32 = vrot.slane %v13284_v31, %v13215_v5  ;;  %v1191_v33 = vcombine.high %v13284_v31, %v13284_v31  ;;  %v13353_v61 = vld [vmem:[%s13220_s14 + $0x30] sm:$0xff] }
  0x14   : > { %v13245_v13 = vrot.slane %v13230_v8, %v13215_v5  ;;  %v13249_v14 = vrot.slane %v13236_v10, %v13215_v5  ;;  %v1071_v15 = vcombine.low %v13236_v10, %v13236_v10  ;;  %v1070_v16 = vrot.slane %v1056_v11, %v13215_v5 }
  0x15   : > { %v1116_v18 = vcombine.low %v13230_v8, %v13230_v8  ;;  %v1115_v20 = vrot.slane %v1101_v9, %v13215_v5  ;;  %v1161_v25 = vcombine.low %v13256_v17, %v13256_v17  ;;  %v13277_v26 = vrot.slane %v13256_v17, %v13215_v5 }
  0x16   : > { %1801 = vrot.lane.b32.xlu1 %v13245_v13, %s13182_s15  ;;  %1793 = vrot.lane.b32.xlu0 %v13249_v14, %s13182_s15  ;;  %v1079_v19 = vrot.slane %v1071_v15, %v13215_v5  ;;  %v1100_v21 = vrot.slane %v1070_v16, %v13215_v5  ;;  %v1160_v27 = vrot.slane %v1146_v22, %v13215_v5  ;;  %v13377_v15 = vld [vmem:[%s13220_s14 + $0x38] sm:$0xff] }
  0x17   : > { %v1124_v23 = vrot.slane %v1116_v18, %v13215_v5  ;;  %v1145_v24 = vrot.slane %v1115_v20, %v13215_v5  ;;  %v1169_v28 = vrot.slane %v1161_v25, %v13215_v5  ;;  %v1117_v29 = vcombine.low %v1115_v20, %v1115_v20 }
  0x18   : > { %v1072_v30 = vcombine.low %v1070_v16, %v1070_v16  ;;  %v1162_v36 = vcombine.low %v1160_v27, %v1160_v27  ;;  %v1190_v37 = vrot.slane %v1160_v27, %v13215_v5  ;;  %v1206_v39 = vcombine.low %v13288_v32, %v13288_v32  ;;  %v13401_v27 = vld [vmem:[%s13220_s14 + $0x40] sm:$0xff] }
  0x19   : > { %v1138_v34 = vrot.slane %v1117_v29, %v13215_v5  ;;  %v1205_v40 = vrot.slane %v1191_v33, %v13215_v5  ;;  %v13309_v42 = vrot.slane %v13288_v32, %v13215_v5  ;;  %v13313_v43 = vrot.slane %v13305_v41, %v13215_v5 }
  0x1a   : > { %1791 = vrot.lane.b32.xlu0 %v1079_v19, %s13182_s15  ;;  %1797 = vrot.lane.b32.xlu1 %v1100_v21, %s13182_s15  ;;  %v1093_v35 = vrot.slane %v1072_v30, %v13215_v5  ;;  %v1183_v38 = vrot.slane %v1162_v36, %v13215_v5  ;;  %v1214_v44 = vrot.slane %v1206_v39, %v13215_v5  ;;  %v13425_v39 = vld [vmem:[%s13220_s14 + $0x48] sm:$0xff] }
  0x1b   : > { %v1207_v45 = vcombine.low %v1205_v40, %v1205_v40  ;;  %v1236_v46 = vcombine.high %v13305_v41, %v13305_v41  ;;  %v1235_v47 = vrot.slane %v1205_v40, %v13215_v5  ;;  %v1251_v49 = vcombine.low %v13313_v43, %v13313_v43 }
  0x1c   : > { %v13333_v52 = vrot.slane %v13313_v43, %v13215_v5  ;;  %v13337_v53 = vrot.slane %v13329_v51, %v13215_v5  ;;  %v1281_v56 = vcombine.high %v13329_v51, %v13329_v51  ;;  %v13357_v62 = vrot.slane %v13353_v61, %v13215_v5 }
  0x1d   : > { %v1228_v48 = vrot.slane %v1207_v45, %v13215_v5  ;;  %v1250_v50 = vrot.slane %v1236_v46, %v13215_v5  ;;  %v1259_v54 = vrot.slane %v1251_v49, %v13215_v5  ;;  %v1326_v63 = vcombine.high %v13353_v61, %v13353_v61 }
  0x1e   : > { %1799 = vrot.lane.b32.xlu0 %v1124_v23, %s13182_s15  ;;  %1805 = vrot.lane.b32.xlu1 %v1145_v24, %s13182_s15  ;;  %v1296_v57 = vcombine.low %v13337_v53, %v13337_v53  ;;  %v1295_v60 = vrot.slane %v1281_v56, %v13215_v5  ;;  %v13366_v1 = vrot.slane %v13337_v53, %v13215_v5 }
  0x1f   : > { %v1252_v55 = vcombine.low %v1250_v50, %v1250_v50  ;;  %v1280_v59 = vrot.slane %v1250_v50, %v13215_v5  ;;  %v1341_v3 = vcombine.low %v13357_v62, %v13357_v62  ;;  %v1340_v11 = vrot.slane %v1326_v63, %v13215_v5 }
  0x20   : > { %v1304_v0 = vrot.slane %v1296_v57, %v13215_v5  ;;  %v1297_v2 = vcombine.low %v1295_v60, %v1295_v60  ;;  %v1325_v9 = vrot.slane %v1295_v60, %v13215_v5  ;;  %v13381_v16 = vrot.slane %v13357_v62, %v13215_v5 }
  0x21   : > { %v1273_v58 = vrot.slane %v1252_v55, %v13215_v5  ;;  %v13385_v18 = vrot.slane %v13377_v15, %v13215_v5  ;;  %v1349_v19 = vrot.slane %v1341_v3, %v13215_v5  ;;  %v1342_v20 = vcombine.low %v1340_v11, %v1340_v11  ;;  %v13449_v55 = vld [vmem:[%s13220_s14 + $0x50] sm:$0xff] }
  0x22   : > { %1807 = vrot.lane.b32.xlu0 %v1169_v28, %s13182_s15  ;;  %1809 = vrot.lane.b32.xlu1 %v13277_v26, %s13182_s15  ;;  %v1318_v4 = vrot.slane %v1297_v2, %v13215_v5  ;;  %v1371_v21 = vcombine.high %v13377_v15, %v13377_v15  ;;  %v1370_v24 = vrot.slane %v1340_v11, %v13215_v5 }
  0x23   : > { %v1386_v22 = vcombine.low %v13385_v18, %v13385_v18  ;;  %v1363_v23 = vrot.slane %v1342_v20, %v13215_v5  ;;  %v13406_v29 = vrot.slane %v13401_v27, %v13215_v5  ;;  %v13412_v30 = vrot.slane %v13385_v18, %v13215_v5 }
  0x24   : > { %v1385_v25 = vrot.slane %v1371_v21, %v13215_v5  ;;  %v13429_v40 = vrot.slane %v13425_v39, %v13215_v5  ;;  %v13453_v56 = vrot.slane %v13449_v55, %v13215_v5  ;;  %v1506_v57 = vcombine.high %v13449_v55, %v13449_v55 }
  0x25   : > { %v1394_v28 = vrot.slane %v1386_v22, %v13215_v5  ;;  %v13438_v46 = vrot.slane %v13406_v29, %v13215_v5 }
  0x26   : > { %1803 = vrot.lane.b32.xlu0 %v1138_v34, %s13182_s15  ;;  %1795 = vrot.lane.b32.xlu1 %v1093_v35, %s13182_s15  ;;  %v1387_v33 = vcombine.low %v1385_v25, %v1385_v25  ;;  %v1416_v34 = vcombine.high %v13401_v27, %v13401_v27  ;;  %v1431_v35 = vcombine.low %v13406_v29, %v13406_v29 }
  0x27   : > { %v1521_v63 = vcombine.low %v13453_v56, %v13453_v56  ;;  %v1520_v3 = vrot.slane %v1506_v57, %v13215_v5 }
  0x28   : > { %v1408_v36 = vrot.slane %v1387_v33, %v13215_v5  ;;  %v1439_v45 = vrot.slane %v1431_v35, %v13215_v5 }
  0x29   : > { %v1522_v20 = vcombine.low %v1520_v3, %v1520_v3 }
  0x2a   : > { %1811 = vrot.lane.b32.xlu0 %v1183_v38, %s13182_s15  ;;  %1813 = vrot.lane.b32.xlu1 %v1190_v37, %s13182_s15  ;;  %v1415_v37 = vrot.slane %v1385_v25, %v13215_v5  ;;  %v1430_v38 = vrot.slane %v1416_v34, %v13215_v5 }
  0x2c   : > { %v1460_v50 = vrot.slane %v1430_v38, %v13215_v5 }
  0x2e   : > { %1815 = vrot.lane.b32.xlu0 %v1214_v44, %s13182_s15  ;;  %1817 = vrot.lane.b32.xlu1 %v13309_v42, %s13182_s15  ;;  %v1461_v44 = vcombine.high %v13425_v39, %v13425_v39 }
  0x32   : > { %1819 = vrot.lane.b32.xlu0 %v1228_v48, %s13182_s15  ;;  %1821 = vrot.lane.b32.xlu1 %v1235_v47, %s13182_s15  ;;  %v1432_v47 = vcombine.low %v1430_v38, %v1430_v38  ;;  %v1476_v48 = vcombine.low %v13429_v40, %v13429_v40 }
  0x34   : > { %v1453_v49 = vrot.slane %v1432_v47, %v13215_v5 }
  0x36   : > { %1823 = vrot.lane.b32.xlu0 %v1259_v54, %s13182_s15  ;;  %1825 = vrot.lane.b32.xlu1 %v13333_v52, %s13182_s15  ;;  %v1475_v54 = vrot.slane %v1461_v44, %v13215_v5 }
  0x38   : > { %v1477_v60 = vcombine.low %v1475_v54, %v1475_v54  ;;  %v1505_v2 = vrot.slane %v1475_v54, %v13215_v5 }
  0x3a   : > { %1827 = vrot.lane.b32.xlu0 %v1273_v58, %s13182_s15  ;;  %1829 = vrot.lane.b32.xlu1 %v1280_v59, %s13182_s15  ;;  %v1484_v58 = vrot.slane %v1476_v48, %v13215_v5  ;;  %v13462_v59 = vrot.slane %v13429_v40, %v13215_v5  ;;  %v1035_v48 = vld [vmem:[%s13220_s14 + $0x68] sm:$0xff] }
  0x3e   : > { %1831 = vrot.lane.b32.xlu0 %v1304_v0, %s13182_s15  ;;  %1833 = vrot.lane.b32.xlu1 %v13366_v1, %s13182_s15  ;;  %v1498_v0 = vrot.slane %v1477_v60, %v13215_v5 }
  0x42   : > { %1835 = vrot.lane.b32.xlu0 %v1318_v4, %s13182_s15  ;;  %1837 = vrot.lane.b32.xlu1 %v1325_v9, %s13182_s15  ;;  %v13473_v4 = vld [vmem:[%s13220_s14 + $0x58] sm:$0xff]  ;;  %v13477_v9 = vrot.slane %v13453_v56, %v13215_v5 }
  0x43   : > { %v13481_v11 = vrot.slane %v13473_v4, %v13215_v5  ;;  %v1551_v21 = vcombine.high %v13473_v4, %v13473_v4 }
  0x45   : > { %v1566_v22 = vcombine.low %v13481_v11, %v13481_v11  ;;  %v1565_v25 = vrot.slane %v1551_v21, %v13215_v5  ;;  %v13501_v33 = vrot.slane %v13481_v11, %v13215_v5 }
  0x46   : > { %1839 = vrot.lane.b32.xlu0 %v1349_v19, %s13182_s15  ;;  %1841 = vrot.lane.b32.xlu1 %v13381_v16, %s13182_s15  ;;  %v1529_v19 = vrot.slane %v1521_v63, %v13215_v5 }
  0x47   : > { %v1574_v35 = vrot.slane %v1566_v22, %v13215_v5 }
  0x4a   : > { %1843 = vrot.lane.b32.xlu0 %v1363_v23, %s13182_s15  ;;  %1845 = vrot.lane.b32.xlu1 %v1370_v24, %s13182_s15  ;;  %v1543_v23 = vrot.slane %v1522_v20, %v13215_v5  ;;  %v1550_v24 = vrot.slane %v1520_v3, %v13215_v5  ;;  %v1036_v3 = vld [vmem:[%s13220_s14 + $0x70] sm:$0xff] }
  0x4b   : > { %v1693_v20 = vrot.slane %v1036_v3, %v13215_v5 }
  0x4e   : > { %1847 = vrot.lane.b32.xlu0 %v1394_v28, %s13182_s15  ;;  %1849 = vrot.lane.b32.xlu1 %v13412_v30, %s13182_s15  ;;  %v13497_v28 = vld [vmem:[%s13220_s14 + $0x60] sm:$0xff] }
  0x4f   : > { %v1603_v34 = vrot.slane %v13497_v28, %v13215_v5 }
  0x51   : > { %v1611_v38 = vcombine.low %v1603_v34, %v1603_v34 }
  0x52   : > { %1851 = vrot.lane.b32.xlu0 %v1408_v36, %s13182_s15  ;;  %1853 = vrot.lane.b32.xlu1 %v1415_v37, %s13182_s15  ;;  %v1567_v36 = vcombine.low %v1565_v25, %v1565_v25  ;;  %v1596_v37 = vcombine.high %v13497_v28, %v13497_v28 }
  0x53   : > { %v1619_v54 = vrot.slane %v1611_v38, %v13215_v5 }
  0x54   : > { %v1588_v44 = vrot.slane %v1567_v36, %v13215_v5  ;;  %v1610_v47 = vrot.slane %v1596_v37, %v13215_v5  ;;  %v1037_v36 = vld [vmem:[%s13220_s14 + $0x78] sm:$0xff]  ;;  %v1716_v37 = vrot.slane %v1693_v20, %v13215_v5 }
  0x55   : > { %v1738_v38 = vrot.slane %v1037_v36, %v13215_v5 }
  0x56   : > { %1855 = vrot.lane.b32.xlu0 %v1439_v45, %s13182_s15  ;;  %1857 = vrot.lane.b32.xlu1 %v13438_v46, %s13182_s15  ;;  %v1595_v45 = vrot.slane %v1565_v25, %v13215_v5  ;;  %v1612_v57 = vcombine.low %v1610_v47, %v1610_v47 }
  0x58   : > { %v1633_v63 = vrot.slane %v1612_v57, %v13215_v5 }
  0x5a   : > { %1859 = vrot.lane.b32.xlu0 %v1453_v49, %s13182_s15  ;;  %1861 = vrot.lane.b32.xlu1 %v1460_v50, %s13182_s15  ;;  %v1626_v49 = vrot.slane %v1603_v34, %v13215_v5  ;;  %v1648_v50 = vrot.slane %v1035_v48, %v13215_v5 }
  0x5c   : > { %v1656_v60 = vcombine.low %v1648_v50, %v1648_v50 }
  0x5e   : > { %1863 = vrot.lane.b32.xlu0 %v1484_v58, %s13182_s15  ;;  %1865 = vrot.lane.b32.xlu1 %v13462_v59, %s13182_s15  ;;  %v1641_v58 = vcombine.high %v1035_v48, %v1035_v48  ;;  %v1664_v21 = vrot.slane %v1656_v60, %v13215_v5  ;;  %v1746_v48 = vcombine.low %v1738_v38, %v1738_v38 }
  0x5f   : > { %v1761_v60 = vrot.slane %v1738_v38, %v13215_v5 }
  0x62   : > { %1867 = vrot.lane.b32.xlu0 %v1498_v0, %s13182_s15  ;;  %1869 = vrot.lane.b32.xlu1 %v1505_v2, %s13182_s15  ;;  %v1640_v0 = vrot.slane %v1610_v47, %v13215_v5  ;;  %v1655_v2 = vrot.slane %v1641_v58, %v13215_v5  ;;  %v1731_v47 = vcombine.high %v1037_v36, %v1037_v36 }
  0x64   : > { %v1657_v22 = vcombine.low %v1655_v2, %v1655_v2  ;;  %v1685_v34 = vrot.slane %v1655_v2, %v13215_v5  ;;  %v12577_v2 = vld.sshfl [vmem:[%s13220_s14 + $0x80] sm:$0x1 pattern:$0x73625140] }
  0x66   : > { %1871 = vrot.lane.b32.xlu0 %v1529_v19, %s13182_s15  ;;  %1873 = vrot.lane.b32.xlu1 %v13477_v9, %s13182_s15  ;;  %v1671_v19 = vrot.slane %v1648_v50, %v13215_v5  ;;  %v1678_v25 = vrot.slane %v1657_v22, %v13215_v5 }
  0x6a   : > { %1875 = vrot.lane.b32.xlu0 %v1543_v23, %s13182_s15  ;;  %1877 = vrot.lane.b32.xlu1 %v1550_v24, %s13182_s15  ;;  %v1686_v23 = vcombine.high %v1036_v3, %v1036_v3  ;;  %v1701_v24 = vcombine.low %v1693_v20, %v1693_v20  ;;  %v2278_v3 = vcombine.low %v13226_v7, %v13226_v7 }
  0x6e   : > { %1879 = vrot.lane.b32.xlu0 %v1574_v35, %s13182_s15  ;;  %1881 = vrot.lane.b32.xlu1 %v13501_v33, %s13182_s15  ;;  %v1700_v35 = vrot.slane %v1686_v23, %v13215_v5  ;;  %v1783_v23 = vcombine.low %v12577_v2, %v12577_v2 }
  0x70   : > { %v1730_v50 = vrot.slane %v1700_v35, %v13215_v5 }
  0x72   : > { %1883 = vrot.lane.b32.xlu0 %v1588_v44, %s13182_s15  ;;  %1885 = vrot.lane.b32.xlu1 %v1595_v45, %s13182_s15  ;;  %v1709_v44 = vrot.slane %v1701_v24, %v13215_v5  ;;  %v1702_v45 = vcombine.low %v1700_v35, %v1700_v35 }
  0x76   : > { %1887 = vrot.lane.b32.xlu0 %v1619_v54, %s13182_s15  ;;  %1889 = vrot.lane.b32.xlu1 %v1626_v49, %s13182_s15  ;;  %v1723_v49 = vrot.slane %v1702_v45, %v13215_v5  ;;  %v1745_v54 = vrot.slane %v1731_v47, %v13215_v5  ;;  %v1790_v47 = vrot.slane %v1783_v23, %v13215_v5 }
  0x7a   : > { %1891 = vrot.lane.b32.xlu0 %v1633_v63, %s13182_s15  ;;  %1893 = vrot.lane.b32.xlu1 %v1640_v0, %s13182_s15  ;;  %v1754_v63 = vrot.slane %v1746_v48, %v13215_v5  ;;  %v1747_v0 = vcombine.low %v1745_v54, %v1745_v54 }
  0x7c   : > { %v1768_v24 = vrot.slane %v1747_v0, %v13215_v5 }
  0x7e   : > { %1895 = vrot.lane.b32.xlu0 %v1664_v21, %s13182_s15  ;;  %1897 = vrot.lane.b32.xlu1 %v1671_v19, %s13182_s15 }
  0x82   : > { %1899 = vrot.lane.b32.xlu0 %v1678_v25, %s13182_s15  ;;  %1901 = vrot.lane.b32.xlu1 %v1685_v34, %s13182_s15  ;;  %v1775_v25 = vrot.slane %v1745_v54, %v13215_v5  ;;  %v2285_v34 = vrot.slane %v2278_v3, %v13215_v5 }
  0x84   : > { %v2301_v48 = vrot.slane %v2285_v34, %v13215_v5 }
  0x86   : > { %1903 = vrot.lane.b32.xlu0 %v1709_v44, %s13182_s15  ;;  %1905 = vrot.lane.b32.xlu1 %v1716_v37, %s13182_s15 }
  0x88   : > { %v13549_v57 = vpop.permute.xlu1 %1801  ;;  %v13551_v58 = vpop.permute.xlu0 %1793 }
  0x89   : > { %v1922_v21 = vrot.slane %v13551_v58, 4  ;;  %v1926_v38 = vrot.slane %v13549_v57, 4 }
  0x8a   : > { %1907 = vrot.lane.b32.xlu0 %v1723_v49, %s13182_s15  ;;  %1909 = vrot.lane.b32.xlu1 %v1730_v50, %s13182_s15  ;;  %v2293_v49 = vcombine.high %v2285_v34, %v2285_v34  ;;  %v2323_v50 = vcombine.low %v13223_v6, %v13223_v6 }
  0x8c   : > { %v1792_v19 = vpop.permute.xlu0 %1791  ;;  %v1798_v20 = vpop.permute.xlu1 %1797  ;;  %v2308_v6 = vrot.slane %v2293_v49, %v13215_v5  ;;  %v2368_v49 = vcombine.low %v13241_v12, %v13241_v12 }
  0x8d   : > { %v1921_v22 = vrot.slane %v1792_v19, 4  ;;  %v1924_v44 = vrot.slane %v1798_v20, 4 }
  0x8e   : > { %1911 = vrot.lane.b32.xlu0 %v1754_v63, %s13182_s15  ;;  %1913 = vrot.lane.b32.xlu1 %v1761_v60, %s13182_s15 }
  0x8f   : > { %v1987_v7 = vsel %vm1986_vm0, %v1921_v22, %v1922_v21 }
  0x90   : > { %v1989_v35 = vsel %vm1988_vm1, %v1792_v19, %v1987_v7  ;;  %v1800_v36 = vpop.permute.xlu0 %1799  ;;  %v1806_v37 = vpop.permute.xlu1 %1805 }
  0x91   : > { %2180 = vst [vmem:[#allocation2] sm:$0x22] %v1989_v35  ;;  %v1925_v45 = vrot.slane %v1800_v36, 4  ;;  %v1928_v19 = vrot.slane %v1806_v37, 4 }
  0x92   : > { %1915 = vrot.lane.b32.xlu0 %v1768_v24, %s13182_s15  ;;  %1917 = vrot.lane.b32.xlu1 %v1775_v25, %s13182_s15  ;;  %v2294_v24 = vcombine.high %v13236_v10, %v13236_v10 }
  0x93   : > { %v1994_v54 = vsel %vm1986_vm0, %v1924_v44, %v1925_v45  ;;  %v1996_v60 = vsel %vm1986_vm0, %v1925_v45, %v1926_v38 }
  0x94   : > { %v1995_v63 = vsel %vm1988_vm1, %v1798_v20, %v1994_v54  ;;  %v1997_v0 = vsel %vm1988_vm1, %v1800_v36, %v1996_v60  ;;  %v1808_v2 = vpop.permute.xlu0 %1807  ;;  %v1810_v3 = vpop.permute.xlu1 %1809  ;;  %v2330_v20 = vrot.slane %v2323_v50, %v13215_v5  ;;  %v2322_v10 = vrot.slane %v2294_v24, %v13215_v5 }
  0x95   : > { %2183 = vst [vmem:[#allocation2 + $0x18] sm:$0x22] %v1995_v63  ;;  %2184 = vst [vmem:[#allocation2 + $0x20] sm:$0x22] %v1997_v0  ;;  %v1929_v22 = vrot.slane %v1808_v2, 4  ;;  %v1930_v23 = vrot.slane %v1810_v3, 4 }
  0x96   : > { %1919 = vrot.lane.b32.xlu0 %v1790_v47, %s13182_s15  ;;  %3013 = vrot.lane.b32.xlu1 %v2301_v48, %s13183_s16  ;;  %v2338_v50 = vcombine.high %v2330_v20, %v2330_v20 }
  0x97   : > { %v2002_v25 = vsel %vm1986_vm0, %v1928_v19, %v1929_v22  ;;  %v2004_v34 = vsel %vm1986_vm0, %v1929_v22, %v1930_v23 }
  0x98   : > { %v2003_v7 = vsel %vm1988_vm1, %v1806_v37, %v2002_v25  ;;  %v2005_v35 = vsel %vm1988_vm1, %v1808_v2, %v2004_v34  ;;  %v1804_v36 = vpop.permute.xlu0 %1803  ;;  %v1796_v45 = vpop.permute.xlu1 %1795  ;;  %v2346_v37 = vrot.slane %v2330_v20, %v13215_v5 }
  0x99   : > { %2187 = vst [vmem:[#allocation2 + $0x38] sm:$0x22] %v2003_v7  ;;  %2188 = vst [vmem:[#allocation2 + $0x40] sm:$0x22] %v2005_v35  ;;  %v1927_v47 = vrot.slane %v1804_v36, 4  ;;  %v1923_v48 = vrot.slane %v1796_v45, 4 }
  0x9a   : > { %3015 = vrot.lane.b32.xlu0 %v2308_v6, %s13183_s16  ;;  %3017 = vrot.lane.b32.xlu1 %v13249_v14, %s13183_s16 }
  0x9b   : > { %v1998_v54 = vsel %vm1986_vm0, %v1926_v38, %v1927_v47  ;;  %v2000_v60 = vsel %vm1986_vm0, %v1927_v47, %v1928_v19  ;;  %v1990_v63 = vsel %vm1986_vm0, %v1922_v21, %v1923_v48  ;;  %v1992_v0 = vsel %vm1986_vm0, %v1923_v48, %v1924_v44 }
  0x9c   : > { %v1999_v12 = vsel %vm1988_vm1, %v13549_v57, %v1998_v54  ;;  %v2001_v2 = vsel %vm1988_vm1, %v1804_v36, %v2000_v60  ;;  %v1991_v14 = vsel %vm1988_vm1, %v13551_v58, %v1990_v63  ;;  %v1993_v22 = vsel %vm1988_vm1, %v1796_v45, %v1992_v0  ;;  %v1812_v6 = vpop.permute.xlu0 %1811  ;;  %v1814_v24 = vpop.permute.xlu1 %1813 }
  0x9d   : > { %2185 = vst [vmem:[#allocation2 + $0x28] sm:$0x22] %v1999_v12  ;;  %2186 = vst [vmem:[#allocation2 + $0x30] sm:$0x22] %v2001_v2  ;;  %v1931_v38 = vrot.slane %v1812_v6, 4  ;;  %v1932_v21 = vrot.slane %v1814_v24, 4  ;;  %v2339_v44 = vcombine.high %v13230_v8, %v13230_v8  ;;  %v2353_v57 = vrot.slane %v2338_v50, %v13215_v5 }
  0x9e   : > { %2181 = vst [vmem:[#allocation2 + $0x8] sm:$0x22] %v1991_v14  ;;  %2182 = vst [vmem:[#allocation2 + $0x10] sm:$0x22] %v1993_v22  ;;  %3019 = vrot.lane.b32.xlu0 %v2322_v10, %s13183_s16  ;;  %3021 = vrot.lane.b32.xlu1 %v2346_v37, %s13183_s16  ;;  %v2375_v58 = vrot.slane %v2368_v49, %v13215_v5  ;;  %v2384_v63 = vcombine.high %v13256_v17, %v13256_v17 }
  0x9f   : > { %v2006_v19 = vsel %vm1986_vm0, %v1930_v23, %v1931_v38  ;;  %v2008_v20 = vsel %vm1986_vm0, %v1931_v38, %v1932_v21  ;;  %v2367_v45 = vrot.slane %v2339_v44, %v13215_v5 }
  0xa0   : > { %v2007_v25 = vsel %vm1988_vm1, %v1810_v3, %v2006_v19  ;;  %v2009_v34 = vsel %vm1988_vm1, %v1812_v6, %v2008_v20  ;;  %v1816_v7 = vpop.permute.xlu0 %1815  ;;  %v1818_v35 = vpop.permute.xlu1 %1817  ;;  %v2391_v23 = vrot.slane %v2375_v58, %v13215_v5  ;;  %v2383_v47 = vcombine.high %v2375_v58, %v2375_v58 }
  0xa1   : > { %2189 = vst [vmem:[#allocation2 + $0x48] sm:$0x22] %v2007_v25  ;;  %2190 = vst [vmem:[#allocation2 + $0x50] sm:$0x22] %v2009_v34  ;;  %v1933_v8 = vrot.slane %v1816_v7, 4  ;;  %v1934_v36 = vrot.slane %v1818_v35, 4  ;;  %v2413_v3 = vcombine.low %v13284_v31, %v13284_v31  ;;  %v2458_v58 = vcombine.low %v13305_v41, %v13305_v41 }
  0xa2   : > { %3023 = vrot.lane.b32.xlu0 %v2353_v57, %s13183_s16  ;;  %3025 = vrot.lane.b32.xlu1 %v13245_v13, %s13183_s16  ;;  %v2398_v31 = vrot.slane %v2383_v47, %v13215_v5 }
  0xa3   : > { %v2010_v48 = vsel %vm1986_vm0, %v1932_v21, %v1933_v8  ;;  %v2012_v49 = vsel %vm1986_vm0, %v1933_v8, %v1934_v36  ;;  %v2420_v0 = vrot.slane %v2413_v3, %v13215_v5  ;;  %v2412_v21 = vrot.slane %v2384_v63, %v13215_v5 }
  0xa4   : > { %v2011_v10 = vsel %vm1988_vm1, %v1814_v24, %v2010_v48  ;;  %v2013_v37 = vsel %vm1988_vm1, %v1816_v7, %v2012_v49  ;;  %v1820_v50 = vpop.permute.xlu0 %1819  ;;  %v1822_v54 = vpop.permute.xlu1 %1821 }
  0xa5   : > { %2191 = vst [vmem:[#allocation2 + $0x58] sm:$0x22] %v2011_v10  ;;  %2192 = vst [vmem:[#allocation2 + $0x60] sm:$0x22] %v2013_v37  ;;  %v1935_v60 = vrot.slane %v1820_v50, 4  ;;  %v1936_v13 = vrot.slane %v1822_v54, 4  ;;  %v2436_v44 = vrot.slane %v2420_v0, %v13215_v5  ;;  %v2428_v57 = vcombine.high %v2420_v0, %v2420_v0 }
  0xa6   : > { %3027 = vrot.lane.b32.xlu0 %v2367_v45, %s13183_s16  ;;  %3029 = vrot.lane.b32.xlu1 %v2391_v23, %s13183_s16  ;;  %v2465_v45 = vrot.slane %v2458_v58, %v13215_v5 }
  0xa7   : > { %v2014_v12 = vsel %vm1986_vm0, %v1934_v36, %v1935_v60  ;;  %v2016_v2 = vsel %vm1986_vm0, %v1935_v60, %v1936_v13  ;;  %v2429_v36 = vcombine.high %v13288_v32, %v13288_v32  ;;  %v2443_v41 = vrot.slane %v2428_v57, %v13215_v5 }
  0xa8   : > { %v2015_v14 = vsel %vm1988_vm1, %v1818_v35, %v2014_v12  ;;  %v2017_v22 = vsel %vm1988_vm1, %v1820_v50, %v2016_v2  ;;  %v1824_v6 = vpop.permute.xlu0 %1823  ;;  %v1826_v24 = vpop.permute.xlu1 %1825  ;;  %v2473_v60 = vcombine.high %v2465_v45, %v2465_v45 }
  0xa9   : > { %2193 = vst [vmem:[#allocation2 + $0x68] sm:$0x22] %v2015_v14  ;;  %2194 = vst [vmem:[#allocation2 + $0x70] sm:$0x22] %v2017_v22  ;;  %v1937_v17 = vrot.slane %v1824_v6, 4  ;;  %v1938_v38 = vrot.slane %v1826_v24, 4  ;;  %v2457_v50 = vrot.slane %v2429_v36, %v13215_v5 }
  0xaa   : > { %3031 = vrot.lane.b32.xlu0 %v2398_v31, %s13183_s16  ;;  %3033 = vrot.lane.b32.xlu1 %v13277_v26, %s13183_s16 }
  0xab   : > { %v2018_v19 = vsel %vm1986_vm0, %v1936_v13, %v1937_v17  ;;  %v2020_v20 = vsel %vm1986_vm0, %v1937_v17, %v1938_v38  ;;  %v2503_v13 = vcombine.low %v13329_v51, %v13329_v51  ;;  %v2488_v51 = vrot.slane %v2473_v60, %v13215_v5 }
  0xac   : > { %v2019_v25 = vsel %vm1988_vm1, %v1822_v54, %v2018_v19  ;;  %v2021_v34 = vsel %vm1988_vm1, %v1824_v6, %v2020_v20  ;;  %v1828_v7 = vpop.permute.xlu0 %1827  ;;  %v1830_v35 = vpop.permute.xlu1 %1829  ;;  %v2481_v54 = vrot.slane %v2465_v45, %v13215_v5  ;;  %v2474_v6 = vcombine.high %v13313_v43, %v13313_v43 }
  0xad   : > { %2195 = vst [vmem:[#allocation2 + $0x78] sm:$0x22] %v2019_v25  ;;  %2196 = vst [vmem:[#allocation2 + $0x80] sm:$0x22] %v2021_v34  ;;  %v1939_v8 = vrot.slane %v1828_v7, 4  ;;  %v1940_v26 = vrot.slane %v1830_v35, 4  ;;  %v2548_v25 = vcombine.low %v13353_v61, %v13353_v61 }
  0xae   : > { %3035 = vrot.lane.b32.xlu0 %v2412_v21, %s13183_s16  ;;  %3037 = vrot.lane.b32.xlu1 %v2436_v44, %s13183_s16  ;;  %v2502_v43 = vrot.slane %v2474_v6, %v13215_v5  ;;  %v2564_v6 = vcombine.high %v13357_v62, %v13357_v62 }
  0xaf   : > { %v2022_v23 = vsel %vm1986_vm0, %v1938_v38, %v1939_v8  ;;  %v2024_v47 = vsel %vm1986_vm0, %v1939_v8, %v1940_v26 }
  0xb0   : > { %v2023_v3 = vsel %vm1988_vm1, %v1826_v24, %v2022_v23  ;;  %v2025_v48 = vsel %vm1988_vm1, %v1828_v7, %v2024_v47  ;;  %v1832_v49 = vpop.permute.xlu0 %1831  ;;  %v1834_v10 = vpop.permute.xlu1 %1833  ;;  %v2510_v24 = vrot.slane %v2503_v13, %v13215_v5 }
  0xb1   : > { %2197 = vst [vmem:[#allocation2 + $0x88] sm:$0x22] %v2023_v3  ;;  %2198 = vst [vmem:[#allocation2 + $0x90] sm:$0x22] %v2025_v48  ;;  %v1941_v32 = vrot.slane %v1832_v49, 4  ;;  %v1942_v37 = vrot.slane %v1834_v10, 4  ;;  %v2555_v3 = vrot.slane %v2548_v25, %v13215_v5 }
  0xb2   : > { %3039 = vrot.lane.b32.xlu0 %v2443_v41, %s13183_s16  ;;  %3041 = vrot.lane.b32.xlu1 %v13309_v42, %s13183_s16  ;;  %v2526_v34 = vrot.slane %v2510_v24, %v13215_v5  ;;  %v2518_v7 = vcombine.high %v2510_v24, %v2510_v24 }
  0xb3   : > { %v2026_v63 = vsel %vm1986_vm0, %v1940_v26, %v1941_v32  ;;  %v2028_v31 = vsel %vm1986_vm0, %v1941_v32, %v1942_v37  ;;  %v2571_v13 = vrot.slane %v2555_v3, %v13215_v5 }
  0xb4   : > { %v2027_v0 = vsel %vm1988_vm1, %v1830_v35, %v2026_v63  ;;  %v2029_v12 = vsel %vm1988_vm1, %v1832_v49, %v2028_v31  ;;  %v1836_v2 = vpop.permute.xlu0 %1835  ;;  %v1838_v14 = vpop.permute.xlu1 %1837  ;;  %v2533_v47 = vrot.slane %v2518_v7, %v13215_v5  ;;  %v2563_v63 = vcombine.high %v2555_v3, %v2555_v3 }
  0xb5   : > { %2199 = vst [vmem:[#allocation2 + $0x98] sm:$0x22] %v2027_v0  ;;  %2200 = vst [vmem:[#allocation2 + $0xa0] sm:$0x22] %v2029_v12  ;;  %v1943_v22 = vrot.slane %v1836_v2, 4  ;;  %v1944_v42 = vrot.slane %v1838_v14, 4  ;;  %v2593_v31 = vcombine.low %v13377_v15, %v13377_v15 }
  0xb6   : > { %3043 = vrot.lane.b32.xlu0 %v2457_v50, %s13183_s16  ;;  %3045 = vrot.lane.b32.xlu1 %v2481_v54, %s13183_s16  ;;  %v2578_v15 = vrot.slane %v2563_v63, %v13215_v5 }
  0xb7   : > { %v2030_v17 = vsel %vm1986_vm0, %v1942_v37, %v1943_v22  ;;  %v2032_v38 = vsel %vm1986_vm0, %v1943_v22, %v1944_v42  ;;  %v2600_v24 = vrot.slane %v2593_v31, %v13215_v5 }
  0xb8   : > { %v2031_v21 = vsel %vm1988_vm1, %v1834_v10, %v2030_v17  ;;  %v2033_v44 = vsel %vm1988_vm1, %v1836_v2, %v2032_v38  ;;  %v1840_v57 = vpop.permute.xlu0 %1839  ;;  %v1842_v58 = vpop.permute.xlu1 %1841 }
  0xb9   : > { %2201 = vst [vmem:[#allocation2 + $0xa8] sm:$0x22] %v2031_v21  ;;  %2202 = vst [vmem:[#allocation2 + $0xb0] sm:$0x22] %v2033_v44  ;;  %v1945_v19 = vrot.slane %v1840_v57, 4  ;;  %v1946_v20 = vrot.slane %v1842_v58, 4  ;;  %v2616_v25 = vrot.slane %v2600_v24, %v13215_v5 }
  0xba   : > { %3047 = vrot.lane.b32.xlu0 %v2488_v51, %s13183_s16  ;;  %3049 = vrot.lane.b32.xlu1 %v13333_v52, %s13183_s16  ;;  %v2519_v52 = vcombine.high %v13337_v53, %v13337_v53 }
  0xbb   : > { %v2034_v35 = vsel %vm1986_vm0, %v1944_v42, %v1945_v19  ;;  %v2036_v8 = vsel %vm1986_vm0, %v1945_v19, %v1946_v20 }
  0xbc   : > { %v2035_v26 = vsel %vm1988_vm1, %v1838_v14, %v2034_v35  ;;  %v2037_v36 = vsel %vm1988_vm1, %v1840_v57, %v2036_v8  ;;  %v1844_v41 = vpop.permute.xlu0 %1843  ;;  %v1846_v61 = vpop.permute.xlu1 %1845  ;;  %v2547_v60 = vrot.slane %v2519_v52, %v13215_v5 }
  0xbd   : > { %2203 = vst [vmem:[#allocation2 + $0xb8] sm:$0x22] %v2035_v26  ;;  %2204 = vst [vmem:[#allocation2 + $0xc0] sm:$0x22] %v2037_v36  ;;  %v1947_v45 = vrot.slane %v1844_v41, 4  ;;  %v1948_v23 = vrot.slane %v1846_v61, 4 }
  0xbe   : > { %3051 = vrot.lane.b32.xlu0 %v2502_v43, %s13183_s16  ;;  %3053 = vrot.lane.b32.xlu1 %v2526_v34, %s13183_s16  ;;  %v2608_v43 = vcombine.high %v2600_v24, %v2600_v24  ;;  %v2638_v34 = vcombine.low %v13401_v27, %v13401_v27 }
  0xbf   : > { %v2038_v48 = vsel %vm1986_vm0, %v1946_v20, %v1947_v45  ;;  %v2040_v49 = vsel %vm1986_vm0, %v1947_v45, %v1948_v23  ;;  %v2592_v20 = vrot.slane %v2564_v6, %v13215_v5  ;;  %v2609_v45 = vcombine.high %v13385_v18, %v13385_v18 }
  0xc0   : > { %v2039_v10 = vsel %vm1988_vm1, %v1842_v58, %v2038_v48  ;;  %v2041_v32 = vsel %vm1988_vm1, %v1844_v41, %v2040_v49  ;;  %v1848_v37 = vpop.permute.xlu0 %1847  ;;  %v1850_v50 = vpop.permute.xlu1 %1849  ;;  %v2623_v27 = vrot.slane %v2608_v43, %v13215_v5 }
  0xc1   : > { %2205 = vst [vmem:[#allocation2 + $0xc8] sm:$0x22] %v2039_v10  ;;  %2206 = vst [vmem:[#allocation2 + $0xd0] sm:$0x22] %v2041_v32  ;;  %v1949_v53 = vrot.slane %v1848_v37, 4  ;;  %v1950_v54 = vrot.slane %v1850_v50, 4 }
  0xc2   : > { %3055 = vrot.lane.b32.xlu0 %v2533_v47, %s13183_s16  ;;  %3057 = vrot.lane.b32.xlu1 %v13366_v1, %s13183_s16 }
  0xc3   : > { %v2042_v0 = vsel %vm1986_vm0, %v1948_v23, %v1949_v53  ;;  %v2044_v12 = vsel %vm1986_vm0, %v1949_v53, %v1950_v54  ;;  %v2645_v23 = vrot.slane %v2638_v34, %v13215_v5 }
  0xc4   : > { %v2043_v2 = vsel %vm1988_vm1, %v1846_v61, %v2042_v0  ;;  %v2045_v14 = vsel %vm1988_vm1, %v1848_v37, %v2044_v12  ;;  %v1852_v22 = vpop.permute.xlu0 %1851  ;;  %v1854_v42 = vpop.permute.xlu1 %1853  ;;  %v2637_v37 = vrot.slane %v2609_v45, %v13215_v5 }
  0xc5   : > { %2207 = vst [vmem:[#allocation2 + $0xd8] sm:$0x22] %v2043_v2  ;;  %2208 = vst [vmem:[#allocation2 + $0xe0] sm:$0x22] %v2045_v14  ;;  %v1951_v51 = vrot.slane %v1852_v22, 4  ;;  %v1952_v1 = vrot.slane %v1854_v42, 4  ;;  %v2661_v53 = vrot.slane %v2645_v23, %v13215_v5  ;;  %v2654_v14 = vcombine.high %v13406_v29, %v13406_v29 }
  0xc6   : > { %3059 = vrot.lane.b32.xlu0 %v2547_v60, %s13183_s16  ;;  %3061 = vrot.lane.b32.xlu1 %v2571_v13, %s13183_s16 }
  0xc7   : > { %v2046_v17 = vsel %vm1986_vm0, %v1950_v54, %v1951_v51  ;;  %v2048_v38 = vsel %vm1986_vm0, %v1951_v51, %v1952_v1  ;;  %v2683_v54 = vcombine.low %v13425_v39, %v13425_v39 }
  0xc8   : > { %v2047_v21 = vsel %vm1988_vm1, %v1850_v50, %v2046_v17  ;;  %v2049_v44 = vsel %vm1988_vm1, %v1852_v22, %v2048_v38  ;;  %v1856_v57 = vpop.permute.xlu0 %1855  ;;  %v1858_v58 = vpop.permute.xlu1 %1857  ;;  %v2653_v50 = vcombine.high %v2645_v23, %v2645_v23  ;;  %v2682_v38 = vrot.slane %v2654_v14, %v13215_v5 }
  0xc9   : > { %2209 = vst [vmem:[#allocation2 + $0xe8] sm:$0x22] %v2047_v21  ;;  %2210 = vst [vmem:[#allocation2 + $0xf0] sm:$0x22] %v2049_v44  ;;  %v1953_v62 = vrot.slane %v1856_v57, 4  ;;  %v1954_v19 = vrot.slane %v1858_v58, 4  ;;  %v2690_v22 = vrot.slane %v2683_v54, %v13215_v5  ;;  %v2818_v14 = vcombine.low %v13497_v28, %v13497_v28 }
  0xca   : > { %3063 = vrot.lane.b32.xlu0 %v2578_v15, %s13183_s16  ;;  %3065 = vrot.lane.b32.xlu1 %v13381_v16, %s13183_s16  ;;  %v2668_v39 = vrot.slane %v2653_v50, %v13215_v5  ;;  %v2744_v50 = vcombine.high %v13453_v56, %v13453_v56 }
  0xcb   : > { %v2050_v7 = vsel %vm1986_vm0, %v1952_v1, %v1953_v62  ;;  %v2052_v35 = vsel %vm1986_vm0, %v1953_v62, %v1954_v19  ;;  %v2706_v21 = vrot.slane %v2690_v22, %v13215_v5  ;;  %v2698_v44 = vcombine.high %v2690_v22, %v2690_v22 }
  0xcc   : > { %v2051_v8 = vsel %vm1988_vm1, %v1854_v42, %v2050_v7  ;;  %v2053_v26 = vsel %vm1988_vm1, %v1856_v57, %v2052_v35  ;;  %v1860_v36 = vpop.permute.xlu0 %1859  ;;  %v1862_v41 = vpop.permute.xlu1 %1861  ;;  %v2728_v57 = vcombine.low %v13449_v55, %v13449_v55  ;;  %v2699_v7 = vcombine.high %v13429_v40, %v13429_v40 }
  0xcd   : > { %2211 = vst [vmem:[#allocation2 + $0xf8] sm:$0x22] %v2051_v8  ;;  %2212 = vst [vmem:[#allocation2 + $0x100] sm:$0x22] %v2053_v26  ;;  %v1955_v61 = vrot.slane %v1860_v36, 4  ;;  %v1956_v16 = vrot.slane %v1862_v41, 4  ;;  %v2713_v55 = vrot.slane %v2698_v44, %v13215_v5 }
  0xce   : > { %3067 = vrot.lane.b32.xlu0 %v2592_v20, %s13183_s16  ;;  %3069 = vrot.lane.b32.xlu1 %v2616_v25, %s13183_s16  ;;  %v2735_v35 = vrot.slane %v2728_v57, %v13215_v5 }
  0xcf   : > { %v2054_v52 = vsel %vm1986_vm0, %v1954_v19, %v1955_v61  ;;  %v2056_v47 = vsel %vm1986_vm0, %v1955_v61, %v1956_v16 }
  0xd0   : > { %v2055_v3 = vsel %vm1988_vm1, %v1858_v58, %v2054_v52  ;;  %v2057_v48 = vsel %vm1988_vm1, %v1860_v36, %v2056_v47  ;;  %v1864_v49 = vpop.permute.xlu0 %1863  ;;  %v1866_v10 = vpop.permute.xlu1 %1865  ;;  %v2751_v23 = vrot.slane %v2735_v35, %v13215_v5  ;;  %v2743_v52 = vcombine.high %v2735_v35, %v2735_v35 }
  0xd1   : > { %2213 = vst [vmem:[#allocation2 + $0x108] sm:$0x22] %v2055_v3  ;;  %2214 = vst [vmem:[#allocation2 + $0x110] sm:$0x22] %v2057_v48  ;;  %v1957_v18 = vrot.slane %v1864_v49, 4  ;;  %v1958_v32 = vrot.slane %v1866_v10, 4  ;;  %v2773_v47 = vcombine.low %v13473_v4, %v13473_v4 }
  0xd2   : > { %3071 = vrot.lane.b32.xlu0 %v2623_v27, %s13183_s16  ;;  %3073 = vrot.lane.b32.xlu1 %v13412_v30, %s13183_s16  ;;  %v2727_v27 = vrot.slane %v2699_v7, %v13215_v5  ;;  %v2758_v4 = vrot.slane %v2743_v52, %v13215_v5 }
  0xd3   : > { %v2058_v60 = vsel %vm1986_vm0, %v1956_v16, %v1957_v18  ;;  %v2060_v13 = vsel %vm1986_vm0, %v1957_v18, %v1958_v32 }
  0xd4   : > { %v2059_v63 = vsel %vm1988_vm1, %v1862_v41, %v2058_v60  ;;  %v2061_v31 = vsel %vm1988_vm1, %v1864_v49, %v2060_v13  ;;  %v1868_v0 = vpop.permute.xlu0 %1867  ;;  %v1870_v12 = vpop.permute.xlu1 %1869  ;;  %v13804_v13 = vld [vmem:[%s13220_s14] sm:$0xff] }
  0xd5   : > { %2215 = vst [vmem:[#allocation2 + $0x118] sm:$0x22] %v2059_v63  ;;  %2216 = vst [vmem:[#allocation2 + $0x120] sm:$0x22] %v2061_v31  ;;  %v1959_v2 = vrot.slane %v1868_v0, 4  ;;  %v1960_v30 = vrot.slane %v1870_v12, 4 }
  0xd6   : > { %3075 = vrot.lane.b32.xlu0 %v2637_v37, %s13183_s16  ;;  %3077 = vrot.lane.b32.xlu1 %v2661_v53, %s13183_s16  ;;  %v2780_v53 = vrot.slane %v2773_v47, %v13215_v5 }
  0xd7   : > { %v2062_v42 = vsel %vm1986_vm0, %v1958_v32, %v1959_v2  ;;  %v2064_v51 = vsel %vm1986_vm0, %v1959_v2, %v1960_v30 }
  0xd8   : > { %v2063_v1 = vsel %vm1988_vm1, %v1866_v10, %v2062_v42  ;;  %v2065_v6 = vsel %vm1988_vm1, %v1868_v0, %v2064_v51  ;;  %v1872_v15 = vpop.permute.xlu0 %1871  ;;  %v1874_v24 = vpop.permute.xlu1 %1873  ;;  %v2788_v22 = vcombine.high %v2780_v53, %v2780_v53  ;;  %v3499_v42 = vcombine.low %v13804_v13, %v13804_v13 }
  0xd9   : > { %2217 = vst [vmem:[#allocation2 + $0x128] sm:$0x22] %v2063_v1  ;;  %2218 = vst [vmem:[#allocation2 + $0x130] sm:$0x22] %v2065_v6  ;;  %v1961_v29 = vrot.slane %v1872_v15, 4  ;;  %v1962_v17 = vrot.slane %v1874_v24, 4 }
  0xda   : > { %3079 = vrot.lane.b32.xlu0 %v2668_v39, %s13183_s16  ;;  %3081 = vrot.lane.b32.xlu1 %v13438_v46, %s13183_s16  ;;  %v2796_v39 = vrot.slane %v2780_v53, %v13215_v5  ;;  %v13828_v44 = vrot.slane %v3499_v42, %v13215_v5 }
  0xdb   : > { %v2066_v58 = vsel %vm1986_vm0, %v1960_v30, %v1961_v29  ;;  %v2068_v62 = vsel %vm1986_vm0, %v1961_v29, %v1962_v17  ;;  %v2772_v30 = vrot.slane %v2744_v50, %v13215_v5  ;;  %v2789_v29 = vcombine.high %v13481_v11, %v13481_v11 }
  0xdc   : > { %v2067_v19 = vsel %vm1988_vm1, %v1870_v12, %v2066_v58  ;;  %v2069_v20 = vsel %vm1988_vm1, %v1872_v15, %v2068_v62  ;;  %v1876_v25 = vpop.permute.xlu0 %1875  ;;  %v1878_v43 = vpop.permute.xlu1 %1877 }
  0xdd   : > { %2219 = vst [vmem:[#allocation2 + $0x138] sm:$0x22] %v2067_v19  ;;  %2220 = vst [vmem:[#allocation2 + $0x140] sm:$0x22] %v2069_v20  ;;  %v1963_v34 = vrot.slane %v1876_v25, 4  ;;  %v1964_v46 = vrot.slane %v1878_v43, 4 }
  0xde   : > { %3083 = vrot.lane.b32.xlu0 %v2682_v38, %s13183_s16  ;;  %3085 = vrot.lane.b32.xlu1 %v2706_v21, %s13183_s16  ;;  %v2825_v38 = vrot.slane %v2818_v14, %v13215_v5  ;;  %v2803_v21 = vrot.slane %v2788_v22, %v13215_v5 }
  0xdf   : > { %v2070_v8 = vsel %vm1986_vm0, %v1962_v17, %v1963_v34  ;;  %v2072_v26 = vsel %vm1986_vm0, %v1963_v34, %v1964_v46 }
  0xe0   : > { %v2071_v36 = vsel %vm1988_vm1, %v1874_v24, %v2070_v8  ;;  %v2073_v41 = vsel %vm1988_vm1, %v1876_v25, %v2072_v26  ;;  %v1880_v61 = vpop.permute.xlu0 %1879  ;;  %v1882_v16 = vpop.permute.xlu1 %1881  ;;  %v2817_v25 = vrot.slane %v2789_v29, %v13215_v5  ;;  %v2841_v7 = vrot.slane %v2825_v38, %v13215_v5 }
  0xe1   : > { %2221 = vst [vmem:[#allocation2 + $0x148] sm:$0x22] %v2071_v36  ;;  %2222 = vst [vmem:[#allocation2 + $0x150] sm:$0x22] %v2073_v41  ;;  %v1965_v40 = vrot.slane %v1880_v61, 4  ;;  %v1966_v45 = vrot.slane %v1882_v16, 4  ;;  %v2833_v35 = vcombine.high %v2825_v38, %v2825_v38  ;;  %v3514_v8 = vcombine.low %v13828_v44, %v13828_v44 }
  0xe2   : > { %3087 = vrot.lane.b32.xlu0 %v2713_v55, %s13183_s16  ;;  %3089 = vrot.lane.b32.xlu1 %v13462_v59, %s13183_s16  ;;  %v3513_v26 = vrot.slane %v13804_v13, %v13215_v5 }
  0xe3   : > { %v2074_v3 = vsel %vm1986_vm0, %v1964_v46, %v1965_v40  ;;  %v2076_v48 = vsel %vm1986_vm0, %v1965_v40, %v1966_v45  ;;  %v2848_v52 = vrot.slane %v2833_v35, %v13215_v5  ;;  %v3522_v47 = vrot.slane %v3514_v8, %v13215_v5 }
  0xe4   : > { %v2075_v49 = vsel %vm1988_vm1, %v1878_v43, %v2074_v3  ;;  %v2077_v10 = vsel %vm1988_vm1, %v1880_v61, %v2076_v48  ;;  %v1884_v18 = vpop.permute.xlu0 %1883  ;;  %v1886_v32 = vpop.permute.xlu1 %1885  ;;  %v13836_v43 = vld [vmem:[%s13220_s14] sm:$0xff]  ;;  %v3515_v3 = vcombine.low %v3513_v26, %v3513_v26 }
  0xe5   : > { %2223 = vst [vmem:[#allocation2 + $0x158] sm:$0x22] %v2075_v49  ;;  %2224 = vst [vmem:[#allocation2 + $0x160] sm:$0x22] %v2077_v10  ;;  %v1967_v59 = vrot.slane %v1884_v18, 4  ;;  %v1968_v37 = vrot.slane %v1886_v32, 4  ;;  %v181_v55 = vrot.slane %v13836_v43, %v13215_v5 }
  0xe6   : > { %3091 = vrot.lane.b32.xlu0 %v2727_v27, %s13183_s16  ;;  %3093 = vrot.lane.b32.xlu1 %v2751_v23, %s13183_s16  ;;  %v3536_v53 = vrot.slane %v3515_v3, %v13215_v5 }
  0xe7   : > { %v2078_v54 = vsel %vm1986_vm0, %v1966_v45, %v1967_v59  ;;  %v2080_v60 = vsel %vm1986_vm0, %v1967_v59, %v1968_v37  ;;  %12513 = vst.sshfl [vmem:[#allocation2] sm:$0x5 pattern:$0x75316420] %v181_v55  ;;  %v189_v61 = vcombine.high %v181_v55, %v181_v55 }
  0xe8   : > { %v2079_v63 = vsel %vm1988_vm1, %v1882_v16, %v2078_v54  ;;  %v2081_v31 = vsel %vm1988_vm1, %v1884_v18, %v2080_v60  ;;  %v1888_v0 = vpop.permute.xlu0 %1887  ;;  %v1890_v56 = vpop.permute.xlu1 %1889  ;;  %v4736_v54 = vcombine.high %v3513_v26, %v3513_v26  ;;  %v4721_v60 = vcombine.high %v13804_v13, %v13804_v13 }
  0xe9   : > { %2225 = vst [vmem:[#allocation2 + $0x168] sm:$0x22] %v2079_v63  ;;  %2226 = vst [vmem:[#allocation2 + $0x170] sm:$0x22] %v2081_v31  ;;  %v1969_v12 = vrot.slane %v1888_v0, 4  ;;  %v1970_v2 = vrot.slane %v1890_v56, 4  ;;  %v13877_v13 = vrot.slane %v3513_v26, %v13215_v5 }
  0xea   : > { %3095 = vrot.lane.b32.xlu0 %v2758_v4, %s13183_s16  ;;  %3097 = vrot.lane.b32.xlu1 %v13477_v9, %s13183_s16  ;;  %12514 = vst.sshfl [vmem:[#allocation2 + $0x8] sm:$0x5 pattern:$0x75316420] %v189_v61  ;;  %v13862_v4 = vrot.slane %v13828_v44, %v13215_v5  ;;  %v13883_v22 = vrot.slane %v4721_v60, %v13215_v5 }
  0xeb   : > { %v2082_v51 = vsel %vm1986_vm0, %v1968_v37, %v1969_v12  ;;  %v2084_v1 = vsel %vm1986_vm0, %v1969_v12, %v1970_v2 }
  0xec   : > { %v2083_v6 = vsel %vm1988_vm1, %v1886_v32, %v2082_v51  ;;  %v2085_v15 = vsel %vm1988_vm1, %v1888_v0, %v2084_v1  ;;  %v1892_v28 = vpop.permute.xlu0 %1891  ;;  %v1894_v24 = vpop.permute.xlu1 %1893 }
  0xed   : > { %2227 = vst [vmem:[#allocation2 + $0x178] sm:$0x22] %v2083_v6  ;;  %2228 = vst [vmem:[#allocation2 + $0x180] sm:$0x22] %v2085_v15  ;;  %v1971_v9 = vrot.slane %v1892_v28, 4  ;;  %v1972_v17 = vrot.slane %v1894_v24, 4 }
  0xee   : > { %3099 = vrot.lane.b32.xlu0 %v2772_v30, %s13183_s16  ;;  %3101 = vrot.lane.b32.xlu1 %v2796_v39, %s13183_s16  ;;  %v13880_v39 = vrot.slane %v4736_v54, %v13215_v5 }
  0xef   : > { %v2086_v57 = vsel %vm1986_vm0, %v1970_v2, %v1971_v9  ;;  %v2088_v11 = vsel %vm1986_vm0, %v1971_v9, %v1972_v17  ;;  %v13895_v9 = vrot.slane %v13883_v22, %v13215_v5 }
  0xf0   : > { %v2087_v58 = vsel %vm1988_vm1, %v1890_v56, %v2086_v57  ;;  %v2089_v62 = vsel %vm1988_vm1, %v1892_v28, %v2088_v11  ;;  %v1896_v19 = vpop.permute.xlu0 %1895  ;;  %v1898_v20 = vpop.permute.xlu1 %1897  ;;  %v13902_v57 = vld [vmem:[%s13220_s14 + $0x8] sm:$0xff] }
  0xf1   : > { %2229 = vst [vmem:[#allocation2 + $0x188] sm:$0x22] %v2087_v58  ;;  %2230 = vst [vmem:[#allocation2 + $0x190] sm:$0x22] %v2089_v62  ;;  %v1973_v34 = vrot.slane %v1896_v19, 4  ;;  %v1974_v46 = vrot.slane %v1898_v20, 4  ;;  %v3544_v55 = vcombine.low %v13902_v57, %v13902_v57 }
  0xf2   : > { %3103 = vrot.lane.b32.xlu0 %v2803_v21, %s13183_s16  ;;  %3105 = vrot.lane.b32.xlu1 %v13501_v33, %s13183_s16 }
  0xf3   : > { %v2090_v36 = vsel %vm1986_vm0, %v1972_v17, %v1973_v34  ;;  %v2092_v41 = vsel %vm1986_vm0, %v1973_v34, %v1974_v46  ;;  %v5957_v17 = vcombine.low %v13883_v22, %v13883_v22  ;;  %v174_v34 = vcombine.high %v13836_v43, %v13836_v43 }
  0xf4   : > { %v2091_v16 = vsel %vm1988_vm1, %v1894_v24, %v2090_v36  ;;  %v2093_v40 = vsel %vm1988_vm1, %v1896_v19, %v2092_v41  ;;  %v1900_v45 = vpop.permute.xlu0 %1899  ;;  %v1902_v27 = vpop.permute.xlu1 %1901 }
  0xf5   : > { %2231 = vst [vmem:[#allocation2 + $0x198] sm:$0x22] %v2091_v16  ;;  %2232 = vst [vmem:[#allocation2 + $0x1a0] sm:$0x22] %v2093_v40  ;;  %v1975_v33 = vrot.slane %v1900_v45, 4  ;;  %v1976_v23 = vrot.slane %v1902_v27, 4  ;;  %v188_v43 = vrot.slane %v174_v34, %v13215_v5  ;;  %v13926_v40 = vrot.slane %v3544_v55, %v13215_v5 }
  0xf6   : > { %3107 = vrot.lane.b32.xlu0 %v2817_v25, %s13183_s16  ;;  %3109 = vrot.lane.b32.xlu1 %v2841_v7, %s13183_s16  ;;  %v7177_v7 = vcombine.high %v13828_v44, %v13828_v44 }
  0xf7   : > { %v2094_v48 = vsel %vm1986_vm0, %v1974_v46, %v1975_v33  ;;  %v2096_v49 = vsel %vm1986_vm0, %v1975_v33, %v1976_v23  ;;  %v5978_v46 = vrot.slane %v5957_v17, %v13215_v5  ;;  %12515 = vst.sshfl [vmem:[#allocation2 + $0x10] sm:$0x5 pattern:$0x75316420] %v188_v43 }
  0xf8   : > { %v2095_v10 = vsel %vm1988_vm1, %v1898_v20, %v2094_v48  ;;  %v2097_v18 = vsel %vm1988_vm1, %v1900_v45, %v2096_v49  ;;  %v1904_v32 = vpop.permute.xlu0 %1903  ;;  %v1906_v59 = vpop.permute.xlu1 %1905  ;;  %v7192_v44 = vrot.slane %v7177_v7, %v13215_v5  ;;  %v3559_v49 = vcombine.low %v13926_v40, %v13926_v40 }
  0xf9   : > { %2233 = vst [vmem:[#allocation2 + $0x1a8] sm:$0x22] %v2095_v10  ;;  %2234 = vst [vmem:[#allocation2 + $0x1b0] sm:$0x22] %v2097_v18  ;;  %v1977_v37 = vrot.slane %v1904_v32, 4  ;;  %v1978_v50 = vrot.slane %v1906_v59, 4  ;;  %v4737_v10 = vcombine.high %v13883_v22, %v13883_v22 }
  0xfa   : > { %3111 = vrot.lane.b32.xlu0 %v2848_v52, %s13183_s16  ;;  %4235 = vrot.lane.b32.xlu1 %v3522_v47, %s13184_s17  ;;  %v3567_v60 = vrot.slane %v3559_v49, %v13215_v5 }
  0xfb   : > { %v2098_v63 = vsel %vm1986_vm0, %v1976_v23, %v1977_v37  ;;  %v2100_v31 = vsel %vm1986_vm0, %v1977_v37, %v1978_v50 }
  0xfc   : > { %v2099_v0 = vsel %vm1988_vm1, %v1902_v27, %v2098_v63  ;;  %v2101_v56 = vsel %vm1988_vm1, %v1904_v32, %v2100_v31  ;;  %v1908_v12 = vpop.permute.xlu0 %1907  ;;  %v1910_v2 = vpop.permute.xlu1 %1909  ;;  %v190_v27 = vcombine.high %v188_v43, %v188_v43  ;;  %v4765_v63 = vrot.slane %v4737_v10, %v13215_v5 }
  0xfd   : > { %2235 = vst [vmem:[#allocation2 + $0x1b8] sm:$0x22] %v2099_v0  ;;  %2236 = vst [vmem:[#allocation2 + $0x1c0] sm:$0x22] %v2101_v56  ;;  %v1979_v30 = vrot.slane %v1908_v12, 4  ;;  %v1980_v14 = vrot.slane %v1910_v2, 4  ;;  %v13949_v31 = vrot.slane %v13902_v57, %v13215_v5 }
  0xfe   : > { %4237 = vrot.lane.b32.xlu0 %v13862_v4, %s13184_s17  ;;  %4239 = vrot.lane.b32.xlu1 %v3536_v53, %s13184_s17  ;;  %12516 = vst.sshfl [vmem:[#allocation2 + $0x18] sm:$0x5 pattern:$0x75316420] %v190_v27 }
  0xff   : > { %v2102_v42 = vsel %vm1986_vm0, %v1978_v50, %v1979_v30  ;;  %v2104_v51 = vsel %vm1986_vm0, %v1979_v30, %v1980_v14  ;;  %v4781_v43 = vcombine.high %v13949_v31, %v13949_v31 }
 0x100   : > { %v2103_v1 = vsel %vm1988_vm1, %v1906_v59, %v2102_v42  ;;  %v2105_v6 = vsel %vm1988_vm1, %v1908_v12, %v2104_v51  ;;  %v1912_v15 = vpop.permute.xlu0 %1911  ;;  %v1914_v28 = vpop.permute.xlu1 %1913  ;;  %v13959_v42 = vrot.slane %v13949_v31, %v13215_v5  ;;  %v6001_v51 = vcombine.low %v13949_v31, %v13949_v31 }
 0x101   : > { %2237 = vst [vmem:[#allocation2 + $0x1c8] sm:$0x22] %v2103_v1  ;;  %2238 = vst [vmem:[#allocation2 + $0x1d0] sm:$0x22] %v2105_v6  ;;  %v1981_v24 = vrot.slane %v1912_v15, 4  ;;  %v1982_v29 = vrot.slane %v1914_v28, 4 }
 0x102   : > { %5455 = vrot.lane.b32.xlu0 %v13877_v13, %s13185_s18  ;;  %5457 = vrot.lane.b32.xlu1 %v13880_v39, %s13185_s18  ;;  %v13964_v1 = vld [vmem:[%s13220_s14 + $0x8] sm:$0xff] }
 0x103   : > { %v2106_v38 = vsel %vm1986_vm0, %v1980_v14, %v1981_v24  ;;  %v2108_v21 = vsel %vm1986_vm0, %v1981_v24, %v1982_v29 }
 0x104   : > { %v2107_v11 = vsel %vm1988_vm1, %v1910_v2, %v2106_v38  ;;  %v2109_v58 = vsel %vm1988_vm1, %v1912_v15, %v2108_v21  ;;  %v1916_v62 = vpop.permute.xlu0 %1915  ;;  %v1918_v19 = vpop.permute.xlu1 %1917 }
 0x105   : > { %2239 = vst [vmem:[#allocation2 + $0x1d8] sm:$0x22] %v2107_v11  ;;  %2240 = vst [vmem:[#allocation2 + $0x1e0] sm:$0x22] %v2109_v58  ;;  %v1983_v20 = vrot.slane %v1916_v62, 4  ;;  %v1984_v25 = vrot.slane %v1918_v19, 4  ;;  %v6009_v58 = vrot.slane %v6001_v51, %v13215_v5 }
 0x106   : > { %5459 = vrot.lane.b32.xlu0 %v13895_v9, %s13185_s18  ;;  %6676 = vrot.lane.b32.xlu1 %v3536_v53, %s13186_s19 }
 0x107   : > { %v2110_v35 = vsel %vm1986_vm0, %v1982_v29, %v1983_v20  ;;  %v2112_v8 = vsel %vm1986_vm0, %v1983_v20, %v1984_v25 }
 0x108   : > { %v2111_v26 = vsel %vm1988_vm1, %v1914_v28, %v2110_v35  ;;  %v2113_v36 = vsel %vm1988_vm1, %v1916_v62, %v2112_v8  ;;  %v1920_v41 = vpop.permute.xlu0 %1919  ;;  %v3014_v61 = vpop.permute.xlu1 %3013  ;;  %v226_v28 = vrot.slane %v13964_v1, %v13215_v5  ;;  %v4766_v8 = vcombine.high %v13902_v57, %v13902_v57 }
 0x109   : > { %2241 = vst [vmem:[#allocation2 + $0x1e8] sm:$0x22] %v2111_v26  ;;  %2242 = vst [vmem:[#allocation2 + $0x1f0] sm:$0x22] %v2113_v36  ;;  %v1985_v16 = vrot.slane %v1920_v41, 4  ;;  %v3143_v47 = vrot.slane %v3014_v61, 4 }
 0x10a   : > { %6678 = vrot.lane.b32.xlu0 %v13877_v13, %s13186_s19  ;;  %6680 = vrot.lane.b32.xlu1 %v5978_v46, %s13186_s19  ;;  %12517 = vst.sshfl [vmem:[#allocation2 + $0x20] sm:$0x5 pattern:$0x75316420] %v226_v28  ;;  %v234_v20 = vcombine.high %v226_v28, %v226_v28  ;;  %v13188_v41 = vmov 0   ;;  %v13997_v27 = vrot.slane %v4766_v8, %v13215_v5 }
 0x10b   : > { %v2114_v45 = vsel %vm1986_vm0, %v1984_v25, %v1985_v16  ;;  %9411 = vmatprep.mubr.bf16.mxu0 %v13188_v41  ;;  %9452 = vmatprep.mubr.bf16.mxu1 %v13188_v41 }
 0x10c   : > { %v2115_v33 = vsel %vm1988_vm1, %v1918_v19, %v2114_v45  ;;  %v3016_v23 = vpop.permute.xlu0 %3015  ;;  %v3018_v52 = vpop.permute.xlu1 %3017  ;;  %12518 = vst.sshfl [vmem:[#allocation2 + $0x28] sm:$0x5 pattern:$0x75316420] %v234_v20 }
 0x10d   : > { %2243 = vst [vmem:[#allocation2 + $0x1f8] sm:$0x22] %v2115_v33  ;;  %v3144_v3 = vrot.slane %v3016_v23, 4  ;;  %v3145_v48 = vrot.slane %v3018_v52, 4  ;;  %v14002_v33 = vrot.slane %v4781_v43, %v13215_v5 }
 0x10e   : > { %7897 = vrot.lane.b32.xlu0 %v13862_v4, %s13187_s20  ;;  %7899 = vrot.lane.b32.xlu1 %v7192_v44, %s13187_s20 }
 0x10f   : > { %v3208_v18 = vsel %vm1986_vm0, %v3143_v47, %v3144_v3  ;;  %v3211_v32 = vsel %vm1986_vm0, %v3144_v3, %v3145_v48  ;;  %v14007_v47 = vld [vmem:[%s13220_s14 + $0x10] sm:$0xff] }
 0x110   : > { %v3210_v59 = vsel %vm3209_vm2, %v3014_v61, %v3208_v18  ;;  %v3212_v37 = vsel %vm3209_vm2, %v3016_v23, %v3211_v32  ;;  %v3020_v50 = vpop.permute.xlu0 %3019  ;;  %v3022_v53 = vpop.permute.xlu1 %3021 }
 0x111   : > { %3401 = vst [vmem:[#allocation2] sm:$0x44] %v3210_v59  ;;  %3402 = vst [vmem:[#allocation2 + $0x8] sm:$0x44] %v3212_v37  ;;  %v3146_v4 = vrot.slane %v3020_v50, 4  ;;  %v3147_v54 = vrot.slane %v3022_v53, 4  ;;  %v14013_v59 = vrot.slane %v13997_v27, %v13215_v5  ;;  %v219_v37 = vcombine.high %v13964_v1, %v13964_v1 }
 0x112   : > { %7901 = vrot.lane.b32.xlu0 %v13877_v13, %s13187_s20  ;;  %4241 = vrot.lane.b32.xlu1 %v13877_v13, %s13184_s17 }
 0x113   : > { %v3213_v0 = vsel %vm1986_vm0, %v3145_v48, %v3146_v4  ;;  %v3215_v56 = vsel %vm1986_vm0, %v3146_v4, %v3147_v54  ;;  %v3589_v4 = vcombine.low %v14007_v47, %v14007_v47 }
 0x114   : > { %v3214_v12 = vsel %vm3209_vm2, %v3018_v52, %v3213_v0  ;;  %v3216_v2 = vsel %vm3209_vm2, %v3020_v50, %v3215_v56  ;;  %v3024_v30 = vpop.permute.xlu0 %3023  ;;  %v3026_v14 = vpop.permute.xlu1 %3025  ;;  %v6002_v50 = vcombine.low %v13997_v27, %v13997_v27 }
 0x115   : > { %3403 = vst [vmem:[#allocation2 + $0x10] sm:$0x44] %v3214_v12  ;;  %3404 = vst [vmem:[#allocation2 + $0x18] sm:$0x44] %v3216_v2  ;;  %v3148_v13 = vrot.slane %v3024_v30, 4  ;;  %v3149_v22 = vrot.slane %v3026_v14, 4 }
 0x116   : > { %4243 = vrot.lane.b32.xlu0 %v3567_v60, %s13184_s17  ;;  %5461 = vrot.lane.b32.xlu1 %v4765_v63, %s13185_s18  ;;  %v233_v63 = vrot.slane %v219_v37, %v13215_v5 }
 0x117   : > { %v3217_v6 = vsel %vm1986_vm0, %v3147_v54, %v3148_v13  ;;  %v3219_v15 = vsel %vm1986_vm0, %v3148_v13, %v3149_v22  ;;  %v14038_v13 = vrot.slane %v3589_v4, %v13215_v5 }
 0x118   : > { %v3218_v24 = vsel %vm3209_vm2, %v3022_v53, %v3217_v6  ;;  %v3220_v29 = vsel %vm3209_vm2, %v3024_v30, %v3219_v15  ;;  %v3028_v17 = vpop.permute.xlu0 %3027  ;;  %v3030_v38 = vpop.permute.xlu1 %3029  ;;  %v7222_v53 = vcombine.high %v13926_v40, %v13926_v40  ;;  %12519 = vst.sshfl [vmem:[#allocation2 + $0x30] sm:$0x5 pattern:$0x75316420] %v233_v63  ;;  %v235_v1 = vcombine.high %v233_v63, %v233_v63 }
 0x119   : > { %3405 = vst [vmem:[#allocation2 + $0x20] sm:$0x44] %v3218_v24  ;;  %3406 = vst [vmem:[#allocation2 + $0x28] sm:$0x44] %v3220_v29  ;;  %v3150_v21 = vrot.slane %v3028_v17, 4  ;;  %v3151_v11 = vrot.slane %v3030_v38, 4 }
 0x11a   : > { %5463 = vrot.lane.b32.xlu0 %v13959_v42, %s13185_s18  ;;  %6682 = vrot.lane.b32.xlu1 %v13895_v9, %s13186_s19  ;;  %v7230_v9 = vrot.slane %v13926_v40, %v13215_v5  ;;  %v6023_v40 = vrot.slane %v6002_v50, %v13215_v5  ;;  %12520 = vst.sshfl [vmem:[#allocation2 + $0x38] sm:$0x5 pattern:$0x75316420] %v235_v1 }
 0x11b   : > { %v3221_v62 = vsel %vm1986_vm0, %v3149_v22, %v3150_v21  ;;  %v3223_v19 = vsel %vm1986_vm0, %v3150_v21, %v3151_v11  ;;  %v4782_v21 = vcombine.high %v13997_v27, %v13997_v27 }
 0x11c   : > { %v3222_v25 = vsel %vm3209_vm2, %v3026_v14, %v3221_v62  ;;  %v3224_v34 = vsel %vm3209_vm2, %v3028_v17, %v3223_v19  ;;  %v3032_v46 = vpop.permute.xlu0 %3031  ;;  %v3034_v7 = vpop.permute.xlu1 %3033  ;;  %v7237_v14 = vrot.slane %v7222_v53, %v13215_v5 }
 0x11d   : > { %3407 = vst [vmem:[#allocation2 + $0x30] sm:$0x44] %v3222_v25  ;;  %3408 = vst [vmem:[#allocation2 + $0x38] sm:$0x44] %v3224_v34  ;;  %v3152_v55 = vrot.slane %v3032_v46, 4  ;;  %v3153_v35 = vrot.slane %v3034_v7, 4 }
 0x11e   : > { %6684 = vrot.lane.b32.xlu0 %v6009_v58, %s13186_s19  ;;  %7903 = vrot.lane.b32.xlu1 %v13880_v39, %s13187_s20 }
 0x11f   : > { %v3225_v26 = vsel %vm1986_vm0, %v3151_v11, %v3152_v55  ;;  %v3227_v36 = vsel %vm1986_vm0, %v3152_v55, %v3153_v35  ;;  %v4810_v55 = vrot.slane %v4782_v21, %v13215_v5 }
 0x120   : > { %v3226_v57 = vsel %vm3209_vm2, %v3030_v38, %v3225_v26  ;;  %v3228_v61 = vsel %vm3209_vm2, %v3032_v46, %v3227_v36  ;;  %v3036_v16 = vpop.permute.xlu0 %3035  ;;  %v3038_v44 = vpop.permute.xlu1 %3037  ;;  %v3604_v38 = vcombine.low %v14038_v13, %v14038_v13 }
 0x121   : > { %3409 = vst [vmem:[#allocation2 + $0x40] sm:$0x44] %v3226_v57  ;;  %3410 = vst [vmem:[#allocation2 + $0x48] sm:$0x44] %v3228_v61  ;;  %v3154_v39 = vrot.slane %v3036_v16, 4  ;;  %v3155_v45 = vrot.slane %v3038_v44, 4 }
 0x122   : > { %7905 = vrot.lane.b32.xlu0 %v7230_v9, %s13187_s20  ;;  %4245 = vrot.lane.b32.xlu1 %v7230_v9, %s13184_s17 }
 0x123   : > { %v3229_v23 = vsel %vm1986_vm0, %v3153_v35, %v3154_v39  ;;  %v3231_v52 = vsel %vm1986_vm0, %v3154_v39, %v3155_v45  ;;  %v4818_v35 = vrot.slane %v14007_v47, %v13215_v5  ;;  %v14072_v39 = vld [vmem:[%s13220_s14 + $0x10] sm:$0xff] }
 0x124   : > { %v3230_v3 = vsel %vm3209_vm2, %v3034_v7, %v3229_v23  ;;  %v3232_v48 = vsel %vm3209_vm2, %v3036_v16, %v3231_v52  ;;  %v3040_v49 = vpop.permute.xlu0 %3039  ;;  %v3042_v10 = vpop.permute.xlu1 %3041  ;;  %v3612_v7 = vrot.slane %v3604_v38, %v13215_v5  ;;  %v271_v23 = vrot.slane %v14072_v39, %v13215_v5 }
 0x125   : > { %3411 = vst [vmem:[#allocation2 + $0x50] sm:$0x44] %v3230_v3  ;;  %3412 = vst [vmem:[#allocation2 + $0x58] sm:$0x44] %v3232_v48  ;;  %v3156_v18 = vrot.slane %v3040_v49, 4  ;;  %v3157_v32 = vrot.slane %v3042_v10, 4  ;;  %v14069_v16 = vrot.slane %v4818_v35, %v13215_v5 }
 0x126   : > { %4247 = vrot.lane.b32.xlu0 %v6009_v58, %s13184_s17  ;;  %5465 = vrot.lane.b32.xlu1 %v14002_v33, %s13185_s18  ;;  %12521 = vst.sshfl [vmem:[#allocation2 + $0x40] sm:$0x5 pattern:$0x75316420] %v271_v23  ;;  %v279_v53 = vcombine.high %v271_v23, %v271_v23 }
 0x127   : > { %v3233_v54 = vsel %vm1986_vm0, %v3155_v45, %v3156_v18  ;;  %v3235_v60 = vsel %vm1986_vm0, %v3156_v18, %v3157_v32 }
 0x128   : > { %v3234_v31 = vsel %vm3209_vm2, %v3038_v44, %v3233_v54  ;;  %v3236_v0 = vsel %vm3209_vm2, %v3040_v49, %v3235_v60  ;;  %v3044_v56 = vpop.permute.xlu0 %3043  ;;  %v3046_v12 = vpop.permute.xlu1 %3045  ;;  %v6046_v44 = vcombine.low %v4818_v35, %v4818_v35  ;;  %12522 = vst.sshfl [vmem:[#allocation2 + $0x48] sm:$0x5 pattern:$0x75316420] %v279_v53 }
 0x129   : > { %3413 = vst [vmem:[#allocation2 + $0x60] sm:$0x44] %v3234_v31  ;;  %3414 = vst [vmem:[#allocation2 + $0x68] sm:$0x44] %v3236_v0  ;;  %v3158_v2 = vrot.slane %v3044_v56, 4  ;;  %v3159_v30 = vrot.slane %v3046_v12, 4 }
 0x12a   : > { %5467 = vrot.lane.b32.xlu0 %v14013_v59, %s13185_s18  ;;  %6686 = vrot.lane.b32.xlu1 %v13959_v42, %s13186_s19 }
 0x12b   : > { %v3237_v22 = vsel %vm1986_vm0, %v3157_v32, %v3158_v2  ;;  %v3239_v51 = vsel %vm1986_vm0, %v3158_v2, %v3159_v30  ;;  %v6054_v32 = vrot.slane %v6046_v44, %v13215_v5 }
 0x12c   : > { %v3238_v6 = vsel %vm3209_vm2, %v3042_v10, %v3237_v22  ;;  %v3240_v15 = vsel %vm3209_vm2, %v3044_v56, %v3239_v51  ;;  %v3048_v28 = vpop.permute.xlu0 %3047  ;;  %v3050_v24 = vpop.permute.xlu1 %3049  ;;  %v4811_v56 = vcombine.high %v14007_v47, %v14007_v47 }
 0x12d   : > { %3415 = vst [vmem:[#allocation2 + $0x70] sm:$0x44] %v3238_v6  ;;  %3416 = vst [vmem:[#allocation2 + $0x78] sm:$0x44] %v3240_v15  ;;  %v3160_v29 = vrot.slane %v3048_v28, 4  ;;  %v3161_v17 = vrot.slane %v3050_v24, 4 }
 0x12e   : > { %6688 = vrot.lane.b32.xlu0 %v6023_v40, %s13186_s19  ;;  %7907 = vrot.lane.b32.xlu1 %v7237_v14, %s13187_s20  ;;  %v14101_v6 = vrot.slane %v4811_v56, %v13215_v5 }
 0x12f   : > { %v3241_v11 = vsel %vm1986_vm0, %v3159_v30, %v3160_v29  ;;  %v3243_v58 = vsel %vm1986_vm0, %v3160_v29, %v3161_v17 }
 0x130   : > { %v3242_v62 = vsel %vm3209_vm2, %v3046_v12, %v3241_v11  ;;  %v3244_v19 = vsel %vm3209_vm2, %v3048_v28, %v3243_v58  ;;  %v3052_v20 = vpop.permute.xlu0 %3051  ;;  %v3054_v25 = vpop.permute.xlu1 %3053  ;;  %v4826_v12 = vcombine.high %v4818_v35, %v4818_v35 }
 0x131   : > { %3417 = vst [vmem:[#allocation2 + $0x80] sm:$0x44] %v3242_v62  ;;  %3418 = vst [vmem:[#allocation2 + $0x88] sm:$0x44] %v3244_v19  ;;  %v3162_v34 = vrot.slane %v3052_v20, 4  ;;  %v3163_v46 = vrot.slane %v3054_v25, 4  ;;  %v14117_v62 = vrot.slane %v14101_v6, %v13215_v5  ;;  %v264_v19 = vcombine.high %v14072_v39, %v14072_v39 }
 0x132   : > { %7909 = vrot.lane.b32.xlu0 %v13959_v42, %s13187_s20  ;;  %4249 = vrot.lane.b32.xlu1 %v13959_v42, %s13184_s17 }
 0x133   : > { %v3245_v9 = vsel %vm1986_vm0, %v3161_v17, %v3162_v34  ;;  %v3247_v8 = vsel %vm1986_vm0, %v3162_v34, %v3163_v46 }
 0x134   : > { %v3246_v43 = vsel %vm3209_vm2, %v3050_v24, %v3245_v9  ;;  %v3248_v26 = vsel %vm3209_vm2, %v3052_v20, %v3247_v8  ;;  %v3056_v36 = vpop.permute.xlu0 %3055  ;;  %v3058_v57 = vpop.permute.xlu1 %3057  ;;  %v14111_v24 = vld [vmem:[%s13220_s14 + $0x18] sm:$0xff]  ;;  %v6047_v20 = vcombine.low %v14101_v6, %v14101_v6 }
 0x135   : > { %3419 = vst [vmem:[#allocation2 + $0x90] sm:$0x44] %v3246_v43  ;;  %3420 = vst [vmem:[#allocation2 + $0x98] sm:$0x44] %v3248_v26  ;;  %v3164_v42 = vrot.slane %v3056_v36, 4  ;;  %v3165_v61 = vrot.slane %v3058_v57, 4  ;;  %v3634_v34 = vcombine.low %v14111_v24, %v14111_v24 }
 0x136   : > { %4251 = vrot.lane.b32.xlu0 %v3612_v7, %s13184_s17  ;;  %5469 = vrot.lane.b32.xlu1 %v4810_v55, %s13185_s18  ;;  %v278_v55 = vrot.slane %v264_v19, %v13215_v5 }
 0x137   : > { %v3249_v45 = vsel %vm1986_vm0, %v3163_v46, %v3164_v42  ;;  %v3251_v27 = vsel %vm1986_vm0, %v3164_v42, %v3165_v61  ;;  %v14142_v42 = vrot.slane %v3634_v34, %v13215_v5 }
 0x138   : > { %v3250_v52 = vsel %vm3209_vm2, %v3054_v25, %v3249_v45  ;;  %v3252_v3 = vsel %vm3209_vm2, %v3056_v36, %v3251_v27  ;;  %v3060_v48 = vpop.permute.xlu0 %3059  ;;  %v3062_v49 = vpop.permute.xlu1 %3061  ;;  %v7267_v25 = vcombine.high %v14038_v13, %v14038_v13  ;;  %12523 = vst.sshfl [vmem:[#allocation2 + $0x50] sm:$0x5 pattern:$0x75316420] %v278_v55  ;;  %v280_v39 = vcombine.high %v278_v55, %v278_v55 }
 0x139   : > { %3421 = vst [vmem:[#allocation2 + $0xa0] sm:$0x44] %v3250_v52  ;;  %3422 = vst [vmem:[#allocation2 + $0xa8] sm:$0x44] %v3252_v3  ;;  %v3166_v10 = vrot.slane %v3060_v48, 4  ;;  %v3167_v18 = vrot.slane %v3062_v49, 4 }
 0x13a   : > { %5471 = vrot.lane.b32.xlu0 %v14069_v16, %s13185_s18  ;;  %6690 = vrot.lane.b32.xlu1 %v14013_v59, %s13186_s19  ;;  %v7275_v59 = vrot.slane %v14038_v13, %v13215_v5  ;;  %v6068_v13 = vrot.slane %v6047_v20, %v13215_v5  ;;  %12524 = vst.sshfl [vmem:[#allocation2 + $0x58] sm:$0x5 pattern:$0x75316420] %v280_v39 }
 0x13b   : > { %v3253_v37 = vsel %vm1986_vm0, %v3165_v61, %v3166_v10  ;;  %v3255_v50 = vsel %vm1986_vm0, %v3166_v10, %v3167_v18  ;;  %v4827_v10 = vcombine.high %v14101_v6, %v14101_v6 }
 0x13c   : > { %v3254_v4 = vsel %vm3209_vm2, %v3058_v57, %v3253_v37  ;;  %v3256_v54 = vsel %vm3209_vm2, %v3060_v48, %v3255_v50  ;;  %v3064_v60 = vpop.permute.xlu0 %3063  ;;  %v3066_v63 = vpop.permute.xlu1 %3065  ;;  %v7282_v57 = vrot.slane %v7267_v25, %v13215_v5 }
 0x13d   : > { %3423 = vst [vmem:[#allocation2 + $0xb0] sm:$0x44] %v3254_v4  ;;  %3424 = vst [vmem:[#allocation2 + $0xb8] sm:$0x44] %v3256_v54  ;;  %v3168_v31 = vrot.slane %v3064_v60, 4  ;;  %v3169_v0 = vrot.slane %v3066_v63, 4 }
 0x13e   : > { %6692 = vrot.lane.b32.xlu0 %v6054_v32, %s13186_s19  ;;  %7911 = vrot.lane.b32.xlu1 %v14002_v33, %s13187_s20  ;;  %v14106_v33 = vrot.slane %v4826_v12, %v13215_v5 }
 0x13f   : > { %v3257_v2 = vsel %vm1986_vm0, %v3167_v18, %v3168_v31  ;;  %v3259_v30 = vsel %vm1986_vm0, %v3168_v31, %v3169_v0  ;;  %v4855_v31 = vrot.slane %v4827_v10, %v13215_v5 }
 0x140   : > { %v3258_v40 = vsel %vm3209_vm2, %v3062_v49, %v3257_v2  ;;  %v3260_v14 = vsel %vm3209_vm2, %v3064_v60, %v3259_v30  ;;  %v3068_v22 = vpop.permute.xlu0 %3067  ;;  %v3070_v51 = vpop.permute.xlu1 %3069  ;;  %v3649_v49 = vcombine.low %v14142_v42, %v14142_v42 }
 0x141   : > { %3425 = vst [vmem:[#allocation2 + $0xc0] sm:$0x44] %v3258_v40  ;;  %3426 = vst [vmem:[#allocation2 + $0xc8] sm:$0x44] %v3260_v14  ;;  %v3170_v47 = vrot.slane %v3068_v22, 4  ;;  %v3171_v1 = vrot.slane %v3070_v51, 4 }
 0x142   : > { %7913 = vrot.lane.b32.xlu0 %v7275_v59, %s13187_s20  ;;  %4253 = vrot.lane.b32.xlu1 %v7275_v59, %s13184_s17 }
 0x143   : > { %v3261_v15 = vsel %vm1986_vm0, %v3169_v0, %v3170_v47  ;;  %v3263_v28 = vsel %vm1986_vm0, %v3170_v47, %v3171_v1  ;;  %v4863_v0 = vrot.slane %v14111_v24, %v13215_v5  ;;  %v14176_v47 = vld [vmem:[%s13220_s14 + $0x18] sm:$0xff] }
 0x144   : > { %v3262_v29 = vsel %vm3209_vm2, %v3066_v63, %v3261_v15  ;;  %v3264_v17 = vsel %vm3209_vm2, %v3068_v22, %v3263_v28  ;;  %v3072_v38 = vpop.permute.xlu0 %3071  ;;  %v3074_v21 = vpop.permute.xlu1 %3073  ;;  %v3657_v63 = vrot.slane %v3649_v49, %v13215_v5  ;;  %v316_v15 = vrot.slane %v14176_v47, %v13215_v5 }
 0x145   : > { %3427 = vst [vmem:[#allocation2 + $0xd0] sm:$0x44] %v3262_v29  ;;  %3428 = vst [vmem:[#allocation2 + $0xd8] sm:$0x44] %v3264_v17  ;;  %v3172_v11 = vrot.slane %v3072_v38, 4  ;;  %v3173_v58 = vrot.slane %v3074_v21, 4  ;;  %v14173_v22 = vrot.slane %v4863_v0, %v13215_v5 }
 0x146   : > { %4255 = vrot.lane.b32.xlu0 %v6054_v32, %s13184_s17  ;;  %5473 = vrot.lane.b32.xlu1 %v14106_v33, %s13185_s18  ;;  %12525 = vst.sshfl [vmem:[#allocation2 + $0x60] sm:$0x5 pattern:$0x75316420] %v316_v15  ;;  %v324_v25 = vcombine.high %v316_v15, %v316_v15 }
 0x147   : > { %v3265_v46 = vsel %vm1986_vm0, %v3171_v1, %v3172_v11  ;;  %v3267_v7 = vsel %vm1986_vm0, %v3172_v11, %v3173_v58 }
 0x148   : > { %v3266_v35 = vsel %vm3209_vm2, %v3070_v51, %v3265_v46  ;;  %v3268_v9 = vsel %vm3209_vm2, %v3072_v38, %v3267_v7  ;;  %v3076_v8 = vpop.permute.xlu0 %3075  ;;  %v3078_v43 = vpop.permute.xlu1 %3077  ;;  %v6091_v51 = vcombine.low %v4863_v0, %v4863_v0  ;;  %12526 = vst.sshfl [vmem:[#allocation2 + $0x68] sm:$0x5 pattern:$0x75316420] %v324_v25 }
 0x149   : > { %3429 = vst [vmem:[#allocation2 + $0xe0] sm:$0x44] %v3266_v35  ;;  %3430 = vst [vmem:[#allocation2 + $0xe8] sm:$0x44] %v3268_v9  ;;  %v3174_v26 = vrot.slane %v3076_v8, 4  ;;  %v3175_v36 = vrot.slane %v3078_v43, 4 }
 0x14a   : > { %5475 = vrot.lane.b32.xlu0 %v14117_v62, %s13185_s18  ;;  %6694 = vrot.lane.b32.xlu1 %v14069_v16, %s13186_s19 }
 0x14b   : > { %v3269_v61 = vsel %vm1986_vm0, %v3173_v58, %v3174_v26  ;;  %v3271_v44 = vsel %vm1986_vm0, %v3174_v26, %v3175_v36  ;;  %v6099_v58 = vrot.slane %v6091_v51, %v13215_v5 }
 0x14c   : > { %v3270_v45 = vsel %vm3209_vm2, %v3074_v21, %v3269_v61  ;;  %v3272_v27 = vsel %vm3209_vm2, %v3076_v8, %v3271_v44  ;;  %v3080_v23 = vpop.permute.xlu0 %3079  ;;  %v3082_v52 = vpop.permute.xlu1 %3081  ;;  %v4856_v8 = vcombine.high %v14111_v24, %v14111_v24 }
 0x14d   : > { %3431 = vst [vmem:[#allocation2 + $0xf0] sm:$0x44] %v3270_v45  ;;  %3432 = vst [vmem:[#allocation2 + $0xf8] sm:$0x44] %v3272_v27  ;;  %v3176_v3 = vrot.slane %v3080_v23, 4  ;;  %v3177_v48 = vrot.slane %v3082_v52, 4 }
 0x14e   : > { %6696 = vrot.lane.b32.xlu0 %v6068_v13, %s13186_s19  ;;  %7915 = vrot.lane.b32.xlu1 %v7282_v57, %s13187_s20  ;;  %v14205_v45 = vrot.slane %v4856_v8, %v13215_v5 }
 0x14f   : > { %v3273_v18 = vsel %vm1986_vm0, %v3175_v36, %v3176_v3  ;;  %v3275_v32 = vsel %vm1986_vm0, %v3176_v3, %v3177_v48 }
 0x150   : > { %v3274_v37 = vsel %vm3209_vm2, %v3078_v43, %v3273_v18  ;;  %v3276_v50 = vsel %vm3209_vm2, %v3080_v23, %v3275_v32  ;;  %v3084_v53 = vpop.permute.xlu0 %3083  ;;  %v3086_v4 = vpop.permute.xlu1 %3085  ;;  %v4871_v43 = vcombine.high %v4863_v0, %v4863_v0 }
 0x151   : > { %3433 = vst [vmem:[#allocation2 + $0x100] sm:$0x44] %v3274_v37  ;;  %3434 = vst [vmem:[#allocation2 + $0x108] sm:$0x44] %v3276_v50  ;;  %v3178_v54 = vrot.slane %v3084_v53, 4  ;;  %v3179_v60 = vrot.slane %v3086_v4, 4  ;;  %v14221_v37 = vrot.slane %v14205_v45, %v13215_v5  ;;  %v309_v50 = vcombine.high %v14176_v47, %v14176_v47 }
 0x152   : > { %7917 = vrot.lane.b32.xlu0 %v14069_v16, %s13187_s20  ;;  %4257 = vrot.lane.b32.xlu1 %v14069_v16, %s13184_s17 }
 0x153   : > { %v3277_v59 = vsel %vm1986_vm0, %v3177_v48, %v3178_v54  ;;  %v3279_v56 = vsel %vm1986_vm0, %v3178_v54, %v3179_v60 }
 0x154   : > { %v3278_v12 = vsel %vm3209_vm2, %v3082_v52, %v3277_v59  ;;  %v3280_v2 = vsel %vm3209_vm2, %v3084_v53, %v3279_v56  ;;  %v3088_v30 = vpop.permute.xlu0 %3087  ;;  %v3090_v40 = vpop.permute.xlu1 %3089  ;;  %v14215_v52 = vld [vmem:[%s13220_s14 + $0x20] sm:$0xff]  ;;  %v6092_v53 = vcombine.low %v14205_v45, %v14205_v45 }
 0x155   : > { %3435 = vst [vmem:[#allocation2 + $0x110] sm:$0x44] %v3278_v12  ;;  %3436 = vst [vmem:[#allocation2 + $0x118] sm:$0x44] %v3280_v2  ;;  %v3180_v16 = vrot.slane %v3088_v30, 4  ;;  %v3181_v14 = vrot.slane %v3090_v40, 4  ;;  %v3679_v54 = vcombine.low %v14215_v52, %v14215_v52 }
 0x156   : > { %4259 = vrot.lane.b32.xlu0 %v3657_v63, %s13184_s17  ;;  %5477 = vrot.lane.b32.xlu1 %v4855_v31, %s13185_s18  ;;  %v323_v31 = vrot.slane %v309_v50, %v13215_v5 }
 0x157   : > { %v3281_v1 = vsel %vm1986_vm0, %v3179_v60, %v3180_v16  ;;  %v3283_v6 = vsel %vm1986_vm0, %v3180_v16, %v3181_v14  ;;  %v14246_v16 = vrot.slane %v3679_v54, %v13215_v5  ;;  %v4901_v54 = vcombine.high %v14215_v52, %v14215_v52 }
 0x158   : > { %v3282_v28 = vsel %vm3209_vm2, %v3086_v4, %v3281_v1  ;;  %v3284_v29 = vsel %vm3209_vm2, %v3088_v30, %v3283_v6  ;;  %v3092_v17 = vpop.permute.xlu0 %3091  ;;  %v3094_v38 = vpop.permute.xlu1 %3093  ;;  %v7312_v4 = vcombine.high %v14142_v42, %v14142_v42  ;;  %12527 = vst.sshfl [vmem:[#allocation2 + $0x70] sm:$0x5 pattern:$0x75316420] %v323_v31  ;;  %v325_v47 = vcombine.high %v323_v31, %v323_v31 }
 0x159   : > { %3437 = vst [vmem:[#allocation2 + $0x120] sm:$0x44] %v3282_v28  ;;  %3438 = vst [vmem:[#allocation2 + $0x128] sm:$0x44] %v3284_v29  ;;  %v3182_v21 = vrot.slane %v3092_v17, 4  ;;  %v3183_v11 = vrot.slane %v3094_v38, 4  ;;  %v7365_v50 = vrot.slane %v14246_v16, %v13215_v5 }
 0x15a   : > { %5479 = vrot.lane.b32.xlu0 %v14173_v22, %s13185_s18  ;;  %6698 = vrot.lane.b32.xlu1 %v14117_v62, %s13186_s19  ;;  %v7320_v62 = vrot.slane %v14142_v42, %v13215_v5  ;;  %v6113_v42 = vrot.slane %v6092_v53, %v13215_v5  ;;  %12528 = vst.sshfl [vmem:[#allocation2 + $0x78] sm:$0x5 pattern:$0x75316420] %v325_v47 }
 0x15b   : > { %v3285_v19 = vsel %vm1986_vm0, %v3181_v14, %v3182_v21  ;;  %v3287_v20 = vsel %vm1986_vm0, %v3182_v21, %v3183_v11 }
 0x15c   : > { %v3286_v34 = vsel %vm3209_vm2, %v3090_v40, %v3285_v19  ;;  %v3288_v46 = vsel %vm3209_vm2, %v3092_v17, %v3287_v20  ;;  %v3096_v7 = vpop.permute.xlu0 %3095  ;;  %v3098_v55 = vpop.permute.xlu1 %3097  ;;  %v7327_v40 = vrot.slane %v7312_v4, %v13215_v5  ;;  %v3694_v17 = vcombine.low %v14246_v16, %v14246_v16 }
 0x15d   : > { %3439 = vst [vmem:[#allocation2 + $0x130] sm:$0x44] %v3286_v34  ;;  %3440 = vst [vmem:[#allocation2 + $0x138] sm:$0x44] %v3288_v46  ;;  %v3184_v35 = vrot.slane %v3096_v7, 4  ;;  %v3185_v9 = vrot.slane %v3098_v55, 4 }
 0x15e   : > { %6700 = vrot.lane.b32.xlu0 %v6099_v58, %s13186_s19  ;;  %7919 = vrot.lane.b32.xlu1 %v14106_v33, %s13187_s20  ;;  %v14210_v33 = vrot.slane %v4871_v43, %v13215_v5  ;;  %v3702_v46 = vrot.slane %v3694_v17, %v13215_v5 }
 0x15f   : > { %v3289_v26 = vsel %vm1986_vm0, %v3183_v11, %v3184_v35  ;;  %v3291_v36 = vsel %vm1986_vm0, %v3184_v35, %v3185_v9 }
 0x160   : > { %v3290_v13 = vsel %vm3209_vm2, %v3094_v38, %v3289_v26  ;;  %v3292_v57 = vsel %vm3209_vm2, %v3096_v7, %v3291_v36  ;;  %v3100_v61 = vpop.permute.xlu0 %3099  ;;  %v3102_v44 = vpop.permute.xlu1 %3101  ;;  %v4872_v38 = vcombine.high %v14205_v45, %v14205_v45 }
 0x161   : > { %3441 = vst [vmem:[#allocation2 + $0x140] sm:$0x44] %v3290_v13  ;;  %3442 = vst [vmem:[#allocation2 + $0x148] sm:$0x44] %v3292_v57  ;;  %v3186_v24 = vrot.slane %v3100_v61, 4  ;;  %v3187_v39 = vrot.slane %v3102_v44, 4 }
 0x162   : > { %7921 = vrot.lane.b32.xlu0 %v7320_v62, %s13187_s20  ;;  %4261 = vrot.lane.b32.xlu1 %v7320_v62, %s13184_s17  ;;  %v4900_v7 = vrot.slane %v4872_v38, %v13215_v5 }
 0x163   : > { %v3293_v27 = vsel %vm1986_vm0, %v3185_v9, %v3186_v24  ;;  %v3295_v23 = vsel %vm1986_vm0, %v3186_v24, %v3187_v39 }
 0x164   : > { %v3294_v3 = vsel %vm3209_vm2, %v3098_v55, %v3293_v27  ;;  %v3296_v48 = vsel %vm3209_vm2, %v3100_v61, %v3295_v23  ;;  %v3104_v49 = vpop.permute.xlu0 %3103  ;;  %v3106_v10 = vpop.permute.xlu1 %3105  ;;  %v4908_v55 = vrot.slane %v14215_v52, %v13215_v5  ;;  %v146_v61 = vld [vmem:[%s13220_s14 + $0x20] sm:$0xff] }
 0x165   : > { %3443 = vst [vmem:[#allocation2 + $0x150] sm:$0x44] %v3294_v3  ;;  %3444 = vst [vmem:[#allocation2 + $0x158] sm:$0x44] %v3296_v48  ;;  %v3188_v18 = vrot.slane %v3104_v49, 4  ;;  %v3189_v32 = vrot.slane %v3106_v10, 4  ;;  %v361_v24 = vrot.slane %v146_v61, %v13215_v5  ;;  %v354_v17 = vcombine.high %v146_v61, %v146_v61 }
 0x166   : > { %4263 = vrot.lane.b32.xlu0 %v6099_v58, %s13184_s17  ;;  %5481 = vrot.lane.b32.xlu1 %v14210_v33, %s13185_s18  ;;  %v14285_v13 = vrot.slane %v4908_v55, %v13215_v5  ;;  %v6136_v57 = vcombine.low %v4908_v55, %v4908_v55 }
 0x167   : > { %v3297_v60 = vsel %vm1986_vm0, %v3187_v39, %v3188_v18  ;;  %v3299_v63 = vsel %vm1986_vm0, %v3188_v18, %v3189_v32  ;;  %12529 = vst.sshfl [vmem:[#allocation2 + $0x80] sm:$0x5 pattern:$0x75316420] %v361_v24 }
 0x168   : > { %v3298_v0 = vsel %vm3209_vm2, %v3102_v44, %v3297_v60  ;;  %v3300_v59 = vsel %vm3209_vm2, %v3104_v49, %v3299_v63  ;;  %v3108_v56 = vpop.permute.xlu0 %3107  ;;  %v3110_v12 = vpop.permute.xlu1 %3109  ;;  %v6144_v3 = vrot.slane %v6136_v57, %v13215_v5  ;;  %v369_v49 = vcombine.high %v361_v24, %v361_v24 }
 0x169   : > { %3445 = vst [vmem:[#allocation2 + $0x160] sm:$0x44] %v3298_v0  ;;  %3446 = vst [vmem:[#allocation2 + $0x168] sm:$0x44] %v3300_v59  ;;  %v3190_v2 = vrot.slane %v3108_v56, 4  ;;  %v3191_v30 = vrot.slane %v3110_v12, 4  ;;  %v4916_v60 = vcombine.high %v4908_v55, %v4908_v55 }
 0x16a   : > { %5483 = vrot.lane.b32.xlu0 %v14221_v37, %s13185_s18  ;;  %6702 = vrot.lane.b32.xlu1 %v14173_v22, %s13186_s19  ;;  %12530 = vst.sshfl [vmem:[#allocation2 + $0x88] sm:$0x5 pattern:$0x75316420] %v369_v49 }
 0x16b   : > { %v3301_v14 = vsel %vm1986_vm0, %v3189_v32, %v3190_v2  ;;  %v3303_v51 = vsel %vm1986_vm0, %v3190_v2, %v3191_v30 }
 0x16c   : > { %v3302_v1 = vsel %vm3209_vm2, %v3106_v10, %v3301_v14  ;;  %v3304_v6 = vsel %vm3209_vm2, %v3108_v56, %v3303_v51  ;;  %v14252_v15 = vpop.permute.xlu0 %3111  ;;  %v4236_v28 = vpop.permute.xlu1 %4235 }
 0x16d   : > { %3447 = vst [vmem:[#allocation2 + $0x170] sm:$0x44] %v3302_v1  ;;  %3448 = vst [vmem:[#allocation2 + $0x178] sm:$0x44] %v3304_v6  ;;  %v3192_v29 = vrot.slane %v14252_v15, 4  ;;  %v4365_v20 = vrot.slane %v4236_v28, 4 }
 0x16e   : > { %6704 = vrot.lane.b32.xlu0 %v6113_v42, %s13186_s19  ;;  %7923 = vrot.lane.b32.xlu1 %v7327_v40, %s13187_s20  ;;  %v14329_v40 = vld [vmem:[%s13220_s14 + $0x28] sm:$0xff] }
 0x16f   : > { %v3305_v21 = vsel %vm1986_vm0, %v3191_v30, %v3192_v29  ;;  %v14325_v30 = vrot.slane %v4916_v60, %v13215_v5 }
 0x170   : > { %v3306_v11 = vsel %vm3209_vm2, %v3110_v12, %v3305_v21  ;;  %v4238_v58 = vpop.permute.xlu0 %4237  ;;  %v14265_v19 = vpop.permute.xlu1 %4239  ;;  %v7357_v21 = vcombine.high %v14246_v16, %v14246_v16 }
 0x171   : > { %3449 = vst [vmem:[#allocation2 + $0x180] sm:$0x44] %v3306_v11  ;;  %v4366_v25 = vrot.slane %v4238_v58, 4  ;;  %v4367_v34 = vrot.slane %v14265_v19, 4  ;;  %v3724_v11 = vcombine.low %v14329_v40, %v14329_v40 }
 0x172   : > { %7925 = vrot.lane.b32.xlu0 %v14173_v22, %s13187_s20  ;;  %4265 = vrot.lane.b32.xlu1 %v14173_v22, %s13184_s17 }
 0x173   : > { %v4430_v35 = vsel %vm1986_vm0, %v4365_v20, %v4366_v25  ;;  %v4433_v9 = vsel %vm1986_vm0, %v4366_v25, %v4367_v34  ;;  %v368_v25 = vrot.slane %v354_v17, %v13215_v5 }
 0x174   : > { %v4432_v62 = vsel %vm4431_vm3, %v4236_v28, %v4430_v35  ;;  %v4434_v8 = vsel %vm4431_vm3, %v4238_v58, %v4433_v9  ;;  %v5456_v43 = vpop.permute.xlu0 %5455  ;;  %v5458_v22 = vpop.permute.xlu1 %5457 }
 0x175   : > { %4623 = vst [vmem:[#allocation2] sm:$0x88] %v4432_v62  ;;  %4624 = vst [vmem:[#allocation2 + $0x8] sm:$0x88] %v4434_v8  ;;  %v5585_v26 = vrot.slane %v5456_v43, 4  ;;  %v5586_v36 = vrot.slane %v5458_v22, 4  ;;  %v7372_v62 = vrot.slane %v7357_v21, %v13215_v5 }
 0x176   : > { %4267 = vrot.lane.b32.xlu0 %v3702_v46, %s13184_s17  ;;  %5485 = vrot.lane.b32.xlu1 %v4900_v7, %s13185_s18  ;;  %12531 = vst.sshfl [vmem:[#allocation2 + $0x90] sm:$0x5 pattern:$0x75316420] %v368_v25  ;;  %v14443_v21 = vld [vmem:[%s13220_s14 + $0x28] sm:$0xff] }
 0x177   : > { %v5650_v44 = vsel %vm1986_vm0, %v5585_v26, %v5586_v36 }
 0x178   : > { %v5652_v39 = vsel %vm5651_vm4, %v5456_v43, %v5650_v44  ;;  %v14291_v45 = vpop.permute.xlu0 %5459  ;;  %v6677_v27 = vpop.permute.xlu1 %6676 }
 0x179   : > { %5843 = vst [vmem:[#allocation2 + $0x200] sm:$0x11] %v5652_v39  ;;  %v5587_v23 = vrot.slane %v14291_v45, 4  ;;  %v6806_v53 = vrot.slane %v6677_v27, 4 }
 0x17a   : > { %5487 = vrot.lane.b32.xlu0 %v14285_v13, %s13185_s18  ;;  %6706 = vrot.lane.b32.xlu1 %v14221_v37, %s13186_s19 }
 0x17b   : > { %v5653_v48 = vsel %vm1986_vm0, %v5586_v36, %v5587_v23 }
 0x17c   : > { %v5654_v10 = vsel %vm5651_vm4, %v5458_v22, %v5653_v48  ;;  %v6679_v18 = vpop.permute.xlu0 %6678  ;;  %v14303_v32 = vpop.permute.xlu1 %6680  ;;  %v370_v22 = vcombine.high %v368_v25, %v368_v25  ;;  %v8350_v44 = vld [vmem:[#allocation2] sm:$0xff]  ;;  %v8351_v60 = vld [vmem:[#allocation2 + $0x8] sm:$0xff] }
 0x17d   : > { %5844 = vst [vmem:[#allocation2 + $0x208] sm:$0x11] %v5654_v10  ;;  %v6807_v4 = vrot.slane %v6679_v18, 4  ;;  %v6808_v37 = vrot.slane %v14303_v32, 4 }
 0x17e   : > { %6708 = vrot.lane.b32.xlu0 %v6144_v3, %s13186_s19  ;;  %7927 = vrot.lane.b32.xlu1 %v14210_v33, %s13187_s20  ;;  %v14320_v33 = vrot.slane %v4901_v54, %v13215_v5  ;;  %12532 = vst.sshfl [vmem:[#allocation2 + $0x98] sm:$0x5 pattern:$0x75316420] %v370_v22 }
 0x17f   : > { %v6871_v63 = vsel %vm1986_vm0, %v6806_v53, %v6807_v4  ;;  %v6874_v31 = vsel %vm1986_vm0, %v6807_v4, %v6808_v37 }
 0x180   : > { %v6873_v0 = vsel %vm6872_vm5, %v6677_v27, %v6871_v63  ;;  %v6875_v59 = vsel %vm6872_vm5, %v6679_v18, %v6874_v31  ;;  %v7898_v56 = vpop.permute.xlu0 %7897  ;;  %v7900_v52 = vpop.permute.xlu1 %7899  ;;  %v14337_v28 = vrot.slane %v14320_v33, %v13215_v5  ;;  %v6137_v38 = vcombine.low %v14320_v33, %v14320_v33  ;;  %v14404_v31 = vld [vmem:[%s17299_s1] sm:$0x3] }
 0x181   : > { %7064 = vst [vmem:[#allocation2 + $0x200] sm:$0x22] %v6873_v0  ;;  %7065 = vst [vmem:[#allocation2 + $0x208] sm:$0x22] %v6875_v59  ;;  %v8027_v12 = vrot.slane %v7898_v56, 4  ;;  %v8028_v2 = vrot.slane %v7900_v52, 4 }
 0x182   : > { %7929 = vrot.lane.b32.xlu0 %v7365_v50, %s13187_s20  ;;  %4269 = vrot.lane.b32.xlu1 %v7365_v50, %s13184_s17 }
 0x183   : > { %v8092_v42 = vsel %vm1986_vm0, %v8027_v12, %v8028_v2  ;;  %v14415_v12 = vrot.slane %v14329_v40, %v13215_v5 }
 0x184   : > { %v8094_v14 = vsel %vm8093_vm6, %v7898_v56, %v8092_v42  ;;  %v14332_v51 = vpop.permute.xlu0 %7901  ;;  %v4242_v47 = vpop.permute.xlu1 %4241 }
 0x185   : > { %8285 = vst [vmem:[#allocation2 + $0x200] sm:$0x44] %v8094_v14  ;;  %v8029_v1 = vrot.slane %v14332_v51, 4  ;;  %v4368_v6 = vrot.slane %v4242_v47, 4 }
 0x186   : > { %4271 = vrot.lane.b32.xlu0 %v6144_v3, %s13184_s17  ;;  %5489 = vrot.lane.b32.xlu1 %v14325_v30, %s13185_s18 }
 0x187   : > { %v8095_v58 = vsel %vm1986_vm0, %v8028_v2, %v8029_v1  ;;  %v4435_v20 = vsel %vm1986_vm0, %v4367_v34, %v4368_v6  ;;  %v6158_v34 = vrot.slane %v6137_v38, %v13215_v5  ;;  %v14438_v38 = vrot.slane %v14415_v12, %v13215_v5 }
 0x188   : > { %v8096_v46 = vsel %vm8093_vm6, %v7900_v52, %v8095_v58  ;;  %v4436_v7 = vsel %vm4431_vm3, %v14265_v19, %v4435_v20  ;;  %v14358_v55 = vpop.permute.xlu0 %4243  ;;  %v5462_v16 = vpop.permute.xlu1 %5461  ;;  %v14368_v19 = vrot.slane %v3724_v11, %v13215_v5  ;;  %v406_v20 = vrot.slane %v14443_v21, %v13215_v5 }
 0x189   : > { %8286 = vst [vmem:[#allocation2 + $0x208] sm:$0x44] %v8096_v46  ;;  %4625 = vst [vmem:[#allocation2 + $0x10] sm:$0x88] %v4436_v7  ;;  %v4369_v35 = vrot.slane %v14358_v55, 4  ;;  %v5588_v9 = vrot.slane %v5462_v16, 4 }
 0x18a   : > { %5491 = vrot.lane.b32.xlu0 %v14337_v28, %s13185_s18  ;;  %6710 = vrot.lane.b32.xlu1 %v14285_v13, %s13186_s19  ;;  %12533 = vst.sshfl [vmem:[#allocation2 + $0xa0] sm:$0x5 pattern:$0x75316420] %v406_v20 }
 0x18b   : > { %v4437_v8 = vsel %vm1986_vm0, %v4368_v6, %v4369_v35  ;;  %v5655_v43 = vsel %vm1986_vm0, %v5587_v23, %v5588_v9  ;;  %v4917_v23 = vcombine.high %v14320_v33, %v14320_v33 }
 0x18c   : > { %v4438_v26 = vsel %vm4431_vm3, %v4242_v47, %v4437_v8  ;;  %v5656_v36 = vsel %vm5651_vm4, %v14291_v45, %v5655_v43  ;;  %v14379_v57 = vpop.permute.xlu0 %5463  ;;  %v6683_v61 = vpop.permute.xlu1 %6682  ;;  %v8414_v24 = vld [vmem:[#allocation2 + $0x200] sm:$0x77]  ;;  %v3739_v45 = vcombine.low %v14368_v19, %v14368_v19  ;;  %v414_v8 = vcombine.high %v406_v20, %v406_v20 }
 0x18d   : > { %4626 = vst [vmem:[#allocation2 + $0x18] sm:$0x88] %v4438_v26  ;;  %5845 = vst [vmem:[#allocation2 + $0x210] sm:$0x11] %v5656_v36  ;;  %v5589_v39 = vrot.slane %v14379_v57, 4  ;;  %v6809_v27 = vrot.slane %v6683_v61, 4  ;;  %v12581_v3 = vcombine.high %v8350_v44, %v8414_v24  ;;  %v12580_v48 = vcombine.low %v8350_v44, %v8414_v24 }
 0x18e   : > { %6712 = vrot.lane.b32.xlu0 %v6158_v34, %s13186_s19  ;;  %7931 = vrot.lane.b32.xlu1 %v7372_v62, %s13187_s20  ;;  %v4945_v52 = vrot.slane %v4917_v23, %v13215_v5  ;;  %v7410_v44 = vrot.slane %v14368_v19, %v13215_v5  ;;  %v4946_v24 = vcombine.high %v14329_v40, %v14329_v40 }
 0x18f   : > { %v5657_v49 = vsel %vm1986_vm0, %v5588_v9, %v5589_v39  ;;  %v6876_v10 = vsel %vm1986_vm0, %v6808_v37, %v6809_v27  ;;  %12708 = vmatprep.subr.msk.bf16.mxu0 %vm8994_vm7, %v12581_v3  ;;  %v8996_v18 = vsel %vm8994_vm7, %v12580_v48, 0  ;;  %12534 = vst.sshfl [vmem:[#allocation2 + $0xa8] sm:$0x5 pattern:$0x75316420] %v414_v8 }
 0x190   : > { %v5658_v50 = vsel %vm5651_vm4, %v5462_v16, %v5657_v49  ;;  %v6877_v53 = vsel %vm6872_vm5, %v14303_v32, %v6876_v10  ;;  %v14399_v4 = vpop.permute.xlu0 %6684  ;;  %v7904_v54 = vpop.permute.xlu1 %7903  ;;  %9380 = vmatpush1.bf16.msra.mxu0 %v8996_v18  ;;  %v8415_v63 = vld [vmem:[#allocation2 + $0x208] sm:$0x77]  ;;  %v3747_v32 = vrot.slane %v3739_v45, %v13215_v5 }
 0x191   : > { %5846 = vst [vmem:[#allocation2 + $0x218] sm:$0x11] %v5658_v50  ;;  %7066 = vst [vmem:[#allocation2 + $0x210] sm:$0x22] %v6877_v53  ;;  %v6810_v37 = vrot.slane %v14399_v4, 4  ;;  %v8030_v0 = vrot.slane %v7904_v54, 4  ;;  %v12583_v59 = vcombine.high %v8351_v60, %v8415_v63  ;;  %v12582_v56 = vcombine.low %v8351_v60, %v8415_v63 }
 0x192   : > { %7933 = vrot.lane.b32.xlu0 %v14285_v13, %s13187_s20  ;;  %4273 = vrot.lane.b32.xlu1 %v14285_v13, %s13184_s17 }
 0x193   : > { %v6878_v2 = vsel %vm1986_vm0, %v6809_v27, %v6810_v37  ;;  %v8097_v33 = vsel %vm1986_vm0, %v8029_v1, %v8030_v0  ;;  %12710 = vmatprep.subr.msk.bf16.mxu1 %vm8994_vm7, %v12583_v59  ;;  %v9002_v13 = vsel %vm8994_vm7, %v12582_v56, 0  ;;  %12709 = vmatmul.mubr.msk.bf16.vlgmr.msra.gmra.mrb[0].mxu0 %vm8990_vm8, %v14404_v31 }
 0x194   : > { %v6879_v42 = vsel %vm6872_vm5, %v6683_v61, %v6878_v2  ;;  %v8098_v14 = vsel %vm8093_vm6, %v14332_v51, %v8097_v33  ;;  %v14430_v47 = vpop.permute.xlu0 %7905  ;;  %v4246_v6 = vpop.permute.xlu1 %4245  ;;  %9421 = vmatpush1.bf16.msra.mxu1 %v9002_v13  ;;  %9493 = vmatprep.mubr.bf16.mxu0 %v13188_v41  ;;  %v6181_v51 = vcombine.low %v14415_v12, %v14415_v12  ;;  %v8353_v50 = vld [vmem:[#allocation2 + $0x18] sm:$0xff] }
 0x195   : > { %7067 = vst [vmem:[#allocation2 + $0x218] sm:$0x22] %v6879_v42  ;;  %8287 = vst [vmem:[#allocation2 + $0x210] sm:$0x44] %v8098_v14  ;;  %v8031_v1 = vrot.slane %v14430_v47, 4  ;;  %v4370_v17 = vrot.slane %v4246_v6, 4 }
 0x196   : > { %4275 = vrot.lane.b32.xlu0 %v3747_v32, %s13184_s17  ;;  %5493 = vrot.lane.b32.xlu1 %v4945_v52, %s13185_s18  ;;  %v6189_v34 = vrot.slane %v6181_v51, %v13215_v5  ;;  %v14521_v52 = vld [vmem:[%s13220_s14 + $0x30] sm:$0xff]  ;;  %v399_v51 = vcombine.high %v14443_v21, %v14443_v21 }
 0x197   : > { %v8099_v11 = vsel %vm1986_vm0, %v8030_v0, %v8031_v1  ;;  %v4439_v58 = vsel %vm1986_vm0, %v4369_v35, %v4370_v17  ;;  %12711 = vmatmul.mubr.msk.bf16.vlgmr.msra.gmra.mrb[0].mxu1 %vm8990_vm8, %v14404_v31 }
 0x198   : > { %v8100_v25 = vsel %vm8093_vm6, %v7904_v54, %v8099_v11  ;;  %v4440_v46 = vsel %vm4431_vm3, %v14358_v55, %v4439_v58  ;;  %v14458_v7 = vpop.permute.xlu0 %4247  ;;  %v5466_v16 = vpop.permute.xlu1 %5465  ;;  %9534 = vmatprep.mubr.bf16.mxu1 %v13188_v41  ;;  %v14502_v54 = vrot.slane %v4946_v24, %v13215_v5  ;;  %v413_v21 = vrot.slane %v399_v51, %v13215_v5 }
 0x199   : > { %8288 = vst [vmem:[#allocation2 + $0x218] sm:$0x44] %v8100_v25  ;;  %4627 = vst [vmem:[#allocation2 + $0x20] sm:$0x88] %v4440_v46  ;;  %v4371_v35 = vrot.slane %v14458_v7, 4  ;;  %v5590_v9 = vrot.slane %v5466_v16, 4 }
 0x19a   : > { %5495 = vrot.lane.b32.xlu0 %v14438_v38, %s13185_s18  ;;  %6714 = vrot.lane.b32.xlu1 %v14337_v28, %s13186_s19  ;;  %v8352_v28 = vld [vmem:[#allocation2 + $0x10] sm:$0xff]  ;;  %12535 = vst.sshfl [vmem:[#allocation2 + $0xb0] sm:$0x5 pattern:$0x75316420] %v413_v21  ;;  %v415_v8 = vcombine.high %v413_v21, %v413_v21 }
 0x19b   : > { %v4441_v55 = vsel %vm1986_vm0, %v4370_v17, %v4371_v35  ;;  %v5659_v62 = vsel %vm1986_vm0, %v5589_v39, %v5590_v9  ;;  %v3769_v17 = vcombine.low %v14521_v52, %v14521_v52 }
 0x19c   : > { %v4442_v43 = vsel %vm4431_vm3, %v4246_v6, %v4441_v55  ;;  %v5660_v22 = vsel %vm5651_vm4, %v14379_v57, %v5659_v62  ;;  %v14476_v26 = vpop.permute.xlu0 %5467  ;;  %v6687_v36 = vpop.permute.xlu1 %6686  ;;  %v8416_v61 = vld [vmem:[#allocation2 + $0x210] sm:$0x77]  ;;  %v4961_v57 = vcombine.high %v14415_v12, %v14415_v12  ;;  %v14532_v6 = vrot.slane %v14502_v54, %v13215_v5  ;;  %12536 = vst.sshfl [vmem:[#allocation2 + $0xb8] sm:$0x5 pattern:$0x75316420] %v415_v8 }
 0x19d   : > { %4628 = vst [vmem:[#allocation2 + $0x28] sm:$0x88] %v4442_v43  ;;  %5847 = vst [vmem:[#allocation2 + $0x220] sm:$0x11] %v5660_v22  ;;  %v5591_v39 = vrot.slane %v14476_v26, 4  ;;  %v6811_v27 = vrot.slane %v6687_v36, 4  ;;  %v12585_v3 = vcombine.high %v8352_v28, %v8416_v61  ;;  %v12584_v48 = vcombine.low %v8352_v28, %v8416_v61 }
 0x19e   : > { %6716 = vrot.lane.b32.xlu0 %v6189_v34, %s13186_s19  ;;  %7935 = vrot.lane.b32.xlu1 %v14325_v30, %s13187_s20 }
 0x19f   : > { %v5661_v40 = vsel %vm1986_vm0, %v5590_v9, %v5591_v39  ;;  %v6880_v45 = vsel %vm1986_vm0, %v6810_v37, %v6811_v27  ;;  %12712 = vmatprep.subr.msk.bf16.mxu0 %vm8994_vm7, %v12585_v3  ;;  %v9008_v23 = vsel %vm8994_vm7, %v12584_v48, 0 }
 0x1a0   : > { %v5662_v49 = vsel %vm5651_vm4, %v5466_v16, %v5661_v40  ;;  %v6881_v30 = vsel %vm6872_vm5, %v14399_v4, %v6880_v45  ;;  %v14499_v10 = vpop.permute.xlu0 %6688  ;;  %v7908_v18 = vpop.permute.xlu1 %7907  ;;  %9462 = vmatpush1.bf16.msra.mxu0 %v9008_v23  ;;  %v8417_v53 = vld [vmem:[#allocation2 + $0x218] sm:$0x77]  ;;  %v14508_v4 = vrot.slane %v4961_v57, %v13215_v5  ;;  %v8354_v61 = vld [vmem:[#allocation2 + $0x20] sm:$0xff] }
 0x1a1   : > { %5848 = vst [vmem:[#allocation2 + $0x228] sm:$0x11] %v5662_v49  ;;  %7068 = vst [vmem:[#allocation2 + $0x220] sm:$0x22] %v6881_v30  ;;  %v6812_v60 = vrot.slane %v14499_v10, 4  ;;  %v8032_v63 = vrot.slane %v7908_v18, 4  ;;  %v12587_v37 = vcombine.high %v8353_v50, %v8417_v53  ;;  %v12586_v0 = vcombine.low %v8353_v50, %v8417_v53 }
 0x1a2   : > { %7937 = vrot.lane.b32.xlu0 %v7410_v44, %s13187_s20  ;;  %4277 = vrot.lane.b32.xlu1 %v7410_v44, %s13184_s17 }
 0x1a3   : > { %v6882_v59 = vsel %vm1986_vm0, %v6811_v27, %v6812_v60  ;;  %v8101_v56 = vsel %vm1986_vm0, %v8031_v1, %v8032_v63  ;;  %12714 = vmatprep.subr.msk.bf16.mxu1 %vm8994_vm7, %v12587_v37  ;;  %v9014_v32 = vsel %vm8994_vm7, %v12586_v0, 0  ;;  %12713 = vmatmul.mubr.msk.bf16.vlgmr.msra.gmra.mrb[4].mxu0 %vm8990_vm8, %v14404_v31  ;;  %v6182_v1 = vcombine.low %v14502_v54, %v14502_v54 }
 0x1a4   : > { %v6883_v12 = vsel %vm6872_vm5, %v6687_v36, %v6882_v59  ;;  %v8102_v2 = vsel %vm8093_vm6, %v14430_v47, %v8101_v56  ;;  %v14526_v33 = vpop.permute.xlu0 %7909  ;;  %v4250_v13 = vpop.permute.xlu1 %4249  ;;  %9503 = vmatpush1.bf16.msra.mxu1 %v9014_v32  ;;  %9575 = vmatprep.mubr.bf16.mxu0 %v13188_v41  ;;  %v7402_v47 = vcombine.high %v14368_v19, %v14368_v19  ;;  %v8355_v50 = vld [vmem:[#allocation2 + $0x28] sm:$0xff] }
 0x1a5   : > { %7069 = vst [vmem:[#allocation2 + $0x228] sm:$0x22] %v6883_v12  ;;  %8289 = vst [vmem:[#allocation2 + $0x220] sm:$0x44] %v8102_v2  ;;  %v8033_v42 = vrot.slane %v14526_v33, 4  ;;  %v4372_v14 = vrot.slane %v4250_v13, 4  ;;  %v14610_v59 = vrot.slane %v14521_v52, %v13215_v5 }
 0x1a6   : > { %4279 = vrot.lane.b32.xlu0 %v6189_v34, %s13184_s17  ;;  %5497 = vrot.lane.b32.xlu1 %v14508_v4, %s13185_s18  ;;  %v7417_v9 = vrot.slane %v7402_v47, %v13215_v5  ;;  %v14568_v34 = vrot.slane %v3769_v17, %v13215_v5  ;;  %v14638_v17 = vld [vmem:[%s13220_s14 + $0x30] sm:$0xff] }
 0x1a7   : > { %v8103_v11 = vsel %vm1986_vm0, %v8032_v63, %v8033_v42  ;;  %v4443_v58 = vsel %vm1986_vm0, %v4371_v35, %v4372_v14  ;;  %12715 = vmatmul.mubr.msk.bf16.vlgmr.msra.gmra.mrb[4].mxu1 %vm8990_vm8, %v14404_v31  ;;  %v14633_v47 = vrot.slane %v14610_v59, %v13215_v5 }
 0x1a8   : > { %v8104_v20 = vsel %vm8093_vm6, %v7908_v18, %v8103_v11  ;;  %v4444_v19 = vsel %vm4431_vm3, %v14458_v7, %v4443_v58  ;;  %v14556_v25 = vpop.permute.xlu0 %4251  ;;  %v5470_v46 = vpop.permute.xlu1 %5469  ;;  %9616 = vmatprep.mubr.bf16.mxu1 %v13188_v41  ;;  %v6203_v7 = vrot.slane %v6182_v1, %v13215_v5  ;;  %v451_v58 = vrot.slane %v14638_v17, %v13215_v5 }
 0x1a9   : > { %8290 = vst [vmem:[#allocation2 + $0x228] sm:$0x44] %v8104_v20  ;;  %4629 = vst [vmem:[#allocation2 + $0x30] sm:$0x88] %v4444_v19  ;;  %v4373_v16 = vrot.slane %v14556_v25, 4  ;;  %v5592_v35 = vrot.slane %v5470_v46, 4 }
 0x1aa   : > { %5499 = vrot.lane.b32.xlu0 %v14532_v6, %s13185_s18  ;;  %6718 = vrot.lane.b32.xlu1 %v14438_v38, %s13186_s19  ;;  %12537 = vst.sshfl [vmem:[#allocation2 + $0xc0] sm:$0x5 pattern:$0x75316420] %v451_v58 }
 0x1ab   : > { %v4445_v55 = vsel %vm1986_vm0, %v4372_v14, %v4373_v16  ;;  %v5663_v62 = vsel %vm1986_vm0, %v5591_v39, %v5592_v35  ;;  %v4962_v39 = vcombine.high %v14502_v54, %v14502_v54 }
 0x1ac   : > { %v4446_v43 = vsel %vm4431_vm3, %v4250_v13, %v4445_v55  ;;  %v5664_v22 = vsel %vm5651_vm4, %v14476_v26, %v5663_v62  ;;  %v14579_v36 = vpop.permute.xlu0 %5471  ;;  %v6691_v28 = vpop.permute.xlu1 %6690  ;;  %v8418_v44 = vld [vmem:[#allocation2 + $0x220] sm:$0x77]  ;;  %v3784_v26 = vcombine.low %v14568_v34, %v14568_v34  ;;  %v459_v55 = vcombine.high %v451_v58, %v451_v58 }
 0x1ad   : > { %4630 = vst [vmem:[#allocation2 + $0x38] sm:$0x88] %v4446_v43  ;;  %5849 = vst [vmem:[#allocation2 + $0x230] sm:$0x11] %v5664_v22  ;;  %v5593_v24 = vrot.slane %v14579_v36, 4  ;;  %v6813_v27 = vrot.slane %v6691_v28, 4  ;;  %v12589_v3 = vcombine.high %v8354_v61, %v8418_v44  ;;  %v12588_v48 = vcombine.low %v8354_v61, %v8418_v44 }
 0x1ae   : > { %6720 = vrot.lane.b32.xlu0 %v6203_v7, %s13186_s19  ;;  %7939 = vrot.lane.b32.xlu1 %v7417_v9, %s13187_s20  ;;  %v4990_v0 = vrot.slane %v4962_v39, %v13215_v5  ;;  %v7455_v61 = vrot.slane %v14568_v34, %v13215_v5  ;;  %v4991_v44 = vcombine.high %v14521_v52, %v14521_v52 }
 0x1af   : > { %v5665_v57 = vsel %vm1986_vm0, %v5592_v35, %v5593_v24  ;;  %v6884_v40 = vsel %vm1986_vm0, %v6812_v60, %v6813_v27  ;;  %12716 = vmatprep.subr.msk.bf16.mxu0 %vm8994_vm7, %v12589_v3  ;;  %v9020_v45 = vsel %vm8994_vm7, %v12588_v48, 0  ;;  %12538 = vst.sshfl [vmem:[#allocation2 + $0xc8] sm:$0x5 pattern:$0x75316420] %v459_v55 }
 0x1b0   : > { %v5666_v23 = vsel %vm5651_vm4, %v5470_v46, %v5665_v57  ;;  %v6885_v49 = vsel %vm6872_vm5, %v14499_v10, %v6884_v40  ;;  %v14599_v30 = vpop.permute.xlu0 %6692  ;;  %v7912_v18 = vpop.permute.xlu1 %7911  ;;  %9544 = vmatpush1.bf16.msra.mxu0 %v9020_v45  ;;  %v8419_v53 = vld [vmem:[#allocation2 + $0x228] sm:$0x77]  ;;  %v3792_v10 = vrot.slane %v3784_v26, %v13215_v5 }
 0x1b1   : > { %5850 = vst [vmem:[#allocation2 + $0x238] sm:$0x11] %v5666_v23  ;;  %7070 = vst [vmem:[#allocation2 + $0x230] sm:$0x22] %v6885_v49  ;;  %v6814_v54 = vrot.slane %v14599_v30, 4  ;;  %v8034_v60 = vrot.slane %v7912_v18, 4  ;;  %v12591_v63 = vcombine.high %v8355_v50, %v8419_v53  ;;  %v12590_v37 = vcombine.low %v8355_v50, %v8419_v53 }
 0x1b2   : > { %7941 = vrot.lane.b32.xlu0 %v14438_v38, %s13187_s20  ;;  %4281 = vrot.lane.b32.xlu1 %v14438_v38, %s13184_s17 }
 0x1b3   : > { %v6886_v56 = vsel %vm1986_vm0, %v6813_v27, %v6814_v54  ;;  %v8105_v32 = vsel %vm1986_vm0, %v8033_v42, %v8034_v60  ;;  %12718 = vmatprep.subr.msk.bf16.mxu1 %vm8994_vm7, %v12591_v63  ;;  %v9026_v38 = vsel %vm8994_vm7, %v12590_v37, 0  ;;  %12717 = vmatmul.mubr.msk.bf16.vlgmr.msra.gmra.mrb[8].mxu0 %vm8990_vm8, %v14404_v31 }
 0x1b4   : > { %v6887_v12 = vsel %vm6872_vm5, %v6691_v28, %v6886_v56  ;;  %v8106_v2 = vsel %vm8093_vm6, %v14526_v33, %v8105_v32  ;;  %v14625_v13 = vpop.permute.xlu0 %7913  ;;  %v4254_v14 = vpop.permute.xlu1 %4253  ;;  %9585 = vmatpush1.bf16.msra.mxu1 %v9026_v38  ;;  %9657 = vmatprep.mubr.bf16.mxu0 %v13188_v41  ;;  %v6226_v33 = vcombine.low %v14610_v59, %v14610_v59  ;;  %v8357_v23 = vld [vmem:[#allocation2 + $0x38] sm:$0xff] }
 0x1b5   : > { %7071 = vst [vmem:[#allocation2 + $0x238] sm:$0x22] %v6887_v12  ;;  %8291 = vst [vmem:[#allocation2 + $0x230] sm:$0x44] %v8106_v2  ;;  %v8035_v42 = vrot.slane %v14625_v13, 4  ;;  %v4374_v1 = vrot.slane %v4254_v14, 4 }
 0x1b6   : > { %4283 = vrot.lane.b32.xlu0 %v3792_v10, %s13184_s17  ;;  %5501 = vrot.lane.b32.xlu1 %v4990_v0, %s13185_s18  ;;  %v6234_v7 = vrot.slane %v6226_v33, %v13215_v5  ;;  %v14716_v0 = vld [vmem:[%s13220_s14 + $0x38] sm:$0xff]  ;;  %v444_v33 = vcombine.high %v14638_v17, %v14638_v17 }
 0x1b7   : > { %v8107_v51 = vsel %vm1986_vm0, %v8034_v60, %v8035_v42  ;;  %v4447_v11 = vsel %vm1986_vm0, %v4373_v16, %v4374_v1  ;;  %12719 = vmatmul.mubr.msk.bf16.vlgmr.msra.gmra.mrb[8].mxu1 %vm8990_vm8, %v14404_v31 }
 0x1b8   : > { %v8108_v20 = vsel %vm8093_vm6, %v7912_v18, %v8107_v51  ;;  %v4448_v19 = vsel %vm4431_vm3, %v14556_v25, %v4447_v11  ;;  %v14653_v46 = vpop.permute.xlu0 %4255  ;;  %v5474_v21 = vpop.permute.xlu1 %5473  ;;  %9698 = vmatprep.mubr.bf16.mxu1 %v13188_v41  ;;  %v14697_v18 = vrot.slane %v4991_v44, %v13215_v5  ;;  %v458_v17 = vrot.slane %v444_v33, %v13215_v5 }
 0x1b9   : > { %8292 = vst [vmem:[#allocation2 + $0x238] sm:$0x44] %v8108_v20  ;;  %4631 = vst [vmem:[#allocation2 + $0x40] sm:$0x88] %v4448_v19  ;;  %v4375_v16 = vrot.slane %v14653_v46, 4  ;;  %v5594_v35 = vrot.slane %v5474_v21, 4 }
 0x1ba   : > { %5503 = vrot.lane.b32.xlu0 %v14633_v47, %s13185_s18  ;;  %6722 = vrot.lane.b32.xlu1 %v14532_v6, %s13186_s19  ;;  %v8356_v6 = vld [vmem:[#allocation2 + $0x30] sm:$0xff]  ;;  %12539 = vst.sshfl [vmem:[#allocation2 + $0xd0] sm:$0x5 pattern:$0x75316420] %v458_v17  ;;  %v460_v55 = vcombine.high %v458_v17, %v458_v17 }
 0x1bb   : > { %v4449_v25 = vsel %vm1986_vm0, %v4374_v1, %v4375_v16  ;;  %v5667_v9 = vsel %vm1986_vm0, %v5593_v24, %v5594_v35  ;;  %v3814_v1 = vcombine.low %v14716_v0, %v14716_v0 }
 0x1bc   : > { %v4450_v62 = vsel %vm4431_vm3, %v4254_v14, %v4449_v25  ;;  %v5668_v8 = vsel %vm5651_vm4, %v14579_v36, %v5667_v9  ;;  %v14671_v43 = vpop.permute.xlu0 %5475  ;;  %v6695_v22 = vpop.permute.xlu1 %6694  ;;  %v8420_v28 = vld [vmem:[#allocation2 + $0x230] sm:$0x77]  ;;  %v5006_v36 = vcombine.high %v14610_v59, %v14610_v59  ;;  %v14727_v14 = vrot.slane %v14697_v18, %v13215_v5  ;;  %12540 = vst.sshfl [vmem:[#allocation2 + $0xd8] sm:$0x5 pattern:$0x75316420] %v460_v55 }
 0x1bd   : > { %4632 = vst [vmem:[#allocation2 + $0x48] sm:$0x88] %v4450_v62  ;;  %5851 = vst [vmem:[#allocation2 + $0x240] sm:$0x11] %v5668_v8  ;;  %v5595_v24 = vrot.slane %v14671_v43, 4  ;;  %v6815_v27 = vrot.slane %v6695_v22, 4  ;;  %v12593_v3 = vcombine.high %v8356_v6, %v8420_v28  ;;  %v12592_v48 = vcombine.low %v8356_v6, %v8420_v28 }
 0x1be   : > { %6724 = vrot.lane.b32.xlu0 %v6234_v7, %s13186_s19  ;;  %7943 = vrot.lane.b32.xlu1 %v14508_v4, %s13187_s20 }
 0x1bf   : > { %v5669_v52 = vsel %vm1986_vm0, %v5594_v35, %v5595_v24  ;;  %v6888_v26 = vsel %vm1986_vm0, %v6814_v54, %v6815_v27  ;;  %12720 = vmatprep.subr.msk.bf16.mxu0 %vm8994_vm7, %v12593_v3  ;;  %v9032_v39 = vsel %vm8994_vm7, %v12592_v48, 0 }
 0x1c0   : > { %v5670_v57 = vsel %vm5651_vm4, %v5474_v21, %v5669_v52  ;;  %v6889_v4 = vsel %vm6872_vm5, %v14599_v30, %v6888_v26  ;;  %v14694_v40 = vpop.permute.xlu0 %6696  ;;  %v7916_v45 = vpop.permute.xlu1 %7915  ;;  %9626 = vmatpush1.bf16.msra.mxu0 %v9032_v39  ;;  %v8421_v49 = vld [vmem:[#allocation2 + $0x238] sm:$0x77]  ;;  %v14703_v30 = vrot.slane %v5006_v36, %v13215_v5  ;;  %v8358_v28 = vld [vmem:[#allocation2 + $0x40] sm:$0xff] }
 0x1c1   : > { %5852 = vst [vmem:[#allocation2 + $0x248] sm:$0x11] %v5670_v57  ;;  %7072 = vst [vmem:[#allocation2 + $0x240] sm:$0x22] %v6889_v4  ;;  %v6816_v50 = vrot.slane %v14694_v40, 4  ;;  %v8036_v53 = vrot.slane %v7916_v45, 4  ;;  %v12595_v54 = vcombine.high %v8357_v23, %v8421_v49  ;;  %v12594_v60 = vcombine.low %v8357_v23, %v8421_v49 }
 0x1c2   : > { %7945 = vrot.lane.b32.xlu0 %v7455_v61, %s13187_s20  ;;  %4285 = vrot.lane.b32.xlu1 %v7455_v61, %s13184_s17 }
 0x1c3   : > { %v6890_v63 = vsel %vm1986_vm0, %v6815_v27, %v6816_v50  ;;  %v8109_v37 = vsel %vm1986_vm0, %v8035_v42, %v8036_v53  ;;  %12722 = vmatprep.subr.msk.bf16.mxu1 %vm8994_vm7, %v12595_v54  ;;  %v9038_v10 = vsel %vm8994_vm7, %v12594_v60, 0  ;;  %12721 = vmatmul.mubr.msk.bf16.vlgmr.msra.gmra.mrb[12].mxu0 %vm8990_vm8, %v14404_v31  ;;  %v6227_v42 = vcombine.low %v14697_v18, %v14697_v18 }
 0x1c4   : > { %v6891_v59 = vsel %vm6872_vm5, %v6695_v22, %v6890_v63  ;;  %v8110_v56 = vsel %vm8093_vm6, %v14625_v13, %v8109_v37  ;;  %v14721_v32 = vpop.permute.xlu0 %7917  ;;  %v4258_v38 = vpop.permute.xlu1 %4257  ;;  %9667 = vmatpush1.bf16.msra.mxu1 %v9038_v10  ;;  %9739 = vmatprep.mubr.bf16.mxu0 %v13188_v41  ;;  %v7447_v13 = vcombine.high %v14568_v34, %v14568_v34  ;;  %v8359_v23 = vld [vmem:[#allocation2 + $0x48] sm:$0xff] }
 0x1c5   : > { %7073 = vst [vmem:[#allocation2 + $0x248] sm:$0x22] %v6891_v59  ;;  %8293 = vst [vmem:[#allocation2 + $0x240] sm:$0x44] %v8110_v56  ;;  %v8037_v12 = vrot.slane %v14721_v32, 4  ;;  %v4376_v2 = vrot.slane %v4258_v38, 4  ;;  %v14805_v63 = vrot.slane %v14716_v0, %v13215_v5 }
 0x1c6   : > { %4287 = vrot.lane.b32.xlu0 %v6234_v7, %s13184_s17  ;;  %5505 = vrot.lane.b32.xlu1 %v14703_v30, %s13185_s18  ;;  %v7462_v35 = vrot.slane %v7447_v13, %v13215_v5  ;;  %v14763_v7 = vrot.slane %v3814_v1, %v13215_v5  ;;  %v14833_v1 = vld [vmem:[%s13220_s14 + $0x38] sm:$0xff] }
 0x1c7   : > { %v8111_v51 = vsel %vm1986_vm0, %v8036_v53, %v8037_v12  ;;  %v4451_v11 = vsel %vm1986_vm0, %v4375_v16, %v4376_v2  ;;  %12723 = vmatmul.mubr.msk.bf16.vlgmr.msra.gmra.mrb[12].mxu1 %vm8990_vm8, %v14404_v31  ;;  %v14828_v13 = vrot.slane %v14805_v63, %v13215_v5 }
 0x1c8   : > { %v8112_v58 = vsel %vm8093_vm6, %v7916_v45, %v8111_v51  ;;  %v4452_v34 = vsel %vm4431_vm3, %v14653_v46, %v4451_v11  ;;  %v14751_v20 = vpop.permute.xlu0 %4259  ;;  %v5478_v19 = vpop.permute.xlu1 %5477  ;;  %9780 = vmatprep.mubr.bf16.mxu1 %v13188_v41  ;;  %v6248_v46 = vrot.slane %v6227_v42, %v13215_v5  ;;  %v496_v11 = vrot.slane %v14833_v1, %v13215_v5 }
 0x1c9   : > { %8294 = vst [vmem:[#allocation2 + $0x248] sm:$0x44] %v8112_v58  ;;  %4633 = vst [vmem:[#allocation2 + $0x50] sm:$0x88] %v4452_v34  ;;  %v4377_v21 = vrot.slane %v14751_v20, 4  ;;  %v5596_v16 = vrot.slane %v5478_v19, 4 }
 0x1ca   : > { %5507 = vrot.lane.b32.xlu0 %v14727_v14, %s13185_s18  ;;  %6726 = vrot.lane.b32.xlu1 %v14633_v47, %s13186_s19  ;;  %12541 = vst.sshfl [vmem:[#allocation2 + $0xe0] sm:$0x5 pattern:$0x75316420] %v496_v11 }
 0x1cb   : > { %v4453_v25 = vsel %vm1986_vm0, %v4376_v2, %v4377_v21  ;;  %v5671_v9 = vsel %vm1986_vm0, %v5595_v24, %v5596_v16  ;;  %v5007_v24 = vcombine.high %v14697_v18, %v14697_v18 }
 0x1cc   : > { %v4454_v62 = vsel %vm4431_vm3, %v4258_v38, %v4453_v25  ;;  %v5672_v8 = vsel %vm5651_vm4, %v14671_v43, %v5671_v9  ;;  %v14774_v22 = vpop.permute.xlu0 %5479  ;;  %v6699_v6 = vpop.permute.xlu1 %6698  ;;  %v8422_v61 = vld [vmem:[#allocation2 + $0x240] sm:$0x77]  ;;  %v3829_v43 = vcombine.low %v14763_v7, %v14763_v7  ;;  %v504_v25 = vcombine.high %v496_v11, %v496_v11 }
 0x1cd   : > { %4634 = vst [vmem:[#allocation2 + $0x58] sm:$0x88] %v4454_v62  ;;  %5853 = vst [vmem:[#allocation2 + $0x250] sm:$0x11] %v5672_v8  ;;  %v5597_v44 = vrot.slane %v14774_v22, 4  ;;  %v6817_v27 = vrot.slane %v6699_v6, 4  ;;  %v12597_v3 = vcombine.high %v8358_v28, %v8422_v61  ;;  %v12596_v48 = vcombine.low %v8358_v28, %v8422_v61 }
 0x1ce   : > { %6728 = vrot.lane.b32.xlu0 %v6248_v46, %s13186_s19  ;;  %7947 = vrot.lane.b32.xlu1 %v7462_v35, %s13187_s20  ;;  %v5035_v60 = vrot.slane %v5007_v24, %v13215_v5  ;;  %v7500_v28 = vrot.slane %v14763_v7, %v13215_v5  ;;  %v5036_v61 = vcombine.high %v14716_v0, %v14716_v0 }
 0x1cf   : > { %v5673_v36 = vsel %vm1986_vm0, %v5596_v16, %v5597_v44  ;;  %v6892_v52 = vsel %vm1986_vm0, %v6816_v50, %v6817_v27  ;;  %12724 = vmatprep.subr.msk.bf16.mxu0 %vm8994_vm7, %v12597_v3  ;;  %v9044_v26 = vsel %vm8994_vm7, %v12596_v48, 0  ;;  %12542 = vst.sshfl [vmem:[#allocation2 + $0xe8] sm:$0x5 pattern:$0x75316420] %v504_v25 }
 0x1d0   : > { %v5674_v39 = vsel %vm5651_vm4, %v5478_v19, %v5673_v36  ;;  %v6893_v57 = vsel %vm6872_vm5, %v14694_v40, %v6892_v52  ;;  %v14794_v4 = vpop.permute.xlu0 %6700  ;;  %v7920_v45 = vpop.permute.xlu1 %7919  ;;  %9708 = vmatpush1.bf16.msra.mxu0 %v9044_v26  ;;  %v8423_v49 = vld [vmem:[#allocation2 + $0x248] sm:$0x77]  ;;  %v3837_v40 = vrot.slane %v3829_v43, %v13215_v5 }
 0x1d1   : > { %5854 = vst [vmem:[#allocation2 + $0x258] sm:$0x11] %v5674_v39  ;;  %7074 = vst [vmem:[#allocation2 + $0x250] sm:$0x22] %v6893_v57  ;;  %v6818_v18 = vrot.slane %v14794_v4, 4  ;;  %v8038_v50 = vrot.slane %v7920_v45, 4  ;;  %v12599_v53 = vcombine.high %v8359_v23, %v8423_v49  ;;  %v12598_v54 = vcombine.low %v8359_v23, %v8423_v49 }
 0x1d2   : > { %7949 = vrot.lane.b32.xlu0 %v14633_v47, %s13187_s20  ;;  %4289 = vrot.lane.b32.xlu1 %v14633_v47, %s13184_s17 }
 0x1d3   : > { %v6894_v37 = vsel %vm1986_vm0, %v6817_v27, %v6818_v18  ;;  %v8113_v10 = vsel %vm1986_vm0, %v8037_v12, %v8038_v50  ;;  %12726 = vmatprep.subr.msk.bf16.mxu1 %vm8994_vm7, %v12599_v53  ;;  %v9050_v47 = vsel %vm8994_vm7, %v12598_v54, 0  ;;  %12725 = vmatmul.mubr.msk.bf16.vlgmr.msra.gmra.mrb[16].mxu0 %vm8990_vm8, %v14404_v31 }
 0x1d4   : > { %v6895_v59 = vsel %vm6872_vm5, %v6699_v6, %v6894_v37  ;;  %v8114_v56 = vsel %vm8093_vm6, %v14721_v32, %v8113_v10  ;;  %v14820_v38 = vpop.permute.xlu0 %7921  ;;  %v4262_v2 = vpop.permute.xlu1 %4261  ;;  %9749 = vmatpush1.bf16.msra.mxu1 %v9050_v47  ;;  %9821 = vmatprep.mubr.bf16.mxu0 %v13188_v41  ;;  %v6271_v32 = vcombine.low %v14805_v63, %v14805_v63  ;;  %v8361_v39 = vld [vmem:[#allocation2 + $0x58] sm:$0xff] }
 0x1d5   : > { %7075 = vst [vmem:[#allocation2 + $0x258] sm:$0x22] %v6895_v59  ;;  %8295 = vst [vmem:[#allocation2 + $0x250] sm:$0x44] %v8114_v56  ;;  %v8039_v12 = vrot.slane %v14820_v38, 4  ;;  %v4378_v42 = vrot.slane %v4262_v2, 4 }
 0x1d6   : > { %4291 = vrot.lane.b32.xlu0 %v3837_v40, %s13184_s17  ;;  %5509 = vrot.lane.b32.xlu1 %v5035_v60, %s13185_s18  ;;  %v6279_v46 = vrot.slane %v6271_v32, %v13215_v5  ;;  %v14911_v60 = vld [vmem:[%s13220_s14 + $0x40] sm:$0xff]  ;;  %v489_v32 = vcombine.high %v14833_v1, %v14833_v1 }
 0x1d7   : > { %v8115_v33 = vsel %vm1986_vm0, %v8038_v50, %v8039_v12  ;;  %v4455_v51 = vsel %vm1986_vm0, %v4377_v21, %v4378_v42  ;;  %12727 = vmatmul.mubr.msk.bf16.vlgmr.msra.gmra.mrb[16].mxu1 %vm8990_vm8, %v14404_v31 }
 0x1d8   : > { %v8116_v58 = vsel %vm8093_vm6, %v7920_v45, %v8115_v33  ;;  %v4456_v34 = vsel %vm4431_vm3, %v14751_v20, %v4455_v51  ;;  %v14848_v19 = vpop.permute.xlu0 %4263  ;;  %v5482_v17 = vpop.permute.xlu1 %5481  ;;  %9862 = vmatprep.mubr.bf16.mxu1 %v13188_v41  ;;  %v14892_v45 = vrot.slane %v5036_v61, %v13215_v5  ;;  %v503_v1 = vrot.slane %v489_v32, %v13215_v5 }
 0x1d9   : > { %8296 = vst [vmem:[#allocation2 + $0x258] sm:$0x44] %v8116_v58  ;;  %4635 = vst [vmem:[#allocation2 + $0x60] sm:$0x88] %v4456_v34  ;;  %v4379_v21 = vrot.slane %v14848_v19, 4  ;;  %v5598_v16 = vrot.slane %v5482_v17, 4 }
 0x1da   : > { %5511 = vrot.lane.b32.xlu0 %v14828_v13, %s13185_s18  ;;  %6730 = vrot.lane.b32.xlu1 %v14727_v14, %s13186_s19  ;;  %v8360_v14 = vld [vmem:[#allocation2 + $0x50] sm:$0xff]  ;;  %12543 = vst.sshfl [vmem:[#allocation2 + $0xf0] sm:$0x5 pattern:$0x75316420] %v503_v1 }
 0x1db   : > { %v4457_v20 = vsel %vm1986_vm0, %v4378_v42, %v4379_v21  ;;  %v5675_v35 = vsel %vm1986_vm0, %v5597_v44, %v5598_v16  ;;  %v3859_v42 = vcombine.low %v14911_v60, %v14911_v60 }
 0x1dc   : > { %v4458_v9 = vsel %vm4431_vm3, %v4262_v2, %v4457_v20  ;;  %v5676_v55 = vsel %vm5651_vm4, %v14774_v22, %v5675_v35  ;;  %v14866_v62 = vpop.permute.xlu0 %5483  ;;  %v6703_v8 = vpop.permute.xlu1 %6702  ;;  %v8424_v6 = vld [vmem:[#allocation2 + $0x250] sm:$0x77]  ;;  %v5051_v22 = vcombine.high %v14805_v63, %v14805_v63  ;;  %v14922_v2 = vrot.slane %v14892_v45, %v13215_v5 }
 0x1dd   : > { %4636 = vst [vmem:[#allocation2 + $0x68] sm:$0x88] %v4458_v9  ;;  %5855 = vst [vmem:[#allocation2 + $0x260] sm:$0x11] %v5676_v55  ;;  %v5599_v44 = vrot.slane %v14866_v62, 4  ;;  %v6819_v27 = vrot.slane %v6703_v8, 4  ;;  %v12601_v3 = vcombine.high %v8360_v14, %v8424_v6  ;;  %v12600_v48 = vcombine.low %v8360_v14, %v8424_v6 }
 0x1de   : > { %6732 = vrot.lane.b32.xlu0 %v6279_v46, %s13186_s19  ;;  %7951 = vrot.lane.b32.xlu1 %v14703_v30, %s13187_s20  ;;  %v505_v35 = vcombine.high %v503_v1, %v503_v1 }
 0x1df   : > { %v5677_v0 = vsel %vm1986_vm0, %v5598_v16, %v5599_v44  ;;  %v6896_v43 = vsel %vm1986_vm0, %v6818_v18, %v6819_v27  ;;  %12728 = vmatprep.subr.msk.bf16.mxu0 %vm8994_vm7, %v12601_v3  ;;  %v9056_v24 = vsel %vm8994_vm7, %v12600_v48, 0  ;;  %v14958_v16 = vrot.slane %v3859_v42, %v13215_v5  ;;  %v15033_v42 = vld [vmem:[%s13220_s14 + $0x40] sm:$0xff] }
 0x1e0   : > { %v5678_v36 = vsel %vm5651_vm4, %v5482_v17, %v5677_v0  ;;  %v6897_v30 = vsel %vm6872_vm5, %v14794_v4, %v6896_v43  ;;  %v14889_v52 = vpop.permute.xlu0 %6704  ;;  %v7924_v26 = vpop.permute.xlu1 %7923  ;;  %9790 = vmatpush1.bf16.msra.mxu0 %v9056_v24  ;;  %v8425_v57 = vld [vmem:[#allocation2 + $0x258] sm:$0x77]  ;;  %v14898_v4 = vrot.slane %v5051_v22, %v13215_v5  ;;  %v8362_v14 = vld [vmem:[#allocation2 + $0x60] sm:$0xff] }
 0x1e1   : > { %5856 = vst [vmem:[#allocation2 + $0x268] sm:$0x11] %v5678_v36  ;;  %7076 = vst [vmem:[#allocation2 + $0x260] sm:$0x22] %v6897_v30  ;;  %v6820_v23 = vrot.slane %v14889_v52, 4  ;;  %v8040_v49 = vrot.slane %v7924_v26, 4  ;;  %v12603_v18 = vcombine.high %v8361_v39, %v8425_v57  ;;  %v12602_v50 = vcombine.low %v8361_v39, %v8425_v57 }
 0x1e2   : > { %7953 = vrot.lane.b32.xlu0 %v7500_v28, %s13187_s20  ;;  %4293 = vrot.lane.b32.xlu1 %v7500_v28, %s13184_s17  ;;  %12544 = vst.sshfl [vmem:[#allocation2 + $0xf8] sm:$0x5 pattern:$0x75316420] %v505_v35 }
 0x1e3   : > { %v6898_v53 = vsel %vm1986_vm0, %v6819_v27, %v6820_v23  ;;  %v8117_v54 = vsel %vm1986_vm0, %v8039_v12, %v8040_v49  ;;  %12730 = vmatprep.subr.msk.bf16.mxu1 %vm8994_vm7, %v12603_v18  ;;  %v9062_v40 = vsel %vm8994_vm7, %v12602_v50, 0  ;;  %12729 = vmatmul.mubr.msk.bf16.vlgmr.msra.gmra.mrb[20].mxu0 %vm8990_vm8, %v14404_v31  ;;  %v6272_v12 = vcombine.low %v14892_v45, %v14892_v45 }
 0x1e4   : > { %v6899_v63 = vsel %vm6872_vm5, %v6703_v8, %v6898_v53  ;;  %v8118_v37 = vsel %vm8093_vm6, %v14820_v38, %v8117_v54  ;;  %v14916_v10 = vpop.permute.xlu0 %7925  ;;  %v4266_v47 = vpop.permute.xlu1 %4265  ;;  %9831 = vmatpush1.bf16.msra.mxu1 %v9062_v40  ;;  %9903 = vmatprep.mubr.bf16.mxu0 %v13188_v41  ;;  %v7492_v38 = vcombine.high %v14763_v7, %v14763_v7  ;;  %v15013_v40 = vld [vmem:[%s17299_s1] sm:$0x3] }
 0x1e5   : > { %7077 = vst [vmem:[#allocation2 + $0x268] sm:$0x22] %v6899_v63  ;;  %8297 = vst [vmem:[#allocation2 + $0x260] sm:$0x44] %v8118_v37  ;;  %v8041_v59 = vrot.slane %v14916_v10, 4  ;;  %v4380_v56 = vrot.slane %v4266_v47, 4  ;;  %v15000_v50 = vrot.slane %v14911_v60, %v13215_v5 }
 0x1e6   : > { %4295 = vrot.lane.b32.xlu0 %v6279_v46, %s13184_s17  ;;  %5513 = vrot.lane.b32.xlu1 %v14898_v4, %s13185_s18 }
 0x1e7   : > { %v8119_v33 = vsel %vm1986_vm0, %v8040_v49, %v8041_v59  ;;  %v4459_v51 = vsel %vm1986_vm0, %v4379_v21, %v4380_v56  ;;  %12731 = vmatmul.mubr.msk.bf16.vlgmr.msra.gmra.mrb[20].mxu1 %vm8990_vm8, %v14404_v31  ;;  %v6293_v31 = vrot.slane %v6272_v12, %v13215_v5 }
 0x1e8   : > { %v8120_v11 = vsel %vm8093_vm6, %v7924_v26, %v8119_v33  ;;  %v4460_v7 = vsel %vm4431_vm3, %v14848_v19, %v4459_v51  ;;  %v14946_v58 = vpop.permute.xlu0 %4267  ;;  %v5486_v34 = vpop.permute.xlu1 %5485  ;;  %9944 = vmatprep.mubr.bf16.mxu1 %v13188_v41  ;;  %v7507_v19 = vrot.slane %v7492_v38, %v13215_v5  ;;  %v8363_v26 = vld [vmem:[#allocation2 + $0x68] sm:$0xff]  ;;  %v15028_v38 = vrot.slane %v15000_v50, %v13215_v5 }
 0x1e9   : > { %8298 = vst [vmem:[#allocation2 + $0x268] sm:$0x44] %v8120_v11  ;;  %4637 = vst [vmem:[#allocation2 + $0x70] sm:$0x88] %v4460_v7  ;;  %v4381_v17 = vrot.slane %v14946_v58, 4  ;;  %v5600_v21 = vrot.slane %v5486_v34, 4  ;;  %v541_v51 = vrot.slane %v15033_v42, %v13215_v5 }
 0x1ea   : > { %5515 = vrot.lane.b32.xlu0 %v14922_v2, %s13185_s18  ;;  %6734 = vrot.lane.b32.xlu1 %v14828_v13, %s13186_s19 }
 0x1eb   : > { %v4461_v46 = vsel %vm1986_vm0, %v4380_v56, %v4381_v17  ;;  %v5679_v20 = vsel %vm1986_vm0, %v5599_v44, %v5600_v21  ;;  %v5052_v44 = vcombine.high %v14892_v45, %v14892_v45  ;;  %12545 = vst.sshfl [vmem:[#allocation2 + $0x100] sm:$0x5 pattern:$0x75316420] %v541_v51 }
 0x1ec   : > { %v4462_v25 = vsel %vm4431_vm3, %v4266_v47, %v4461_v46  ;;  %v5680_v9 = vsel %vm5651_vm4, %v14866_v62, %v5679_v20  ;;  %v14969_v55 = vpop.permute.xlu0 %5487  ;;  %v6707_v8 = vpop.permute.xlu1 %6706  ;;  %v8426_v6 = vld [vmem:[#allocation2 + $0x260] sm:$0x77]  ;;  %v3874_v62 = vcombine.low %v14958_v16, %v14958_v16  ;;  %v549_v46 = vcombine.high %v541_v51, %v541_v51 }
 0x1ed   : > { %4638 = vst [vmem:[#allocation2 + $0x78] sm:$0x88] %v4462_v25  ;;  %5857 = vst [vmem:[#allocation2 + $0x270] sm:$0x11] %v5680_v9  ;;  %v5601_v28 = vrot.slane %v14969_v55, 4  ;;  %v6821_v61 = vrot.slane %v6707_v8, 4  ;;  %v12605_v27 = vcombine.high %v8362_v14, %v8426_v6  ;;  %v12604_v3 = vcombine.low %v8362_v14, %v8426_v6 }
 0x1ee   : > { %6736 = vrot.lane.b32.xlu0 %v6293_v31, %s13186_s19  ;;  %7955 = vrot.lane.b32.xlu1 %v7507_v19, %s13187_s20  ;;  %v5080_v18 = vrot.slane %v5052_v44, %v13215_v5  ;;  %v7545_v14 = vrot.slane %v14958_v16, %v13215_v5  ;;  %v5081_v6 = vcombine.high %v14911_v60, %v14911_v60 }
 0x1ef   : > { %v5681_v48 = vsel %vm1986_vm0, %v5600_v21, %v5601_v28  ;;  %v6900_v22 = vsel %vm1986_vm0, %v6820_v23, %v6821_v61  ;;  %12732 = vmatprep.subr.msk.bf16.mxu0 %vm8994_vm7, %v12605_v27  ;;  %v9068_v0 = vsel %vm8994_vm7, %v12604_v3, 0  ;;  %12546 = vst.sshfl [vmem:[#allocation2 + $0x108] sm:$0x5 pattern:$0x75316420] %v549_v46 }
 0x1f0   : > { %v5682_v43 = vsel %vm5651_vm4, %v5486_v34, %v5681_v48  ;;  %v6901_v24 = vsel %vm6872_vm5, %v14889_v52, %v6900_v22  ;;  %v14989_v36 = vpop.permute.xlu0 %6708  ;;  %v7928_v30 = vpop.permute.xlu1 %7927  ;;  %9872 = vmatpush1.bf16.msra.mxu0 %v9068_v0  ;;  %v8427_v39 = vld [vmem:[#allocation2 + $0x268] sm:$0x77]  ;;  %v3882_v52 = vrot.slane %v3874_v62, %v13215_v5 }
 0x1f1   : > { %5858 = vst [vmem:[#allocation2 + $0x278] sm:$0x11] %v5682_v43  ;;  %7078 = vst [vmem:[#allocation2 + $0x270] sm:$0x22] %v6901_v24  ;;  %v6822_v57 = vrot.slane %v14989_v36, 4  ;;  %v8042_v45 = vrot.slane %v7928_v30, 4  ;;  %v12607_v23 = vcombine.high %v8363_v26, %v8427_v39  ;;  %v12606_v49 = vcombine.low %v8363_v26, %v8427_v39 }
 0x1f2   : > { %7957 = vrot.lane.b32.xlu0 %v14828_v13, %s13187_s20  ;;  %4297 = vrot.lane.b32.xlu1 %v14828_v13, %s13184_s17 }
 0x1f3   : > { %v6902_v53 = vsel %vm1986_vm0, %v6821_v61, %v6822_v57  ;;  %v8121_v54 = vsel %vm1986_vm0, %v8041_v59, %v8042_v45  ;;  %12734 = vmatprep.subr.msk.bf16.mxu1 %vm8994_vm7, %v12607_v23  ;;  %v9074_v13 = vsel %vm8994_vm7, %v12606_v49, 0  ;;  %12733 = vmatmul.mubr.msk.bf16.vlgmr.msra.gmra.mrb[24].mxu0 %vm8990_vm8, %v15013_v40 }
 0x1f4   : > { %v6903_v63 = vsel %vm6872_vm5, %v6707_v8, %v6902_v53  ;;  %v8122_v37 = vsel %vm8093_vm6, %v14916_v10, %v8121_v54  ;;  %v15020_v47 = vpop.permute.xlu0 %7929  ;;  %v4270_v59 = vpop.permute.xlu1 %4269  ;;  %9913 = vmatpush1.bf16.msra.mxu1 %v9074_v13  ;;  %9985 = vmatprep.mubr.bf16.mxu0 %v13188_v41  ;;  %v6316_v10 = vcombine.low %v15000_v50, %v15000_v50  ;;  %v8365_v43 = vld [vmem:[#allocation2 + $0x78] sm:$0xff] }
 0x1f5   : > { %7079 = vst [vmem:[#allocation2 + $0x278] sm:$0x22] %v6903_v63  ;;  %8299 = vst [vmem:[#allocation2 + $0x270] sm:$0x44] %v8122_v37  ;;  %v8043_v56 = vrot.slane %v15020_v47, 4  ;;  %v4382_v12 = vrot.slane %v4270_v59, 4 }
 0x1f6   : > { %4299 = vrot.lane.b32.xlu0 %v3882_v52, %s13184_s17  ;;  %5517 = vrot.lane.b32.xlu1 %v5080_v18, %s13185_s18  ;;  %v6324_v31 = vrot.slane %v6316_v10, %v13215_v5  ;;  %v15111_v18 = vld [vmem:[%s13220_s14 + $0x48] sm:$0xff]  ;;  %v534_v10 = vcombine.high %v15033_v42, %v15033_v42 }
 0x1f7   : > { %v8123_v32 = vsel %vm1986_vm0, %v8042_v45, %v8043_v56  ;;  %v4463_v33 = vsel %vm1986_vm0, %v4381_v17, %v4382_v12  ;;  %12735 = vmatmul.mubr.msk.bf16.vlgmr.msra.gmra.mrb[24].mxu1 %vm8990_vm8, %v15013_v40 }
 0x1f8   : > { %v8124_v11 = vsel %vm8093_vm6, %v7928_v30, %v8123_v32  ;;  %v4464_v7 = vsel %vm4431_vm3, %v14946_v58, %v4463_v33  ;;  %v15048_v34 = vpop.permute.xlu0 %4271  ;;  %v5490_v1 = vpop.permute.xlu1 %5489  ;;  %10026 = vmatprep.mubr.bf16.mxu1 %v13188_v41  ;;  %v15092_v30 = vrot.slane %v5081_v6, %v13215_v5  ;;  %v548_v42 = vrot.slane %v534_v10, %v13215_v5 }
 0x1f9   : > { %8300 = vst [vmem:[#allocation2 + $0x278] sm:$0x44] %v8124_v11  ;;  %4639 = vst [vmem:[#allocation2 + $0x80] sm:$0x88] %v4464_v7  ;;  %v4383_v17 = vrot.slane %v15048_v34, 4  ;;  %v5602_v21 = vrot.slane %v5490_v1, 4 }
 0x1fa   : > { %5519 = vrot.lane.b32.xlu0 %v15028_v38, %s13185_s18  ;;  %6738 = vrot.lane.b32.xlu1 %v14922_v2, %s13186_s19  ;;  %v8364_v2 = vld [vmem:[#allocation2 + $0x70] sm:$0xff]  ;;  %12547 = vst.sshfl [vmem:[#allocation2 + $0x110] sm:$0x5 pattern:$0x75316420] %v548_v42  ;;  %v550_v46 = vcombine.high %v548_v42, %v548_v42 }
 0x1fb   : > { %v4465_v58 = vsel %vm1986_vm0, %v4382_v12, %v4383_v17  ;;  %v5683_v19 = vsel %vm1986_vm0, %v5601_v28, %v5602_v21  ;;  %v3904_v12 = vcombine.low %v15111_v18, %v15111_v18 }
 0x1fc   : > { %v4466_v20 = vsel %vm4431_vm3, %v4270_v59, %v4465_v58  ;;  %v5684_v35 = vsel %vm5651_vm4, %v14969_v55, %v5683_v19  ;;  %v15066_v25 = vpop.permute.xlu0 %5491  ;;  %v6711_v9 = vpop.permute.xlu1 %6710  ;;  %v8428_v8 = vld [vmem:[#allocation2 + $0x270] sm:$0x77]  ;;  %v5096_v55 = vcombine.high %v15000_v50, %v15000_v50  ;;  %v15122_v59 = vrot.slane %v15092_v30, %v13215_v5  ;;  %12548 = vst.sshfl [vmem:[#allocation2 + $0x118] sm:$0x5 pattern:$0x75316420] %v550_v46 }
 0x1fd   : > { %4640 = vst [vmem:[#allocation2 + $0x88] sm:$0x88] %v4466_v20  ;;  %5859 = vst [vmem:[#allocation2 + $0x280] sm:$0x11] %v5684_v35  ;;  %v5603_v28 = vrot.slane %v15066_v25, 4  ;;  %v6823_v61 = vrot.slane %v6711_v9, 4  ;;  %v12609_v27 = vcombine.high %v8364_v2, %v8428_v8  ;;  %v12608_v3 = vcombine.low %v8364_v2, %v8428_v8 }
 0x1fe   : > { %6740 = vrot.lane.b32.xlu0 %v6324_v31, %s13186_s19  ;;  %7959 = vrot.lane.b32.xlu1 %v14898_v4, %s13187_s20 }
 0x1ff   : > { %v5685_v60 = vsel %vm1986_vm0, %v5602_v21, %v5603_v28  ;;  %v6904_v62 = vsel %vm1986_vm0, %v6822_v57, %v6823_v61  ;;  %12736 = vmatprep.subr.msk.bf16.mxu0 %vm8994_vm7, %v12609_v27  ;;  %v9080_v44 = vsel %vm8994_vm7, %v12608_v3, 0 }
 0x200   : > { %v5686_v48 = vsel %vm5651_vm4, %v5490_v1, %v5685_v60  ;;  %v6905_v4 = vsel %vm6872_vm5, %v14989_v36, %v6904_v62  ;;  %v15089_v22 = vpop.permute.xlu0 %6712  ;;  %v7932_v0 = vpop.permute.xlu1 %7931  ;;  %9954 = vmatpush1.bf16.msra.mxu0 %v9080_v44  ;;  %v8429_v24 = vld [vmem:[#allocation2 + $0x278] sm:$0x77]  ;;  %v15098_v36 = vrot.slane %v5096_v55, %v13215_v5  ;;  %v8366_v8 = vld [vmem:[#allocation2 + $0x80] sm:$0xff] }
 0x201   : > { %5860 = vst [vmem:[#allocation2 + $0x288] sm:$0x11] %v5686_v48  ;;  %7080 = vst [vmem:[#allocation2 + $0x280] sm:$0x22] %v6905_v4  ;;  %v6824_v26 = vrot.slane %v15089_v22, 4  ;;  %v8044_v39 = vrot.slane %v7932_v0, 4  ;;  %v12611_v57 = vcombine.high %v8365_v43, %v8429_v24  ;;  %v12610_v45 = vcombine.low %v8365_v43, %v8429_v24 }
 0x202   : > { %7961 = vrot.lane.b32.xlu0 %v7545_v14, %s13187_s20  ;;  %4301 = vrot.lane.b32.xlu1 %v7545_v14, %s13184_s17 }
 0x203   : > { %v6906_v23 = vsel %vm1986_vm0, %v6823_v61, %v6824_v26  ;;  %v8125_v49 = vsel %vm1986_vm0, %v8043_v56, %v8044_v39  ;;  %12738 = vmatprep.subr.msk.bf16.mxu1 %vm8994_vm7, %v12611_v57  ;;  %v9086_v52 = vsel %vm8994_vm7, %v12610_v45, 0  ;;  %12737 = vmatmul.mubr.msk.bf16.vlgmr.msra.gmra.mrb[28].mxu0 %vm8990_vm8, %v15013_v40  ;;  %v6317_v56 = vcombine.low %v15092_v30, %v15092_v30 }
 0x204   : > { %v6907_v50 = vsel %vm6872_vm5, %v6711_v9, %v6906_v23  ;;  %v8126_v53 = vsel %vm8093_vm6, %v15020_v47, %v8125_v49  ;;  %v15116_v54 = vpop.permute.xlu0 %7933  ;;  %v4274_v13 = vpop.permute.xlu1 %4273  ;;  %9995 = vmatpush1.bf16.msra.mxu1 %v9086_v52  ;;  %10067 = vmatprep.mubr.bf16.mxu0 %v13188_v41  ;;  %v7537_v47 = vcombine.high %v14958_v16, %v14958_v16  ;;  %v8367_v43 = vld [vmem:[#allocation2 + $0x88] sm:$0xff] }
 0x205   : > { %7081 = vst [vmem:[#allocation2 + $0x288] sm:$0x22] %v6907_v50  ;;  %8301 = vst [vmem:[#allocation2 + $0x280] sm:$0x44] %v8126_v53  ;;  %v8045_v63 = vrot.slane %v15116_v54, 4  ;;  %v4384_v37 = vrot.slane %v4274_v13, 4  ;;  %v15200_v23 = vrot.slane %v15111_v18, %v13215_v5 }
 0x206   : > { %4303 = vrot.lane.b32.xlu0 %v6324_v31, %s13184_s17  ;;  %5521 = vrot.lane.b32.xlu1 %v15098_v36, %s13185_s18  ;;  %v7552_v21 = vrot.slane %v7537_v47, %v13215_v5  ;;  %v15158_v31 = vrot.slane %v3904_v12, %v13215_v5  ;;  %v15228_v12 = vld [vmem:[%s13220_s14 + $0x48] sm:$0xff] }
 0x207   : > { %v8127_v32 = vsel %vm1986_vm0, %v8044_v39, %v8045_v63  ;;  %v4467_v33 = vsel %vm1986_vm0, %v4383_v17, %v4384_v37  ;;  %12739 = vmatmul.mubr.msk.bf16.vlgmr.msra.gmra.mrb[28].mxu1 %vm8990_vm8, %v15013_v40  ;;  %v15223_v47 = vrot.slane %v15200_v23, %v13215_v5 }
 0x208   : > { %v8128_v51 = vsel %vm8093_vm6, %v7932_v0, %v8127_v32  ;;  %v4468_v16 = vsel %vm4431_vm3, %v15048_v34, %v4467_v33  ;;  %v15146_v11 = vpop.permute.xlu0 %4275  ;;  %v5494_v7 = vpop.permute.xlu1 %5493  ;;  %10108 = vmatprep.mubr.bf16.mxu1 %v13188_v41  ;;  %v6338_v34 = vrot.slane %v6317_v56, %v13215_v5  ;;  %v586_v33 = vrot.slane %v15228_v12, %v13215_v5 }
 0x209   : > { %8302 = vst [vmem:[#allocation2 + $0x288] sm:$0x44] %v8128_v51  ;;  %4641 = vst [vmem:[#allocation2 + $0x90] sm:$0x88] %v4468_v16  ;;  %v4385_v1 = vrot.slane %v15146_v11, 4  ;;  %v5604_v17 = vrot.slane %v5494_v7, 4 }
 0x20a   : > { %5523 = vrot.lane.b32.xlu0 %v15122_v59, %s13185_s18  ;;  %6742 = vrot.lane.b32.xlu1 %v15028_v38, %s13186_s19  ;;  %12549 = vst.sshfl [vmem:[#allocation2 + $0x120] sm:$0x5 pattern:$0x75316420] %v586_v33 }
 0x20b   : > { %v4469_v58 = vsel %vm1986_vm0, %v4384_v37, %v4385_v1  ;;  %v5687_v19 = vsel %vm1986_vm0, %v5603_v28, %v5604_v17  ;;  %v5097_v28 = vcombine.high %v15092_v30, %v15092_v30 }
 0x20c   : > { %v4470_v20 = vsel %vm4431_vm3, %v4274_v13, %v4469_v58  ;;  %v5688_v35 = vsel %vm5651_vm4, %v15066_v25, %v5687_v19  ;;  %v15169_v9 = vpop.permute.xlu0 %5495  ;;  %v6715_v2 = vpop.permute.xlu1 %6714  ;;  %v8430_v14 = vld [vmem:[#allocation2 + $0x280] sm:$0x77]  ;;  %v3919_v25 = vcombine.low %v15158_v31, %v15158_v31  ;;  %v594_v58 = vcombine.high %v586_v33, %v586_v33 }
 0x20d   : > { %4642 = vst [vmem:[#allocation2 + $0x98] sm:$0x88] %v4470_v20  ;;  %5861 = vst [vmem:[#allocation2 + $0x290] sm:$0x11] %v5688_v35  ;;  %v5605_v6 = vrot.slane %v15169_v9, 4  ;;  %v6825_v61 = vrot.slane %v6715_v2, 4  ;;  %v12613_v27 = vcombine.high %v8366_v8, %v8430_v14  ;;  %v12612_v3 = vcombine.low %v8366_v8, %v8430_v14 }
 0x20e   : > { %6744 = vrot.lane.b32.xlu0 %v6338_v34, %s13186_s19  ;;  %7963 = vrot.lane.b32.xlu1 %v7552_v21, %s13187_s20  ;;  %v5125_v45 = vrot.slane %v5097_v28, %v13215_v5  ;;  %v7590_v8 = vrot.slane %v15158_v31, %v13215_v5  ;;  %v5126_v14 = vcombine.high %v15111_v18, %v15111_v18 }
 0x20f   : > { %v5689_v55 = vsel %vm1986_vm0, %v5604_v17, %v5605_v6  ;;  %v6908_v60 = vsel %vm1986_vm0, %v6824_v26, %v6825_v61  ;;  %12740 = vmatprep.subr.msk.bf16.mxu0 %vm8994_vm7, %v12613_v27  ;;  %v9092_v62 = vsel %vm8994_vm7, %v12612_v3, 0  ;;  %12550 = vst.sshfl [vmem:[#allocation2 + $0x128] sm:$0x5 pattern:$0x75316420] %v594_v58 }
 0x210   : > { %v5690_v44 = vsel %vm5651_vm4, %v5494_v7, %v5689_v55  ;;  %v6909_v48 = vsel %vm6872_vm5, %v15089_v22, %v6908_v60  ;;  %v15189_v4 = vpop.permute.xlu0 %6716  ;;  %v7936_v0 = vpop.permute.xlu1 %7935  ;;  %10036 = vmatpush1.bf16.msra.mxu0 %v9092_v62  ;;  %v8431_v24 = vld [vmem:[#allocation2 + $0x288] sm:$0x77]  ;;  %v3927_v22 = vrot.slane %v3919_v25, %v13215_v5 }
 0x211   : > { %5862 = vst [vmem:[#allocation2 + $0x298] sm:$0x11] %v5690_v44  ;;  %7082 = vst [vmem:[#allocation2 + $0x290] sm:$0x22] %v6909_v48  ;;  %v6826_v30 = vrot.slane %v15189_v4, 4  ;;  %v8046_v26 = vrot.slane %v7936_v0, 4  ;;  %v12615_v39 = vcombine.high %v8367_v43, %v8431_v24  ;;  %v12614_v57 = vcombine.low %v8367_v43, %v8431_v24 }
 0x212   : > { %7965 = vrot.lane.b32.xlu0 %v15028_v38, %s13187_s20  ;;  %4305 = vrot.lane.b32.xlu1 %v15028_v38, %s13184_s17 }
 0x213   : > { %v6910_v49 = vsel %vm1986_vm0, %v6825_v61, %v6826_v30  ;;  %v8129_v52 = vsel %vm1986_vm0, %v8045_v63, %v8046_v26  ;;  %12742 = vmatprep.subr.msk.bf16.mxu1 %vm8994_vm7, %v12615_v39  ;;  %v9098_v38 = vsel %vm8994_vm7, %v12614_v57, 0  ;;  %12741 = vmatmul.mubr.msk.bf16.vlgmr.msra.gmra.mrb[32].mxu0 %vm8990_vm8, %v15013_v40 }
 0x214   : > { %v6911_v50 = vsel %vm6872_vm5, %v6715_v2, %v6910_v49  ;;  %v8130_v53 = vsel %vm8093_vm6, %v15116_v54, %v8129_v52  ;;  %v15215_v13 = vpop.permute.xlu0 %7937  ;;  %v4278_v37 = vpop.permute.xlu1 %4277  ;;  %10077 = vmatpush1.bf16.msra.mxu1 %v9098_v38  ;;  %10149 = vmatprep.mubr.bf16.mxu0 %v13188_v41  ;;  %v6361_v54 = vcombine.low %v15200_v23, %v15200_v23  ;;  %v8369_v44 = vld [vmem:[#allocation2 + $0x98] sm:$0xff] }
 0x215   : > { %7083 = vst [vmem:[#allocation2 + $0x298] sm:$0x22] %v6911_v50  ;;  %8303 = vst [vmem:[#allocation2 + $0x290] sm:$0x44] %v8130_v53  ;;  %v8047_v63 = vrot.slane %v15215_v13, 4  ;;  %v4386_v56 = vrot.slane %v4278_v37, 4 }
 0x216   : > { %4307 = vrot.lane.b32.xlu0 %v3927_v22, %s13184_s17  ;;  %5525 = vrot.lane.b32.xlu1 %v5125_v45, %s13185_s18  ;;  %v6369_v34 = vrot.slane %v6361_v54, %v13215_v5  ;;  %v15306_v45 = vld [vmem:[%s13220_s14 + $0x50] sm:$0xff] }
 0x217   : > { %v8131_v10 = vsel %vm1986_vm0, %v8046_v26, %v8047_v63  ;;  %v4471_v32 = vsel %vm1986_vm0, %v4385_v1, %v4386_v56  ;;  %12743 = vmatmul.mubr.msk.bf16.vlgmr.msra.gmra.mrb[32].mxu1 %vm8990_vm8, %v15013_v40  ;;  %v3949_v54 = vcombine.low %v15306_v45, %v15306_v45 }
 0x218   : > { %v8132_v51 = vsel %vm8093_vm6, %v7936_v0, %v8131_v10  ;;  %v4472_v16 = vsel %vm4431_vm3, %v15146_v11, %v4471_v32  ;;  %v15243_v7 = vpop.permute.xlu0 %4279  ;;  %v5498_v42 = vpop.permute.xlu1 %5497  ;;  %10190 = vmatprep.mubr.bf16.mxu1 %v13188_v41  ;;  %v15287_v0 = vrot.slane %v5126_v14, %v13215_v5 }
 0x219   : > { %8304 = vst [vmem:[#allocation2 + $0x298] sm:$0x44] %v8132_v51  ;;  %4643 = vst [vmem:[#allocation2 + $0xa0] sm:$0x88] %v4472_v16  ;;  %v4387_v1 = vrot.slane %v15243_v7, 4  ;;  %v5606_v17 = vrot.slane %v5498_v42, 4 }
 0x21a   : > { %5527 = vrot.lane.b32.xlu0 %v15223_v47, %s13185_s18  ;;  %6746 = vrot.lane.b32.xlu1 %v15122_v59, %s13186_s19  ;;  %v8368_v59 = vld [vmem:[#allocation2 + $0x90] sm:$0xff] }
 0x21b   : > { %v4473_v11 = vsel %vm1986_vm0, %v4386_v56, %v4387_v1  ;;  %v5691_v21 = vsel %vm1986_vm0, %v5605_v6, %v5606_v17  ;;  %v7582_v56 = vcombine.high %v15158_v31, %v15158_v31 }
 0x21c   : > { %v4474_v19 = vsel %vm4431_vm3, %v4278_v37, %v4473_v11  ;;  %v5692_v46 = vsel %vm5651_vm4, %v15169_v9, %v5691_v21  ;;  %v15261_v20 = vpop.permute.xlu0 %5499  ;;  %v6719_v35 = vpop.permute.xlu1 %6718  ;;  %v8432_v2 = vld [vmem:[#allocation2 + $0x290] sm:$0x77]  ;;  %v5141_v9 = vcombine.high %v15200_v23, %v15200_v23  ;;  %v15317_v37 = vrot.slane %v15287_v0, %v13215_v5 }
 0x21d   : > { %4644 = vst [vmem:[#allocation2 + $0xa8] sm:$0x88] %v4474_v19  ;;  %5863 = vst [vmem:[#allocation2 + $0x2a0] sm:$0x11] %v5692_v46  ;;  %v5607_v6 = vrot.slane %v15261_v20, 4  ;;  %v6827_v61 = vrot.slane %v6719_v35, 4  ;;  %v12617_v27 = vcombine.high %v8368_v59, %v8432_v2  ;;  %v12616_v3 = vcombine.low %v8368_v59, %v8432_v2 }
 0x21e   : > { %6748 = vrot.lane.b32.xlu0 %v6369_v34, %s13186_s19  ;;  %7967 = vrot.lane.b32.xlu1 %v15098_v36, %s13187_s20 }
 0x21f   : > { %v5693_v18 = vsel %vm1986_vm0, %v5606_v17, %v5607_v6  ;;  %v6912_v25 = vsel %vm1986_vm0, %v6826_v30, %v6827_v61  ;;  %12744 = vmatprep.subr.msk.bf16.mxu0 %vm8994_vm7, %v12617_v27  ;;  %v9104_v28 = vsel %vm8994_vm7, %v12616_v3, 0 }
 0x220   : > { %v5694_v55 = vsel %vm5651_vm4, %v5498_v42, %v5693_v18  ;;  %v6913_v36 = vsel %vm6872_vm5, %v15189_v4, %v6912_v25  ;;  %v15284_v60 = vpop.permute.xlu0 %6720  ;;  %v7940_v62 = vpop.permute.xlu1 %7939  ;;  %10118 = vmatpush1.bf16.msra.mxu0 %v9104_v28  ;;  %v8433_v48 = vld [vmem:[#allocation2 + $0x298] sm:$0x77]  ;;  %v15293_v4 = vrot.slane %v5141_v9, %v13215_v5  ;;  %v8370_v2 = vld [vmem:[#allocation2 + $0xa0] sm:$0xff] }
 0x221   : > { %5864 = vst [vmem:[#allocation2 + $0x2a8] sm:$0x11] %v5694_v55  ;;  %7084 = vst [vmem:[#allocation2 + $0x2a0] sm:$0x22] %v6913_v36  ;;  %v6828_v43 = vrot.slane %v15284_v60, 4  ;;  %v8048_v24 = vrot.slane %v7940_v62, 4  ;;  %v12619_v30 = vcombine.high %v8369_v44, %v8433_v48  ;;  %v12618_v26 = vcombine.low %v8369_v44, %v8433_v48 }
 0x222   : > { %7969 = vrot.lane.b32.xlu0 %v7590_v8, %s13187_s20  ;;  %4309 = vrot.lane.b32.xlu1 %v7590_v8, %s13184_s17 }
 0x223   : > { %v6914_v39 = vsel %vm1986_vm0, %v6827_v61, %v6828_v43  ;;  %v8133_v57 = vsel %vm1986_vm0, %v8047_v63, %v8048_v24  ;;  %12746 = vmatprep.subr.msk.bf16.mxu1 %vm8994_vm7, %v12619_v30  ;;  %v9110_v22 = vsel %vm8994_vm7, %v12618_v26, 0  ;;  %12745 = vmatmul.mubr.msk.bf16.vlgmr.msra.gmra.mrb[36].mxu0 %vm8990_vm8, %v15013_v40  ;;  %v579_v63 = vcombine.high %v15228_v12, %v15228_v12 }
 0x224   : > { %v6915_v23 = vsel %vm6872_vm5, %v6719_v35, %v6914_v39  ;;  %v8134_v49 = vsel %vm8093_vm6, %v15215_v13, %v8133_v57  ;;  %v15311_v52 = vpop.permute.xlu0 %7941  ;;  %v4282_v38 = vpop.permute.xlu1 %4281  ;;  %10159 = vmatpush1.bf16.msra.mxu1 %v9110_v22  ;;  %10231 = vmatprep.mubr.bf16.mxu0 %v13188_v41  ;;  %v6362_v13 = vcombine.low %v15287_v0, %v15287_v0  ;;  %v8371_v44 = vld [vmem:[#allocation2 + $0xa8] sm:$0xff] }
 0x225   : > { %7085 = vst [vmem:[#allocation2 + $0x2a8] sm:$0x22] %v6915_v23  ;;  %8305 = vst [vmem:[#allocation2 + $0x2a0] sm:$0x44] %v8134_v49  ;;  %v8049_v50 = vrot.slane %v15311_v52, 4  ;;  %v4388_v53 = vrot.slane %v4282_v38, 4  ;;  %v593_v32 = vrot.slane %v579_v63, %v13215_v5  ;;  %v15395_v39 = vrot.slane %v15306_v45, %v13215_v5 }
 0x226   : > { %4311 = vrot.lane.b32.xlu0 %v6369_v34, %s13184_s17  ;;  %5529 = vrot.lane.b32.xlu1 %v15293_v4, %s13185_s18  ;;  %v6383_v17 = vrot.slane %v6362_v13, %v13215_v5  ;;  %v15353_v34 = vrot.slane %v3949_v54, %v13215_v5 }
 0x227   : > { %v8135_v10 = vsel %vm1986_vm0, %v8048_v24, %v8049_v50  ;;  %v4475_v12 = vsel %vm1986_vm0, %v4387_v1, %v4388_v53  ;;  %12747 = vmatmul.mubr.msk.bf16.vlgmr.msra.gmra.mrb[36].mxu1 %vm8990_vm8, %v15013_v40  ;;  %12551 = vst.sshfl [vmem:[#allocation2 + $0x130] sm:$0x5 pattern:$0x75316420] %v593_v32  ;;  %v595_v58 = vcombine.high %v593_v32, %v593_v32 }
 0x228   : > { %v8136_v33 = vsel %vm8093_vm6, %v7940_v62, %v8135_v10  ;;  %v4476_v31 = vsel %vm4431_vm3, %v15243_v7, %v4475_v12  ;;  %v15342_v51 = vpop.permute.xlu0 %4283  ;;  %v5502_v16 = vpop.permute.xlu1 %5501  ;;  %10272 = vmatprep.mubr.bf16.mxu1 %v13188_v41  ;;  %v7597_v7 = vrot.slane %v7582_v56, %v13215_v5  ;;  %v15418_v13 = vrot.slane %v15395_v39, %v13215_v5  ;;  %v15423_v56 = vld [vmem:[%s13220_s14 + $0x50] sm:$0xff] }
 0x229   : > { %8306 = vst [vmem:[#allocation2 + $0x2a8] sm:$0x44] %v8136_v33  ;;  %4645 = vst [vmem:[#allocation2 + $0xb0] sm:$0x88] %v4476_v31  ;;  %v4389_v42 = vrot.slane %v15342_v51, 4  ;;  %v5608_v1 = vrot.slane %v5502_v16, 4  ;;  %v631_v12 = vrot.slane %v15423_v56, %v13215_v5 }
 0x22a   : > { %5531 = vrot.lane.b32.xlu0 %v15317_v37, %s13185_s18  ;;  %6750 = vrot.lane.b32.xlu1 %v15223_v47, %s13186_s19  ;;  %12552 = vst.sshfl [vmem:[#allocation2 + $0x138] sm:$0x5 pattern:$0x75316420] %v595_v58 }
 0x22b   : > { %v4477_v11 = vsel %vm1986_vm0, %v4388_v53, %v4389_v42  ;;  %v5695_v21 = vsel %vm1986_vm0, %v5607_v6, %v5608_v1  ;;  %v5142_v6 = vcombine.high %v15287_v0, %v15287_v0  ;;  %12553 = vst.sshfl [vmem:[#allocation2 + $0x140] sm:$0x5 pattern:$0x75316420] %v631_v12 }
 0x22c   : > { %v4478_v19 = vsel %vm4431_vm3, %v4282_v38, %v4477_v11  ;;  %v5696_v46 = vsel %vm5651_vm4, %v15261_v20, %v5695_v21  ;;  %v15364_v35 = vpop.permute.xlu0 %5503  ;;  %v6723_v59 = vpop.permute.xlu1 %6722  ;;  %v8434_v8 = vld [vmem:[#allocation2 + $0x2a0] sm:$0x77]  ;;  %v3964_v20 = vcombine.low %v15353_v34, %v15353_v34  ;;  %v639_v11 = vcombine.high %v631_v12, %v631_v12 }
 0x22d   : > { %4646 = vst [vmem:[#allocation2 + $0xb8] sm:$0x88] %v4478_v19  ;;  %5865 = vst [vmem:[#allocation2 + $0x2b0] sm:$0x11] %v5696_v46  ;;  %v5609_v14 = vrot.slane %v15364_v35, 4  ;;  %v6829_v61 = vrot.slane %v6723_v59, 4  ;;  %v12621_v27 = vcombine.high %v8370_v2, %v8434_v8  ;;  %v12620_v3 = vcombine.low %v8370_v2, %v8434_v8 }
 0x22e   : > { %6752 = vrot.lane.b32.xlu0 %v6383_v17, %s13186_s19  ;;  %7971 = vrot.lane.b32.xlu1 %v7597_v7, %s13187_s20  ;;  %v5170_v26 = vrot.slane %v5142_v6, %v13215_v5  ;;  %v7635_v2 = vrot.slane %v15353_v34, %v13215_v5  ;;  %v5171_v8 = vcombine.high %v15306_v45, %v15306_v45 }
 0x22f   : > { %v5697_v9 = vsel %vm1986_vm0, %v5608_v1, %v5609_v14  ;;  %v6916_v18 = vsel %vm1986_vm0, %v6828_v43, %v6829_v61  ;;  %12748 = vmatprep.subr.msk.bf16.mxu0 %vm8994_vm7, %v12621_v27  ;;  %v9116_v25 = vsel %vm8994_vm7, %v12620_v3, 0  ;;  %12554 = vst.sshfl [vmem:[#allocation2 + $0x148] sm:$0x5 pattern:$0x75316420] %v639_v11 }
 0x230   : > { %v5698_v28 = vsel %vm5651_vm4, %v5502_v16, %v5697_v9  ;;  %v6917_v55 = vsel %vm6872_vm5, %v15284_v60, %v6916_v18  ;;  %v15384_v36 = vpop.permute.xlu0 %6724  ;;  %v7944_v62 = vpop.permute.xlu1 %7943  ;;  %10200 = vmatpush1.bf16.msra.mxu0 %v9116_v25  ;;  %v8435_v48 = vld [vmem:[#allocation2 + $0x2a8] sm:$0x77]  ;;  %v3972_v60 = vrot.slane %v3964_v20, %v13215_v5 }
 0x231   : > { %5866 = vst [vmem:[#allocation2 + $0x2b8] sm:$0x11] %v5698_v28  ;;  %7086 = vst [vmem:[#allocation2 + $0x2b0] sm:$0x22] %v6917_v55  ;;  %v6830_v0 = vrot.slane %v15384_v36, 4  ;;  %v8050_v43 = vrot.slane %v7944_v62, 4  ;;  %v12623_v24 = vcombine.high %v8371_v44, %v8435_v48  ;;  %v12622_v30 = vcombine.low %v8371_v44, %v8435_v48 }
 0x232   : > { %7973 = vrot.lane.b32.xlu0 %v15223_v47, %s13187_s20  ;;  %4313 = vrot.lane.b32.xlu1 %v15223_v47, %s13184_s17 }
 0x233   : > { %v6918_v57 = vsel %vm1986_vm0, %v6829_v61, %v6830_v0  ;;  %v8137_v22 = vsel %vm1986_vm0, %v8049_v50, %v8050_v43  ;;  %12750 = vmatprep.subr.msk.bf16.mxu1 %vm8994_vm7, %v12623_v24  ;;  %v9122_v47 = vsel %vm8994_vm7, %v12622_v30, 0  ;;  %12749 = vmatmul.mubr.msk.bf16.vlgmr.msra.gmra.mrb[40].mxu0 %vm8990_vm8, %v15013_v40 }
 0x234   : > { %v6919_v23 = vsel %vm6872_vm5, %v6723_v59, %v6918_v57  ;;  %v8138_v49 = vsel %vm8093_vm6, %v15311_v52, %v8137_v22  ;;  %v15410_v38 = vpop.permute.xlu0 %7945  ;;  %v4286_v53 = vpop.permute.xlu1 %4285  ;;  %10241 = vmatpush1.bf16.msra.mxu1 %v9122_v47  ;;  %10313 = vmatprep.mubr.bf16.mxu0 %v13188_v41  ;;  %v6406_v52 = vcombine.low %v15395_v39, %v15395_v39  ;;  %v8373_v28 = vld [vmem:[#allocation2 + $0xb8] sm:$0xff] }
 0x235   : > { %7087 = vst [vmem:[#allocation2 + $0x2b8] sm:$0x22] %v6919_v23  ;;  %8307 = vst [vmem:[#allocation2 + $0x2b0] sm:$0x44] %v8138_v49  ;;  %v8051_v50 = vrot.slane %v15410_v38, 4  ;;  %v4390_v63 = vrot.slane %v4286_v53, 4 }
 0x236   : > { %4315 = vrot.lane.b32.xlu0 %v3972_v60, %s13184_s17  ;;  %5533 = vrot.lane.b32.xlu1 %v5170_v26, %s13185_s18  ;;  %v6414_v17 = vrot.slane %v6406_v52, %v13215_v5  ;;  %v15501_v26 = vld [vmem:[%s13220_s14 + $0x58] sm:$0xff] }
 0x237   : > { %v8139_v54 = vsel %vm1986_vm0, %v8050_v43, %v8051_v50  ;;  %v4479_v10 = vsel %vm1986_vm0, %v4389_v42, %v4390_v63  ;;  %12751 = vmatmul.mubr.msk.bf16.vlgmr.msra.gmra.mrb[40].mxu1 %vm8990_vm8, %v15013_v40  ;;  %v3994_v52 = vcombine.low %v15501_v26, %v15501_v26 }
 0x238   : > { %v8140_v32 = vsel %vm8093_vm6, %v7944_v62, %v8139_v54  ;;  %v4480_v33 = vsel %vm4431_vm3, %v15342_v51, %v4479_v10  ;;  %v15438_v31 = vpop.permute.xlu0 %4287  ;;  %v5506_v16 = vpop.permute.xlu1 %5505  ;;  %10354 = vmatprep.mubr.bf16.mxu1 %v13188_v41  ;;  %v15482_v62 = vrot.slane %v5171_v8, %v13215_v5 }
 0x239   : > { %8308 = vst [vmem:[#allocation2 + $0x2b8] sm:$0x44] %v8140_v32  ;;  %4647 = vst [vmem:[#allocation2 + $0xc0] sm:$0x88] %v4480_v33  ;;  %v4391_v42 = vrot.slane %v15438_v31, 4  ;;  %v5610_v1 = vrot.slane %v5506_v16, 4 }
 0x23a   : > { %5535 = vrot.lane.b32.xlu0 %v15418_v13, %s13185_s18  ;;  %6754 = vrot.lane.b32.xlu1 %v15317_v37, %s13186_s19  ;;  %v8372_v37 = vld [vmem:[#allocation2 + $0xb0] sm:$0xff] }
 0x23b   : > { %v4481_v51 = vsel %vm1986_vm0, %v4390_v63, %v4391_v42  ;;  %v5699_v7 = vsel %vm1986_vm0, %v5609_v14, %v5610_v1  ;;  %v7627_v63 = vcombine.high %v15353_v34, %v15353_v34 }
 0x23c   : > { %v4482_v21 = vsel %vm4431_vm3, %v4286_v53, %v4481_v51  ;;  %v5700_v58 = vsel %vm5651_vm4, %v15364_v35, %v5699_v7  ;;  %v15456_v19 = vpop.permute.xlu0 %5507  ;;  %v6727_v46 = vpop.permute.xlu1 %6726  ;;  %v8436_v59 = vld [vmem:[#allocation2 + $0x2b0] sm:$0x77]  ;;  %v5186_v35 = vcombine.high %v15395_v39, %v15395_v39  ;;  %v15512_v53 = vrot.slane %v15482_v62, %v13215_v5 }
 0x23d   : > { %4648 = vst [vmem:[#allocation2 + $0xc8] sm:$0x88] %v4482_v21  ;;  %5867 = vst [vmem:[#allocation2 + $0x2c0] sm:$0x11] %v5700_v58  ;;  %v5611_v14 = vrot.slane %v15456_v19, 4  ;;  %v6831_v61 = vrot.slane %v6727_v46, 4  ;;  %v12625_v27 = vcombine.high %v8372_v37, %v8436_v59  ;;  %v12624_v3 = vcombine.low %v8372_v37, %v8436_v59 }
 0x23e   : > { %6756 = vrot.lane.b32.xlu0 %v6414_v17, %s13186_s19  ;;  %7975 = vrot.lane.b32.xlu1 %v15293_v4, %s13187_s20 }
 0x23f   : > { %v5701_v45 = vsel %vm1986_vm0, %v5610_v1, %v5611_v14  ;;  %v6920_v20 = vsel %vm1986_vm0, %v6830_v0, %v6831_v61  ;;  %12752 = vmatprep.subr.msk.bf16.mxu0 %vm8994_vm7, %v12625_v27  ;;  %v9128_v6 = vsel %vm8994_vm7, %v12624_v3, 0 }
 0x240   : > { %v5702_v9 = vsel %vm5651_vm4, %v5506_v16, %v5701_v45  ;;  %v6921_v4 = vsel %vm6872_vm5, %v15384_v36, %v6920_v20  ;;  %v15479_v18 = vpop.permute.xlu0 %6728  ;;  %v7948_v25 = vpop.permute.xlu1 %7947  ;;  %10282 = vmatpush1.bf16.msra.mxu0 %v9128_v6  ;;  %v8437_v55 = vld [vmem:[#allocation2 + $0x2b8] sm:$0x77]  ;;  %v15488_v36 = vrot.slane %v5186_v35, %v13215_v5  ;;  %v8374_v59 = vld [vmem:[#allocation2 + $0xc0] sm:$0xff] }
 0x241   : > { %5868 = vst [vmem:[#allocation2 + $0x2c8] sm:$0x11] %v5702_v9  ;;  %7088 = vst [vmem:[#allocation2 + $0x2c0] sm:$0x22] %v6921_v4  ;;  %v6832_v44 = vrot.slane %v15479_v18, 4  ;;  %v8052_v48 = vrot.slane %v7948_v25, 4  ;;  %v12627_v0 = vcombine.high %v8373_v28, %v8437_v55  ;;  %v12626_v43 = vcombine.low %v8373_v28, %v8437_v55 }
 0x242   : > { %7977 = vrot.lane.b32.xlu0 %v7635_v2, %s13187_s20  ;;  %4317 = vrot.lane.b32.xlu1 %v7635_v2, %s13184_s17 }
 0x243   : > { %v6922_v24 = vsel %vm1986_vm0, %v6831_v61, %v6832_v44  ;;  %v8141_v30 = vsel %vm1986_vm0, %v8051_v50, %v8052_v48  ;;  %12754 = vmatprep.subr.msk.bf16.mxu1 %vm8994_vm7, %v12627_v0  ;;  %v9134_v60 = vsel %vm8994_vm7, %v12626_v43, 0  ;;  %12753 = vmatmul.mubr.msk.bf16.vlgmr.msra.gmra.mrb[44].mxu0 %vm8990_vm8, %v15013_v40  ;;  %v624_v50 = vcombine.high %v15423_v56, %v15423_v56 }
 0x244   : > { %v6923_v39 = vsel %vm6872_vm5, %v6727_v46, %v6922_v24  ;;  %v8142_v57 = vsel %vm8093_vm6, %v15410_v38, %v8141_v30  ;;  %v15506_v22 = vpop.permute.xlu0 %7949  ;;  %v4290_v47 = vpop.permute.xlu1 %4289  ;;  %10323 = vmatpush1.bf16.msra.mxu1 %v9134_v60  ;;  %10395 = vmatprep.mubr.bf16.mxu0 %v13188_v41  ;;  %v6407_v38 = vcombine.low %v15482_v62, %v15482_v62  ;;  %v8375_v28 = vld [vmem:[#allocation2 + $0xc8] sm:$0xff] }
 0x245   : > { %7089 = vst [vmem:[#allocation2 + $0x2c8] sm:$0x22] %v6923_v39  ;;  %8309 = vst [vmem:[#allocation2 + $0x2c0] sm:$0x44] %v8142_v57  ;;  %v8053_v23 = vrot.slane %v15506_v22, 4  ;;  %v4392_v49 = vrot.slane %v4290_v47, 4  ;;  %v638_v10 = vrot.slane %v624_v50, %v13215_v5  ;;  %v15590_v24 = vrot.slane %v15501_v26, %v13215_v5 }
 0x246   : > { %4319 = vrot.lane.b32.xlu0 %v6414_v17, %s13184_s17  ;;  %5537 = vrot.lane.b32.xlu1 %v15488_v36, %s13185_s18  ;;  %v6428_v1 = vrot.slane %v6407_v38, %v13215_v5  ;;  %v15548_v17 = vrot.slane %v3994_v52, %v13215_v5  ;;  %v15618_v38 = vld [vmem:[%s13220_s14 + $0x58] sm:$0xff] }
 0x247   : > { %v8143_v54 = vsel %vm1986_vm0, %v8052_v48, %v8053_v23  ;;  %v4483_v56 = vsel %vm1986_vm0, %v4391_v42, %v4392_v49  ;;  %12755 = vmatmul.mubr.msk.bf16.vlgmr.msra.gmra.mrb[44].mxu1 %vm8990_vm8, %v15013_v40  ;;  %12555 = vst.sshfl [vmem:[#allocation2 + $0x150] sm:$0x5 pattern:$0x75316420] %v638_v10  ;;  %v640_v11 = vcombine.high %v638_v10, %v638_v10 }
 0x248   : > { %v8144_v12 = vsel %vm8093_vm6, %v7948_v25, %v8143_v54  ;;  %v4484_v34 = vsel %vm4431_vm3, %v15438_v31, %v4483_v56  ;;  %v15537_v32 = vpop.permute.xlu0 %4291  ;;  %v5510_v33 = vpop.permute.xlu1 %5509  ;;  %10436 = vmatprep.mubr.bf16.mxu1 %v13188_v41  ;;  %v7642_v31 = vrot.slane %v7627_v63, %v13215_v5  ;;  %v15629_v54 = vld [vmem:[%s17299_s1] sm:$0x3]  ;;  %v676_v56 = vrot.slane %v15618_v38, %v13215_v5 }
 0x249   : > { %8310 = vst [vmem:[#allocation2 + $0x2c8] sm:$0x44] %v8144_v12  ;;  %4649 = vst [vmem:[#allocation2 + $0xd0] sm:$0x88] %v4484_v34  ;;  %v4393_v16 = vrot.slane %v15537_v32, 4  ;;  %v5612_v42 = vrot.slane %v5510_v33, 4 }
 0x24a   : > { %5539 = vrot.lane.b32.xlu0 %v15512_v53, %s13185_s18  ;;  %6758 = vrot.lane.b32.xlu1 %v15418_v13, %s13186_s19  ;;  %12556 = vst.sshfl [vmem:[#allocation2 + $0x158] sm:$0x5 pattern:$0x75316420] %v640_v11 }
 0x24b   : > { %v4485_v51 = vsel %vm1986_vm0, %v4392_v49, %v4393_v16  ;;  %v5703_v7 = vsel %vm1986_vm0, %v5611_v14, %v5612_v42  ;;  %v5187_v14 = vcombine.high %v15482_v62, %v15482_v62  ;;  %12557 = vst.sshfl [vmem:[#allocation2 + $0x160] sm:$0x5 pattern:$0x75316420] %v676_v56 }
 0x24c   : > { %v4486_v21 = vsel %vm4431_vm3, %v4290_v47, %v4485_v51  ;;  %v5704_v58 = vsel %vm5651_vm4, %v15456_v19, %v5703_v7  ;;  %v15559_v46 = vpop.permute.xlu0 %5511  ;;  %v6731_v37 = vpop.permute.xlu1 %6730  ;;  %v8438_v2 = vld [vmem:[#allocation2 + $0x2c0] sm:$0x77]  ;;  %v4009_v19 = vcombine.low %v15548_v17, %v15548_v17  ;;  %v684_v51 = vcombine.high %v676_v56, %v676_v56 }
 0x24d   : > { %4650 = vst [vmem:[#allocation2 + $0xd8] sm:$0x88] %v4486_v21  ;;  %5869 = vst [vmem:[#allocation2 + $0x2d0] sm:$0x11] %v5704_v58  ;;  %v5613_v8 = vrot.slane %v15559_v46, 4  ;;  %v6833_v61 = vrot.slane %v6731_v37, 4  ;;  %v12629_v27 = vcombine.high %v8374_v59, %v8438_v2  ;;  %v12628_v3 = vcombine.low %v8374_v59, %v8438_v2 }
 0x24e   : > { %6760 = vrot.lane.b32.xlu0 %v6428_v1, %s13186_s19  ;;  %7979 = vrot.lane.b32.xlu1 %v7642_v31, %s13187_s20  ;;  %v5215_v43 = vrot.slane %v5187_v14, %v13215_v5  ;;  %v7680_v59 = vrot.slane %v15548_v17, %v13215_v5  ;;  %v5216_v2 = vcombine.high %v15501_v26, %v15501_v26 }
 0x24f   : > { %v5705_v35 = vsel %vm1986_vm0, %v5612_v42, %v5613_v8  ;;  %v6924_v45 = vsel %vm1986_vm0, %v6832_v44, %v6833_v61  ;;  %12756 = vmatprep.subr.msk.bf16.mxu0 %vm8994_vm7, %v12629_v27  ;;  %v9140_v20 = vsel %vm8994_vm7, %v12628_v3, 0  ;;  %12558 = vst.sshfl [vmem:[#allocation2 + $0x168] sm:$0x5 pattern:$0x75316420] %v684_v51 }
 0x250   : > { %v5706_v6 = vsel %vm5651_vm4, %v5510_v33, %v5705_v35  ;;  %v6925_v9 = vsel %vm6872_vm5, %v15479_v18, %v6924_v45  ;;  %v15579_v4 = vpop.permute.xlu0 %6732  ;;  %v7952_v25 = vpop.permute.xlu1 %7951  ;;  %10364 = vmatpush1.bf16.msra.mxu0 %v9140_v20  ;;  %v8439_v55 = vld [vmem:[#allocation2 + $0x2c8] sm:$0x77]  ;;  %v4017_v18 = vrot.slane %v4009_v19, %v13215_v5 }
 0x251   : > { %5870 = vst [vmem:[#allocation2 + $0x2d8] sm:$0x11] %v5706_v6  ;;  %7090 = vst [vmem:[#allocation2 + $0x2d0] sm:$0x22] %v6925_v9  ;;  %v6834_v62 = vrot.slane %v15579_v4, 4  ;;  %v8054_v44 = vrot.slane %v7952_v25, 4  ;;  %v12631_v48 = vcombine.high %v8375_v28, %v8439_v55  ;;  %v12630_v0 = vcombine.low %v8375_v28, %v8439_v55 }
 0x252   : > { %7981 = vrot.lane.b32.xlu0 %v15418_v13, %s13187_s20  ;;  %4321 = vrot.lane.b32.xlu1 %v15418_v13, %s13184_s17 }
 0x253   : > { %v6926_v30 = vsel %vm1986_vm0, %v6833_v61, %v6834_v62  ;;  %v8145_v60 = vsel %vm1986_vm0, %v8053_v23, %v8054_v44  ;;  %12758 = vmatprep.subr.msk.bf16.mxu1 %vm8994_vm7, %v12631_v48  ;;  %v9146_v13 = vsel %vm8994_vm7, %v12630_v0, 0  ;;  %12757 = vmatmul.mubr.msk.bf16.vlgmr.msra.gmra.mrb[48].mxu0 %vm8990_vm8, %v15013_v40  ;;  %v15613_v40 = vrot.slane %v15590_v24, %v13215_v5 }
 0x254   : > { %v6927_v39 = vsel %vm6872_vm5, %v6731_v37, %v6926_v30  ;;  %v8146_v57 = vsel %vm8093_vm6, %v15506_v22, %v8145_v60  ;;  %v15605_v47 = vpop.permute.xlu0 %7953  ;;  %v4294_v49 = vpop.permute.xlu1 %4293  ;;  %10405 = vmatpush1.bf16.msra.mxu1 %v9146_v13  ;;  %10477 = vmatprep.mubr.bf16.mxu0 %v13188_v41  ;;  %v6451_v22 = vcombine.low %v15590_v24, %v15590_v24  ;;  %v8377_v6 = vld [vmem:[#allocation2 + $0xd8] sm:$0xff] }
 0x255   : > { %7091 = vst [vmem:[#allocation2 + $0x2d8] sm:$0x22] %v6927_v39  ;;  %8311 = vst [vmem:[#allocation2 + $0x2d0] sm:$0x44] %v8146_v57  ;;  %v8055_v23 = vrot.slane %v15605_v47, 4  ;;  %v4394_v50 = vrot.slane %v4294_v49, 4 }
 0x256   : > { %4323 = vrot.lane.b32.xlu0 %v4017_v18, %s13184_s17  ;;  %5541 = vrot.lane.b32.xlu1 %v5215_v43, %s13185_s18  ;;  %v6459_v1 = vrot.slane %v6451_v22, %v13215_v5  ;;  %v15701_v43 = vld [vmem:[%s13220_s14 + $0x60] sm:$0xff] }
 0x257   : > { %v8147_v63 = vsel %vm1986_vm0, %v8054_v44, %v8055_v23  ;;  %v4487_v52 = vsel %vm1986_vm0, %v4393_v16, %v4394_v50  ;;  %12759 = vmatmul.mubr.msk.bf16.vlgmr.msra.gmra.mrb[48].mxu1 %vm8990_vm8, %v15629_v54  ;;  %v4039_v22 = vcombine.low %v15701_v43, %v15701_v43 }
 0x258   : > { %v8148_v10 = vsel %vm8093_vm6, %v7952_v25, %v8147_v63  ;;  %v4488_v12 = vsel %vm4431_vm3, %v15537_v32, %v4487_v52  ;;  %v15638_v34 = vpop.permute.xlu0 %4295  ;;  %v5514_v33 = vpop.permute.xlu1 %5513  ;;  %10518 = vmatprep.mubr.bf16.mxu1 %v13188_v41  ;;  %v15682_v25 = vrot.slane %v5216_v2, %v13215_v5 }
 0x259   : > { %8312 = vst [vmem:[#allocation2 + $0x2d8] sm:$0x44] %v8148_v10  ;;  %4651 = vst [vmem:[#allocation2 + $0xe0] sm:$0x88] %v4488_v12  ;;  %v4395_v16 = vrot.slane %v15638_v34, 4  ;;  %v5614_v42 = vrot.slane %v5514_v33, 4 }
 0x25a   : > { %5543 = vrot.lane.b32.xlu0 %v15613_v40, %s13185_s18  ;;  %6762 = vrot.lane.b32.xlu1 %v15512_v53, %s13186_s19  ;;  %v8376_v53 = vld [vmem:[#allocation2 + $0xd0] sm:$0xff] }
 0x25b   : > { %v4489_v32 = vsel %vm1986_vm0, %v4394_v50, %v4395_v16  ;;  %v5707_v31 = vsel %vm1986_vm0, %v5613_v8, %v5614_v42  ;;  %v7672_v50 = vcombine.high %v15548_v17, %v15548_v17 }
 0x25c   : > { %v4490_v7 = vsel %vm4431_vm3, %v4294_v49, %v4489_v32  ;;  %v5708_v11 = vsel %vm5651_vm4, %v15559_v46, %v5707_v31  ;;  %v15656_v21 = vpop.permute.xlu0 %5515  ;;  %v6735_v58 = vpop.permute.xlu1 %6734  ;;  %v8440_v37 = vld [vmem:[#allocation2 + $0x2d0] sm:$0x77]  ;;  %v5231_v46 = vcombine.high %v15590_v24, %v15590_v24  ;;  %v15712_v49 = vrot.slane %v15682_v25, %v13215_v5 }
 0x25d   : > { %4652 = vst [vmem:[#allocation2 + $0xe8] sm:$0x88] %v4490_v7  ;;  %5871 = vst [vmem:[#allocation2 + $0x2e0] sm:$0x11] %v5708_v11  ;;  %v5615_v8 = vrot.slane %v15656_v21, 4  ;;  %v6835_v61 = vrot.slane %v6735_v58, 4  ;;  %v12633_v27 = vcombine.high %v8376_v53, %v8440_v37  ;;  %v12632_v3 = vcombine.low %v8376_v53, %v8440_v37 }
 0x25e   : > { %6764 = vrot.lane.b32.xlu0 %v6459_v1, %s13186_s19  ;;  %7983 = vrot.lane.b32.xlu1 %v15488_v36, %s13187_s20 }
 0x25f   : > { %v5709_v26 = vsel %vm1986_vm0, %v5614_v42, %v5615_v8  ;;  %v6928_v19 = vsel %vm1986_vm0, %v6834_v62, %v6835_v61  ;;  %12760 = vmatprep.subr.msk.bf16.mxu0 %vm8994_vm7, %v12633_v27  ;;  %v9152_v14 = vsel %vm8994_vm7, %v12632_v3, 0 }
 0x260   : > { %v5710_v35 = vsel %vm5651_vm4, %v5514_v33, %v5709_v26  ;;  %v6929_v36 = vsel %vm6872_vm5, %v15579_v4, %v6928_v19  ;;  %v15679_v45 = vpop.permute.xlu0 %6736  ;;  %v7956_v20 = vpop.permute.xlu1 %7955  ;;  %10446 = vmatpush1.bf16.msra.mxu0 %v9152_v14  ;;  %v8441_v9 = vld [vmem:[#allocation2 + $0x2d8] sm:$0x77]  ;;  %v15688_v4 = vrot.slane %v5231_v46, %v13215_v5  ;;  %v8378_v37 = vld [vmem:[#allocation2 + $0xe0] sm:$0xff] }
 0x261   : > { %5872 = vst [vmem:[#allocation2 + $0x2e8] sm:$0x11] %v5710_v35  ;;  %7092 = vst [vmem:[#allocation2 + $0x2e0] sm:$0x22] %v6929_v36  ;;  %v6836_v28 = vrot.slane %v15679_v45, 4  ;;  %v8056_v55 = vrot.slane %v7956_v20, 4  ;;  %v12635_v62 = vcombine.high %v8377_v6, %v8441_v9  ;;  %v12634_v44 = vcombine.low %v8377_v6, %v8441_v9 }
 0x262   : > { %7985 = vrot.lane.b32.xlu0 %v7680_v59, %s13187_s20  ;;  %4325 = vrot.lane.b32.xlu1 %v7680_v59, %s13184_s17 }
 0x263   : > { %v6930_v48 = vsel %vm1986_vm0, %v6835_v61, %v6836_v28  ;;  %v8149_v0 = vsel %vm1986_vm0, %v8055_v23, %v8056_v55  ;;  %12762 = vmatprep.subr.msk.bf16.mxu1 %vm8994_vm7, %v12635_v62  ;;  %v9158_v18 = vsel %vm8994_vm7, %v12634_v44, 0  ;;  %12761 = vmatmul.mubr.msk.bf16.vlgmr.msra.gmra.mrb[52].mxu0 %vm8990_vm8, %v15629_v54  ;;  %v669_v23 = vcombine.high %v15618_v38, %v15618_v38 }
 0x264   : > { %v6931_v24 = vsel %vm6872_vm5, %v6735_v58, %v6930_v48  ;;  %v8150_v30 = vsel %vm8093_vm6, %v15605_v47, %v8149_v0  ;;  %v15706_v60 = vpop.permute.xlu0 %7957  ;;  %v4298_v13 = vpop.permute.xlu1 %4297  ;;  %10487 = vmatpush1.bf16.msra.mxu1 %v9158_v18  ;;  %10559 = vmatprep.mubr.bf16.mxu0 %v13188_v41  ;;  %v6452_v47 = vcombine.low %v15682_v25, %v15682_v25  ;;  %v8379_v6 = vld [vmem:[#allocation2 + $0xe8] sm:$0xff] }
 0x265   : > { %7093 = vst [vmem:[#allocation2 + $0x2e8] sm:$0x22] %v6931_v24  ;;  %8313 = vst [vmem:[#allocation2 + $0x2e0] sm:$0x44] %v8150_v30  ;;  %v8057_v39 = vrot.slane %v15706_v60, 4  ;;  %v4396_v57 = vrot.slane %v4298_v13, 4  ;;  %v683_v52 = vrot.slane %v669_v23, %v13215_v5  ;;  %v15790_v48 = vrot.slane %v15701_v43, %v13215_v5 }
 0x266   : > { %4327 = vrot.lane.b32.xlu0 %v6459_v1, %s13184_s17  ;;  %5545 = vrot.lane.b32.xlu1 %v15688_v4, %s13185_s18  ;;  %v6473_v42 = vrot.slane %v6452_v47, %v13215_v5  ;;  %v15748_v1 = vrot.slane %v4039_v22, %v13215_v5 }
 0x267   : > { %v8151_v63 = vsel %vm1986_vm0, %v8056_v55, %v8057_v39  ;;  %v4491_v38 = vsel %vm1986_vm0, %v4395_v16, %v4396_v57  ;;  %12763 = vmatmul.mubr.msk.bf16.vlgmr.msra.gmra.mrb[52].mxu1 %vm8990_vm8, %v15629_v54  ;;  %12559 = vst.sshfl [vmem:[#allocation2 + $0x170] sm:$0x5 pattern:$0x75316420] %v683_v52  ;;  %v685_v51 = vcombine.high %v683_v52, %v683_v52 }
 0x268   : > { %v8152_v56 = vsel %vm8093_vm6, %v7956_v20, %v8151_v63  ;;  %v4492_v17 = vsel %vm4431_vm3, %v15638_v34, %v4491_v38  ;;  %v15737_v10 = vpop.permute.xlu0 %4299  ;;  %v5518_v12 = vpop.permute.xlu1 %5517  ;;  %10600 = vmatprep.mubr.bf16.mxu1 %v13188_v41  ;;  %v7687_v34 = vrot.slane %v7672_v50, %v13215_v5  ;;  %v15813_v47 = vrot.slane %v15790_v48, %v13215_v5 }
 0x269   : > { %8314 = vst [vmem:[#allocation2 + $0x2e8] sm:$0x44] %v8152_v56  ;;  %4653 = vst [vmem:[#allocation2 + $0xf0] sm:$0x88] %v4492_v17  ;;  %v4397_v33 = vrot.slane %v15737_v10, 4  ;;  %v5616_v16 = vrot.slane %v5518_v12, 4 }
 0x26a   : > { %5547 = vrot.lane.b32.xlu0 %v15712_v49, %s13185_s18  ;;  %6766 = vrot.lane.b32.xlu1 %v15613_v40, %s13186_s19  ;;  %12560 = vst.sshfl [vmem:[#allocation2 + $0x178] sm:$0x5 pattern:$0x75316420] %v685_v51  ;;  %v15832_v17 = vld [vmem:[%s13220_s14 + $0x60] sm:$0xff] }
 0x26b   : > { %v4493_v32 = vsel %vm1986_vm0, %v4396_v57, %v4397_v33  ;;  %v5711_v31 = vsel %vm1986_vm0, %v5615_v8, %v5616_v16  ;;  %v5232_v8 = vcombine.high %v15682_v25, %v15682_v25 }
 0x26c   : > { %v4494_v7 = vsel %vm4431_vm3, %v4298_v13, %v4493_v32  ;;  %v5712_v11 = vsel %vm5651_vm4, %v15656_v21, %v5711_v31  ;;  %v15759_v58 = vpop.permute.xlu0 %5519  ;;  %v6739_v53 = vpop.permute.xlu1 %6738  ;;  %v8442_v59 = vld [vmem:[#allocation2 + $0x2e0] sm:$0x77]  ;;  %v4054_v21 = vcombine.low %v15748_v1, %v15748_v1 }
 0x26d   : > { %4654 = vst [vmem:[#allocation2 + $0xf8] sm:$0x88] %v4494_v7  ;;  %5873 = vst [vmem:[#allocation2 + $0x2f0] sm:$0x11] %v5712_v11  ;;  %v5617_v2 = vrot.slane %v15759_v58, 4  ;;  %v6837_v61 = vrot.slane %v6739_v53, 4  ;;  %v12637_v27 = vcombine.high %v8378_v37, %v8442_v59  ;;  %v12636_v3 = vcombine.low %v8378_v37, %v8442_v59 }
 0x26e   : > { %6768 = vrot.lane.b32.xlu0 %v6473_v42, %s13186_s19  ;;  %7987 = vrot.lane.b32.xlu1 %v7687_v34, %s13187_s20  ;;  %v5260_v44 = vrot.slane %v5232_v8, %v13215_v5  ;;  %v15843_v42 = vld.sshfl [vmem:[%s13220_s14 + $0x60] sm:$0xff pattern:$0x73625140]  ;;  %v7725_v59 = vrot.slane %v15748_v1, %v13215_v5 }
 0x26f   : > { %v5713_v46 = vsel %vm1986_vm0, %v5616_v16, %v5617_v2  ;;  %v6932_v26 = vsel %vm1986_vm0, %v6836_v28, %v6837_v61  ;;  %12764 = vmatprep.subr.msk.bf16.mxu0 %vm8994_vm7, %v12637_v27  ;;  %v9164_v19 = vsel %vm8994_vm7, %v12636_v3, 0  ;;  %v721_v16 = vrot.slane %v15832_v17, %v13215_v5 }
 0x270   : > { %v5714_v14 = vsel %vm5651_vm4, %v5518_v12, %v5713_v46  ;;  %v6933_v35 = vsel %vm6872_vm5, %v15679_v45, %v6932_v26  ;;  %v15779_v36 = vpop.permute.xlu0 %6740  ;;  %v7960_v20 = vpop.permute.xlu1 %7959  ;;  %10528 = vmatpush1.bf16.msra.mxu0 %v9164_v19  ;;  %v8443_v9 = vld [vmem:[#allocation2 + $0x2e8] sm:$0x77]  ;;  %v4062_v45 = vrot.slane %v4054_v21, %v13215_v5  ;;  %v5261_v21 = vcombine.high %v15701_v43, %v15701_v43 }
 0x271   : > { %5874 = vst [vmem:[#allocation2 + $0x2f8] sm:$0x11] %v5714_v14  ;;  %7094 = vst [vmem:[#allocation2 + $0x2f0] sm:$0x22] %v6933_v35  ;;  %v6838_v25 = vrot.slane %v15779_v36, 4  ;;  %v8058_v28 = vrot.slane %v7960_v20, 4  ;;  %v12639_v55 = vcombine.high %v8379_v6, %v8443_v9  ;;  %v12638_v62 = vcombine.low %v8379_v6, %v8443_v9 }
 0x272   : > { %7989 = vrot.lane.b32.xlu0 %v15613_v40, %s13187_s20  ;;  %4329 = vrot.lane.b32.xlu1 %v15613_v40, %s13184_s17  ;;  %12561 = vst.sshfl [vmem:[#allocation2 + $0x180] sm:$0x5 pattern:$0x75316420] %v721_v16  ;;  %v729_v31 = vcombine.high %v721_v16, %v721_v16 }
 0x273   : > { %v6934_v0 = vsel %vm1986_vm0, %v6837_v61, %v6838_v25  ;;  %v8153_v18 = vsel %vm1986_vm0, %v8057_v39, %v8058_v28  ;;  %12766 = vmatprep.subr.msk.bf16.mxu1 %vm8994_vm7, %v12639_v55  ;;  %v9170_v40 = vsel %vm8994_vm7, %v12638_v62, 0  ;;  %12765 = vmatmul.mubr.msk.bf16.vlgmr.msra.gmra.mrb[56].mxu0 %vm8990_vm8, %v15629_v54  ;;  %v15885_v55 = vrot.slane %v5261_v21, %v13215_v5 }
 0x274   : > { %v6935_v24 = vsel %vm6872_vm5, %v6739_v53, %v6934_v0  ;;  %v8154_v30 = vsel %vm8093_vm6, %v15706_v60, %v8153_v18  ;;  %v15805_v13 = vpop.permute.xlu0 %7961  ;;  %v4302_v57 = vpop.permute.xlu1 %4301  ;;  %10569 = vmatpush1.bf16.msra.mxu1 %v9170_v40  ;;  %10641 = vmatprep.mubr.bf16.mxu0 %v13188_v41  ;;  %v6496_v60 = vcombine.low %v15790_v48, %v15790_v48  ;;  %v8380_v53 = vld [vmem:[#allocation2 + $0xf0] sm:$0xff]  ;;  %v8381_v35 = vld [vmem:[#allocation2 + $0xf8] sm:$0xff] }
 0x275   : > { %7095 = vst [vmem:[#allocation2 + $0x2f8] sm:$0x22] %v6935_v24  ;;  %8315 = vst [vmem:[#allocation2 + $0x2f0] sm:$0x44] %v8154_v30  ;;  %v8059_v39 = vrot.slane %v15805_v13, 4  ;;  %v4398_v23 = vrot.slane %v4302_v57, 4 }
 0x276   : > { %4331 = vrot.lane.b32.xlu0 %v4062_v45, %s13184_s17  ;;  %5549 = vrot.lane.b32.xlu1 %v5260_v44, %s13185_s18  ;;  %12562 = vst.sshfl [vmem:[#allocation2 + $0x188] sm:$0x5 pattern:$0x75316420] %v729_v31 }
 0x277   : > { %v8155_v50 = vsel %vm1986_vm0, %v8058_v28, %v8059_v39  ;;  %v4495_v22 = vsel %vm1986_vm0, %v4397_v33, %v4398_v23  ;;  %12767 = vmatmul.mubr.msk.bf16.vlgmr.msra.gmra.mrb[56].mxu1 %vm8990_vm8, %v15629_v54 }
 0x278   : > { %v8156_v63 = vsel %vm8093_vm6, %v7960_v20, %v8155_v50  ;;  %v4496_v38 = vsel %vm4431_vm3, %v15737_v10, %v4495_v22  ;;  %v15828_v52 = vpop.permute.xlu0 %4303  ;;  %v5522_v56 = vpop.permute.xlu1 %5521  ;;  %10682 = vmatprep.mubr.bf16.mxu1 %v13188_v41  ;;  %v6504_v10 = vrot.slane %v6496_v60, %v13215_v5  ;;  %v15924_v50 = vld [vmem:[%s13220_s14 + $0x68] sm:$0xff] }
 0x279   : > { %8316 = vst [vmem:[#allocation2 + $0x2f8] sm:$0x44] %v8156_v63  ;;  %4655 = vst [vmem:[#allocation2 + $0x100] sm:$0x88] %v4496_v38  ;;  %v4399_v12 = vrot.slane %v15828_v52, 4  ;;  %v5618_v33 = vrot.slane %v5522_v56, 4 }
 0x27a   : > { %5551 = vrot.lane.b32.xlu0 %v15813_v47, %s13185_s18  ;;  %6770 = vrot.lane.b32.xlu1 %v15712_v49, %s13186_s19 }
 0x27b   : > { %v4497_v34 = vsel %vm1986_vm0, %v4398_v23, %v4399_v12  ;;  %v5715_v32 = vsel %vm1986_vm0, %v5617_v2, %v5618_v33 }
 0x27c   : > { %v4498_v51 = vsel %vm4431_vm3, %v4302_v57, %v4497_v34  ;;  %v5716_v7 = vsel %vm5651_vm4, %v15759_v58, %v5715_v32  ;;  %v15854_v49 = vpop.permute.xlu0 %5523  ;;  %v6743_v11 = vpop.permute.xlu1 %6742  ;;  %v8444_v37 = vld [vmem:[#allocation2 + $0x2f0] sm:$0x77]  ;;  %v2855_v58 = vrot.slane %v15843_v42, %v13215_v5 }
 0x27d   : > { %4656 = vst [vmem:[#allocation2 + $0x108] sm:$0x88] %v4498_v51  ;;  %5875 = vst [vmem:[#allocation2 + $0x300] sm:$0x11] %v5716_v7  ;;  %v5619_v61 = vrot.slane %v15854_v49, 4  ;;  %v6839_v2 = vrot.slane %v6743_v11, 4  ;;  %v12641_v27 = vcombine.high %v8380_v53, %v8444_v37  ;;  %v12640_v3 = vcombine.low %v8380_v53, %v8444_v37 }
 0x27e   : > { %6772 = vrot.lane.b32.xlu0 %v6504_v10, %s13186_s19  ;;  %7991 = vrot.lane.b32.xlu1 %v15688_v4, %s13187_s20  ;;  %v2834_v37 = vcombine.high %v15843_v42, %v15843_v42  ;;  %v714_v42 = vcombine.high %v15832_v17, %v15832_v17 }
 0x27f   : > { %v5717_v8 = vsel %vm1986_vm0, %v5618_v33, %v5619_v61  ;;  %v6936_v46 = vsel %vm1986_vm0, %v6838_v25, %v6839_v2  ;;  %12768 = vmatprep.subr.msk.bf16.mxu0 %vm8994_vm7, %v12641_v27  ;;  %v9176_v26 = vsel %vm8994_vm7, %v12640_v3, 0 }
 0x280   : > { %v5718_v4 = vsel %vm5651_vm4, %v5522_v56, %v5717_v8  ;;  %v6937_v19 = vsel %vm6872_vm5, %v15779_v36, %v6936_v46  ;;  %v15877_v14 = vpop.permute.xlu0 %6744  ;;  %v7964_v43 = vpop.permute.xlu1 %7963  ;;  %10610 = vmatpush1.bf16.msra.mxu0 %v9176_v26  ;;  %v8445_v20 = vld [vmem:[#allocation2 + $0x2f8] sm:$0x77]  ;;  %v5276_v36 = vcombine.high %v15790_v48, %v15790_v48 }
 0x281   : > { %5876 = vst [vmem:[#allocation2 + $0x308] sm:$0x11] %v5718_v4  ;;  %7096 = vst [vmem:[#allocation2 + $0x300] sm:$0x22] %v6937_v19  ;;  %v6840_v6 = vrot.slane %v15877_v14, 4  ;;  %v8060_v9 = vrot.slane %v7964_v43, 4  ;;  %v12643_v25 = vcombine.high %v8381_v35, %v8445_v20  ;;  %v12642_v28 = vcombine.low %v8381_v35, %v8445_v20 }
 0x282   : > { %7993 = vrot.lane.b32.xlu0 %v7725_v59, %s13187_s20  ;;  %3113 = vrot.lane.b32.xlu1 %v2855_v58, %s13183_s16  ;;  %v15907_v57 = vrot.slane %v5276_v36, %v13215_v5  ;;  %v2862_v35 = vrot.slane %v2834_v37, %v13215_v5  ;;  %v728_v20 = vrot.slane %v714_v42, %v13215_v5 }
 0x283   : > { %v6938_v62 = vsel %vm1986_vm0, %v6839_v2, %v6840_v6  ;;  %v8157_v45 = vsel %vm1986_vm0, %v8059_v39, %v8060_v9  ;;  %12770 = vmatprep.subr.msk.bf16.mxu1 %vm8994_vm7, %v12643_v25  ;;  %v9182_v44 = vsel %vm8994_vm7, %v12642_v28, 0  ;;  %12769 = vmatmul.mubr.msk.bf16.vlgmr.msra.gmra.mrb[60].mxu0 %vm8990_vm8, %v15629_v54  ;;  %v6497_v39 = vcombine.low %v15885_v55, %v15885_v55 }
 0x284   : > { %v6939_v48 = vsel %vm6872_vm5, %v6743_v11, %v6938_v62  ;;  %v8158_v0 = vsel %vm8093_vm6, %v15805_v13, %v8157_v45  ;;  %v15900_v18 = vpop.permute.xlu0 %7965  ;;  %v4306_v40 = vpop.permute.xlu1 %4305  ;;  %10651 = vmatpush1.bf16.msra.mxu1 %v9182_v44  ;;  %10723 = vmatprep.mubr.bf16.mxu0 %v13188_v41  ;;  %v15911_v13 = vrot.slane %v15885_v55, %v13215_v5  ;;  %v8383_v19 = vld [vmem:[#allocation2 + $0x108] sm:$0xff] }
 0x285   : > { %7097 = vst [vmem:[#allocation2 + $0x308] sm:$0x22] %v6939_v48  ;;  %8317 = vst [vmem:[#allocation2 + $0x300] sm:$0x44] %v8158_v0  ;;  %v8061_v24 = vrot.slane %v15900_v18, 4  ;;  %v4400_v30 = vrot.slane %v4306_v40, 4  ;;  %v6518_v16 = vrot.slane %v6497_v39, %v13215_v5  ;;  %v730_v62 = vcombine.high %v728_v20, %v728_v20 }
 0x286   : > { %4333 = vrot.lane.b32.xlu0 %v7725_v59, %s13184_s17  ;;  %4335 = vrot.lane.b32.xlu1 %v6504_v10, %s13184_s17  ;;  %v2863_v10 = vcombine.low %v15924_v50, %v15924_v50  ;;  %12563 = vst.sshfl [vmem:[#allocation2 + $0x190] sm:$0x5 pattern:$0x75316420] %v728_v20 }
 0x287   : > { %v8159_v23 = vsel %vm1986_vm0, %v8060_v9, %v8061_v24  ;;  %v4499_v60 = vsel %vm1986_vm0, %v4399_v12, %v4400_v30  ;;  %12771 = vmatmul.mubr.msk.bf16.vlgmr.msra.gmra.mrb[60].mxu1 %vm8990_vm8, %v15629_v54  ;;  %12564 = vst.sshfl [vmem:[#allocation2 + $0x198] sm:$0x5 pattern:$0x75316420] %v730_v62 }
 0x288   : > { %v8160_v22 = vsel %vm8093_vm6, %v7964_v43, %v8159_v23  ;;  %v4500_v63 = vsel %vm4431_vm3, %v15828_v52, %v4499_v60  ;;  %v15929_v38 = vpop.permute.xlu0 %4307  ;;  %v5526_v56 = vpop.permute.xlu1 %5525  ;;  %10764 = vmatprep.mubr.bf16.mxu1 %v13188_v41  ;;  %v7717_v52 = vcombine.high %v15748_v1, %v15748_v1  ;;  %v8382_v1 = vld [vmem:[#allocation2 + $0x100] sm:$0xff]  ;;  %v15961_v3 = vrot.slane %v2863_v10, %v13215_v5 }
 0x289   : > { %8318 = vst [vmem:[#allocation2 + $0x308] sm:$0x44] %v8160_v22  ;;  %4657 = vst [vmem:[#allocation2 + $0x110] sm:$0x88] %v4500_v63  ;;  %v4401_v33 = vrot.slane %v15929_v38, 4  ;;  %v5620_v12 = vrot.slane %v5526_v56, 4  ;;  %v16015_v22 = vrot.slane %v15924_v50, %v13215_v5 }
 0x28a   : > { %5553 = vrot.lane.b32.xlu0 %v15907_v57, %s13185_s18  ;;  %5555 = vrot.lane.b32.xlu1 %v15911_v13, %s13185_s18  ;;  %v4099_v36 = vcombine.low %v15961_v3, %v15961_v3 }
 0x28b   : > { %v4501_v34 = vsel %vm1986_vm0, %v4400_v30, %v4401_v33  ;;  %v5719_v32 = vsel %vm1986_vm0, %v5619_v61, %v5620_v12 }
 0x28c   : > { %v4502_v31 = vsel %vm4431_vm3, %v4306_v40, %v4501_v34  ;;  %v5720_v51 = vsel %vm5651_vm4, %v15854_v49, %v5719_v32  ;;  %v15951_v7 = vpop.permute.xlu0 %5527  ;;  %v6747_v11 = vpop.permute.xlu1 %6746  ;;  %v8446_v53 = vld [vmem:[#allocation2 + $0x300] sm:$0x77]  ;;  %v7732_v49 = vrot.slane %v7717_v52, %v13215_v5  ;;  %v4107_v60 = vrot.slane %v4099_v36, %v13215_v5 }
 0x28d   : > { %4658 = vst [vmem:[#allocation2 + $0x118] sm:$0x88] %v4502_v31  ;;  %5877 = vst [vmem:[#allocation2 + $0x310] sm:$0x11] %v5720_v51  ;;  %v5621_v59 = vrot.slane %v15951_v7, 4  ;;  %v6841_v2 = vrot.slane %v6747_v11, 4  ;;  %v12645_v27 = vcombine.high %v8382_v1, %v8446_v53  ;;  %v12644_v61 = vcombine.low %v8382_v1, %v8446_v53 }
 0x28e   : > { %6774 = vrot.lane.b32.xlu0 %v15813_v47, %s13186_s19  ;;  %6776 = vrot.lane.b32.xlu1 %v6518_v16, %s13186_s19  ;;  %v6541_v32 = vcombine.low %v16015_v22, %v16015_v22 }
 0x28f   : > { %v5721_v58 = vsel %vm1986_vm0, %v5620_v12, %v5621_v59  ;;  %v6940_v21 = vsel %vm1986_vm0, %v6840_v6, %v6841_v2  ;;  %12772 = vmatprep.subr.msk.bf16.mxu0 %vm8994_vm7, %v12645_v27  ;;  %v9188_v8 = vsel %vm8994_vm7, %v12644_v61, 0 }
 0x290   : > { %v5722_v46 = vsel %vm5651_vm4, %v5526_v56, %v5721_v58  ;;  %v6941_v26 = vsel %vm6872_vm5, %v15877_v14, %v6940_v21  ;;  %v15976_v4 = vpop.permute.xlu0 %6748  ;;  %v7968_v17 = vpop.permute.xlu1 %7967  ;;  %10692 = vmatpush1.bf16.msra.mxu0 %v9188_v8  ;;  %v8447_v43 = vld [vmem:[#allocation2 + $0x308] sm:$0x77]  ;;  %v15986_v14 = vrot.slane %v15961_v3, %v13215_v5  ;;  %v8384_v37 = vld [vmem:[#allocation2 + $0x110] sm:$0xff] }
 0x291   : > { %5878 = vst [vmem:[#allocation2 + $0x318] sm:$0x11] %v5722_v46  ;;  %7098 = vst [vmem:[#allocation2 + $0x310] sm:$0x22] %v6941_v26  ;;  %v6842_v6 = vrot.slane %v15976_v4, 4  ;;  %v8062_v9 = vrot.slane %v7968_v17, 4  ;;  %v12647_v25 = vcombine.high %v8383_v19, %v8447_v43  ;;  %v12646_v28 = vcombine.low %v8383_v19, %v8447_v43 }
 0x292   : > { %7995 = vrot.lane.b32.xlu0 %v7732_v49, %s13187_s20  ;;  %7997 = vrot.lane.b32.xlu1 %v15813_v47, %s13187_s20 }
 0x293   : > { %v6942_v45 = vsel %vm1986_vm0, %v6841_v2, %v6842_v6  ;;  %v8161_v44 = vsel %vm1986_vm0, %v8061_v24, %v8062_v9  ;;  %12774 = vmatprep.subr.msk.bf16.mxu1 %vm8994_vm7, %v12647_v25  ;;  %v9194_v48 = vsel %vm8994_vm7, %v12646_v28, 0  ;;  %12773 = vmatmul.mubr.msk.bf16.vlgmr.msra.gmra.mrb[64].mxu0 %vm8990_vm8, %v15629_v54  ;;  %v16075_v25 = vld [vmem:[%s13220_s14 + $0x68] sm:$0xff] }
 0x294   : > { %v6943_v0 = vsel %vm6872_vm5, %v6747_v11, %v6942_v45  ;;  %v8162_v40 = vsel %vm8093_vm6, %v15900_v18, %v8161_v44  ;;  %v16003_v30 = vpop.permute.xlu0 %7969  ;;  %v4310_v39 = vpop.permute.xlu1 %4309  ;;  %10733 = vmatpush1.bf16.msra.mxu1 %v9194_v48  ;;  %10805 = vmatprep.mubr.bf16.mxu0 %v13188_v41  ;;  %v5277_v18 = vcombine.high %v15885_v55, %v15885_v55  ;;  %v8385_v19 = vld [vmem:[#allocation2 + $0x118] sm:$0xff] }
 0x295   : > { %7099 = vst [vmem:[#allocation2 + $0x318] sm:$0x22] %v6943_v0  ;;  %8319 = vst [vmem:[#allocation2 + $0x310] sm:$0x44] %v8162_v40  ;;  %v8063_v24 = vrot.slane %v16003_v30, 4  ;;  %v4402_v23 = vrot.slane %v4310_v39, 4  ;;  %v766_v28 = vrot.slane %v16075_v25, %v13215_v5 }
 0x296   : > { %3115 = vrot.lane.b32.xlu0 %v2862_v35, %s13183_s16  ;;  %3117 = vrot.lane.b32.xlu1 %v15986_v14, %s13183_s16 }
 0x297   : > { %v8163_v63 = vsel %vm1986_vm0, %v8062_v9, %v8063_v24  ;;  %v4503_v56 = vsel %vm1986_vm0, %v4401_v33, %v4402_v23  ;;  %12775 = vmatmul.mubr.msk.bf16.vlgmr.msra.gmra.mrb[64].mxu1 %vm8990_vm8, %v15629_v54  ;;  %v5305_v33 = vrot.slane %v5277_v18, %v13215_v5  ;;  %12565 = vst.sshfl [vmem:[#allocation2 + $0x1a0] sm:$0x5 pattern:$0x75316420] %v766_v28 }
 0x298   : > { %v8164_v12 = vsel %vm8093_vm6, %v7968_v17, %v8163_v63  ;;  %v4504_v55 = vsel %vm4431_vm3, %v15929_v38, %v4503_v56  ;;  %v16028_v16 = vpop.permute.xlu0 %4311  ;;  %v5530_v52 = vpop.permute.xlu1 %5529  ;;  %10846 = vmatprep.mubr.bf16.mxu1 %v13188_v41  ;;  %v16038_v38 = vrot.slane %v16015_v22, %v13215_v5  ;;  %v774_v0 = vcombine.high %v766_v28, %v766_v28 }
 0x299   : > { %8320 = vst [vmem:[#allocation2 + $0x318] sm:$0x44] %v8164_v12  ;;  %4659 = vst [vmem:[#allocation2 + $0x120] sm:$0x88] %v4504_v55  ;;  %v4403_v10 = vrot.slane %v16028_v16, 4  ;;  %v5622_v34 = vrot.slane %v5530_v52, 4  ;;  %v5321_v55 = vcombine.high %v16015_v22, %v16015_v22 }
 0x29a   : > { %4337 = vrot.lane.b32.xlu0 %v15813_v47, %s13184_s17  ;;  %4339 = vrot.lane.b32.xlu1 %v4107_v60, %s13184_s17  ;;  %12566 = vst.sshfl [vmem:[#allocation2 + $0x1a8] sm:$0x5 pattern:$0x75316420] %v774_v0 }
 0x29b   : > { %v4505_v31 = vsel %vm1986_vm0, %v4402_v23, %v4403_v10  ;;  %v5723_v51 = vsel %vm1986_vm0, %v5621_v59, %v5622_v34  ;;  %v16058_v59 = vrot.slane %v6541_v32, %v13215_v5 }
 0x29c   : > { %v4506_v47 = vsel %vm4431_vm3, %v4310_v39, %v4505_v31  ;;  %v5724_v11 = vsel %vm5651_vm4, %v15951_v7, %v5723_v51  ;;  %v16051_v1 = vpop.permute.xlu0 %5531  ;;  %v6751_v53 = vpop.permute.xlu1 %6750  ;;  %v8448_v2 = vld [vmem:[#allocation2 + $0x310] sm:$0x77] }
 0x29d   : > { %4660 = vst [vmem:[#allocation2 + $0x128] sm:$0x88] %v4506_v47  ;;  %5879 = vst [vmem:[#allocation2 + $0x320] sm:$0x11] %v5724_v11  ;;  %v5623_v27 = vrot.slane %v16051_v1, 4  ;;  %v6843_v61 = vrot.slane %v6751_v53, 4  ;;  %v12649_v49 = vcombine.high %v8384_v37, %v8448_v2  ;;  %v12648_v42 = vcombine.low %v8384_v37, %v8448_v2 }
 0x29e   : > { %5557 = vrot.lane.b32.xlu0 %v5305_v33, %s13185_s18  ;;  %5559 = vrot.lane.b32.xlu1 %v16038_v38, %s13185_s18 }
 0x29f   : > { %v5725_v7 = vsel %vm1986_vm0, %v5622_v34, %v5623_v27  ;;  %v6944_v58 = vsel %vm1986_vm0, %v6842_v6, %v6843_v61  ;;  %12776 = vmatprep.subr.msk.bf16.mxu0 %vm8994_vm7, %v12649_v49  ;;  %v9200_v21 = vsel %vm8994_vm7, %v12648_v42, 0  ;;  %v16169_v42 = vld [vmem:[%s13220_s14 + $0x70] sm:$0xff] }
 0x2a0   : > { %v5726_v8 = vsel %vm5651_vm4, %v5530_v52, %v5725_v7  ;;  %v6945_v46 = vsel %vm6872_vm5, %v15976_v4, %v6944_v58  ;;  %v16071_v26 = vpop.permute.xlu0 %6752  ;;  %v7972_v17 = vpop.permute.xlu1 %7971  ;;  %10774 = vmatpush1.bf16.msra.mxu0 %v9200_v21  ;;  %v8449_v43 = vld [vmem:[#allocation2 + $0x318] sm:$0x77]  ;;  %v2878_v4 = vcombine.high %v15961_v3, %v15961_v3  ;;  %v8386_v22 = vld [vmem:[#allocation2 + $0x120] sm:$0xff] }
 0x2a1   : > { %5880 = vst [vmem:[#allocation2 + $0x328] sm:$0x11] %v5726_v8  ;;  %7100 = vst [vmem:[#allocation2 + $0x320] sm:$0x22] %v6945_v46  ;;  %v6844_v35 = vrot.slane %v16071_v26, 4  ;;  %v8064_v20 = vrot.slane %v7972_v17, 4  ;;  %v12651_v6 = vcombine.high %v8385_v19, %v8449_v43  ;;  %v12650_v9 = vcombine.low %v8385_v19, %v8449_v43 }
 0x2a2   : > { %6778 = vrot.lane.b32.xlu0 %v15911_v13, %s13186_s19  ;;  %6780 = vrot.lane.b32.xlu1 %v16058_v59, %s13186_s19 }
 0x2a3   : > { %v6946_v36 = vsel %vm1986_vm0, %v6843_v61, %v6844_v35  ;;  %v8165_v62 = vsel %vm1986_vm0, %v8063_v24, %v8064_v20  ;;  %12778 = vmatprep.subr.msk.bf16.mxu1 %vm8994_vm7, %v12651_v6  ;;  %v9206_v13 = vsel %vm8994_vm7, %v12650_v9, 0  ;;  %12777 = vmatmul.mubr.msk.bf16.vlgmr.msra.gmra.mrb[68].mxu0 %vm8990_vm8, %v15629_v54  ;;  %v5306_v24 = vcombine.high %v15924_v50, %v15924_v50 }
 0x2a4   : > { %v6947_v3 = vsel %vm6872_vm5, %v6751_v53, %v6946_v36  ;;  %v8166_v45 = vsel %vm8093_vm6, %v16003_v30, %v8165_v62  ;;  %v16098_v44 = vpop.permute.xlu0 %7973  ;;  %v4314_v48 = vpop.permute.xlu1 %4313  ;;  %10815 = vmatpush1.bf16.msra.mxu1 %v9206_v13  ;;  %10887 = vmatprep.mubr.bf16.mxu0 %v13188_v41  ;;  %v16107_v30 = vrot.slane %v2878_v4, %v13215_v5  ;;  %v8387_v8 = vld [vmem:[#allocation2 + $0x128] sm:$0xff] }
 0x2a5   : > { %7101 = vst [vmem:[#allocation2 + $0x328] sm:$0x22] %v6947_v3  ;;  %8321 = vst [vmem:[#allocation2 + $0x320] sm:$0x44] %v8166_v45  ;;  %v8065_v40 = vrot.slane %v16098_v44, 4  ;;  %v4404_v39 = vrot.slane %v4314_v48, 4  ;;  %v759_v3 = vcombine.high %v16075_v25, %v16075_v25 }
 0x2a6   : > { %7999 = vrot.lane.b32.xlu0 %v15907_v57, %s13187_s20  ;;  %8001 = vrot.lane.b32.xlu1 %v15986_v14, %s13187_s20 }
 0x2a7   : > { %v8167_v23 = vsel %vm1986_vm0, %v8064_v20, %v8065_v40  ;;  %v4507_v60 = vsel %vm1986_vm0, %v4403_v10, %v4404_v39  ;;  %12779 = vmatmul.mubr.msk.bf16.vlgmr.msra.gmra.mrb[68].mxu1 %vm8990_vm8, %v15629_v54  ;;  %v2908_v20 = vcombine.low %v16169_v42, %v16169_v42  ;;  %v773_v0 = vrot.slane %v759_v3, %v13215_v5 }
 0x2a8   : > { %v8168_v57 = vsel %vm8093_vm6, %v7972_v17, %v8167_v23  ;;  %v4508_v18 = vsel %vm4431_vm3, %v16028_v16, %v4507_v60  ;;  %v16122_v63 = vpop.permute.xlu0 %4315  ;;  %v5534_v50 = vpop.permute.xlu1 %5533  ;;  %10928 = vmatprep.mubr.bf16.mxu1 %v13188_v41  ;;  %v16133_v16 = vrot.slane %v5306_v24, %v13215_v5 }
 0x2a9   : > { %8322 = vst [vmem:[#allocation2 + $0x328] sm:$0x44] %v8168_v57  ;;  %4661 = vst [vmem:[#allocation2 + $0x130] sm:$0x88] %v4508_v18  ;;  %v4405_v56 = vrot.slane %v16122_v63, 4  ;;  %v5624_v12 = vrot.slane %v5534_v50, 4  ;;  %v775_v57 = vcombine.high %v773_v0, %v773_v0 }
 0x2aa   : > { %3119 = vrot.lane.b32.xlu0 %v16107_v30, %s13183_s16  ;;  %3121 = vrot.lane.b32.xlu1 %v16038_v38, %s13183_s16  ;;  %v16156_v2 = vrot.slane %v16133_v16, %v13215_v5  ;;  %12567 = vst.sshfl [vmem:[#allocation2 + $0x1b0] sm:$0x5 pattern:$0x75316420] %v773_v0 }
 0x2ab   : > { %v4509_v52 = vsel %vm1986_vm0, %v4404_v39, %v4405_v56  ;;  %v5727_v10 = vsel %vm1986_vm0, %v5623_v27, %v5624_v12  ;;  %v6542_v27 = vcombine.low %v16133_v16, %v16133_v16  ;;  %12568 = vst.sshfl [vmem:[#allocation2 + $0x1b8] sm:$0x5 pattern:$0x75316420] %v775_v57  ;;  %v16326_v57 = vld [vmem:[%s13220_s14 + $0x70] sm:$0xff] }
 0x2ac   : > { %v4510_v34 = vsel %vm4431_vm3, %v4314_v48, %v4509_v52  ;;  %v5728_v33 = vsel %vm5651_vm4, %v16051_v1, %v5727_v10  ;;  %v16144_v32 = vpop.permute.xlu0 %5535  ;;  %v6755_v31 = vpop.permute.xlu1 %6754  ;;  %v8450_v51 = vld [vmem:[#allocation2 + $0x320] sm:$0x77]  ;;  %v16152_v1 = vrot.slane %v5321_v55, %v13215_v5 }
 0x2ad   : > { %4662 = vst [vmem:[#allocation2 + $0x138] sm:$0x88] %v4510_v34  ;;  %5881 = vst [vmem:[#allocation2 + $0x330] sm:$0x11] %v5728_v33  ;;  %v5625_v47 = vrot.slane %v16144_v32, 4  ;;  %v6845_v11 = vrot.slane %v6755_v31, 4  ;;  %v12653_v53 = vcombine.high %v8386_v22, %v8450_v51  ;;  %v12652_v37 = vcombine.low %v8386_v22, %v8450_v51 }
 0x2ae   : > { %4341 = vrot.lane.b32.xlu0 %v15986_v14, %s13184_s17  ;;  %4343 = vrot.lane.b32.xlu1 %v16058_v59, %s13184_s17 }
 0x2af   : > { %v5729_v61 = vsel %vm1986_vm0, %v5624_v12, %v5625_v47  ;;  %v6948_v14 = vsel %vm1986_vm0, %v6844_v35, %v6845_v11  ;;  %12780 = vmatprep.subr.msk.bf16.mxu0 %vm8994_vm7, %v12653_v53  ;;  %v9212_v49 = vsel %vm8994_vm7, %v12652_v37, 0  ;;  %v16256_v53 = vrot.slane %v16169_v42, %v13215_v5 }
 0x2b0   : > { %v5730_v59 = vsel %vm5651_vm4, %v5534_v50, %v5729_v61  ;;  %v6949_v7 = vsel %vm6872_vm5, %v16071_v26, %v6948_v14  ;;  %v16174_v58 = vpop.permute.xlu0 %6756  ;;  %v7976_v21 = vpop.permute.xlu1 %7975  ;;  %10856 = vmatpush1.bf16.msra.mxu0 %v9212_v49  ;;  %v8451_v46 = vld [vmem:[#allocation2 + $0x328] sm:$0x77]  ;;  %v6563_v26 = vrot.slane %v6542_v27, %v13215_v5  ;;  %v8388_v34 = vld [vmem:[#allocation2 + $0x130] sm:$0xff] }
 0x2b1   : > { %5882 = vst [vmem:[#allocation2 + $0x338] sm:$0x11] %v5730_v59  ;;  %7102 = vst [vmem:[#allocation2 + $0x330] sm:$0x22] %v6949_v7  ;;  %v6846_v17 = vrot.slane %v16174_v58, 4  ;;  %v8066_v19 = vrot.slane %v7976_v21, 4  ;;  %v12655_v43 = vcombine.high %v8387_v8, %v8451_v46  ;;  %v12654_v35 = vcombine.low %v8387_v8, %v8451_v46 }
 0x2b2   : > { %5561 = vrot.lane.b32.xlu0 %v16152_v1, %s13185_s18  ;;  %5563 = vrot.lane.b32.xlu1 %v16156_v2, %s13185_s18 }
 0x2b3   : > { %v6950_v6 = vsel %vm1986_vm0, %v6845_v11, %v6846_v17  ;;  %v8169_v9 = vsel %vm1986_vm0, %v8065_v40, %v8066_v19  ;;  %12782 = vmatprep.subr.msk.bf16.mxu1 %vm8994_vm7, %v12655_v43  ;;  %v9218_v4 = vsel %vm8994_vm7, %v12654_v35, 0  ;;  %12781 = vmatmul.mubr.msk.bf16.vlgmr.msra.gmra.mrb[72].mxu0 %vm8990_vm8, %v15629_v54  ;;  %v16278_v43 = vrot.slane %v16256_v53, %v13215_v5 }
 0x2b4   : > { %v6951_v28 = vsel %vm6872_vm5, %v6755_v31, %v6950_v6  ;;  %v8170_v36 = vsel %vm8093_vm6, %v16098_v44, %v8169_v9  ;;  %v16197_v62 = vpop.permute.xlu0 %7977  ;;  %v4318_v13 = vpop.permute.xlu1 %4317  ;;  %10897 = vmatpush1.bf16.msra.mxu1 %v9218_v4  ;;  %10969 = vmatprep.mubr.bf16.mxu0 %v13188_v41  ;;  %v16207_v44 = vrot.slane %v2908_v20, %v13215_v5  ;;  %v8389_v7 = vld [vmem:[#allocation2 + $0x138] sm:$0xff] }
 0x2b5   : > { %7103 = vst [vmem:[#allocation2 + $0x338] sm:$0x22] %v6951_v28  ;;  %8323 = vst [vmem:[#allocation2 + $0x330] sm:$0x44] %v8170_v36  ;;  %v8067_v45 = vrot.slane %v16197_v62, 4  ;;  %v4406_v48 = vrot.slane %v4318_v13, 4  ;;  %v6586_v35 = vcombine.low %v16256_v53, %v16256_v53 }
 0x2b6   : > { %6782 = vrot.lane.b32.xlu0 %v16038_v38, %s13186_s19  ;;  %6784 = vrot.lane.b32.xlu1 %v6563_v26, %s13186_s19  ;;  %v16293_v6 = vld [vmem:[%s17299_s1] sm:$0x3] }
 0x2b7   : > { %v8171_v40 = vsel %vm1986_vm0, %v8066_v19, %v8067_v45  ;;  %v4511_v25 = vsel %vm1986_vm0, %v4405_v56, %v4406_v48  ;;  %12783 = vmatmul.mubr.msk.bf16.vlgmr.msra.gmra.mrb[72].mxu1 %vm8990_vm8, %v15629_v54  ;;  %v16231_v54 = vrot.slane %v16207_v44, %v13215_v5 }
 0x2b8   : > { %v8172_v39 = vsel %vm8093_vm6, %v7976_v21, %v8171_v40  ;;  %v4512_v24 = vsel %vm4431_vm3, %v16122_v63, %v4511_v25  ;;  %v16221_v23 = vpop.permute.xlu0 %4319  ;;  %v5538_v60 = vpop.permute.xlu1 %5537  ;;  %11010 = vmatprep.mubr.bf16.mxu1 %v13188_v41  ;;  %v4144_v63 = vcombine.low %v16207_v44, %v16207_v44 }
 0x2b9   : > { %8324 = vst [vmem:[#allocation2 + $0x338] sm:$0x44] %v8172_v39  ;;  %4663 = vst [vmem:[#allocation2 + $0x140] sm:$0x88] %v4512_v24  ;;  %v4407_v18 = vrot.slane %v16221_v23, 4  ;;  %v5626_v50 = vrot.slane %v5538_v60, 4 }
 0x2ba   : > { %8003 = vrot.lane.b32.xlu0 %v16107_v30, %s13187_s20  ;;  %8005 = vrot.lane.b32.xlu1 %v16038_v38, %s13187_s20 }
 0x2bb   : > { %v4513_v56 = vsel %vm1986_vm0, %v4406_v48, %v4407_v18  ;;  %v5731_v12 = vsel %vm1986_vm0, %v5625_v47, %v5626_v50  ;;  %v5322_v47 = vcombine.high %v16133_v16, %v16133_v16 }
 0x2bc   : > { %v4514_v30 = vsel %vm4431_vm3, %v4318_v13, %v4513_v56  ;;  %v5732_v55 = vsel %vm5651_vm4, %v16144_v32, %v5731_v12  ;;  %v16244_v52 = vpop.permute.xlu0 %5539  ;;  %v6759_v10 = vpop.permute.xlu1 %6758  ;;  %v8452_v33 = vld [vmem:[#allocation2 + $0x330] sm:$0x77]  ;;  %v4152_v32 = vrot.slane %v4144_v63, %v13215_v5 }
 0x2bd   : > { %4664 = vst [vmem:[#allocation2 + $0x148] sm:$0x88] %v4514_v30  ;;  %5883 = vst [vmem:[#allocation2 + $0x340] sm:$0x11] %v5732_v55  ;;  %v5627_v31 = vrot.slane %v16244_v52, 4  ;;  %v6847_v22 = vrot.slane %v6759_v10, 4  ;;  %v12657_v51 = vcombine.high %v8388_v34, %v8452_v33  ;;  %v12656_v11 = vcombine.low %v8388_v34, %v8452_v33 }
 0x2be   : > { %3123 = vrot.lane.b32.xlu0 %v16152_v1, %s13183_s16  ;;  %3125 = vrot.lane.b32.xlu1 %v16231_v54, %s13183_s16 }
 0x2bf   : > { %v5733_v37 = vsel %vm1986_vm0, %v5626_v50, %v5627_v31  ;;  %v6952_v27 = vsel %vm1986_vm0, %v6846_v17, %v6847_v22  ;;  %12784 = vmatprep.subr.msk.bf16.mxu0 %vm8994_vm7, %v12657_v51  ;;  %v9224_v61 = vsel %vm8994_vm7, %v12656_v11, 0 }
 0x2c0   : > { %v5734_v14 = vsel %vm5651_vm4, %v5538_v60, %v5733_v37  ;;  %v6953_v16 = vsel %vm6872_vm5, %v16174_v58, %v6952_v27  ;;  %v16269_v49 = vpop.permute.xlu0 %6760  ;;  %v7980_v59 = vpop.permute.xlu1 %7979  ;;  %10938 = vmatpush1.bf16.msra.mxu0 %v9224_v61  ;;  %v8453_v21 = vld [vmem:[#allocation2 + $0x338] sm:$0x77]  ;;  %v5350_v58 = vrot.slane %v5322_v47, %v13215_v5 }
 0x2c1   : > { %5884 = vst [vmem:[#allocation2 + $0x348] sm:$0x11] %v5734_v14  ;;  %7104 = vst [vmem:[#allocation2 + $0x340] sm:$0x22] %v6953_v16  ;;  %v6848_v8 = vrot.slane %v16269_v49, 4  ;;  %v8068_v46 = vrot.slane %v7980_v59, 4  ;;  %v12659_v17 = vcombine.high %v8389_v7, %v8453_v21  ;;  %v12658_v19 = vcombine.low %v8389_v7, %v8453_v21 }
 0x2c2   : > { %4345 = vrot.lane.b32.xlu0 %v16038_v38, %s13184_s17  ;;  %4347 = vrot.lane.b32.xlu1 %v4152_v32, %s13184_s17 }
 0x2c3   : > { %v6954_v26 = vsel %vm1986_vm0, %v6847_v22, %v6848_v8  ;;  %v8173_v20 = vsel %vm1986_vm0, %v8067_v45, %v8068_v46  ;;  %12786 = vmatprep.subr.msk.bf16.mxu1 %vm8994_vm7, %v12659_v17  ;;  %v9230_v38 = vsel %vm8994_vm7, %v12658_v19, 0  ;;  %12785 = vmatmul.mubr.msk.bf16.vlgmr.msra.gmra.mrb[76].mxu0 %vm8990_vm8, %v16293_v6  ;;  %v16308_v45 = vrot.slane %v6586_v35, %v13215_v5 }
 0x2c4   : > { %v6955_v9 = vsel %vm6872_vm5, %v6759_v10, %v6954_v26  ;;  %v8174_v4 = vsel %vm8093_vm6, %v16197_v62, %v8173_v20  ;;  %v16300_v28 = vpop.permute.xlu0 %7981  ;;  %v4322_v36 = vpop.permute.xlu1 %4321  ;;  %10979 = vmatpush1.bf16.msra.mxu1 %v9230_v38  ;;  %11051 = vmatprep.mubr.bf16.mxu0 %v13188_v41  ;;  %v8391_v61 = vld [vmem:[#allocation2 + $0x148] sm:$0xff] }
 0x2c5   : > { %7105 = vst [vmem:[#allocation2 + $0x348] sm:$0x22] %v6955_v9  ;;  %8325 = vst [vmem:[#allocation2 + $0x340] sm:$0x44] %v8174_v4  ;;  %v8069_v13 = vrot.slane %v16300_v28, 4  ;;  %v4408_v3 = vrot.slane %v4322_v36, 4 }
 0x2c6   : > { %5565 = vrot.lane.b32.xlu0 %v5350_v58, %s13185_s18  ;;  %5567 = vrot.lane.b32.xlu1 %v16278_v43, %s13185_s18 }
 0x2c7   : > { %v8175_v62 = vsel %vm1986_vm0, %v8068_v46, %v8069_v13  ;;  %v4515_v48 = vsel %vm1986_vm0, %v4407_v18, %v4408_v3  ;;  %12787 = vmatmul.mubr.msk.bf16.vlgmr.msra.gmra.mrb[76].mxu1 %vm8990_vm8, %v16293_v6  ;;  %v811_v18 = vrot.slane %v16326_v57, %v13215_v5 }
 0x2c8   : > { %v8176_v0 = vsel %vm8093_vm6, %v7980_v59, %v8175_v62  ;;  %v4516_v40 = vsel %vm4431_vm3, %v16221_v23, %v4515_v48  ;;  %v16321_v25 = vpop.permute.xlu0 %4323  ;;  %v5542_v39 = vpop.permute.xlu1 %5541  ;;  %11092 = vmatprep.mubr.bf16.mxu1 %v13188_v41  ;;  %v2923_v23 = vcombine.high %v16207_v44, %v16207_v44  ;;  %v8390_v44 = vld [vmem:[#allocation2 + $0x140] sm:$0xff] }
 0x2c9   : > { %8326 = vst [vmem:[#allocation2 + $0x348] sm:$0x44] %v8176_v0  ;;  %4665 = vst [vmem:[#allocation2 + $0x150] sm:$0x88] %v4516_v40  ;;  %v4409_v24 = vrot.slane %v16321_v25, 4  ;;  %v5628_v60 = vrot.slane %v5542_v39, 4  ;;  %v819_v10 = vcombine.high %v811_v18, %v811_v18 }
 0x2ca   : > { %6786 = vrot.lane.b32.xlu0 %v16156_v2, %s13186_s19  ;;  %6788 = vrot.lane.b32.xlu1 %v16308_v45, %s13186_s19  ;;  %12569 = vst.sshfl [vmem:[#allocation2 + $0x1c0] sm:$0x5 pattern:$0x75316420] %v811_v18 }
 0x2cb   : > { %v4517_v50 = vsel %vm1986_vm0, %v4408_v3, %v4409_v24  ;;  %v5735_v63 = vsel %vm1986_vm0, %v5627_v31, %v5628_v60  ;;  %v5351_v31 = vcombine.high %v16169_v42, %v16169_v42  ;;  %12570 = vst.sshfl [vmem:[#allocation2 + $0x1c8] sm:$0x5 pattern:$0x75316420] %v819_v10 }
 0x2cc   : > { %v4518_v56 = vsel %vm4431_vm3, %v4322_v36, %v4517_v50  ;;  %v5736_v2 = vsel %vm5651_vm4, %v16244_v52, %v5735_v63  ;;  %v16345_v12 = vpop.permute.xlu0 %5543  ;;  %v6763_v30 = vpop.permute.xlu1 %6762  ;;  %v8454_v55 = vld [vmem:[#allocation2 + $0x340] sm:$0x77]  ;;  %v16353_v52 = vrot.slane %v2923_v23, %v13215_v5 }
 0x2cd   : > { %4666 = vst [vmem:[#allocation2 + $0x158] sm:$0x88] %v4518_v56  ;;  %5885 = vst [vmem:[#allocation2 + $0x350] sm:$0x11] %v5736_v2  ;;  %v5629_v34 = vrot.slane %v16345_v12, 4  ;;  %v6849_v33 = vrot.slane %v6763_v30, 4  ;;  %v12661_v22 = vcombine.high %v8390_v44, %v8454_v55  ;;  %v12660_v51 = vcombine.low %v8390_v44, %v8454_v55 }
 0x2ce   : > { %8007 = vrot.lane.b32.xlu0 %v16152_v1, %s13187_s20  ;;  %8009 = vrot.lane.b32.xlu1 %v16231_v54, %s13187_s20 }
 0x2cf   : > { %v5737_v11 = vsel %vm1986_vm0, %v5628_v60, %v5629_v34  ;;  %v6956_v32 = vsel %vm1986_vm0, %v6848_v8, %v6849_v33  ;;  %12788 = vmatprep.subr.msk.bf16.mxu0 %vm8994_vm7, %v12661_v22  ;;  %v9236_v1 = vsel %vm8994_vm7, %v12660_v51, 0  ;;  %v16378_v8 = vrot.slane %v5351_v31, %v13215_v5 }
 0x2d0   : > { %v5738_v47 = vsel %vm5651_vm4, %v5542_v39, %v5737_v11  ;;  %v6957_v37 = vsel %vm6872_vm5, %v16269_v49, %v6956_v32  ;;  %v16368_v27 = vpop.permute.xlu0 %6764  ;;  %v7984_v42 = vpop.permute.xlu1 %7983  ;;  %11020 = vmatpush1.bf16.msra.mxu0 %v9236_v1  ;;  %v8455_v14 = vld [vmem:[#allocation2 + $0x348] sm:$0x77]  ;;  %v5366_v49 = vcombine.high %v16256_v53, %v16256_v53  ;;  %v8392_v56 = vld [vmem:[#allocation2 + $0x150] sm:$0xff] }
 0x2d1   : > { %5886 = vst [vmem:[#allocation2 + $0x358] sm:$0x11] %v5738_v47  ;;  %7106 = vst [vmem:[#allocation2 + $0x350] sm:$0x22] %v6957_v37  ;;  %v6850_v16 = vrot.slane %v16368_v27, 4  ;;  %v8070_v59 = vrot.slane %v7984_v42, 4  ;;  %v12663_v7 = vcombine.high %v8391_v61, %v8455_v14  ;;  %v12662_v21 = vcombine.low %v8391_v61, %v8455_v14 }
 0x2d2   : > { %3127 = vrot.lane.b32.xlu0 %v16353_v52, %s13183_s16  ;;  %3129 = vrot.lane.b32.xlu1 %v16278_v43, %s13183_s16  ;;  %v16402_v9 = vrot.slane %v5366_v49, %v13215_v5  ;;  %v16406_v4 = vrot.slane %v16378_v8, %v13215_v5 }
 0x2d3   : > { %v6958_v46 = vsel %vm1986_vm0, %v6849_v33, %v6850_v16  ;;  %v8177_v17 = vsel %vm1986_vm0, %v8069_v13, %v8070_v59  ;;  %12790 = vmatprep.subr.msk.bf16.mxu1 %vm8994_vm7, %v12663_v7  ;;  %v9242_v19 = vsel %vm8994_vm7, %v12662_v21, 0  ;;  %12789 = vmatmul.mubr.msk.bf16.vlgmr.msra.gmra.mrb[80].mxu0 %vm8990_vm8, %v16293_v6  ;;  %v16419_v13 = vld [vmem:[%s13220_s14 + $0x78] sm:$0xff] }
 0x2d4   : > { %v6959_v53 = vsel %vm6872_vm5, %v6763_v30, %v6958_v46  ;;  %v8178_v58 = vsel %vm8093_vm6, %v16300_v28, %v8177_v17  ;;  %v16393_v35 = vpop.permute.xlu0 %7985  ;;  %v4326_v26 = vpop.permute.xlu1 %4325  ;;  %11061 = vmatpush1.bf16.msra.mxu1 %v9242_v19  ;;  %11133 = vmatprep.mubr.bf16.mxu0 %v13188_v41  ;;  %v6587_v28 = vcombine.low %v16378_v8, %v16378_v8  ;;  %v8393_v47 = vld [vmem:[#allocation2 + $0x158] sm:$0xff] }
 0x2d5   : > { %7107 = vst [vmem:[#allocation2 + $0x358] sm:$0x22] %v6959_v53  ;;  %8327 = vst [vmem:[#allocation2 + $0x350] sm:$0x44] %v8178_v58  ;;  %v8071_v20 = vrot.slane %v16393_v35, 4  ;;  %v4410_v38 = vrot.slane %v4326_v26, 4  ;;  %v804_v30 = vcombine.high %v16326_v57, %v16326_v57 }
 0x2d6   : > { %4349 = vrot.lane.b32.xlu0 %v16231_v54, %s13184_s17  ;;  %4351 = vrot.lane.b32.xlu1 %v16308_v45, %s13184_s17  ;;  %v6608_v39 = vrot.slane %v6587_v28, %v13215_v5 }
 0x2d7   : > { %v8179_v36 = vsel %vm1986_vm0, %v8070_v59, %v8071_v20  ;;  %v4519_v54 = vsel %vm1986_vm0, %v4409_v24, %v4410_v38  ;;  %12791 = vmatmul.mubr.msk.bf16.vlgmr.msra.gmra.mrb[80].mxu1 %vm8990_vm8, %v16293_v6  ;;  %v818_v33 = vrot.slane %v804_v30, %v13215_v5 }
 0x2d8   : > { %v8180_v3 = vsel %vm8093_vm6, %v7984_v42, %v8179_v36  ;;  %v4520_v45 = vsel %vm4431_vm3, %v16321_v25, %v4519_v54  ;;  %v16424_v62 = vpop.permute.xlu0 %4327  ;;  %v5546_v48 = vpop.permute.xlu1 %5545  ;;  %11174 = vmatprep.mubr.bf16.mxu1 %v13188_v41  ;;  %v2953_v25 = vcombine.low %v16419_v13, %v16419_v13 }
 0x2d9   : > { %8328 = vst [vmem:[#allocation2 + $0x358] sm:$0x44] %v8180_v3  ;;  %4667 = vst [vmem:[#allocation2 + $0x160] sm:$0x88] %v4520_v45  ;;  %v4411_v0 = vrot.slane %v16424_v62, 4  ;;  %v5630_v40 = vrot.slane %v5546_v48, 4  ;;  %v820_v42 = vcombine.high %v818_v33, %v818_v33 }
 0x2da   : > { %5569 = vrot.lane.b32.xlu0 %v16402_v9, %s13185_s18  ;;  %5571 = vrot.lane.b32.xlu1 %v16406_v4, %s13185_s18  ;;  %12571 = vst.sshfl [vmem:[#allocation2 + $0x1d0] sm:$0x5 pattern:$0x75316420] %v818_v33 }
 0x2db   : > { %v4521_v24 = vsel %vm1986_vm0, %v4410_v38, %v4411_v0  ;;  %v5739_v60 = vsel %vm1986_vm0, %v5629_v34, %v5630_v40  ;;  %12572 = vst.sshfl [vmem:[#allocation2 + $0x1d8] sm:$0x5 pattern:$0x75316420] %v820_v42  ;;  %v16506_v38 = vrot.slane %v16419_v13, %v13215_v5 }
 0x2dc   : > { %v4522_v23 = vsel %vm4431_vm3, %v4326_v26, %v4521_v24  ;;  %v5740_v18 = vsel %vm5651_vm4, %v16345_v12, %v5739_v60  ;;  %v16444_v50 = vpop.permute.xlu0 %5547  ;;  %v6767_v63 = vpop.permute.xlu1 %6766  ;;  %v8456_v2 = vld [vmem:[#allocation2 + $0x350] sm:$0x77]  ;;  %v16453_v12 = vrot.slane %v2953_v25, %v13215_v5 }
 0x2dd   : > { %4668 = vst [vmem:[#allocation2 + $0x168] sm:$0x88] %v4522_v23  ;;  %5887 = vst [vmem:[#allocation2 + $0x360] sm:$0x11] %v5740_v18  ;;  %v5631_v44 = vrot.slane %v16444_v50, 4  ;;  %v6851_v55 = vrot.slane %v6767_v63, 4  ;;  %v12665_v10 = vcombine.high %v8392_v56, %v8456_v2  ;;  %v12664_v34 = vcombine.low %v8392_v56, %v8456_v2 }
 0x2de   : > { %6790 = vrot.lane.b32.xlu0 %v16278_v43, %s13186_s19  ;;  %6792 = vrot.lane.b32.xlu1 %v6608_v39, %s13186_s19  ;;  %v4189_v7 = vcombine.low %v16453_v12, %v16453_v12  ;;  %v6631_v39 = vcombine.low %v16506_v38, %v16506_v38 }
 0x2df   : > { %v5741_v57 = vsel %vm1986_vm0, %v5630_v40, %v5631_v44  ;;  %v6960_v22 = vsel %vm1986_vm0, %v6850_v16, %v6851_v55  ;;  %12792 = vmatprep.subr.msk.bf16.mxu0 %vm8994_vm7, %v12665_v10  ;;  %v9248_v51 = vsel %vm8994_vm7, %v12664_v34, 0 }
 0x2e0   : > { %v5742_v31 = vsel %vm5651_vm4, %v5546_v48, %v5741_v57  ;;  %v6961_v11 = vsel %vm6872_vm5, %v16368_v27, %v6960_v22  ;;  %v16467_v32 = vpop.permute.xlu0 %6768  ;;  %v7988_v1 = vpop.permute.xlu1 %7987  ;;  %11102 = vmatpush1.bf16.msra.mxu0 %v9248_v51  ;;  %v8457_v37 = vld [vmem:[#allocation2 + $0x358] sm:$0x77]  ;;  %v16476_v27 = vrot.slane %v16453_v12, %v13215_v5 }
 0x2e1   : > { %5888 = vst [vmem:[#allocation2 + $0x368] sm:$0x11] %v5742_v31  ;;  %7108 = vst [vmem:[#allocation2 + $0x360] sm:$0x22] %v6961_v11  ;;  %v6852_v61 = vrot.slane %v16467_v32, 4  ;;  %v8072_v14 = vrot.slane %v7988_v1, 4  ;;  %v12667_v16 = vcombine.high %v8393_v47, %v8457_v37  ;;  %v12666_v59 = vcombine.low %v8393_v47, %v8457_v37 }
 0x2e2   : > { %8011 = vrot.lane.b32.xlu0 %v16353_v52, %s13187_s20  ;;  %8013 = vrot.lane.b32.xlu1 %v16278_v43, %s13187_s20 }
 0x2e3   : > { %v6962_v21 = vsel %vm1986_vm0, %v6851_v55, %v6852_v61  ;;  %v8181_v49 = vsel %vm1986_vm0, %v8071_v20, %v8072_v14  ;;  %12794 = vmatprep.subr.msk.bf16.mxu1 %vm8994_vm7, %v12667_v16  ;;  %v9254_v52 = vsel %vm8994_vm7, %v12666_v59, 0  ;;  %12793 = vmatmul.mubr.msk.bf16.vlgmr.msra.gmra.mrb[84].mxu0 %vm8990_vm8, %v16293_v6  ;;  %v4197_v20 = vrot.slane %v4189_v7, %v13215_v5 }
 0x2e4   : > { %v6963_v46 = vsel %vm6872_vm5, %v6767_v63, %v6962_v21  ;;  %v8182_v17 = vsel %vm8093_vm6, %v16393_v35, %v8181_v49  ;;  %v16493_v19 = vpop.permute.xlu0 %7989  ;;  %v4330_v53 = vpop.permute.xlu1 %4329  ;;  %11143 = vmatpush1.bf16.msra.mxu1 %v9254_v52  ;;  %11215 = vmatprep.mubr.bf16.mxu0 %v13188_v41  ;;  %v5367_v35 = vcombine.high %v16378_v8, %v16378_v8  ;;  %v8394_v63 = vld [vmem:[#allocation2 + $0x160] sm:$0xff]  ;;  %v8395_v11 = vld [vmem:[#allocation2 + $0x168] sm:$0xff] }
 0x2e5   : > { %7109 = vst [vmem:[#allocation2 + $0x368] sm:$0x22] %v6963_v46  ;;  %8329 = vst [vmem:[#allocation2 + $0x360] sm:$0x44] %v8182_v17  ;;  %v8073_v58 = vrot.slane %v16493_v19, 4  ;;  %v4412_v26 = vrot.slane %v4330_v53, 4 }
 0x2e6   : > { %3131 = vrot.lane.b32.xlu0 %v16402_v9, %s13183_s16  ;;  %3133 = vrot.lane.b32.xlu1 %v16476_v27, %s13183_s16 }
 0x2e7   : > { %v8183_v28 = vsel %vm1986_vm0, %v8072_v14, %v8073_v58  ;;  %v4523_v36 = vsel %vm1986_vm0, %v4411_v0, %v4412_v26  ;;  %12795 = vmatmul.mubr.msk.bf16.vlgmr.msra.gmra.mrb[84].mxu1 %vm8990_vm8, %v16293_v6  ;;  %v5395_v0 = vrot.slane %v5367_v35, %v13215_v5  ;;  %v16566_v14 = vld [vmem:[%s13220_s14 + $0x78] sm:$0xff] }
 0x2e8   : > { %v8184_v54 = vsel %vm8093_vm6, %v7988_v1, %v8183_v28  ;;  %v4524_v8 = vsel %vm4431_vm3, %v16424_v62, %v4523_v36  ;;  %v16519_v3 = vpop.permute.xlu0 %4331  ;;  %v5550_v45 = vpop.permute.xlu1 %5549  ;;  %11256 = vmatprep.mubr.bf16.mxu1 %v13188_v41  ;;  %v16529_v62 = vrot.slane %v16506_v38, %v13215_v5  ;;  %v856_v16 = vrot.slane %v16566_v14, %v13215_v5 }
 0x2e9   : > { %8330 = vst [vmem:[#allocation2 + $0x368] sm:$0x44] %v8184_v54  ;;  %4669 = vst [vmem:[#allocation2 + $0x170] sm:$0x88] %v4524_v8  ;;  %v4413_v48 = vrot.slane %v16519_v3, 4  ;;  %v5632_v40 = vrot.slane %v5550_v45, 4 }
 0x2ea   : > { %4353 = vrot.lane.b32.xlu0 %v16278_v43, %s13184_s17  ;;  %4355 = vrot.lane.b32.xlu1 %v4197_v20, %s13184_s17  ;;  %12573 = vst.sshfl [vmem:[#allocation2 + $0x1e0] sm:$0x5 pattern:$0x75316420] %v856_v16  ;;  %v864_v46 = vcombine.high %v856_v16, %v856_v16 }
 0x2eb   : > { %v4525_v25 = vsel %vm1986_vm0, %v4412_v26, %v4413_v48  ;;  %v5743_v24 = vsel %vm1986_vm0, %v5631_v44, %v5632_v40  ;;  %v16549_v44 = vrot.slane %v6631_v39, %v13215_v5 }
 0x2ec   : > { %v4526_v43 = vsel %vm4431_vm3, %v4330_v53, %v4525_v25  ;;  %v5744_v60 = vsel %vm5651_vm4, %v16444_v50, %v5743_v24  ;;  %v16542_v23 = vpop.permute.xlu0 %5551  ;;  %v6771_v18 = vpop.permute.xlu1 %6770  ;;  %v8458_v56 = vld [vmem:[#allocation2 + $0x360] sm:$0x77]  ;;  %12574 = vst.sshfl [vmem:[#allocation2 + $0x1e8] sm:$0x5 pattern:$0x75316420] %v864_v46 }
 0x2ed   : > { %4670 = vst [vmem:[#allocation2 + $0x178] sm:$0x88] %v4526_v43  ;;  %5889 = vst [vmem:[#allocation2 + $0x370] sm:$0x11] %v5744_v60  ;;  %v5633_v2 = vrot.slane %v16542_v23, 4  ;;  %v6853_v30 = vrot.slane %v6771_v18, 4  ;;  %v12669_v55 = vcombine.high %v8394_v63, %v8458_v56  ;;  %v12668_v10 = vcombine.low %v8394_v63, %v8458_v56 }
 0x2ee   : > { %5573 = vrot.lane.b32.xlu0 %v5395_v0, %s13185_s18  ;;  %5575 = vrot.lane.b32.xlu1 %v16529_v62, %s13185_s18  ;;  %v9413_v63 = vpop.f32.mrb[0].mxu0  ;;  %v9454_v56 = vpop.f32.mrb[0].mxu1 }
 0x2ef   : > { %v5745_v50 = vsel %vm1986_vm0, %v5632_v40, %v5633_v2  ;;  %v6964_v34 = vsel %vm1986_vm0, %v6852_v61, %v6853_v30  ;;  %12796 = vmatprep.subr.msk.bf16.mxu0 %vm8994_vm7, %v12669_v55  ;;  %v9260_v33 = vsel %vm8994_vm7, %v12668_v10, 0  ;;  %v9415_v10 = vpop.f32.mrb[1].mxu0  ;;  %12910 = vtanh.f32 %v9413_v63 }
 0x2f0   : > { %v5746_v57 = vsel %vm5651_vm4, %v5550_v45, %v5745_v50  ;;  %v6965_v22 = vsel %vm6872_vm5, %v16467_v32, %v6964_v34  ;;  %v16562_v51 = vpop.permute.xlu0 %6772  ;;  %v7992_v31 = vpop.permute.xlu1 %7991  ;;  %11184 = vmatpush1.bf16.msra.mxu0 %v9260_v33  ;;  %v8459_v1 = vld [vmem:[#allocation2 + $0x368] sm:$0x77]  ;;  %v2968_v32 = vcombine.high %v16453_v12, %v16453_v12  ;;  %12912 = vtanh.f32 %v9454_v56 }
 0x2f1   : > { %5890 = vst [vmem:[#allocation2 + $0x378] sm:$0x11] %v5746_v57  ;;  %7110 = vst [vmem:[#allocation2 + $0x370] sm:$0x22] %v6965_v22  ;;  %v6854_v47 = vrot.slane %v16562_v51, 4  ;;  %v8074_v37 = vrot.slane %v7992_v31, 4  ;;  %v12671_v42 = vcombine.high %v8395_v11, %v8459_v1  ;;  %v12670_v61 = vcombine.low %v8395_v11, %v8459_v1 }
 0x2f2   : > { %6794 = vrot.lane.b32.xlu0 %v16406_v4, %s13186_s19  ;;  %6796 = vrot.lane.b32.xlu1 %v16549_v44, %s13186_s19  ;;  %v9456_v50 = vpop.f32.mrb[1].mxu1  ;;  %v9417_v33 = vpop.f32.mrb[2].mxu0  ;;  %12914 = vtanh.f32 %v9415_v10 }
 0x2f3   : > { %v6966_v59 = vsel %vm1986_vm0, %v6853_v30, %v6854_v47  ;;  %v8185_v7 = vsel %vm1986_vm0, %v8073_v58, %v8074_v37  ;;  %12798 = vmatprep.subr.msk.bf16.mxu1 %vm8994_vm7, %v12671_v42  ;;  %v9266_v4 = vsel %vm8994_vm7, %v12670_v61, 0  ;;  %12797 = vmatmul.mubr.msk.bf16.vlgmr.msra.gmra.mrb[88].mxu0 %vm8990_vm8, %v16293_v6  ;;  %v5396_v58 = vcombine.high %v16419_v13, %v16419_v13  ;;  %v9458_v57 = vpop.f32.mrb[2].mxu1 }
 0x2f4   : > { %v6967_v12 = vsel %vm6872_vm5, %v6771_v18, %v6966_v59  ;;  %v8186_v21 = vsel %vm8093_vm6, %v16493_v19, %v8185_v7  ;;  %v16589_v49 = vpop.permute.xlu0 %7993  ;;  %v16591_v52 = vpop.permute.xlu1 %3113  ;;  %11225 = vmatpush1.bf16.msra.mxu1 %v9266_v4  ;;  %11297 = vmatprep.mubr.bf16.mxu0 %v13188_v41  ;;  %v16601_v19 = vrot.slane %v2968_v32, %v13215_v5  ;;  %v12907_v4 = vld [vmem:[%s13220_s14 + $0x80] ss:$0 sps:$4 sm:$0x11]   ;;  %12916 = vtanh.f32 %v9456_v50 }
 0x2f5   : > { %7111 = vst [vmem:[#allocation2 + $0x378] sm:$0x22] %v6967_v12  ;;  %8331 = vst [vmem:[#allocation2 + $0x370] sm:$0x44] %v8186_v21  ;;  %v8075_v17 = vrot.slane %v16589_v49, 4  ;;  %v3193_v53 = vrot.slane %v16591_v52, 4 }
 0x2f6   : > { %8015 = vrot.lane.b32.xlu0 %v16402_v9, %s13187_s20  ;;  %8017 = vrot.lane.b32.xlu1 %v16476_v27, %s13187_s20  ;;  %v9418_v59 = vpop.f32.mrb[3].mxu0  ;;  %v12908_v12 = vld [vmem:[%s13220_s14 + $0x80] ss:$0 sps:$4 sm:$0x11]  }
 0x2f7   : > { %v8187_v26 = vsel %vm1986_vm0, %v8074_v37, %v8075_v17  ;;  %v3307_v9 = vsel %vm1986_vm0, %v3192_v29, %v3193_v53  ;;  %12799 = vmatmul.mubr.msk.bf16.vlgmr.msra.gmra.mrb[88].mxu1 %vm8990_vm8, %v16293_v6  ;;  %v5411_v29 = vcombine.high %v16506_v38, %v16506_v38  ;;  %v8396_v38 = vld [vmem:[#allocation2 + $0x170] sm:$0xff] }
 0x2f8   : > { %v8188_v20 = vsel %vm8093_vm6, %v7992_v31, %v8187_v26  ;;  %v3308_v35 = vsel %vm3209_vm2, %v14252_v15, %v3307_v9  ;;  %v4334_v13 = vpop.permute.xlu0 %4333  ;;  %v16618_v28 = vpop.permute.xlu1 %4335  ;;  %11338 = vmatprep.mubr.bf16.mxu1 %v13188_v41  ;;  %v16629_v15 = vrot.slane %v5396_v58, %v13215_v5 }
 0x2f9   : > { %8332 = vst [vmem:[#allocation2 + $0x378] sm:$0x44] %v8188_v20  ;;  %3450 = vst [vmem:[#allocation2 + $0x188] sm:$0x44] %v3308_v35  ;;  %v4414_v36 = vrot.slane %v4334_v13, 4  ;;  %v4415_v54 = vrot.slane %v16618_v28, 4 }
 0x2fa   : > { %3135 = vrot.lane.b32.xlu0 %v16601_v19, %s13183_s16  ;;  %3137 = vrot.lane.b32.xlu1 %v16529_v62, %s13183_s16  ;;  %v16652_v30 = vrot.slane %v16629_v15, %v13215_v5  ;;  %v6632_v55 = vcombine.low %v16629_v15, %v16629_v15 }
 0x2fb   : > { %v4527_v8 = vsel %vm1986_vm0, %v4413_v48, %v4414_v36  ;;  %v4529_v45 = vsel %vm1986_vm0, %v4414_v36, %v4415_v54 }
 0x2fc   : > { %v4528_v40 = vsel %vm4431_vm3, %v16519_v3, %v4527_v8  ;;  %v4530_v0 = vsel %vm4431_vm3, %v4334_v13, %v4529_v45  ;;  %v5554_v39 = vpop.permute.xlu0 %5553  ;;  %v16640_v25 = vpop.permute.xlu1 %5555  ;;  %v8460_v24 = vld [vmem:[#allocation2 + $0x370] sm:$0x77]  ;;  %v16648_v3 = vrot.slane %v5411_v29, %v13215_v5  ;;  %v6653_v7 = vrot.slane %v6632_v55, %v13215_v5 }
 0x2fd   : > { %4671 = vst [vmem:[#allocation2 + $0x180] sm:$0x88] %v4528_v40  ;;  %4672 = vst [vmem:[#allocation2 + $0x188] sm:$0x88] %v4530_v0  ;;  %v5634_v43 = vrot.slane %v5554_v39, 4  ;;  %v5635_v60 = vrot.slane %v16640_v25, 4  ;;  %v12673_v48 = vcombine.high %v8396_v38, %v8460_v24  ;;  %v12672_v18 = vcombine.low %v8396_v38, %v8460_v24 }
 0x2fe   : > { %4357 = vrot.lane.b32.xlu0 %v16476_v27, %s13184_s17  ;;  %4359 = vrot.lane.b32.xlu1 %v16549_v44, %s13184_s17  ;;  %v9495_v29 = vpop.f32.mrb[4].mxu0  ;;  %v4226_v45 = vrot.slane %v12908_v12, %v13215_v5 }
 0x2ff   : > { %v5747_v34 = vsel %vm1986_vm0, %v5633_v2, %v5634_v43  ;;  %v5749_v27 = vsel %vm1986_vm0, %v5634_v43, %v5635_v60  ;;  %12800 = vmatprep.subr.msk.bf16.mxu0 %vm8994_vm7, %v12673_v48  ;;  %v9272_v44 = vsel %vm8994_vm7, %v12672_v18, 0  ;;  %v8397_v2 = vld [vmem:[#allocation2 + $0x178] sm:$0xff]  ;;  %v9497_v40 = vpop.f32.mrb[5].mxu0  ;;  %12918 = vtanh.f32 %v9495_v29 }
 0x300   : > { %v5748_v22 = vsel %vm5651_vm4, %v16542_v23, %v5747_v34  ;;  %v5750_v31 = vsel %vm5651_vm4, %v5554_v39, %v5749_v27  ;;  %v6775_v11 = vpop.permute.xlu0 %6774  ;;  %v16667_v1 = vpop.permute.xlu1 %6776  ;;  %11266 = vmatpush1.bf16.msra.mxu0 %v9272_v44  ;;  %v8461_v37 = vld [vmem:[#allocation2 + $0x378] sm:$0x77]  ;;  %v4227_v44 = vcombine.low %v4226_v45, %v4226_v45 }
 0x301   : > { %5891 = vst [vmem:[#allocation2 + $0x380] sm:$0x11] %v5748_v22  ;;  %5892 = vst [vmem:[#allocation2 + $0x388] sm:$0x11] %v5750_v31  ;;  %v6855_v42 = vrot.slane %v6775_v11, 4  ;;  %v6856_v61 = vrot.slane %v16667_v1, 4  ;;  %v12675_v32 = vcombine.high %v8397_v2, %v8461_v37  ;;  %v12674_v16 = vcombine.low %v8397_v2, %v8461_v37 }
 0x302   : > { %v9459_v23 = vpop.f32.mrb[3].mxu1  ;;  %5577 = vrot.lane.b32.xlu0 %v16648_v3, %s13185_s18  ;;  %5579 = vrot.lane.b32.xlu1 %v16652_v30, %s13185_s18  ;;  %v9499_v24 = vpop.f32.mrb[6].mxu0 }
 0x303   : > { %v6968_v21 = vsel %vm1986_vm0, %v6854_v47, %v6855_v42  ;;  %v6970_v46 = vsel %vm1986_vm0, %v6855_v42, %v6856_v61  ;;  %12802 = vmatprep.subr.msk.bf16.mxu1 %vm8994_vm7, %v12675_v32  ;;  %v9278_v58 = vsel %vm8994_vm7, %v12674_v16, 0  ;;  %12801 = vmatmul.mubr.msk.bf16.vlgmr.msra.gmra.mrb[92].mxu0 %vm8990_vm8, %v16293_v6  ;;  %v849_v47 = vcombine.high %v16566_v14, %v16566_v14  ;;  %v9536_v8 = vpop.f32.mrb[4].mxu1  ;;  %v9500_v50 = vpop.f32.mrb[7].mxu0 }
 0x304   : > { %v6969_v26 = vsel %vm6872_vm5, %v16562_v51, %v6968_v21  ;;  %v6971_v9 = vsel %vm6872_vm5, %v6775_v11, %v6970_v46  ;;  %v7996_v20 = vpop.permute.xlu0 %7995  ;;  %v16690_v35 = vpop.permute.xlu1 %7997  ;;  %11307 = vmatpush1.bf16.msra.mxu1 %v9278_v58  ;;  %11379 = vmatprep.mubr.bf16.mxu0 %v13188_v41  ;;  %v3005_v51 = vrot.slane %v12907_v4, %v13215_v5  ;;  %12920 = vtanh.f32 %v9536_v8  ;;  %v16737_v42 = vld.sshfl [vmem:[%s13220_s14 + $0x80] sm:$0x1 pattern:$0x73625140]  ;;  %v8398_v58 = vld [vmem:[#allocation2 + $0x180] sm:$0xff]  ;;  %v8399_v45 = vld [vmem:[#allocation2 + $0x188] sm:$0xff] }
 0x305   : > { %7112 = vst [vmem:[#allocation2 + $0x380] sm:$0x22] %v6969_v26  ;;  %7113 = vst [vmem:[#allocation2 + $0x388] sm:$0x22] %v6971_v9  ;;  %v8076_v13 = vrot.slane %v7996_v20, 4  ;;  %v8077_v36 = vrot.slane %v16690_v35, 4  ;;  %v863_v14 = vrot.slane %v849_v47, %v13215_v5  ;;  %12922 = vtanh.f32 %v9497_v40 }
 0x306   : > { %6798 = vrot.lane.b32.xlu0 %v16529_v62, %s13186_s19  ;;  %6800 = vrot.lane.b32.xlu1 %v6653_v7, %s13186_s19  ;;  %v9538_v0 = vpop.f32.mrb[5].mxu1  ;;  %v3012_v27 = vrot.slane %v3005_v51, %v13215_v5  ;;  %v4234_v23 = vrot.slane %v4227_v44, %v13215_v5 }
 0x307   : > { %v8189_v39 = vsel %vm1986_vm0, %v8075_v17, %v8076_v13  ;;  %v8191_v38 = vsel %vm1986_vm0, %v8076_v13, %v8077_v36  ;;  %12803 = vmatmul.mubr.msk.bf16.vlgmr.msra.gmra.mrb[92].mxu1 %vm8990_vm8, %v16293_v6  ;;  %v9540_v43 = vpop.f32.mrb[6].mxu1  ;;  %12575 = vst.sshfl [vmem:[#allocation2 + $0x1f0] sm:$0x5 pattern:$0x75316420] %v863_v14  ;;  %v865_v17 = vcombine.high %v863_v14, %v863_v14  ;;  %12924 = vtanh.f32 %v9538_v0 }
 0x308   : > { %v8190_v48 = vsel %vm8093_vm6, %v16589_v49, %v8189_v39  ;;  %v8192_v18 = vsel %vm8093_vm6, %v7996_v20, %v8191_v38  ;;  %v3116_v63 = vpop.permute.xlu0 %3115  ;;  %v16713_v56 = vpop.permute.xlu1 %3117  ;;  %11420 = vmatprep.mubr.bf16.mxu1 %v13188_v41  ;;  %v5454_v0 = vrot.slane %v16737_v42, %v13215_v5 }
 0x309   : > { %8333 = vst [vmem:[#allocation2 + $0x380] sm:$0x44] %v8190_v48  ;;  %8334 = vst [vmem:[#allocation2 + $0x388] sm:$0x44] %v8192_v18  ;;  %v3194_v55 = vrot.slane %v3116_v63, 4  ;;  %v3195_v10 = vrot.slane %v16713_v56, 4  ;;  %v12911_v49 = vpop.eup %12910 }
 0x30a   : > { %v9541_v34 = vpop.f32.mrb[7].mxu1  ;;  %8019 = vrot.lane.b32.xlu0 %v16601_v19, %s13187_s20  ;;  %8021 = vrot.lane.b32.xlu1 %v16529_v62, %s13187_s20  ;;  %12576 = vst.sshfl [vmem:[#allocation2 + $0x1f8] sm:$0x5 pattern:$0x75316420] %v865_v17  ;;  %v5412_v19 = vcombine.high %v16629_v15, %v16629_v15  ;;  %v12913_v22 = vpop.eup %12912  ;;  %v6668_v17 = vcombine.low %v16737_v42, %v16737_v42 }
 0x30b   : > { %v3309_v33 = vsel %vm1986_vm0, %v3193_v53, %v3194_v55  ;;  %v3311_v57 = vsel %vm1986_vm0, %v3194_v55, %v3195_v10  ;;  %v12915_v53 = vpop.eup %12914  ;;  %v9577_v15 = vpop.f32.mrb[8].mxu0  ;;  %v12909_v55 = vld [vmem:[%s13220_s14 + $0x80] ss:$0 sps:$4 sm:$0x11]  }
 0x30c   : > { %v3310_v31 = vsel %vm3209_vm2, %v16591_v52, %v3309_v33  ;;  %v3312_v11 = vsel %vm3209_vm2, %v3116_v63, %v3311_v57  ;;  %v4338_v2 = vpop.permute.xlu0 %4337  ;;  %v16734_v37 = vpop.permute.xlu1 %4339  ;;  %v12259_v7 = vcombine.low %v12911_v49, %v12915_v53  ;;  %v5440_v26 = vrot.slane %v5412_v19, %v13215_v5 }
 0x30d   : > { %3451 = vst [vmem:[#allocation2 + $0x190] sm:$0x44] %v3310_v31  ;;  %3452 = vst [vmem:[#allocation2 + $0x198] sm:$0x44] %v3312_v11  ;;  %v4416_v32 = vrot.slane %v4338_v2, 4  ;;  %v4417_v16 = vrot.slane %v16734_v37, 4  ;;  %v12917_v59 = vpop.eup %12916  ;;  %12926 = vtanh.f32 %v9577_v15  ;;  %v6675_v53 = vrot.slane %v6668_v17, %v13215_v5 }
 0x30e   : > { %v9618_v52 = vpop.f32.mrb[8].mxu1  ;;  %3139 = vrot.lane.b32.xlu0 %v16648_v3, %s13183_s16  ;;  %3141 = vrot.lane.b32.xlu1 %v3012_v27, %s13183_s16  ;;  %v9579_v4 = vpop.f32.mrb[9].mxu0  ;;  %v12260_v9 = vcombine.low %v12913_v22, %v12917_v59  ;;  %12387 = vst [vmem:[%s16743_s4] sm:$0xff] %v12259_v7 }
 0x30f   : > { %v9620_v12 = vpop.f32.mrb[9].mxu1  ;;  %v4531_v21 = vsel %vm1986_vm0, %v4415_v54, %v4416_v32  ;;  %v4533_v46 = vsel %vm1986_vm0, %v4416_v32, %v4417_v16  ;;  %v9581_v20 = vpop.f32.mrb[10].mxu0  ;;  %12928 = vtanh.f32 %v9618_v52  ;;  %v7889_v32 = vrot.slane %v12909_v55, %v13215_v5 }
 0x310   : > { %v9622_v47 = vpop.f32.mrb[10].mxu1  ;;  %v4532_v13 = vsel %vm4431_vm3, %v16618_v28, %v4531_v21  ;;  %v4534_v29 = vsel %vm4431_vm3, %v4338_v2, %v4533_v46  ;;  %v5558_v8 = vpop.permute.xlu0 %5557  ;;  %v8462_v54 = vld [vmem:[#allocation2 + $0x380] sm:$0x77]  ;;  %v8463_v40 = vld [vmem:[#allocation2 + $0x388] sm:$0x77]  ;;  %12388 = vst [vmem:[%s16743_s4 + $0x8] sm:$0xff] %v12260_v9  ;;  %12930 = vtanh.f32 %v9579_v4 }
 0x311   : > { %v16759_v51 = vpop.permute.xlu1 %5559  ;;  %4673 = vst [vmem:[#allocation2 + $0x190] sm:$0x88] %v4532_v13  ;;  %4674 = vst [vmem:[#allocation2 + $0x198] sm:$0x88] %v4534_v29  ;;  %v5636_v14 = vrot.slane %v5558_v8, 4  ;;  %v12677_v39 = vcombine.high %v8398_v58, %v8462_v54  ;;  %v12679_v38 = vcombine.high %v8399_v45, %v8463_v40  ;;  %v9582_v24 = vpop.f32.mrb[11].mxu0  ;;  %v12676_v18 = vcombine.low %v8398_v58, %v8462_v54 }
 0x312   : > { %v5637_v28 = vrot.slane %v16759_v51, 4  ;;  %v9623_v43 = vpop.f32.mrb[11].mxu1  ;;  %v12919_v48 = vpop.eup %12918  ;;  %4361 = vrot.lane.b32.xlu0 %v16529_v62, %s13184_s17  ;;  %4363 = vrot.lane.b32.xlu1 %v4234_v23, %s13184_s17  ;;  %v12678_v63 = vcombine.low %v8399_v45, %v8463_v40  ;;  %12932 = vtanh.f32 %v9620_v12 }
 0x313   : > { %v12921_v50 = vpop.eup %12920  ;;  %v5751_v34 = vsel %vm1986_vm0, %v5635_v60, %v5636_v14  ;;  %12804 = vmatprep.subr.msk.bf16.mxu0 %vm8994_vm7, %v12677_v39  ;;  %12806 = vmatprep.subr.msk.bf16.mxu1 %vm8994_vm7, %v12679_v38  ;;  %v9284_v60 = vsel %vm8994_vm7, %v12676_v18, 0  ;;  %v9700_v42 = vpop.f32.mrb[12].mxu1 }
 0x314   : > { %v5753_v49 = vsel %vm1986_vm0, %v5636_v14, %v5637_v28  ;;  %v12923_v62 = vpop.eup %12922  ;;  %v5752_v27 = vsel %vm5651_vm4, %v16640_v25, %v5751_v34  ;;  %v6779_v33 = vpop.permute.xlu0 %6778  ;;  %v9290_v19 = vsel %vm8994_vm7, %v12678_v63, 0  ;;  %11348 = vmatpush1.bf16.msra.mxu0 %v9284_v60 }
 0x315   : > { %v5754_v44 = vsel %vm5651_vm4, %v5558_v8, %v5753_v49  ;;  %v16783_v57 = vpop.permute.xlu1 %6780  ;;  %v12925_v22 = vpop.eup %12924  ;;  %5893 = vst [vmem:[#allocation2 + $0x390] sm:$0x11] %v5752_v27  ;;  %v6857_v31 = vrot.slane %v6779_v33, 4  ;;  %11389 = vmatpush1.bf16.msra.mxu1 %v9290_v19  ;;  %v12261_v2 = vcombine.low %v12919_v48, %v12923_v62 }
 0x316   : > { %5894 = vst [vmem:[#allocation2 + $0x398] sm:$0x11] %v5754_v44  ;;  %v6858_v11 = vrot.slane %v16783_v57, 4  ;;  %v9659_v25 = vpop.f32.mrb[12].mxu0  ;;  %5581 = vrot.lane.b32.xlu0 %v5440_v26, %s13185_s18  ;;  %5583 = vrot.lane.b32.xlu1 %v5454_v0, %s13185_s18  ;;  %v12262_v15 = vcombine.low %v12921_v50, %v12925_v22  ;;  %v9702_v59 = vpop.f32.mrb[13].mxu1 }
 0x317   : > { %12934 = vtanh.f32 %v9659_v25  ;;  %v9661_v52 = vpop.f32.mrb[13].mxu0  ;;  %v6972_v23 = vsel %vm1986_vm0, %v6856_v61, %v6857_v31  ;;  %12389 = vst [vmem:[%s16743_s4 + $0x10] sm:$0xff] %v12261_v2  ;;  %v9704_v12 = vpop.f32.mrb[14].mxu1  ;;  %12805 = vmatmul.mubr.msk.bf16.vlgmr.msra.gmra.mrb[96].mxu0 %vm8990_vm8, %v16293_v6 }
 0x318   : > { %v6974_v7 = vsel %vm1986_vm0, %v6857_v31, %v6858_v11  ;;  %12936 = vtanh.f32 %v9700_v42  ;;  %v9663_v4 = vpop.f32.mrb[14].mxu0  ;;  %v6973_v21 = vsel %vm6872_vm5, %v16667_v1, %v6972_v23  ;;  %v8000_v58 = vpop.permute.xlu0 %7999  ;;  %12807 = vmatmul.mubr.msk.bf16.vlgmr.msra.gmra.mrb[96].mxu1 %vm8990_vm8, %v16293_v6  ;;  %12390 = vst [vmem:[%s16743_s4 + $0x18] sm:$0xff] %v12262_v15  ;;  %11461 = vmatprep.mubr.bf16.mxu0 %v13188_v41  ;;  %v8400_v2 = vld [vmem:[#allocation2 + $0x190] sm:$0xff] }
 0x319   : > { %v6975_v46 = vsel %vm6872_vm5, %v6779_v33, %v6974_v7  ;;  %v16802_v26 = vpop.permute.xlu1 %8001  ;;  %12938 = vtanh.f32 %v9661_v52  ;;  %7114 = vst [vmem:[#allocation2 + $0x390] sm:$0x22] %v6973_v21  ;;  %v8078_v61 = vrot.slane %v8000_v58, 4  ;;  %11502 = vmatprep.mubr.bf16.mxu1 %v13188_v41  ;;  %v9664_v1 = vpop.f32.mrb[15].mxu0  ;;  %v7896_v6 = vrot.slane %v7889_v32, %v13215_v5 }
 0x31a   : > { %7115 = vst [vmem:[#allocation2 + $0x398] sm:$0x22] %v6975_v46  ;;  %v8079_v9 = vrot.slane %v16802_v26, 4  ;;  %12940 = vtanh.f32 %v9702_v59  ;;  %v9705_v20 = vpop.f32.mrb[15].mxu1  ;;  %v12927_v47 = vpop.eup %12926  ;;  %6802 = vrot.lane.b32.xlu0 %v16652_v30, %s13186_s19  ;;  %6804 = vrot.lane.b32.xlu1 %v6675_v53, %s13186_s19 }
 0x31b   : > { %v8193_v13 = vsel %vm1986_vm0, %v8077_v36, %v8078_v61  ;;  %v12929_v8 = vpop.eup %12928  ;;  %v9741_v36 = vpop.f32.mrb[16].mxu0 }
 0x31c   : > { %v8195_v29 = vsel %vm1986_vm0, %v8078_v61, %v8079_v9  ;;  %v8194_v54 = vsel %vm8093_vm6, %v16690_v35, %v8193_v13  ;;  %v3120_v40 = vpop.permute.xlu0 %3119  ;;  %v12931_v0 = vpop.eup %12930  ;;  %12942 = vtanh.f32 %v9741_v36 }
 0x31d   : > { %v8196_v45 = vsel %vm8093_vm6, %v8000_v58, %v8195_v29  ;;  %v16825_v30 = vpop.permute.xlu1 %3121  ;;  %8335 = vst [vmem:[#allocation2 + $0x390] sm:$0x44] %v8194_v54  ;;  %v3196_v5 = vrot.slane %v3120_v40, 4  ;;  %v9782_v39 = vpop.f32.mrb[16].mxu1  ;;  %v12263_v35 = vcombine.low %v12927_v47, %v12931_v0 }
 0x31e   : > { %8336 = vst [vmem:[#allocation2 + $0x398] sm:$0x44] %v8196_v45  ;;  %v3197_v14 = vrot.slane %v16825_v30, 4  ;;  %8023 = vrot.lane.b32.xlu0 %v16648_v3, %s13187_s20  ;;  %8025 = vrot.lane.b32.xlu1 %v7896_v6, %s13187_s20  ;;  %v9743_v38 = vpop.f32.mrb[17].mxu0  ;;  %v9784_v24 = vpop.f32.mrb[17].mxu1  ;;  %12944 = vtanh.f32 %v9782_v39 }
 0x31f   : > { %v12933_v43 = vpop.eup %12932  ;;  %v3313_v48 = vsel %vm1986_vm0, %v3195_v10, %v3196_v5  ;;  %v9745_v63 = vpop.f32.mrb[18].mxu0  ;;  %12391 = vst [vmem:[%s16743_s4 + $0x20] sm:$0xff] %v12263_v35  ;;  %12946 = vtanh.f32 %v9743_v38 }
 0x320   : > { %v3315_v18 = vsel %vm1986_vm0, %v3196_v5, %v3197_v14  ;;  %v9786_v17 = vpop.f32.mrb[18].mxu1  ;;  %v3314_v3 = vsel %vm3209_vm2, %v16713_v56, %v3313_v48  ;;  %v4342_v34 = vpop.permute.xlu0 %4341  ;;  %v12264_v62 = vcombine.low %v12929_v8, %v12933_v43  ;;  %12948 = vtanh.f32 %v9784_v24 }
 0x321   : > { %v12935_v55 = vpop.eup %12934  ;;  %v3316_v50 = vsel %vm3209_vm2, %v3120_v40, %v3315_v18  ;;  %v16840_v49 = vpop.permute.xlu1 %4343  ;;  %3453 = vst [vmem:[#allocation2 + $0x1a0] sm:$0x44] %v3314_v3  ;;  %v4418_v27 = vrot.slane %v4342_v34, 4 }
 0x322   : > { %v12937_v10 = vpop.eup %12936  ;;  %3454 = vst [vmem:[#allocation2 + $0x1a8] sm:$0x44] %v3316_v50  ;;  %v4419_v44 = vrot.slane %v16840_v49, 4  ;;  %v9746_v33 = vpop.f32.mrb[19].mxu0  ;;  %12392 = vst [vmem:[%s16743_s4 + $0x28] sm:$0xff] %v12264_v62 }
 0x323   : > { %v9787_v60 = vpop.f32.mrb[19].mxu1  ;;  %v12939_v19 = vpop.eup %12938  ;;  %v4535_v22 = vsel %vm1986_vm0, %v4417_v16, %v4418_v27  ;;  %v8401_v16 = vld [vmem:[#allocation2 + $0x198] sm:$0xff] }
 0x324   : > { %v12941_v56 = vpop.eup %12940  ;;  %v4537_v31 = vsel %vm1986_vm0, %v4418_v27, %v4419_v44  ;;  %v12265_v25 = vcombine.low %v12935_v55, %v12939_v19  ;;  %v9823_v42 = vpop.f32.mrb[20].mxu0  ;;  %v4536_v32 = vsel %vm4431_vm3, %v16734_v37, %v4535_v22  ;;  %v8464_v23 = vld [vmem:[#allocation2 + $0x390] sm:$0x77] }
 0x325   : > { %v9864_v53 = vpop.f32.mrb[20].mxu1  ;;  %v4538_v15 = vsel %vm4431_vm3, %v4342_v34, %v4537_v31  ;;  %v5562_v52 = vpop.permute.xlu0 %5561  ;;  %v8465_v7 = vld [vmem:[#allocation2 + $0x398] sm:$0x77]  ;;  %v12266_v4 = vcombine.low %v12937_v10, %v12941_v56  ;;  %12950 = vtanh.f32 %v9823_v42  ;;  %4675 = vst [vmem:[#allocation2 + $0x1a0] sm:$0x88] %v4536_v32  ;;  %v12681_v46 = vcombine.high %v8400_v2, %v8464_v23 }
 0x326   : > { %v16854_v59 = vpop.permute.xlu1 %5563  ;;  %4676 = vst [vmem:[#allocation2 + $0x1a8] sm:$0x88] %v4538_v15  ;;  %v5638_v12 = vrot.slane %v5562_v52, 4  ;;  %v12683_v58 = vcombine.high %v8401_v16, %v8465_v7  ;;  %12393 = vst [vmem:[%s16743_s4 + $0x30] sm:$0xff] %v12265_v25  ;;  %v9825_v37 = vpop.f32.mrb[21].mxu0  ;;  %v12680_v1 = vcombine.low %v8400_v2, %v8464_v23  ;;  %v12682_v20 = vcombine.low %v8401_v16, %v8465_v7 }
 0x327   : > { %v5639_v21 = vrot.slane %v16854_v59, 4  ;;  %v9866_v61 = vpop.f32.mrb[21].mxu1  ;;  %12394 = vst [vmem:[%s16743_s4 + $0x38] sm:$0xff] %v12266_v4  ;;  %12952 = vtanh.f32 %v9864_v53  ;;  %v9827_v47 = vpop.f32.mrb[22].mxu0  ;;  %12808 = vmatprep.subr.msk.bf16.mxu0 %vm8994_vm7, %v12681_v46 }
 0x328   : > { %v9868_v6 = vpop.f32.mrb[22].mxu1  ;;  %v5755_v13 = vsel %vm1986_vm0, %v5637_v28, %v5638_v12  ;;  %12810 = vmatprep.subr.msk.bf16.mxu1 %vm8994_vm7, %v12683_v58  ;;  %12954 = vtanh.f32 %v9825_v37  ;;  %v9828_v8 = vpop.f32.mrb[23].mxu0  ;;  %v9296_v28 = vsel %vm8994_vm7, %v12680_v1, 0  ;;  %v9302_v36 = vsel %vm8994_vm7, %v12682_v20, 0 }
 0x329   : > { %v5757_v29 = vsel %vm1986_vm0, %v5638_v12, %v5639_v21  ;;  %v9869_v54 = vpop.f32.mrb[23].mxu1  ;;  %v5756_v45 = vsel %vm5651_vm4, %v16759_v51, %v5755_v13  ;;  %v6783_v0 = vpop.permute.xlu0 %6782  ;;  %11430 = vmatpush1.bf16.msra.mxu0 %v9296_v28  ;;  %11471 = vmatpush1.bf16.msra.mxu1 %v9302_v36  ;;  %12956 = vtanh.f32 %v9866_v61 }
 0x32a   : > { %v5758_v40 = vsel %vm5651_vm4, %v5562_v52, %v5757_v29  ;;  %v16870_v5 = vpop.permute.xlu1 %6784  ;;  %v12943_v39 = vpop.eup %12942  ;;  %5895 = vst [vmem:[#allocation2 + $0x3a0] sm:$0x11] %v5756_v45  ;;  %v6859_v35 = vrot.slane %v6783_v0, 4 }
 0x32b   : > { %5896 = vst [vmem:[#allocation2 + $0x3a8] sm:$0x11] %v5758_v40  ;;  %v6860_v38 = vrot.slane %v16870_v5, 4  ;;  %v9905_v24 = vpop.f32.mrb[24].mxu0  ;;  %v9946_v51 = vpop.f32.mrb[24].mxu1 }
 0x32c   : > { %v12945_v43 = vpop.eup %12944  ;;  %12958 = vtanh.f32 %v9905_v24  ;;  %v9907_v48 = vpop.f32.mrb[25].mxu0  ;;  %v6976_v17 = vsel %vm1986_vm0, %v6858_v11, %v6859_v35  ;;  %v16889_v11 = vld [vmem:[%s17299_s1] sm:$0x3] }
 0x32d   : > { %v9948_v18 = vpop.f32.mrb[25].mxu1  ;;  %v12947_v63 = vpop.eup %12946  ;;  %v6978_v55 = vsel %vm1986_vm0, %v6859_v35, %v6860_v38  ;;  %12960 = vtanh.f32 %v9946_v51  ;;  %v6977_v62 = vsel %vm6872_vm5, %v16783_v57, %v6976_v17  ;;  %12809 = vmatmul.mubr.msk.bf16.vlgmr.msra.gmra.mrb[100].mxu0 %vm8990_vm8, %v16889_v11  ;;  %12811 = vmatmul.mubr.msk.bf16.vlgmr.msra.gmra.mrb[100].mxu1 %vm8990_vm8, %v16889_v11 }
 0x32e   : > { %v9909_v3 = vpop.f32.mrb[26].mxu0  ;;  %v9950_v50 = vpop.f32.mrb[26].mxu1  ;;  %v6979_v10 = vsel %vm6872_vm5, %v6783_v0, %v6978_v55  ;;  %v12267_v60 = vcombine.low %v12943_v39, %v12947_v63  ;;  %12962 = vtanh.f32 %v9907_v48  ;;  %7116 = vst [vmem:[#allocation2 + $0x3a0] sm:$0x22] %v6977_v62  ;;  %11543 = vmatprep.mubr.bf16.mxu0 %v13188_v41  ;;  %11584 = vmatprep.mubr.bf16.mxu1 %v13188_v41  ;;  %v8402_v55 = vld [vmem:[#allocation2 + $0x1a0] sm:$0xff] }
 0x32f   : > { %v12949_v34 = vpop.eup %12948  ;;  %v8004_v27 = vpop.permute.xlu0 %8003  ;;  %7117 = vst [vmem:[#allocation2 + $0x3a8] sm:$0x22] %v6979_v10  ;;  %12964 = vtanh.f32 %v9948_v18 }
 0x330   : > { %v16884_v33 = vpop.permute.xlu1 %8005  ;;  %v8080_v57 = vrot.slane %v8004_v27, 4  ;;  %v12268_v56 = vcombine.low %v12945_v43, %v12949_v34  ;;  %v9910_v22 = vpop.f32.mrb[27].mxu0  ;;  %12395 = vst [vmem:[%s16743_s4 + $0x40] sm:$0xff] %v12267_v60 }
 0x331   : > { %v8081_v19 = vrot.slane %v16884_v33, 4  ;;  %v9951_v31 = vpop.f32.mrb[27].mxu1  ;;  %v12951_v2 = vpop.eup %12950 }
 0x332   : > { %v9987_v25 = vpop.f32.mrb[28].mxu0  ;;  %v10028_v42 = vpop.f32.mrb[28].mxu1  ;;  %v8197_v53 = vsel %vm1986_vm0, %v8079_v9, %v8080_v57  ;;  %12396 = vst [vmem:[%s16743_s4 + $0x48] sm:$0xff] %v12268_v56 }
 0x333   : > { %v8199_v32 = vsel %vm1986_vm0, %v8080_v57, %v8081_v19  ;;  %12966 = vtanh.f32 %v9987_v25  ;;  %v9989_v15 = vpop.f32.mrb[29].mxu0  ;;  %v10030_v52 = vpop.f32.mrb[29].mxu1  ;;  %v8198_v16 = vsel %vm8093_vm6, %v16802_v26, %v8197_v53 }
 0x334   : > { %v12953_v23 = vpop.eup %12952  ;;  %v8200_v7 = vsel %vm8093_vm6, %v8004_v27, %v8199_v32  ;;  %v3124_v4 = vpop.permute.xlu0 %3123  ;;  %12968 = vtanh.f32 %v10028_v42  ;;  %8337 = vst [vmem:[#allocation2 + $0x3a0] sm:$0x44] %v8198_v16 }
 0x335   : > { %v16909_v12 = vpop.permute.xlu1 %3125  ;;  %v12955_v46 = vpop.eup %12954  ;;  %8338 = vst [vmem:[#allocation2 + $0x3a8] sm:$0x44] %v8200_v7  ;;  %v3198_v9 = vrot.slane %v3124_v4, 4  ;;  %12970 = vtanh.f32 %v9989_v15 }
 0x336   : > { %v3199_v58 = vrot.slane %v16909_v12, 4  ;;  %v9991_v37 = vpop.f32.mrb[30].mxu0  ;;  %v10032_v61 = vpop.f32.mrb[30].mxu1  ;;  %v12269_v1 = vcombine.low %v12951_v2, %v12955_v46  ;;  %12972 = vtanh.f32 %v10030_v52 }
 0x337   : > { %v9992_v20 = vpop.f32.mrb[31].mxu0  ;;  %v10033_v26 = vpop.f32.mrb[31].mxu1  ;;  %v3317_v6 = vsel %vm1986_vm0, %v3197_v14, %v3198_v9 }
 0x338   : > { %v12957_v47 = vpop.eup %12956  ;;  %v3319_v13 = vsel %vm1986_vm0, %v3198_v9, %v3199_v58  ;;  %v10069_v29 = vpop.f32.mrb[32].mxu0  ;;  %v3318_v45 = vsel %vm3209_vm2, %v16825_v30, %v3317_v6  ;;  %12397 = vst [vmem:[%s16743_s4 + $0x50] sm:$0xff] %v12269_v1 }
 0x339   : > { %v10110_v8 = vpop.f32.mrb[32].mxu1  ;;  %v12959_v54 = vpop.eup %12958  ;;  %v3320_v40 = vsel %vm3209_vm2, %v3124_v4, %v3319_v13  ;;  %v12270_v36 = vcombine.low %v12953_v23, %v12957_v47  ;;  %12974 = vtanh.f32 %v10069_v29  ;;  %3455 = vst [vmem:[#allocation2 + $0x1b0] sm:$0x44] %v3318_v45 }
 0x33a   : > { %v4346_v0 = vpop.permute.xlu0 %4345  ;;  %v16921_v28 = vpop.permute.xlu1 %4347  ;;  %3456 = vst [vmem:[#allocation2 + $0x1b8] sm:$0x44] %v3320_v40  ;;  %12976 = vtanh.f32 %v10110_v8 }
 0x33b   : > { %v12961_v14 = vpop.eup %12960  ;;  %v4420_v39 = vrot.slane %v4346_v0, 4  ;;  %v4421_v35 = vrot.slane %v16921_v28, 4  ;;  %v10071_v24 = vpop.f32.mrb[33].mxu0  ;;  %12398 = vst [vmem:[%s16743_s4 + $0x58] sm:$0xff] %v12270_v36  ;;  %v8466_v57 = vld [vmem:[#allocation2 + $0x3a0] sm:$0x77] }
 0x33c   : > { %v10112_v51 = vpop.f32.mrb[33].mxu1  ;;  %v12963_v43 = vpop.eup %12962  ;;  %12978 = vtanh.f32 %v10071_v24  ;;  %v8467_v56 = vld [vmem:[#allocation2 + $0x3a8] sm:$0x77]  ;;  %v12685_v42 = vcombine.high %v8402_v55, %v8466_v57  ;;  %v12684_v52 = vcombine.low %v8402_v55, %v8466_v57 }
 0x33d   : > { %v10073_v30 = vpop.f32.mrb[34].mxu0  ;;  %v10114_v48 = vpop.f32.mrb[34].mxu1  ;;  %v4539_v63 = vsel %vm1986_vm0, %v4419_v44, %v4420_v39  ;;  %v4541_v17 = vsel %vm1986_vm0, %v4420_v39, %v4421_v35  ;;  %v12271_v3 = vcombine.low %v12959_v54, %v12963_v43  ;;  %12980 = vtanh.f32 %v10112_v51  ;;  %v8403_v44 = vld [vmem:[#allocation2 + $0x1a8] sm:$0xff] }
 0x33e   : > { %v12965_v18 = vpop.eup %12964  ;;  %v10074_v50 = vpop.f32.mrb[35].mxu0  ;;  %v4540_v62 = vsel %vm4431_vm3, %v16840_v49, %v4539_v63  ;;  %v4542_v10 = vsel %vm4431_vm3, %v4346_v0, %v4541_v17  ;;  %v12687_v53 = vcombine.high %v8403_v44, %v8467_v56  ;;  %v12686_v23 = vcombine.low %v8403_v44, %v8467_v56  ;;  %12812 = vmatprep.subr.msk.bf16.mxu0 %vm8994_vm7, %v12685_v42 }
 0x33f   : > { %v10115_v34 = vpop.f32.mrb[35].mxu1  ;;  %v5566_v27 = vpop.permute.xlu0 %5565  ;;  %v12272_v22 = vcombine.low %v12961_v14, %v12965_v18  ;;  %4677 = vst [vmem:[#allocation2 + $0x1b0] sm:$0x88] %v4540_v62  ;;  %4678 = vst [vmem:[#allocation2 + $0x1b8] sm:$0x88] %v4542_v10 }
 0x340   : > { %v16935_v60 = vpop.permute.xlu1 %5567  ;;  %v12967_v31 = vpop.eup %12966  ;;  %v5640_v2 = vrot.slane %v5566_v27, 4  ;;  %12399 = vst [vmem:[%s16743_s4 + $0x60] sm:$0xff] %v12271_v3  ;;  %12814 = vmatprep.subr.msk.bf16.mxu1 %vm8994_vm7, %v12687_v53  ;;  %v9314_v13 = vsel %vm8994_vm7, %v12686_v23, 0 }
 0x341   : > { %v5641_v25 = vrot.slane %v16935_v60, 4  ;;  %v10151_v49 = vpop.f32.mrb[36].mxu0  ;;  %v10192_v32 = vpop.f32.mrb[36].mxu1  ;;  %12400 = vst [vmem:[%s16743_s4 + $0x68] sm:$0xff] %v12272_v22  ;;  %11553 = vmatpush1.bf16.msra.mxu1 %v9314_v13 }
 0x342   : > { %v12969_v15 = vpop.eup %12968  ;;  %12982 = vtanh.f32 %v10151_v49  ;;  %v10153_v16 = vpop.f32.mrb[37].mxu0  ;;  %v5759_v46 = vsel %vm1986_vm0, %v5639_v21, %v5640_v2  ;;  %v9308_v21 = vsel %vm8994_vm7, %v12684_v52, 0 }
 0x343   : > { %v10194_v7 = vpop.f32.mrb[37].mxu1  ;;  %v12971_v4 = vpop.eup %12970  ;;  %v5761_v9 = vsel %vm1986_vm0, %v5640_v2, %v5641_v25  ;;  %12984 = vtanh.f32 %v10192_v32  ;;  %v5760_v20 = vsel %vm5651_vm4, %v16854_v59, %v5759_v46  ;;  %11512 = vmatpush1.bf16.msra.mxu0 %v9308_v21 }
 0x344   : > { %v10155_v37 = vpop.f32.mrb[38].mxu0  ;;  %v10196_v61 = vpop.f32.mrb[38].mxu1  ;;  %v5762_v26 = vsel %vm5651_vm4, %v5566_v27, %v5761_v9  ;;  %5897 = vst [vmem:[#allocation2 + $0x3b0] sm:$0x11] %v5760_v20  ;;  %v12273_v54 = vcombine.low %v12967_v31, %v12971_v4  ;;  %12986 = vtanh.f32 %v10153_v16  ;;  %12815 = vmatmul.mubr.msk.bf16.vlgmr.msra.gmra.mrb[104].mxu1 %vm8990_vm8, %v16889_v11 }
 0x345   : > { %v12973_v1 = vpop.eup %12972  ;;  %v6787_v47 = vpop.permute.xlu0 %6786  ;;  %5898 = vst [vmem:[#allocation2 + $0x3b8] sm:$0x11] %v5762_v26  ;;  %12988 = vtanh.f32 %v10194_v7  ;;  %11666 = vmatprep.mubr.bf16.mxu1 %v13188_v41 }
 0x346   : > { %v16951_v6 = vpop.permute.xlu1 %6788  ;;  %v6861_v29 = vrot.slane %v6787_v47, 4  ;;  %v12274_v59 = vcombine.low %v12969_v15, %v12973_v1  ;;  %v10156_v45 = vpop.f32.mrb[39].mxu0  ;;  %12401 = vst [vmem:[%s16743_s4 + $0x70] sm:$0xff] %v12273_v54  ;;  %12813 = vmatmul.mubr.msk.bf16.vlgmr.msra.gmra.mrb[104].mxu0 %vm8990_vm8, %v16889_v11 }
 0x347   : > { %v6862_v8 = vrot.slane %v16951_v6, 4  ;;  %v10197_v40 = vpop.f32.mrb[39].mxu1  ;;  %v12975_v0 = vpop.eup %12974  ;;  %11625 = vmatprep.mubr.bf16.mxu0 %v13188_v41 }
 0x348   : > { %v10233_v36 = vpop.f32.mrb[40].mxu0  ;;  %v10274_v14 = vpop.f32.mrb[40].mxu1  ;;  %v6980_v24 = vsel %vm1986_vm0, %v6860_v38, %v6861_v29  ;;  %12402 = vst [vmem:[%s16743_s4 + $0x78] sm:$0xff] %v12274_v59 }
 0x349   : > { %v12977_v39 = vpop.eup %12976  ;;  %v6982_v51 = vsel %vm1986_vm0, %v6861_v29, %v6862_v8  ;;  %v10235_v43 = vpop.f32.mrb[41].mxu0  ;;  %v6981_v18 = vsel %vm6872_vm5, %v16870_v5, %v6980_v24  ;;  %12990 = vtanh.f32 %v10233_v36  ;;  %v8404_v24 = vld [vmem:[#allocation2 + $0x1b0] sm:$0xff] }
 0x34a   : > { %v10276_v30 = vpop.f32.mrb[41].mxu1  ;;  %v12979_v48 = vpop.eup %12978  ;;  %v6983_v63 = vsel %vm6872_vm5, %v6787_v47, %v6982_v51  ;;  %7118 = vst [vmem:[#allocation2 + $0x3b0] sm:$0x22] %v6981_v18  ;;  %12992 = vtanh.f32 %v10274_v14 }
 0x34b   : > { %v8008_v17 = vpop.permute.xlu0 %8007  ;;  %v16967_v55 = vpop.permute.xlu1 %8009  ;;  %7119 = vst [vmem:[#allocation2 + $0x3b8] sm:$0x22] %v6983_v63  ;;  %v12275_v5 = vcombine.low %v12975_v0, %v12979_v48  ;;  %12994 = vtanh.f32 %v10235_v43 }
 0x34c   : > { %v12981_v38 = vpop.eup %12980  ;;  %v8082_v3 = vrot.slane %v8008_v17, 4  ;;  %v8083_v50 = vrot.slane %v16967_v55, 4  ;;  %v10237_v34 = vpop.f32.mrb[42].mxu0  ;;  %12996 = vtanh.f32 %v10276_v30 }
 0x34d   : > { %v10278_v62 = vpop.f32.mrb[42].mxu1  ;;  %v12276_v10 = vcombine.low %v12977_v39, %v12981_v38  ;;  %v10238_v27 = vpop.f32.mrb[43].mxu0  ;;  %12403 = vst [vmem:[%s16743_s4 + $0x80] sm:$0xff] %v12275_v5 }
 0x34e   : > { %v10279_v57 = vpop.f32.mrb[43].mxu1  ;;  %v8201_v44 = vsel %vm1986_vm0, %v8081_v19, %v8082_v3  ;;  %v8203_v56 = vsel %vm1986_vm0, %v8082_v3, %v8083_v50  ;;  %v10315_v22 = vpop.f32.mrb[44].mxu0 }
 0x34f   : > { %v10356_v31 = vpop.f32.mrb[44].mxu1  ;;  %v12983_v2 = vpop.eup %12982  ;;  %v8202_v42 = vsel %vm8093_vm6, %v16884_v33, %v8201_v44  ;;  %v8204_v53 = vsel %vm8093_vm6, %v8008_v17, %v8203_v56  ;;  %12404 = vst [vmem:[%s16743_s4 + $0x88] sm:$0xff] %v12276_v10  ;;  %12998 = vtanh.f32 %v10315_v22 }
 0x350   : > { %v3128_v49 = vpop.permute.xlu0 %3127  ;;  %v16986_v32 = vpop.permute.xlu1 %3129  ;;  %8339 = vst [vmem:[#allocation2 + $0x3b0] sm:$0x44] %v8202_v42  ;;  %8340 = vst [vmem:[#allocation2 + $0x3b8] sm:$0x44] %v8204_v53  ;;  %13000 = vtanh.f32 %v10356_v31 }
 0x351   : > { %v12985_v19 = vpop.eup %12984  ;;  %v3200_v15 = vrot.slane %v3128_v49, 4  ;;  %v3201_v52 = vrot.slane %v16986_v32, 4  ;;  %v10317_v23 = vpop.f32.mrb[45].mxu0 }
 0x352   : > { %v10358_v16 = vpop.f32.mrb[45].mxu1  ;;  %13002 = vtanh.f32 %v10317_v23  ;;  %v10319_v7 = vpop.f32.mrb[46].mxu0 }
 0x353   : > { %v10360_v4 = vpop.f32.mrb[46].mxu1  ;;  %v3321_v33 = vsel %vm1986_vm0, %v3199_v58, %v3200_v15  ;;  %v3323_v46 = vsel %vm1986_vm0, %v3200_v15, %v3201_v52  ;;  %13004 = vtanh.f32 %v10358_v16  ;;  %v10320_v9 = vpop.f32.mrb[47].mxu0 }
 0x354   : > { %v10361_v37 = vpop.f32.mrb[47].mxu1  ;;  %v12987_v61 = vpop.eup %12986  ;;  %v3322_v1 = vsel %vm3209_vm2, %v16909_v12, %v3321_v33  ;;  %v3324_v20 = vsel %vm3209_vm2, %v3128_v49, %v3323_v46 }
 0x355   : > { %v4350_v26 = vpop.permute.xlu0 %4349  ;;  %v16999_v47 = vpop.permute.xlu1 %4351  ;;  %3457 = vst [vmem:[#allocation2 + $0x1c0] sm:$0x44] %v3322_v1  ;;  %3458 = vst [vmem:[#allocation2 + $0x1c8] sm:$0x44] %v3324_v20  ;;  %v12277_v29 = vcombine.low %v12983_v2, %v12987_v61 }
 0x356   : > { %v12989_v21 = vpop.eup %12988  ;;  %v4422_v58 = vrot.slane %v4350_v26, 4  ;;  %v4423_v13 = vrot.slane %v16999_v47, 4  ;;  %v10397_v54 = vpop.f32.mrb[48].mxu0 }
 0x357   : > { %v10438_v59 = vpop.f32.mrb[48].mxu1  ;;  %v12991_v45 = vpop.eup %12990  ;;  %v12278_v40 = vcombine.low %v12985_v19, %v12989_v21  ;;  %13006 = vtanh.f32 %v10397_v54  ;;  %12405 = vst [vmem:[%s16743_s4 + $0x90] sm:$0xff] %v12277_v29  ;;  %v8468_v38 = vld [vmem:[#allocation2 + $0x3b0] sm:$0x77]  ;;  %v8469_v3 = vld [vmem:[#allocation2 + $0x3b8] sm:$0x77] }
 0x358   : > { %v10399_v0 = vpop.f32.mrb[49].mxu0  ;;  %v10440_v12 = vpop.f32.mrb[49].mxu1  ;;  %v4543_v14 = vsel %vm1986_vm0, %v4421_v35, %v4422_v58  ;;  %v4545_v39 = vsel %vm1986_vm0, %v4422_v58, %v4423_v13  ;;  %13008 = vtanh.f32 %v10438_v59  ;;  %v8405_v35 = vld [vmem:[#allocation2 + $0x1b8] sm:$0xff]  ;;  %v12689_v10 = vcombine.high %v8404_v24, %v8468_v38 }
 0x359   : > { %v12993_v36 = vpop.eup %12992  ;;  %v10401_v51 = vpop.f32.mrb[50].mxu0  ;;  %v4544_v48 = vsel %vm4431_vm3, %v16921_v28, %v4543_v14  ;;  %v4546_v18 = vsel %vm4431_vm3, %v4350_v26, %v4545_v39  ;;  %12406 = vst [vmem:[%s16743_s4 + $0x98] sm:$0xff] %v12278_v40  ;;  %13010 = vtanh.f32 %v10399_v0  ;;  %v12691_v27 = vcombine.high %v8405_v35, %v8469_v3 }
 0x35a   : > { %v10442_v43 = vpop.f32.mrb[50].mxu1  ;;  %v12995_v30 = vpop.eup %12994  ;;  %4679 = vst [vmem:[#allocation2 + $0x1c0] sm:$0x88] %v4544_v48  ;;  %4680 = vst [vmem:[#allocation2 + $0x1c8] sm:$0x88] %v4546_v18  ;;  %v12688_v56 = vcombine.low %v8404_v24, %v8468_v38  ;;  %v12690_v22 = vcombine.low %v8405_v35, %v8469_v3  ;;  %12816 = vmatprep.subr.msk.bf16.mxu0 %vm8994_vm7, %v12689_v10  ;;  %13012 = vtanh.f32 %v10440_v12 }
 0x35b   : > { %v5570_v63 = vpop.permute.xlu0 %5569  ;;  %v17012_v17 = vpop.permute.xlu1 %5571  ;;  %v12279_v31 = vcombine.low %v12991_v45, %v12995_v30  ;;  %12818 = vmatprep.subr.msk.bf16.mxu1 %vm8994_vm7, %v12691_v27 }
 0x35c   : > { %v12997_v5 = vpop.eup %12996  ;;  %v5642_v34 = vrot.slane %v5570_v63, 4  ;;  %v5643_v62 = vrot.slane %v17012_v17, 4  ;;  %v10402_v57 = vpop.f32.mrb[51].mxu0  ;;  %v9326_v37 = vsel %vm8994_vm7, %v12690_v22, 0 }
 0x35d   : > { %v10443_v28 = vpop.f32.mrb[51].mxu1  ;;  %v12999_v44 = vpop.eup %12998  ;;  %v12280_v2 = vcombine.low %v12993_v36, %v12997_v5  ;;  %12407 = vst [vmem:[%s16743_s4 + $0xa0] sm:$0xff] %v12279_v31  ;;  %11635 = vmatpush1.bf16.msra.mxu1 %v9326_v37 }
 0x35e   : > { %v10479_v42 = vpop.f32.mrb[52].mxu0  ;;  %v10520_v53 = vpop.f32.mrb[52].mxu1  ;;  %v5763_v19 = vsel %vm1986_vm0, %v5641_v25, %v5642_v34  ;;  %v5765_v15 = vsel %vm1986_vm0, %v5642_v34, %v5643_v62  ;;  %v9320_v25 = vsel %vm8994_vm7, %v12688_v56, 0 }
 0x35f   : > { %v13001_v49 = vpop.eup %13000  ;;  %v10481_v23 = vpop.f32.mrb[53].mxu0  ;;  %v5764_v4 = vsel %vm5651_vm4, %v16935_v60, %v5763_v19  ;;  %v5766_v33 = vsel %vm5651_vm4, %v5570_v63, %v5765_v15  ;;  %12408 = vst [vmem:[%s16743_s4 + $0xa8] sm:$0xff] %v12280_v2  ;;  %11594 = vmatpush1.bf16.msra.mxu0 %v9320_v25  ;;  %13014 = vtanh.f32 %v10479_v42 }
 0x360   : > { %v10522_v16 = vpop.f32.mrb[53].mxu1  ;;  %v13003_v7 = vpop.eup %13002  ;;  %5899 = vst [vmem:[#allocation2 + $0x3c0] sm:$0x11] %v5764_v4  ;;  %5900 = vst [vmem:[#allocation2 + $0x3c8] sm:$0x11] %v5766_v33  ;;  %13016 = vtanh.f32 %v10520_v53  ;;  %12819 = vmatmul.mubr.msk.bf16.vlgmr.msra.gmra.mrb[108].mxu1 %vm8990_vm8, %v16889_v11 }
 0x361   : > { %v6791_v46 = vpop.permute.xlu0 %6790  ;;  %v17027_v9 = vpop.permute.xlu1 %6792  ;;  %v12281_v60 = vcombine.low %v12999_v44, %v13003_v7  ;;  %13018 = vtanh.f32 %v10481_v23  ;;  %11748 = vmatprep.mubr.bf16.mxu1 %v13188_v41 }
 0x362   : > { %v13005_v61 = vpop.eup %13004  ;;  %v6863_v1 = vrot.slane %v6791_v46, 4  ;;  %v6864_v20 = vrot.slane %v17027_v9, 4  ;;  %v10483_v26 = vpop.f32.mrb[54].mxu0  ;;  %12817 = vmatmul.mubr.msk.bf16.vlgmr.msra.gmra.mrb[108].mxu0 %vm8990_vm8, %v16889_v11  ;;  %13020 = vtanh.f32 %v10522_v16 }
 0x363   : > { %v10524_v21 = vpop.f32.mrb[54].mxu1  ;;  %v12282_v58 = vcombine.low %v13001_v49, %v13005_v61  ;;  %v10484_v29 = vpop.f32.mrb[55].mxu0  ;;  %12409 = vst [vmem:[%s16743_s4 + $0xb0] sm:$0xff] %v12281_v60  ;;  %11707 = vmatprep.mubr.bf16.mxu0 %v13188_v41 }
 0x364   : > { %v10525_v54 = vpop.f32.mrb[55].mxu1  ;;  %v6984_v59 = vsel %vm1986_vm0, %v6862_v8, %v6863_v1  ;;  %v6986_v45 = vsel %vm1986_vm0, %v6863_v1, %v6864_v20  ;;  %v10561_v40 = vpop.f32.mrb[56].mxu0  ;;  %v8406_v29 = vld [vmem:[#allocation2 + $0x1c0] sm:$0xff] }
 0x365   : > { %v10602_v0 = vpop.f32.mrb[56].mxu1  ;;  %v13007_v12 = vpop.eup %13006  ;;  %v6985_v36 = vsel %vm6872_vm5, %v16951_v6, %v6984_v59  ;;  %v6987_v14 = vsel %vm6872_vm5, %v6791_v46, %v6986_v45  ;;  %12410 = vst [vmem:[%s16743_s4 + $0xb8] sm:$0xff] %v12282_v58  ;;  %13022 = vtanh.f32 %v10561_v40 }
 0x366   : > { %v8012_v39 = vpop.permute.xlu0 %8011  ;;  %v17044_v24 = vpop.permute.xlu1 %8013  ;;  %7120 = vst [vmem:[#allocation2 + $0x3c0] sm:$0x22] %v6985_v36  ;;  %7121 = vst [vmem:[#allocation2 + $0x3c8] sm:$0x22] %v6987_v14  ;;  %13024 = vtanh.f32 %v10602_v0  ;;  %v8407_v14 = vld [vmem:[#allocation2 + $0x1c8] sm:$0xff] }
 0x367   : > { %v13009_v8 = vpop.eup %13008  ;;  %v8084_v51 = vrot.slane %v8012_v39, 4  ;;  %v8085_v43 = vrot.slane %v17044_v24, 4  ;;  %v10563_v6 = vpop.f32.mrb[57].mxu0 }
 0x368   : > { %v10604_v30 = vpop.f32.mrb[57].mxu1  ;;  %v13011_v48 = vpop.eup %13010  ;;  %13026 = vtanh.f32 %v10563_v6 }
 0x369   : > { %v10565_v18 = vpop.f32.mrb[58].mxu0  ;;  %v10606_v63 = vpop.f32.mrb[58].mxu1  ;;  %v8205_v38 = vsel %vm1986_vm0, %v8083_v50, %v8084_v51  ;;  %v8207_v35 = vsel %vm1986_vm0, %v8084_v51, %v8085_v43  ;;  %v12283_v3 = vcombine.low %v13007_v12, %v13011_v48  ;;  %13028 = vtanh.f32 %v10604_v30 }
 0x36a   : > { %v10566_v5 = vpop.f32.mrb[59].mxu0  ;;  %v10607_v34 = vpop.f32.mrb[59].mxu1  ;;  %v8206_v10 = vsel %vm8093_vm6, %v16967_v55, %v8205_v38  ;;  %v8208_v27 = vsel %vm8093_vm6, %v8012_v39, %v8207_v35 }
 0x36b   : > { %v3132_v57 = vpop.permute.xlu0 %3131  ;;  %v17063_v28 = vpop.permute.xlu1 %3133  ;;  %8341 = vst [vmem:[#allocation2 + $0x3c0] sm:$0x44] %v8206_v10  ;;  %8342 = vst [vmem:[#allocation2 + $0x3c8] sm:$0x44] %v8208_v27 }
 0x36c   : > { %v13013_v44 = vpop.eup %13012  ;;  %v3202_v50 = vrot.slane %v3132_v57, 4  ;;  %v3203_v56 = vrot.slane %v17063_v28, 4  ;;  %12411 = vst [vmem:[%s16743_s4 + $0xc0] sm:$0xff] %v12283_v3  ;;  %v10643_v22 = vpop.f32.mrb[60].mxu0 }
 0x36d   : > { %v12284_v31 = vcombine.low %v13009_v8, %v13013_v44  ;;  %13030 = vtanh.f32 %v10643_v22  ;;  %v10684_v2 = vpop.f32.mrb[60].mxu1  ;;  %v10645_v42 = vpop.f32.mrb[61].mxu0 }
 0x36e   : > { %v13015_v55 = vpop.eup %13014  ;;  %v3325_v53 = vsel %vm1986_vm0, %v3201_v52, %v3202_v50  ;;  %v3327_v49 = vsel %vm1986_vm0, %v3202_v50, %v3203_v56  ;;  %13032 = vtanh.f32 %v10684_v2  ;;  %v10686_v19 = vpop.f32.mrb[61].mxu1 }
 0x36f   : > { %v10647_v15 = vpop.f32.mrb[62].mxu0  ;;  %v13017_v23 = vpop.eup %13016  ;;  %v3326_v16 = vsel %vm3209_vm2, %v16986_v32, %v3325_v53  ;;  %v3328_v7 = vsel %vm3209_vm2, %v3132_v57, %v3327_v49  ;;  %12412 = vst [vmem:[%s16743_s4 + $0xc8] sm:$0xff] %v12284_v31  ;;  %13034 = vtanh.f32 %v10645_v42 }
 0x370   : > { %v4354_v4 = vpop.permute.xlu0 %4353  ;;  %v17076_v33 = vpop.permute.xlu1 %4355  ;;  %3459 = vst [vmem:[#allocation2 + $0x1d0] sm:$0x44] %v3326_v16  ;;  %3460 = vst [vmem:[#allocation2 + $0x1d8] sm:$0x44] %v3328_v7  ;;  %13036 = vtanh.f32 %v10686_v19 }
 0x371   : > { %v13019_v46 = vpop.eup %13018  ;;  %v4424_v52 = vrot.slane %v4354_v4, 4  ;;  %v4425_v25 = vrot.slane %v17076_v33, 4  ;;  %v10688_v37 = vpop.f32.mrb[62].mxu1 }
 0x372   : > { %v10648_v61 = vpop.f32.mrb[63].mxu0  ;;  %v13021_v1 = vpop.eup %13020  ;;  %v12285_v60 = vcombine.low %v13015_v55, %v13019_v46  ;;  %v8470_v36 = vld [vmem:[#allocation2 + $0x3c0] sm:$0x77]  ;;  %v8471_v39 = vld [vmem:[#allocation2 + $0x3c8] sm:$0x77] }
 0x373   : > { %v10689_v32 = vpop.f32.mrb[63].mxu1  ;;  %v13023_v26 = vpop.eup %13022  ;;  %v4547_v21 = vsel %vm1986_vm0, %v4423_v13, %v4424_v52  ;;  %v4549_v58 = vsel %vm1986_vm0, %v4424_v52, %v4425_v25  ;;  %v12286_v54 = vcombine.low %v13017_v23, %v13021_v1  ;;  %v12693_v6 = vcombine.high %v8406_v29, %v8470_v36 }
 0x374   : > { %v13025_v59 = vpop.eup %13024  ;;  %v4548_v45 = vsel %vm4431_vm3, %v16999_v47, %v4547_v21  ;;  %v4550_v40 = vsel %vm4431_vm3, %v4354_v4, %v4549_v58  ;;  %v5574_v0 = vpop.permute.xlu0 %5573  ;;  %12413 = vst [vmem:[%s16743_s4 + $0xd0] sm:$0xff] %v12285_v60  ;;  %v12695_v30 = vcombine.high %v8407_v14, %v8471_v39  ;;  %v12692_v47 = vcombine.low %v8406_v29, %v8470_v36 }
 0x375   : > { %v17089_v12 = vpop.permute.xlu1 %5575  ;;  %v13027_v13 = vpop.eup %13026  ;;  %4681 = vst [vmem:[#allocation2 + $0x1d0] sm:$0x88] %v4548_v45  ;;  %4682 = vst [vmem:[#allocation2 + $0x1d8] sm:$0x88] %v4550_v40  ;;  %v5644_v8 = vrot.slane %v5574_v0, 4  ;;  %v12694_v18 = vcombine.low %v8407_v14, %v8471_v39  ;;  %12820 = vmatprep.subr.msk.bf16.mxu0 %vm8994_vm7, %v12693_v6 }
 0x376   : > { %v5645_v51 = vrot.slane %v17089_v12, 4  ;;  %12414 = vst [vmem:[%s16743_s4 + $0xd8] sm:$0xff] %v12286_v54  ;;  %v13029_v48 = vpop.eup %13028  ;;  %v12287_v63 = vcombine.low %v13023_v26, %v13027_v13  ;;  %12822 = vmatprep.subr.msk.bf16.mxu1 %vm8994_vm7, %v12695_v30  ;;  %v10725_v2 = vpop.f32.mrb[64].mxu0 }
 0x377   : > { %v5767_v38 = vsel %vm1986_vm0, %v5643_v62, %v5644_v8  ;;  %v12288_v3 = vcombine.low %v13025_v59, %v13029_v48  ;;  %v13031_v5 = vpop.eup %13030  ;;  %v9332_v62 = vsel %vm8994_vm7, %v12692_v47, 0  ;;  %v9338_v44 = vsel %vm8994_vm7, %v12694_v18, 0  ;;  %v10727_v19 = vpop.f32.mrb[65].mxu0 }
 0x378   : > { %v5769_v35 = vsel %vm1986_vm0, %v5644_v8, %v5645_v51  ;;  %v5768_v34 = vsel %vm5651_vm4, %v17012_v17, %v5767_v38  ;;  %v6795_v27 = vpop.permute.xlu0 %6794  ;;  %12415 = vst [vmem:[%s16743_s4 + $0xe0] sm:$0xff] %v12287_v63  ;;  %v13033_v50 = vpop.eup %13032  ;;  %11676 = vmatpush1.bf16.msra.mxu0 %v9332_v62  ;;  %11717 = vmatpush1.bf16.msra.mxu1 %v9338_v44  ;;  %13038 = vtanh.f32 %v10725_v2 }
 0x379   : > { %v5770_v10 = vsel %vm5651_vm4, %v5574_v0, %v5769_v35  ;;  %v17105_v57 = vpop.permute.xlu1 %6796  ;;  %5901 = vst [vmem:[#allocation2 + $0x3d0] sm:$0x11] %v5768_v34  ;;  %v6865_v22 = vrot.slane %v6795_v27, 4  ;;  %12416 = vst [vmem:[%s16743_s4 + $0xe8] sm:$0xff] %v12288_v3  ;;  %v13035_v17 = vpop.eup %13034  ;;  %13040 = vtanh.f32 %v10727_v19 }
 0x37a   : > { %5902 = vst [vmem:[#allocation2 + $0x3d8] sm:$0x11] %v5770_v10  ;;  %v6866_v31 = vrot.slane %v17105_v57, 4  ;;  %v13037_v42 = vpop.eup %13036  ;;  %v12289_v49 = vcombine.low %v13031_v5, %v13035_v17  ;;  %v10766_v52 = vpop.f32.mrb[64].mxu1 }
 0x37b   : > { %v6988_v55 = vsel %vm1986_vm0, %v6864_v20, %v6865_v22  ;;  %12821 = vmatmul.mubr.msk.bf16.vlgmr.msra.gmra.mrb[112].mxu0 %vm8990_vm8, %v16889_v11  ;;  %12823 = vmatmul.mubr.msk.bf16.vlgmr.msra.gmra.mrb[112].mxu1 %vm8990_vm8, %v16889_v11  ;;  %v12290_v20 = vcombine.low %v13033_v50, %v13037_v42  ;;  %13042 = vtanh.f32 %v10766_v52  ;;  %v10768_v60 = vpop.f32.mrb[65].mxu1 }
 0x37c   : > { %v6990_v53 = vsel %vm1986_vm0, %v6865_v22, %v6866_v31  ;;  %v6989_v15 = vsel %vm6872_vm5, %v17027_v9, %v6988_v55  ;;  %v8016_v16 = vpop.permute.xlu0 %8015  ;;  %11789 = vmatprep.mubr.bf16.mxu0 %v13188_v41  ;;  %11830 = vmatprep.mubr.bf16.mxu1 %v13188_v41  ;;  %12417 = vst [vmem:[%s16743_s4 + $0xf0] sm:$0xff] %v12289_v49  ;;  %v10729_v9 = vpop.f32.mrb[66].mxu0  ;;  %13044 = vtanh.f32 %v10768_v60  ;;  %v8408_v30 = vld [vmem:[#allocation2 + $0x1d0] sm:$0xff]  ;;  %v8409_v3 = vld [vmem:[#allocation2 + $0x1d8] sm:$0xff] }
 0x37d   : > { %v6991_v23 = vsel %vm6872_vm5, %v6795_v27, %v6990_v53  ;;  %v17121_v7 = vpop.permute.xlu1 %8017  ;;  %7122 = vst [vmem:[#allocation2 + $0x3d0] sm:$0x22] %v6989_v15  ;;  %v8086_v4 = vrot.slane %v8016_v16, 4  ;;  %12418 = vst [vmem:[%s16743_s4 + $0xf8] sm:$0xff] %v12290_v20  ;;  %v10730_v37 = vpop.f32.mrb[67].mxu0 }
 0x37e   : > { %7123 = vst [vmem:[#allocation2 + $0x3d8] sm:$0x22] %v6991_v23  ;;  %v8087_v46 = vrot.slane %v17121_v7, 4  ;;  %v10770_v54 = vpop.f32.mrb[66].mxu1  ;;  %v10807_v22 = vpop.f32.mrb[68].mxu0 }
 0x37f   : > { %v8209_v61 = vsel %vm1986_vm0, %v8085_v43, %v8086_v4  ;;  %v10771_v59 = vpop.f32.mrb[67].mxu1  ;;  %13046 = vtanh.f32 %v10807_v22  ;;  %v10809_v55 = vpop.f32.mrb[69].mxu0 }
 0x380   : > { %v8211_v1 = vsel %vm1986_vm0, %v8086_v4, %v8087_v46  ;;  %v8210_v32 = vsel %vm8093_vm6, %v17044_v24, %v8209_v61  ;;  %v3136_v21 = vpop.permute.xlu0 %3135  ;;  %13048 = vtanh.f32 %v10809_v55  ;;  %v10811_v4 = vpop.f32.mrb[70].mxu0 }
 0x381   : > { %v8212_v26 = vsel %vm8093_vm6, %v8016_v16, %v8211_v1  ;;  %v17141_v58 = vpop.permute.xlu1 %3137  ;;  %8343 = vst [vmem:[#allocation2 + $0x3d0] sm:$0x44] %v8210_v32  ;;  %v3204_v29 = vrot.slane %v3136_v21, 4  ;;  %v10812_v9 = vpop.f32.mrb[71].mxu0 }
 0x382   : > { %8344 = vst [vmem:[#allocation2 + $0x3d8] sm:$0x44] %v8212_v26  ;;  %v3205_v43 = vrot.slane %v17141_v58, 4  ;;  %v13039_v39 = vpop.eup %13038 }
 0x383   : > { %v3329_v45 = vsel %vm1986_vm0, %v3203_v56, %v3204_v29  ;;  %v13041_v6 = vpop.eup %13040 }
 0x384   : > { %v3331_v24 = vsel %vm1986_vm0, %v3204_v29, %v3205_v43  ;;  %v3330_v40 = vsel %vm3209_vm2, %v17063_v28, %v3329_v45  ;;  %v4358_v36 = vpop.permute.xlu0 %4357  ;;  %v12291_v48 = vcombine.low %v13039_v39, %v13041_v6 }
 0x385   : > { %v3332_v0 = vsel %vm3209_vm2, %v3136_v21, %v3331_v24  ;;  %v17153_v14 = vpop.permute.xlu1 %4359  ;;  %3461 = vst [vmem:[#allocation2 + $0x1e0] sm:$0x44] %v3330_v40  ;;  %v4426_v13 = vrot.slane %v4358_v36, 4  ;;  %v13043_v34 = vpop.eup %13042 }
 0x386   : > { %3462 = vst [vmem:[#allocation2 + $0x1e8] sm:$0x44] %v3332_v0  ;;  %v4427_v8 = vrot.slane %v17153_v14, 4  ;;  %12419 = vst [vmem:[%s16743_s4 + $0x100] sm:$0xff] %v12291_v48  ;;  %v13045_v44 = vpop.eup %13044 }
 0x387   : > { %v4551_v56 = vsel %vm1986_vm0, %v4425_v25, %v4426_v13  ;;  %v12292_v42 = vcombine.low %v13043_v34, %v13045_v44 }
 0x388   : > { %v4553_v28 = vsel %vm1986_vm0, %v4426_v13, %v4427_v8  ;;  %v4552_v47 = vsel %vm4431_vm3, %v17076_v33, %v4551_v56  ;;  %v5578_v63 = vpop.permute.xlu0 %5577  ;;  %v8472_v35 = vld [vmem:[#allocation2 + $0x3d0] sm:$0x77] }
 0x389   : > { %v4554_v18 = vsel %vm4431_vm3, %v4358_v36, %v4553_v28  ;;  %v17165_v38 = vpop.permute.xlu1 %5579  ;;  %v8473_v5 = vld [vmem:[#allocation2 + $0x3d8] sm:$0x77]  ;;  %4683 = vst [vmem:[#allocation2 + $0x1e0] sm:$0x88] %v4552_v47  ;;  %v5646_v25 = vrot.slane %v5578_v63, 4  ;;  %v12697_v27 = vcombine.high %v8408_v30, %v8472_v35  ;;  %v12696_v50 = vcombine.low %v8408_v30, %v8472_v35  ;;  %12420 = vst [vmem:[%s16743_s4 + $0x108] sm:$0xff] %v12292_v42  ;;  %v13047_v0 = vpop.eup %13046 }
 0x38a   : > { %4684 = vst [vmem:[#allocation2 + $0x1e8] sm:$0x88] %v4554_v18  ;;  %v5647_v10 = vrot.slane %v17165_v38, 4  ;;  %v12699_v62 = vcombine.high %v8409_v3, %v8473_v5  ;;  %v12698_v33 = vcombine.low %v8409_v3, %v8473_v5  ;;  %v13049_v13 = vpop.eup %13048  ;;  %v10889_v3 = vpop.f32.mrb[72].mxu0 }
 0x38b   : > { %v5771_v17 = vsel %vm1986_vm0, %v5645_v51, %v5646_v25  ;;  %12824 = vmatprep.subr.msk.bf16.mxu0 %vm8994_vm7, %v12697_v27  ;;  %v9344_v51 = vsel %vm8994_vm7, %v12696_v50, 0  ;;  %v12293_v48 = vcombine.low %v13047_v0, %v13049_v13 }
 0x38c   : > { %v5773_v2 = vsel %vm1986_vm0, %v5646_v25, %v5647_v10  ;;  %12826 = vmatprep.subr.msk.bf16.mxu1 %vm8994_vm7, %v12699_v62  ;;  %v5772_v53 = vsel %vm5651_vm4, %v17089_v12, %v5771_v17  ;;  %v6799_v19 = vpop.permute.xlu0 %6798  ;;  %v9350_v23 = vsel %vm8994_vm7, %v12698_v33, 0  ;;  %11758 = vmatpush1.bf16.msra.mxu0 %v9344_v51  ;;  %v10848_v12 = vpop.f32.mrb[68].mxu1 }
 0x38d   : > { %v5774_v49 = vsel %vm5651_vm4, %v5578_v63, %v5773_v2  ;;  %v17180_v15 = vpop.permute.xlu1 %6800  ;;  %5903 = vst [vmem:[#allocation2 + $0x3e0] sm:$0x11] %v5772_v53  ;;  %v6867_v16 = vrot.slane %v6799_v19, 4  ;;  %11799 = vmatpush1.bf16.msra.mxu1 %v9350_v23  ;;  %13050 = vtanh.f32 %v10848_v12  ;;  %v10850_v61 = vpop.f32.mrb[69].mxu1  ;;  %12421 = vst [vmem:[%s16743_s4 + $0x110] sm:$0xff] %v12293_v48 }
 0x38e   : > { %5904 = vst [vmem:[#allocation2 + $0x3e8] sm:$0x11] %v5774_v49  ;;  %v6868_v20 = vrot.slane %v17180_v15, 4  ;;  %13052 = vtanh.f32 %v10850_v61  ;;  %v10891_v25 = vpop.f32.mrb[73].mxu0 }
 0x38f   : > { %v6992_v52 = vsel %vm1986_vm0, %v6866_v31, %v6867_v16  ;;  %12825 = vmatmul.mubr.msk.bf16.vlgmr.msra.gmra.mrb[116].mxu0 %vm8990_vm8, %v16889_v11  ;;  %13054 = vtanh.f32 %v10889_v3  ;;  %v10893_v53 = vpop.f32.mrb[74].mxu0 }
 0x390   : > { %v6994_v37 = vsel %vm1986_vm0, %v6867_v16, %v6868_v20  ;;  %v6993_v1 = vsel %vm6872_vm5, %v17105_v57, %v6992_v52  ;;  %v8020_v32 = vpop.permute.xlu0 %8019  ;;  %12827 = vmatmul.mubr.msk.bf16.vlgmr.msra.gmra.mrb[116].mxu1 %vm8990_vm8, %v16889_v11  ;;  %11871 = vmatprep.mubr.bf16.mxu0 %v13188_v41  ;;  %v10852_v57 = vpop.f32.mrb[70].mxu1  ;;  %13056 = vtanh.f32 %v10891_v25 }
 0x391   : > { %v6995_v60 = vsel %vm6872_vm5, %v6799_v19, %v6994_v37  ;;  %v17195_v26 = vpop.permute.xlu1 %8021  ;;  %7124 = vst [vmem:[#allocation2 + $0x3e0] sm:$0x22] %v6993_v1  ;;  %v8088_v31 = vrot.slane %v8020_v32, 4  ;;  %11912 = vmatprep.mubr.bf16.mxu1 %v13188_v41  ;;  %v10853_v29 = vpop.f32.mrb[71].mxu1  ;;  %v8411_v22 = vld [vmem:[#allocation2 + $0x1e8] sm:$0xff] }
 0x392   : > { %7125 = vst [vmem:[#allocation2 + $0x3e8] sm:$0x22] %v6995_v60  ;;  %v8089_v21 = vrot.slane %v17195_v26, 4  ;;  %v10930_v51 = vpop.f32.mrb[72].mxu1 }
 0x393   : > { %v8213_v54 = vsel %vm1986_vm0, %v8087_v46, %v8088_v31  ;;  %13058 = vtanh.f32 %v10930_v51  ;;  %v10932_v4 = vpop.f32.mrb[73].mxu1 }
 0x394   : > { %v8215_v11 = vsel %vm1986_vm0, %v8088_v31, %v8089_v21  ;;  %v8214_v59 = vsel %vm8093_vm6, %v17121_v7, %v8213_v54  ;;  %v3140_v24 = vpop.permute.xlu0 %3139  ;;  %13060 = vtanh.f32 %v10932_v4 }
 0x395   : > { %v8216_v45 = vsel %vm8093_vm6, %v8020_v32, %v8215_v11  ;;  %v3142_v40 = vpop.permute.xlu1 %3141  ;;  %8345 = vst [vmem:[#allocation2 + $0x3e0] sm:$0x44] %v8214_v59  ;;  %v3206_v36 = vrot.slane %v3140_v24, 4  ;;  %v10934_v32 = vpop.f32.mrb[74].mxu1 }
 0x396   : > { %8346 = vst [vmem:[#allocation2 + $0x3e8] sm:$0x44] %v8216_v45  ;;  %v3207_v39 = vrot.slane %v3142_v40, 4  ;;  %v10935_v31 = vpop.f32.mrb[75].mxu1  ;;  %v13171_v45 = vld [vmem:[%s17299_s1] sm:$0x3] }
 0x397   : > { %v3333_v46 = vsel %vm1986_vm0, %v3205_v43, %v3206_v36  ;;  %v13051_v47 = vpop.eup %13050 }
 0x398   : > { %v3335_v6 = vsel %vm1986_vm0, %v3206_v36, %v3207_v39  ;;  %v3334_v7 = vsel %vm3209_vm2, %v17141_v58, %v3333_v46  ;;  %v4362_v28 = vpop.permute.xlu0 %4361  ;;  %v13053_v35 = vpop.eup %13052  ;;  %v8410_v58 = vld [vmem:[#allocation2 + $0x1e0] sm:$0xff] }
 0x399   : > { %v3336_v56 = vsel %vm3209_vm2, %v3140_v24, %v3335_v6  ;;  %v4364_v30 = vpop.permute.xlu1 %4363  ;;  %3463 = vst [vmem:[#allocation2 + $0x1f0] sm:$0x44] %v3334_v7  ;;  %v4428_v18 = vrot.slane %v4362_v28, 4  ;;  %v12294_v34 = vcombine.low %v13051_v47, %v13053_v35  ;;  %v13055_v24 = vpop.eup %13054 }
 0x39a   : > { %3464 = vst [vmem:[#allocation2 + $0x1f8] sm:$0x44] %v3336_v56  ;;  %v4429_v63 = vrot.slane %v4364_v30, 4  ;;  %v11012_v48 = vpop.f32.mrb[76].mxu1 }
 0x39b   : > { %v4555_v43 = vsel %vm1986_vm0, %v4427_v8, %v4428_v18  ;;  %12422 = vst [vmem:[%s16743_s4 + $0x118] sm:$0xff] %v12294_v34 }
 0x39c   : > { %v4557_v5 = vsel %vm1986_vm0, %v4428_v18, %v4429_v63  ;;  %v4556_v27 = vsel %vm4431_vm3, %v17153_v14, %v4555_v43  ;;  %v5582_v44 = vpop.permute.xlu0 %5581  ;;  %v8474_v33 = vld [vmem:[#allocation2 + $0x3e0] sm:$0x77]  ;;  %v10894_v14 = vpop.f32.mrb[75].mxu0 }
 0x39d   : > { %v4558_v62 = vsel %vm4431_vm3, %v4362_v28, %v4557_v5  ;;  %v5584_v50 = vpop.permute.xlu1 %5583  ;;  %v8475_v17 = vld [vmem:[#allocation2 + $0x3e8] sm:$0x77]  ;;  %4685 = vst [vmem:[#allocation2 + $0x1f0] sm:$0x88] %v4556_v27  ;;  %v5648_v8 = vrot.slane %v5582_v44, 4  ;;  %v12701_v42 = vcombine.high %v8410_v58, %v8474_v33  ;;  %v12700_v49 = vcombine.low %v8410_v58, %v8474_v33  ;;  %v10971_v7 = vpop.f32.mrb[76].mxu0 }
 0x39e   : > { %4686 = vst [vmem:[#allocation2 + $0x1f8] sm:$0x88] %v4558_v62  ;;  %v5649_v2 = vrot.slane %v5584_v50, 4  ;;  %v12703_v55 = vcombine.high %v8411_v22, %v8475_v17  ;;  %v12702_v19 = vcombine.low %v8411_v22, %v8475_v17  ;;  %13062 = vtanh.f32 %v10971_v7  ;;  %v10973_v56 = vpop.f32.mrb[77].mxu0  ;;  %v11014_v18 = vpop.f32.mrb[77].mxu1 }
 0x39f   : > { %v5775_v23 = vsel %vm1986_vm0, %v5647_v10, %v5648_v8  ;;  %12828 = vmatprep.subr.msk.bf16.mxu0 %vm8994_vm7, %v12701_v42  ;;  %v9356_v61 = vsel %vm8994_vm7, %v12700_v49, 0  ;;  %13064 = vtanh.f32 %v10973_v56  ;;  %v11016_v3 = vpop.f32.mrb[78].mxu1 }
 0x3a0   : > { %v5777_v16 = vsel %vm1986_vm0, %v5648_v8, %v5649_v2  ;;  %12830 = vmatprep.subr.msk.bf16.mxu1 %vm8994_vm7, %v12703_v55  ;;  %v5776_v12 = vsel %vm5651_vm4, %v17165_v38, %v5775_v23  ;;  %v6803_v52 = vpop.permute.xlu0 %6802  ;;  %v9362_v1 = vsel %vm8994_vm7, %v12702_v19, 0  ;;  %11840 = vmatpush1.bf16.msra.mxu0 %v9356_v61  ;;  %13066 = vtanh.f32 %v11012_v48  ;;  %v11017_v25 = vpop.f32.mrb[79].mxu1 }
 0x3a1   : > { %v5778_v9 = vsel %vm5651_vm4, %v5582_v44, %v5777_v16  ;;  %v6805_v37 = vpop.permute.xlu1 %6804  ;;  %5905 = vst [vmem:[#allocation2 + $0x3f0] sm:$0x11] %v5776_v12  ;;  %v6869_v10 = vrot.slane %v6803_v52, 4  ;;  %11881 = vmatpush1.bf16.msra.mxu1 %v9362_v1  ;;  %13068 = vtanh.f32 %v11014_v18 }
 0x3a2   : > { %5906 = vst [vmem:[#allocation2 + $0x3f8] sm:$0x11] %v5778_v9  ;;  %v6870_v60 = vrot.slane %v6805_v37, 4 }
 0x3a3   : > { %v6996_v38 = vsel %vm1986_vm0, %v6868_v20, %v6869_v10  ;;  %12829 = vmatmul.mubr.msk.bf16.vlgmr.msra.gmra.mrb[120].mxu0 %vm8990_vm8, %v13171_v45 }
 0x3a4   : > { %v6998_v57 = vsel %vm1986_vm0, %v6869_v10, %v6870_v60  ;;  %v6997_v29 = vsel %vm6872_vm5, %v17180_v15, %v6996_v38  ;;  %v8024_v11 = vpop.permute.xlu0 %8023  ;;  %12831 = vmatmul.mubr.msk.bf16.vlgmr.msra.gmra.mrb[120].mxu1 %vm8990_vm8, %v13171_v45  ;;  %11953 = vmatprep.mubr.bf16.mxu0 %v13188_v41  ;;  %v13057_v15 = vpop.eup %13056  ;;  %v8412_v47 = vld [vmem:[#allocation2 + $0x1f0] sm:$0xff] }
 0x3a5   : > { %v6999_v54 = vsel %vm6872_vm5, %v6803_v52, %v6998_v57  ;;  %v8026_v59 = vpop.permute.xlu1 %8025  ;;  %7126 = vst [vmem:[#allocation2 + $0x3f0] sm:$0x22] %v6997_v29  ;;  %v8090_v20 = vrot.slane %v8024_v11, 4  ;;  %11994 = vmatprep.mubr.bf16.mxu1 %v13188_v41  ;;  %v12295_v39 = vcombine.low %v13055_v24, %v13057_v15  ;;  %v13059_v6 = vpop.eup %13058  ;;  %v8413_v63 = vld [vmem:[#allocation2 + $0x1f8] sm:$0xff] }
 0x3a6   : > { %7127 = vst [vmem:[#allocation2 + $0x3f8] sm:$0x22] %v6999_v54  ;;  %v8091_v40 = vrot.slane %v8026_v59, 4  ;;  %v13061_v41 = vpop.eup %13060 }
 0x3a7   : > { %v8217_v0 = vsel %vm1986_vm0, %v8089_v21, %v8090_v20  ;;  %12423 = vst [vmem:[%s16743_s4 + $0x120] sm:$0xff] %v12295_v39  ;;  %v12296_v28 = vcombine.low %v13059_v6, %v13061_v41  ;;  %v10975_v21 = vpop.f32.mrb[78].mxu0 }
 0x3a8   : > { %v8219_v36 = vsel %vm1986_vm0, %v8090_v20, %v8091_v40  ;;  %v8218_v13 = vsel %vm8093_vm6, %v17195_v26, %v8217_v0  ;;  %v10976_v30 = vpop.f32.mrb[79].mxu0  ;;  %v13063_v44 = vpop.eup %13062 }
 0x3a9   : > { %v8220_v46 = vsel %vm8093_vm6, %v8024_v11, %v8219_v36  ;;  %8347 = vst [vmem:[#allocation2 + $0x3f0] sm:$0x44] %v8218_v13  ;;  %12424 = vst [vmem:[%s16743_s4 + $0x128] sm:$0xff] %v12296_v28  ;;  %v13065_v50 = vpop.eup %13064  ;;  %v11053_v8 = vpop.f32.mrb[80].mxu0 }
 0x3aa   : > { %8348 = vst [vmem:[#allocation2 + $0x3f8] sm:$0x44] %v8220_v46  ;;  %v12297_v33 = vcombine.low %v13063_v44, %v13065_v50  ;;  %v13067_v22 = vpop.eup %13066  ;;  %13070 = vtanh.f32 %v11053_v8  ;;  %v11055_v42 = vpop.f32.mrb[81].mxu0 }
 0x3ab   : > { %v13069_v17 = vpop.eup %13068  ;;  %13072 = vtanh.f32 %v11055_v42  ;;  %v11057_v55 = vpop.f32.mrb[82].mxu0 }
 0x3ac   : > { %12425 = vst [vmem:[%s16743_s4 + $0x130] sm:$0xff] %v12297_v33  ;;  %v12298_v2 = vcombine.low %v13067_v22, %v13069_v17  ;;  %v11058_v53 = vpop.f32.mrb[83].mxu0  ;;  %v11094_v49 = vpop.f32.mrb[80].mxu1 }
 0x3ad   : > { %13074 = vtanh.f32 %v11094_v49  ;;  %v11096_v19 = vpop.f32.mrb[81].mxu1 }
 0x3ae   : > { %12426 = vst [vmem:[%s16743_s4 + $0x138] sm:$0xff] %v12298_v2  ;;  %13076 = vtanh.f32 %v11096_v19  ;;  %v11098_v51 = vpop.f32.mrb[82].mxu1 }
 0x3af   : > { %v11099_v14 = vpop.f32.mrb[83].mxu1 }
 0x3b0   : > { %v8476_v26 = vld [vmem:[#allocation2 + $0x3f0] sm:$0x77] }
 0x3b1   : > { %v8477_v35 = vld [vmem:[#allocation2 + $0x3f8] sm:$0x77]  ;;  %v12705_v43 = vcombine.high %v8412_v47, %v8476_v26  ;;  %v12704_v58 = vcombine.low %v8412_v47, %v8476_v26 }
 0x3b2   : > { %v12707_v5 = vcombine.high %v8413_v63, %v8477_v35  ;;  %v12706_v34 = vcombine.low %v8413_v63, %v8477_v35 }
 0x3b3   : > { %12832 = vmatprep.subr.msk.bf16.mxu0 %vm8994_vm7, %v12705_v43  ;;  %v9368_v27 = vsel %vm8994_vm7, %v12704_v58, 0 }
 0x3b4   : > { %12834 = vmatprep.subr.msk.bf16.mxu1 %vm8994_vm7, %v12707_v5  ;;  %v9374_v62 = vsel %vm8994_vm7, %v12706_v34, 0  ;;  %11922 = vmatpush1.bf16.msra.mxu0 %v9368_v27  ;;  %v13071_v23 = vpop.eup %13070 }
 0x3b5   : > { %11963 = vmatpush1.bf16.msra.mxu1 %v9374_v62  ;;  %v13073_v16 = vpop.eup %13072 }
 0x3b6   : > { %v12299_v4 = vcombine.low %v13071_v23, %v13073_v16  ;;  %v11135_v52 = vpop.f32.mrb[84].mxu0 }
 0x3b7   : > { %12833 = vmatmul.mubr.msk.bf16.vlgmr.msra.gmra.mrb[124].mxu0 %vm8990_vm8, %v13171_v45  ;;  %v13075_v12 = vpop.eup %13074  ;;  %13078 = vtanh.f32 %v11135_v52  ;;  %v11137_v61 = vpop.f32.mrb[85].mxu0 }
 0x3b8   : > { %12835 = vmatmul.mubr.msk.bf16.vlgmr.msra.gmra.mrb[124].mxu1 %vm8990_vm8, %v13171_v45  ;;  %12427 = vst [vmem:[%s16743_s4 + $0x140] sm:$0xff] %v12299_v4  ;;  %v13077_v9 = vpop.eup %13076  ;;  %13080 = vtanh.f32 %v11137_v61  ;;  %v11139_v1 = vpop.f32.mrb[86].mxu0 }
 0x3b9   : > { %v12300_v37 = vcombine.low %v13075_v12, %v13077_v9  ;;  %v11140_v10 = vpop.f32.mrb[87].mxu0 }
 0x3ba   : > { %v11176_v60 = vpop.f32.mrb[84].mxu1 }
 0x3bb   : > { %12428 = vst [vmem:[%s16743_s4 + $0x148] sm:$0xff] %v12300_v37  ;;  %13082 = vtanh.f32 %v11176_v60  ;;  %v11178_v32 = vpop.f32.mrb[85].mxu1 }
 0x3bc   : > { %13084 = vtanh.f32 %v11178_v32  ;;  %v11180_v31 = vpop.f32.mrb[86].mxu1 }
 0x3bd   : > { %v11181_v38 = vpop.f32.mrb[87].mxu1 }
 0x3c1   : > { %v13079_v57 = vpop.eup %13078 }
 0x3c2   : > { %v13081_v29 = vpop.eup %13080 }
 0x3c3   : > { %v12301_v54 = vcombine.low %v13079_v57, %v13081_v29 }
 0x3c5   : > { %v13083_v11 = vpop.eup %13082  ;;  %12429 = vst [vmem:[%s16743_s4 + $0x150] sm:$0xff] %v12301_v54 }
 0x3c6   : > { %v13085_v59 = vpop.eup %13084  ;;  %v11217_v45 = vpop.f32.mrb[88].mxu0 }
 0x3c7   : > { %v12302_v24 = vcombine.low %v13083_v11, %v13085_v59  ;;  %13086 = vtanh.f32 %v11217_v45  ;;  %v11219_v20 = vpop.f32.mrb[89].mxu0 }
 0x3c8   : > { %13088 = vtanh.f32 %v11219_v20  ;;  %v11221_v40 = vpop.f32.mrb[90].mxu0 }
 0x3c9   : > { %12430 = vst [vmem:[%s16743_s4 + $0x158] sm:$0xff] %v12302_v24  ;;  %v11222_v15 = vpop.f32.mrb[91].mxu0 }
 0x3ca   : > { %v11258_v0 = vpop.f32.mrb[88].mxu1 }
 0x3cb   : > { %13090 = vtanh.f32 %v11258_v0  ;;  %v11260_v36 = vpop.f32.mrb[89].mxu1 }
 0x3cc   : > { %13092 = vtanh.f32 %v11260_v36  ;;  %v11262_v39 = vpop.f32.mrb[90].mxu1 }
 0x3cd   : > { %v11263_v13 = vpop.f32.mrb[91].mxu1 }
 0x3d1   : > { %v13087_v46 = vpop.eup %13086 }
 0x3d2   : > { %v13089_v6 = vpop.eup %13088 }
 0x3d3   : > { %v12303_v7 = vcombine.low %v13087_v46, %v13089_v6 }
 0x3d5   : > { %v13091_v41 = vpop.eup %13090  ;;  %12431 = vst [vmem:[%s16743_s4 + $0x160] sm:$0xff] %v12303_v7 }
 0x3d6   : > { %v13093_v56 = vpop.eup %13092  ;;  %v11299_v28 = vpop.f32.mrb[92].mxu0 }
 0x3d7   : > { %v12304_v21 = vcombine.low %v13091_v41, %v13093_v56  ;;  %13094 = vtanh.f32 %v11299_v28  ;;  %v11301_v30 = vpop.f32.mrb[93].mxu0 }
 0x3d8   : > { %13096 = vtanh.f32 %v11301_v30  ;;  %v11303_v48 = vpop.f32.mrb[94].mxu0 }
 0x3d9   : > { %12432 = vst [vmem:[%s16743_s4 + $0x168] sm:$0xff] %v12304_v21  ;;  %v11304_v47 = vpop.f32.mrb[95].mxu0 }
 0x3da   : > { %v11340_v18 = vpop.f32.mrb[92].mxu1 }
 0x3db   : > { %13098 = vtanh.f32 %v11340_v18  ;;  %v11342_v26 = vpop.f32.mrb[93].mxu1 }
 0x3dc   : > { %13100 = vtanh.f32 %v11342_v26  ;;  %v11344_v63 = vpop.f32.mrb[94].mxu1 }
 0x3dd   : > { %v11345_v35 = vpop.f32.mrb[95].mxu1 }
 0x3e1   : > { %v13095_v3 = vpop.eup %13094 }
 0x3e2   : > { %v13097_v43 = vpop.eup %13096 }
 0x3e3   : > { %v12305_v5 = vcombine.low %v13095_v3, %v13097_v43 }
 0x3e5   : > { %v13099_v58 = vpop.eup %13098  ;;  %12433 = vst [vmem:[%s16743_s4 + $0x170] sm:$0xff] %v12305_v5 }
 0x3e6   : > { %v13101_v34 = vpop.eup %13100 }
 0x3e7   : > { %v12306_v25 = vcombine.low %v13099_v58, %v13101_v34 }
 0x3e9   : > { %12434 = vst [vmem:[%s16743_s4 + $0x178] sm:$0xff] %v12306_v25 }
 0x3ea   : > { %v11381_v27 = vpop.f32.mrb[96].mxu0 }
 0x3eb   : > { %v11422_v62 = vpop.f32.mrb[96].mxu1  ;;  %13102 = vtanh.f32 %v11381_v27  ;;  %v11383_v44 = vpop.f32.mrb[97].mxu0 }
 0x3ec   : > { %v11424_v50 = vpop.f32.mrb[97].mxu1  ;;  %13104 = vtanh.f32 %v11422_v62  ;;  %v11385_v33 = vpop.f32.mrb[98].mxu0 }
 0x3ed   : > { %v11426_v22 = vpop.f32.mrb[98].mxu1  ;;  %13106 = vtanh.f32 %v11383_v44  ;;  %v11386_v17 = vpop.f32.mrb[99].mxu0 }
 0x3ee   : > { %v11427_v8 = vpop.f32.mrb[99].mxu1  ;;  %13108 = vtanh.f32 %v11424_v50 }
 0x3f5   : > { %v13103_v2 = vpop.eup %13102 }
 0x3f6   : > { %v13105_v42 = vpop.eup %13104 }
 0x3f7   : > { %v13107_v55 = vpop.eup %13106 }
 0x3f8   : > { %v13109_v53 = vpop.eup %13108  ;;  %v12307_v49 = vcombine.low %v13103_v2, %v13107_v55 }
 0x3f9   : > { %v12308_v19 = vcombine.low %v13105_v42, %v13109_v53 }
 0x3fa   : > { %12435 = vst [vmem:[%s16743_s4 + $0x180] sm:$0xff] %v12307_v49 }
 0x3fb   : > { %12436 = vst [vmem:[%s16743_s4 + $0x188] sm:$0xff] %v12308_v19 }
 0x400   : > { %v11463_v51 = vpop.f32.mrb[100].mxu0  ;;  %v11504_v14 = vpop.f32.mrb[100].mxu1 }
 0x401   : > { %13110 = vtanh.f32 %v11463_v51  ;;  %v11465_v23 = vpop.f32.mrb[101].mxu0  ;;  %v11506_v16 = vpop.f32.mrb[101].mxu1 }
 0x402   : > { %13112 = vtanh.f32 %v11504_v14  ;;  %v11467_v4 = vpop.f32.mrb[102].mxu0  ;;  %v11508_v12 = vpop.f32.mrb[102].mxu1 }
 0x403   : > { %13114 = vtanh.f32 %v11465_v23  ;;  %v11468_v9 = vpop.f32.mrb[103].mxu0  ;;  %v11509_v52 = vpop.f32.mrb[103].mxu1 }
 0x404   : > { %13116 = vtanh.f32 %v11506_v16 }
 0x40b   : > { %v13111_v37 = vpop.eup %13110 }
 0x40c   : > { %v13113_v61 = vpop.eup %13112 }
 0x40d   : > { %v13115_v1 = vpop.eup %13114 }
 0x40e   : > { %v13117_v10 = vpop.eup %13116  ;;  %v12309_v60 = vcombine.low %v13111_v37, %v13115_v1 }
 0x40f   : > { %v12310_v32 = vcombine.low %v13113_v61, %v13117_v10 }
 0x410   : > { %12437 = vst [vmem:[%s16743_s4 + $0x190] sm:$0xff] %v12309_v60 }
 0x411   : > { %12438 = vst [vmem:[%s16743_s4 + $0x198] sm:$0xff] %v12310_v32 }
 0x417   : > { %v11586_v38 = vpop.f32.mrb[104].mxu1 }
 0x418   : > { %v11588_v29 = vpop.f32.mrb[105].mxu1 }
 0x419   : > { %v11545_v31 = vpop.f32.mrb[104].mxu0  ;;  %v11590_v11 = vpop.f32.mrb[106].mxu1 }
 0x41a   : > { %13118 = vtanh.f32 %v11545_v31  ;;  %v11547_v57 = vpop.f32.mrb[105].mxu0  ;;  %v11591_v45 = vpop.f32.mrb[107].mxu1 }
 0x41b   : > { %13120 = vtanh.f32 %v11586_v38  ;;  %v11549_v54 = vpop.f32.mrb[106].mxu0 }
 0x41c   : > { %13122 = vtanh.f32 %v11547_v57  ;;  %v11550_v59 = vpop.f32.mrb[107].mxu0 }
 0x41d   : > { %13124 = vtanh.f32 %v11588_v29 }
 0x424   : > { %v13119_v24 = vpop.eup %13118 }
 0x425   : > { %v13121_v20 = vpop.eup %13120 }
 0x426   : > { %v13123_v40 = vpop.eup %13122 }
 0x427   : > { %v13125_v15 = vpop.eup %13124  ;;  %v12311_v0 = vcombine.low %v13119_v24, %v13123_v40 }
 0x428   : > { %v12312_v36 = vcombine.low %v13121_v20, %v13125_v15 }
 0x429   : > { %12439 = vst [vmem:[%s16743_s4 + $0x1a0] sm:$0xff] %v12311_v0 }
 0x42a   : > { %12440 = vst [vmem:[%s16743_s4 + $0x1a8] sm:$0xff] %v12312_v36 }
 0x433   : > { %v11668_v13 = vpop.f32.mrb[108].mxu1 }
 0x434   : > { %v11670_v6 = vpop.f32.mrb[109].mxu1 }
 0x435   : > { %v11627_v39 = vpop.f32.mrb[108].mxu0  ;;  %v11672_v41 = vpop.f32.mrb[110].mxu1 }
 0x436   : > { %13126 = vtanh.f32 %v11627_v39  ;;  %v11629_v46 = vpop.f32.mrb[109].mxu0  ;;  %v11673_v28 = vpop.f32.mrb[111].mxu1 }
 0x437   : > { %13128 = vtanh.f32 %v11668_v13  ;;  %v11631_v7 = vpop.f32.mrb[110].mxu0 }
 0x438   : > { %13130 = vtanh.f32 %v11629_v46  ;;  %v11632_v56 = vpop.f32.mrb[111].mxu0 }
 0x439   : > { %13132 = vtanh.f32 %v11670_v6 }
 0x440   : > { %v13127_v21 = vpop.eup %13126 }
 0x441   : > { %v13129_v30 = vpop.eup %13128 }
 0x442   : > { %v13131_v48 = vpop.eup %13130 }
 0x443   : > { %v13133_v47 = vpop.eup %13132  ;;  %v12313_v18 = vcombine.low %v13127_v21, %v13131_v48 }
 0x444   : > { %v12314_v26 = vcombine.low %v13129_v30, %v13133_v47 }
 0x445   : > { %12441 = vst [vmem:[%s16743_s4 + $0x1b0] sm:$0xff] %v12313_v18 }
 0x446   : > { %12442 = vst [vmem:[%s16743_s4 + $0x1b8] sm:$0xff] %v12314_v26 }
 0x44e   : > { %v11709_v63 = vpop.f32.mrb[112].mxu0  ;;  %v11750_v35 = vpop.f32.mrb[112].mxu1 }
 0x44f   : > { %13134 = vtanh.f32 %v11709_v63  ;;  %v11711_v3 = vpop.f32.mrb[113].mxu0  ;;  %v11752_v43 = vpop.f32.mrb[113].mxu1 }
 0x450   : > { %13136 = vtanh.f32 %v11750_v35  ;;  %v11713_v5 = vpop.f32.mrb[114].mxu0  ;;  %v11754_v58 = vpop.f32.mrb[114].mxu1 }
 0x451   : > { %13138 = vtanh.f32 %v11711_v3  ;;  %v11714_v34 = vpop.f32.mrb[115].mxu0  ;;  %v11755_v25 = vpop.f32.mrb[115].mxu1 }
 0x452   : > { %13140 = vtanh.f32 %v11752_v43 }
 0x459   : > { %v13135_v27 = vpop.eup %13134 }
 0x45a   : > { %v13137_v62 = vpop.eup %13136 }
 0x45b   : > { %v13139_v44 = vpop.eup %13138 }
 0x45c   : > { %v13141_v50 = vpop.eup %13140  ;;  %v12315_v33 = vcombine.low %v13135_v27, %v13139_v44 }
 0x45d   : > { %v12316_v22 = vcombine.low %v13137_v62, %v13141_v50 }
 0x45e   : > { %12443 = vst [vmem:[%s16743_s4 + $0x1c0] sm:$0xff] %v12315_v33 }
 0x45f   : > { %12444 = vst [vmem:[%s16743_s4 + $0x1c8] sm:$0xff] %v12316_v22 }
 0x462   : > { %v11791_v17 = vpop.f32.mrb[116].mxu0 }
 0x463   : > { %v11832_v8 = vpop.f32.mrb[116].mxu1  ;;  %13142 = vtanh.f32 %v11791_v17  ;;  %v11793_v2 = vpop.f32.mrb[117].mxu0 }
 0x464   : > { %v11834_v42 = vpop.f32.mrb[117].mxu1  ;;  %13144 = vtanh.f32 %v11832_v8  ;;  %v11795_v55 = vpop.f32.mrb[118].mxu0 }
 0x465   : > { %v11836_v53 = vpop.f32.mrb[118].mxu1  ;;  %13146 = vtanh.f32 %v11793_v2  ;;  %v11796_v49 = vpop.f32.mrb[119].mxu0 }
 0x466   : > { %v11837_v19 = vpop.f32.mrb[119].mxu1  ;;  %13148 = vtanh.f32 %v11834_v42 }
 0x46d   : > { %v13143_v51 = vpop.eup %13142 }
 0x46e   : > { %v13145_v14 = vpop.eup %13144 }
 0x46f   : > { %v13147_v23 = vpop.eup %13146 }
 0x470   : > { %v13149_v16 = vpop.eup %13148  ;;  %v12317_v4 = vcombine.low %v13143_v51, %v13147_v23 }
 0x471   : > { %v12318_v12 = vcombine.low %v13145_v14, %v13149_v16 }
 0x472   : > { %12445 = vst [vmem:[%s16743_s4 + $0x1d0] sm:$0xff] %v12317_v4 }
 0x473   : > { %12446 = vst [vmem:[%s16743_s4 + $0x1d8] sm:$0xff] %v12318_v12 }
 0x476   : > { %v11873_v9 = vpop.f32.mrb[120].mxu0 }
 0x477   : > { %v11914_v52 = vpop.f32.mrb[120].mxu1  ;;  %13150 = vtanh.f32 %v11873_v9  ;;  %v11875_v37 = vpop.f32.mrb[121].mxu0 }
 0x478   : > { %v11916_v61 = vpop.f32.mrb[121].mxu1  ;;  %13152 = vtanh.f32 %v11914_v52  ;;  %v11877_v1 = vpop.f32.mrb[122].mxu0 }
 0x479   : > { %v11918_v10 = vpop.f32.mrb[122].mxu1  ;;  %13154 = vtanh.f32 %v11875_v37  ;;  %v11878_v60 = vpop.f32.mrb[123].mxu0 }
 0x47a   : > { %v11919_v32 = vpop.f32.mrb[123].mxu1  ;;  %13156 = vtanh.f32 %v11916_v61 }
 0x481   : > { %v13151_v31 = vpop.eup %13150 }
 0x482   : > { %v13153_v38 = vpop.eup %13152 }
 0x483   : > { %v13155_v57 = vpop.eup %13154 }
 0x484   : > { %v13157_v29 = vpop.eup %13156  ;;  %v12319_v54 = vcombine.low %v13151_v31, %v13155_v57 }
 0x485   : > { %v12320_v11 = vcombine.low %v13153_v38, %v13157_v29 }
 0x486   : > { %12447 = vst [vmem:[%s16743_s4 + $0x1e0] sm:$0xff] %v12319_v54 }
 0x487   : > { %12448 = vst [vmem:[%s16743_s4 + $0x1e8] sm:$0xff] %v12320_v11 }
 0x48a   : > { %v11955_v59 = vpop.f32.mrb[124].mxu0 }
 0x48b   : > { %v11996_v45 = vpop.f32.mrb[124].mxu1  ;;  %13158 = vtanh.f32 %v11955_v59  ;;  %v11957_v24 = vpop.f32.mrb[125].mxu0 }
 0x48c   : > { %v11998_v20 = vpop.f32.mrb[125].mxu1  ;;  %13160 = vtanh.f32 %v11996_v45  ;;  %v11959_v40 = vpop.f32.mrb[126].mxu0 }
 0x48d   : > { %v12000_v15 = vpop.f32.mrb[126].mxu1  ;;  %13162 = vtanh.f32 %v11957_v24  ;;  %v11960_v0 = vpop.f32.mrb[127].mxu0 }
 0x48e   : > { %v12001_v36 = vpop.f32.mrb[127].mxu1  ;;  %13164 = vtanh.f32 %v11998_v20 }
 0x495   : > { %v13159_v39 = vpop.eup %13158 }
 0x496   : > { %v13161_v13 = vpop.eup %13160 }
 0x497   : > { %v13163_v46 = vpop.eup %13162 }
 0x498   : > { %v13165_v6 = vpop.eup %13164  ;;  %v12321_v7 = vcombine.low %v13159_v39, %v13163_v46 }
 0x499   : > { %v12322_v41 = vcombine.low %v13161_v13, %v13165_v6 }
 0x49a   : > { %12449 = vst [vmem:[%s16743_s4 + $0x1f0] sm:$0xff] %v12321_v7 }
 0x49b   : > { %12450 = vst [vmem:[%s16743_s4 + $0x1f8] sm:$0xff] %v12322_v41 }
 0x49c PF: > { %s12_s9 = sadd.s32 1, %s13179_s9  }
 0x49d   : > { %p9_p4 = scmp.ge.s32.totalorder %s12_s9, 4  }
 0x49f   :  { %11 = sbr.rel (!%p9_p4) target bundleno = 1 (0x1), region = 58 }

</bundles_post_ra>
